<compile_context>
chip_gen: v6e
topology: v6e:2x2x1
jax: 0.10.0
libtpu: 0.0.40
codegen_flags: <defaults>
</compile_context>

<pallas_src>
import functools
import math

import jax
import jax.numpy as jnp
from jax.experimental import pallas as pl
from jax.experimental.pallas import tpu as pltpu


MM_DTYPE = jnp.bfloat16   # MXU operand dtype; accumulation stays f32.


# ------------------------------ Pallas kernel -------------------------------

def _fused_block_kernel(x_ref, lin_w_ref, lin_b_ref, wqkv_ref, bqkv_ref,
                        out_w_ref, out_b_ref, w12_ref, o_ref, attn_ref,
                        *, num_heads, num_layers, batch_block, seq_len):
    """One grid program = `batch_block` batch elements, activation stays in
    VMEM/vregs for the whole forward (input linear + all transformer layers)."""
    C = x_ref.shape[-1]
    hd = C // num_heads
    S = seq_len

    def mm(a, w):
        # bf16 MXU operands, f32 accumulation; vector math stays f32.
        return jnp.dot(a.astype(w.dtype), w, preferred_element_type=jnp.float32)

    x = x_ref[...].astype(jnp.float32)                 # (batch_block*S, C)
    # p = p + self.linear(p)   (per-position Linear -> merged-batch matmul)
    x = x + (mm(x, lin_w_ref[...]) + lin_b_ref[...])

    for l in range(num_layers):                        # static unroll over layers
        # Folded (q/k/v Linear + MHA in_proj) as one (rows, 3C) projection.
        # The attention scale is pre-folded into the q third of wqkv/bqkv.
        # Single bf16 cast of the whole qkv tensor per layer.
        qkv = (mm(x, wqkv_ref[l]) + bqkv_ref[l]).astype(MM_DTYPE)   # (rows, 3C)

        # Attention is per (batch element, head); static unroll, no grid steps.
        for b in range(batch_block):
            r0 = b * S
            for h in range(num_heads):
                c0 = h * hd
                q_h = qkv[r0:r0 + S, c0:c0 + hd]                       # (S, hd) bf16
                k_h = qkv[r0:r0 + S, C + c0:C + c0 + hd]
                v_h = qkv[r0:r0 + S, 2 * C + c0:2 * C + c0 + hd]
                # scores = q_scaled @ k^T   (contraction on head dim, no transpose op)
                s = jax.lax.dot_general(
                    q_h, k_h, (((1,), (1,)), ((), ())),
                    preferred_element_type=jnp.float32)                # (S, S) f32
                s = s - jnp.max(s, axis=-1, keepdims=True)
                p = jnp.exp(s)
                p = p * pl.reciprocal(jnp.sum(p, axis=-1, keepdims=True),
                                      approx=True)
                # Write this head's output straight into the VMEM scratch at its
                # static column offset (no Python head list, no lane concat).
                attn_ref[r0:r0 + S, c0:c0 + hd] = jnp.dot(
                    p.astype(MM_DTYPE), v_h, preferred_element_type=jnp.float32)

        # MHA out_proj (bias) + residual -- one full-M matmul over the merged rows.
        x = (mm(attn_ref[...], out_w_ref[l]) + out_b_ref[l]) + x
        # x = fc2(fc1(x)) + x  ->  x @ (w1 @ w2) + x  (pre-folded, exact).
        x = mm(x, w12_ref[l]) + x

    o_ref[...] = x.astype(o_ref.dtype)


# --------------------------- parameter init / fold ---------------------------

def _init_w(key, cin, cout):
    # PyTorch-Linear-like uniform(-1/sqrt(cin), 1/sqrt(cin)), stored transposed
    # as (cin, cout) so the kernel computes x @ w.
    bound = 1.0 / math.sqrt(cin)
    return jax.random.uniform(key, (cin, cout), jnp.float32, -bound, bound)


def _init_b(key, cin, cout):
    bound = 1.0 / math.sqrt(cin)
    return jax.random.uniform(key, (cout,), jnp.float32, -bound, bound)


def init_params(key, c, num_layers):
    keys = jax.random.split(key, 2 + num_layers)
    params = {
        "lin_w": _init_w(keys[0], c, c),   # self.linear (with bias)
        "lin_b": _init_b(keys[1], c, c),
        "layers": [],
    }
    for l in range(num_layers):
        lk = jax.random.split(keys[2 + l], 14)
        params["layers"].append({
            # outer q/k/v Linear(c, c, bias=False)
            "wq": _init_w(lk[0], c, c),
            "wk": _init_w(lk[1], c, c),
            "wv": _init_w(lk[2], c, c),
            # nn.MultiheadAttention in_proj (weight + bias) split per q/k/v
            "in_wq": _init_w(lk[3], c, c), "in_bq": _init_b(lk[4], c, c),
            "in_wk": _init_w(lk[5], c, c), "in_bk": _init_b(lk[6], c, c),
            "in_wv": _init_w(lk[7], c, c), "in_bv": _init_b(lk[8], c, c),
            # nn.MultiheadAttention out_proj (weight + bias)
            "out_w": _init_w(lk[9], c, c), "out_b": _init_b(lk[10], c, c),
            # fc1 / fc2 Linear(c, c, bias=False)
            "w1": _init_w(lk[11], c, c),
            "w2": _init_w(lk[12], c, c),
        })
    return params


def fold_params(params, num_heads):
    """Fold (q/k/v Linear . in_proj), the attention scale, and (fc1 . fc2).

    All folding is done once in plain jnp (f32); matmul weights are then cast
    to bf16 for the MXU, biases stay f32 (added on the VPU inside the kernel).
    """
    c = params["lin_w"].shape[0]
    scale = 1.0 / math.sqrt(c // num_heads)
    lps = params["layers"]
    # q path carries the attention scale (exact: (q*s) @ k^T == (q @ k^T)*s).
    wq = jnp.stack([(lp["wq"] @ lp["in_wq"]) * scale for lp in lps])     # (L, C, C)
    wk = jnp.stack([lp["wk"] @ lp["in_wk"] for lp in lps])
    wv = jnp.stack([lp["wv"] @ lp["in_wv"] for lp in lps])
    wqkv = jnp.concatenate([wq, wk, wv], axis=-1)                        # (L, C, 3C)
    bqkv = jnp.stack([jnp.concatenate([lp["in_bq"] * scale, lp["in_bk"],
                                       lp["in_bv"]]) for lp in lps])[:, None, :]
    out_w = jnp.stack([lp["out_w"] for lp in lps])                       # (L, C, C)
    out_b = jnp.stack([lp["out_b"] for lp in lps])[:, None, :]           # (L, 1, C)
    # fc2(fc1(x)) has no bias / activation -> single pre-multiplied matrix.
    w12 = jnp.stack([lp["w1"] @ lp["w2"] for lp in lps])                 # (L, C, C)
    return {
        "lin_w": params["lin_w"].astype(MM_DTYPE),
        "lin_b": params["lin_b"][None, :].astype(jnp.float32),
        "wqkv": wqkv.astype(MM_DTYPE),
        "bqkv": bqkv.astype(jnp.float32),
        "out_w": out_w.astype(MM_DTYPE),
        "out_b": out_b.astype(jnp.float32),
        "w12": w12.astype(MM_DTYPE),
    }


# ------------------------------ forward wrapper ------------------------------

def _num_programs(batch):
    """2 programs on v7x (2 TensorCores/chip) so both cores get work; otherwise
    1 program so every dense matmul sees the full merged M = B*S rows."""
    try:
        kind = jax.devices()[0].device_kind.lower()
    except Exception:
        kind = ""
    if ("v7" in kind or "7x" in kind) and batch >= 2 and batch % 2 == 0:
        return 2
    return 1


def _vmem_limit_bytes(fp, rows, c):
    """Explicit VMEM budget: weights (double-buffered default) + act in/out
    (double-buffered) + scratch, with generous headroom for temporaries."""
    weight_bytes = sum(int(v.size) * v.dtype.itemsize for v in fp.values())
    act_bytes = rows * c * 4
    est = 2 * weight_bytes + 5 * act_bytes
    return int(min(max(8 * est, 16 * 1024 * 1024), 64 * 1024 * 1024))


def transformer_block_forward(x, fp, num_heads):
    """x: NCHW (B, C, W, H) float32, fp: folded params.  c1 == c2 (no conv)."""
    B, C, W, H = x.shape
    S = W * H
    L = fp["wqkv"].shape[0]

    # NCHW -> (B*S, C).  Per-position math makes this equivalent to the
    # PyTorch seq-first (S, B, C) path.
    x2 = x.reshape(B, C, S).transpose(0, 2, 1).reshape(B * S, C)

    nprog = _num_programs(B)
    assert B % nprog == 0
    bb = B // nprog              # batch elements per program
    rows = bb * S                # merged M for the dense matmuls

    kern = functools.partial(_fused_block_kernel, num_heads=num_heads,
                             num_layers=L, batch_block=bb, seq_len=S)

    act_spec = pl.BlockSpec((rows, C), lambda i: (i, 0))
    wspec2 = lambda a: pl.BlockSpec(a.shape, lambda i: (0, 0))      # constant idx map
    wspec3 = lambda a: pl.BlockSpec(a.shape, lambda i: (0, 0, 0))   # -> fetched once

    out = pl.pallas_call(
        kern,
        out_shape=jax.ShapeDtypeStruct((B * S, C), jnp.float32),
        grid=(nprog,),
        in_specs=[
            act_spec,
            wspec2(fp["lin_w"]), wspec2(fp["lin_b"]),
            wspec3(fp["wqkv"]), wspec3(fp["bqkv"]),
            wspec3(fp["out_w"]), wspec3(fp["out_b"]),
            wspec3(fp["w12"]),
        ],
        out_specs=act_spec,
        scratch_shapes=[pltpu.VMEM((rows, C), jnp.float32)],   # head-output slab
        compiler_params=pltpu.CompilerParams(
            dimension_semantics=("parallel",),
            vmem_limit_bytes=_vmem_limit_bytes(fp, rows, C)),
    )(x2, fp["lin_w"], fp["lin_b"], fp["wqkv"], fp["bqkv"],
      fp["out_w"], fp["out_b"], fp["w12"])

    # (B*S, C) -> NCHW
    return out.reshape(B, S, C).transpose(0, 2, 1).reshape(B, C, W, H)


# --------------------------- pure-JAX reference ------------------------------

def ref_forward(x, params, num_heads):
    """f32 reference following the PyTorch seq-first path exactly (unfolded)."""
    B, C, W, H = x.shape
    S = W * H
    hd = C // num_heads
    scale = 1.0 / math.sqrt(hd)
    p = x.reshape(B, C, S).transpose(2, 0, 1)          # (S, B, C)
    p2 = p.reshape(S * B, C)
    p2 = p2 + (p2 @ params["lin_w"] + params["lin_b"])
    for lp in params["layers"]:
        q = (p2 @ lp["wq"]) @ lp["in_wq"] + lp["in_bq"]
        k = (p2 @ lp["wk"]) @ lp["in_wk"] + lp["in_bk"]
        v = (p2 @ lp["wv"]) @ lp["in_wv"] + lp["in_bv"]

        def heads(t):
            return t.reshape(S, B * num_heads, hd).transpose(1, 0, 2)

        qh, kh, vh = heads(q), heads(k), heads(v)
        s = jnp.einsum('bqd,bkd->bqk', qh, kh) * scale
        a = jnp.einsum('bqk,bkd->bqd', jax.nn.softmax(s, axis=-1), vh)
        a = a.transpose(1, 0, 2).reshape(S * B, C)
        a = a @ lp["out_w"] + lp["out_b"]
        p2 = a + p2
        p2 = (p2 @ lp["w1"]) @ lp["w2"] + p2
    return p2.reshape(S, B, C).transpose(1, 2, 0).reshape(B, C, W, H)


# ----------------------------------- main ------------------------------------

if __name__ == "__main__":
    B, C, W, H = 2, 32, 8, 8       # c1 == c2 == 32 (conv path skipped)
    num_heads, num_layers = 4, 2

    key = jax.random.PRNGKey(0)
    kx, kp = jax.random.split(key)
    x = jax.random.normal(kx, (B, C, W, H), jnp.float32)
    params = init_params(kp, C, num_layers)
    fparams = fold_params(params, num_heads)

    fwd = jax.jit(functools.partial(transformer_block_forward, num_heads=num_heads))
    out = fwd(x, fparams)
    jax.block_until_ready(out)

    assert out.shape == (B, C, W, H), out.shape
    assert out.dtype == jnp.float32
    assert bool(jnp.all(jnp.isfinite(out)))

    # Correctness vs. f32 reference (differences come only from bf16 MXU
    # operands + approx reciprocal; loose tolerance accordingly).
    ref = ref_forward(x, params, num_heads)
    max_err = float(jnp.max(jnp.abs(out - ref)))
    assert max_err < 0.15, f"max abs err vs f32 reference: {max_err}"

    print("KERNEL_OK")
</pallas_src>

<mosaic_0001>
module attributes {stable_mosaic.version = 11 : i64} {
  func.func @_fused_block_kernel(%arg0: i32, %arg1: memref<128x32xf32, #tpu.memory_space<vmem>>, %arg2: memref<32x32xbf16, #tpu.memory_space<vmem>>, %arg3: memref<1x32xf32, #tpu.memory_space<vmem>>, %arg4: memref<2x32x96xbf16, #tpu.memory_space<vmem>>, %arg5: memref<2x1x96xf32, #tpu.memory_space<vmem>>, %arg6: memref<2x32x32xbf16, #tpu.memory_space<vmem>>, %arg7: memref<2x1x32xf32, #tpu.memory_space<vmem>>, %arg8: memref<2x32x32xbf16, #tpu.memory_space<vmem>>, %arg9: memref<128x32xf32, #tpu.memory_space<vmem>>, %arg10: memref<128x32xf32, #tpu.memory_space<vmem>>) attributes {dimension_semantics = [#tpu.dimension_semantics<parallel>], iteration_bounds = array<i64: 1>, scalar_prefetch = 0 : i64, scratch_operands = 1 : i64, tpu.core_type = #tpu.core_type<tc>, window_params = [{transform_indices = @transform_0, window_bounds = array<i64: 128, 32>}, {pipeline_mode = #tpu.pipeline_mode<synchronous>, transform_indices = @transform_1, window_bounds = array<i64: 32, 32>}, {pipeline_mode = #tpu.pipeline_mode<synchronous>, transform_indices = @transform_2, window_bounds = array<i64: 1, 32>}, {pipeline_mode = #tpu.pipeline_mode<synchronous>, transform_indices = @transform_3, window_bounds = array<i64: 2, 32, 96>}, {pipeline_mode = #tpu.pipeline_mode<synchronous>, transform_indices = @transform_4, window_bounds = array<i64: 2, 1, 96>}, {pipeline_mode = #tpu.pipeline_mode<synchronous>, transform_indices = @transform_5, window_bounds = array<i64: 2, 32, 32>}, {pipeline_mode = #tpu.pipeline_mode<synchronous>, transform_indices = @transform_6, window_bounds = array<i64: 2, 1, 32>}, {pipeline_mode = #tpu.pipeline_mode<synchronous>, transform_indices = @transform_7, window_bounds = array<i64: 2, 32, 32>}, {transform_indices = @transform_8, window_bounds = array<i64: 128, 32>}]} {
    %c0 = arith.constant 0 : index
    %c0_0 = arith.constant 0 : index
    %0 = vector.load %arg1[%c0, %c0_0] : memref<128x32xf32, #tpu.memory_space<vmem>>, vector<128x32xf32>
    %c0_1 = arith.constant 0 : index
    %c0_2 = arith.constant 0 : index
    %1 = vector.load %arg2[%c0_1, %c0_2] : memref<32x32xbf16, #tpu.memory_space<vmem>>, vector<32x32xbf16>
    %2 = arith.truncf %0 : vector<128x32xf32> to vector<128x32xbf16>
    %cst = arith.constant dense<0.000000e+00> : vector<128x32xf32>
    %3 = tpu.matmul %2, %1, %cst {dimension_numbers = #tpu.dot_dimension_numbers<[1], [0], [0], [1], [0, 0, 1, 1], [], []>} : vector<128x32xbf16>, vector<32x32xbf16>, vector<128x32xf32> -> vector<128x32xf32>
    %c0_3 = arith.constant 0 : index
    %c0_4 = arith.constant 0 : index
    %4 = vector.load %arg3[%c0_3, %c0_4] : memref<1x32xf32, #tpu.memory_space<vmem>>, vector<1x32xf32>
    %5 = vector.broadcast %4 : vector<1x32xf32> to vector<128x32xf32>
    %6 = arith.addf %3, %5 : vector<128x32xf32>
    %7 = arith.addf %0, %6 : vector<128x32xf32>
    %c0_5 = arith.constant 0 : index
    %c0_6 = arith.constant 0 : index
    %c0_7 = arith.constant 0 : index
    %8 = vector.load %arg4[%c0_5, %c0_6, %c0_7] : memref<2x32x96xbf16, #tpu.memory_space<vmem>>, vector<1x32x96xbf16>
    %9 = vector.shape_cast %8 : vector<1x32x96xbf16> to vector<32x96xbf16>
    %10 = arith.truncf %7 : vector<128x32xf32> to vector<128x32xbf16>
    %cst_8 = arith.constant dense<0.000000e+00> : vector<128x96xf32>
    %11 = tpu.matmul %10, %9, %cst_8 {dimension_numbers = #tpu.dot_dimension_numbers<[1], [0], [0], [1], [0, 0, 1, 1], [], []>} : vector<128x32xbf16>, vector<32x96xbf16>, vector<128x96xf32> -> vector<128x96xf32>
    %c0_9 = arith.constant 0 : index
    %c0_10 = arith.constant 0 : index
    %c0_11 = arith.constant 0 : index
    %12 = vector.load %arg5[%c0_9, %c0_10, %c0_11] : memref<2x1x96xf32, #tpu.memory_space<vmem>>, vector<1x1x96xf32>
    %13 = vector.shape_cast %12 : vector<1x1x96xf32> to vector<1x96xf32>
    %14 = vector.broadcast %13 : vector<1x96xf32> to vector<128x96xf32>
    %15 = arith.addf %11, %14 : vector<128x96xf32>
    %16 = arith.truncf %15 : vector<128x96xf32> to vector<128x96xbf16>
    %17 = vector.extract_strided_slice %16 {offsets = [0, 0], sizes = [64, 8], strides = [1, 1]} : vector<128x96xbf16> to vector<64x8xbf16>
    %18 = vector.extract_strided_slice %16 {offsets = [0, 32], sizes = [64, 8], strides = [1, 1]} : vector<128x96xbf16> to vector<64x8xbf16>
    %19 = vector.extract_strided_slice %16 {offsets = [0, 64], sizes = [64, 8], strides = [1, 1]} : vector<128x96xbf16> to vector<64x8xbf16>
    %cst_12 = arith.constant dense<0.000000e+00> : vector<64x64xf32>
    %20 = tpu.matmul %17, %18, %cst_12 {dimension_numbers = #tpu.dot_dimension_numbers<[1], [1], [0], [0], [0, 0, 1, 0], [], []>} : vector<64x8xbf16>, vector<64x8xbf16>, vector<64x64xf32> -> vector<64x64xf32>
    %cst_13 = arith.constant dense<0xFF800000> : vector<64xf32>
    %21 = vector.multi_reduction <maximumf>, %20, %cst_13 [1] : vector<64x64xf32> to vector<64xf32>
    %22 = vector.shape_cast %21 : vector<64xf32> to vector<64x1xf32>
    %23 = vector.broadcast %22 : vector<64x1xf32> to vector<64x64xf32>
    %24 = arith.subf %20, %23 : vector<64x64xf32>
    %25 = math.exp %24 : vector<64x64xf32>
    %cst_14 = arith.constant dense<0.000000e+00> : vector<64xf32>
    %26 = vector.multi_reduction <add>, %25, %cst_14 [1] : vector<64x64xf32> to vector<64xf32>
    %27 = vector.shape_cast %26 : vector<64xf32> to vector<64x1xf32>
    %28 = tpu.reciprocal %27 {approx = true} : vector<64x1xf32> -> vector<64x1xf32>
    %29 = vector.broadcast %28 : vector<64x1xf32> to vector<64x64xf32>
    %30 = arith.mulf %25, %29 : vector<64x64xf32>
    %31 = arith.truncf %30 : vector<64x64xf32> to vector<64x64xbf16>
    %cst_15 = arith.constant dense<0.000000e+00> : vector<64x8xf32>
    %32 = tpu.matmul %31, %19, %cst_15 {dimension_numbers = #tpu.dot_dimension_numbers<[1], [0], [0], [1], [0, 0, 1, 1], [], []>} : vector<64x64xbf16>, vector<64x8xbf16>, vector<64x8xf32> -> vector<64x8xf32>
    %c0_16 = arith.constant 0 : index
    %c0_17 = arith.constant 0 : index
    %33 = vector.load %arg10[%c0_16, %c0_17] : memref<128x32xf32, #tpu.memory_space<vmem>>, vector<64x8xf32>
    tpu.vector_store %arg10[%c0_16, %c0_17], %32 {strides = array<i32>} : memref<128x32xf32, #tpu.memory_space<vmem>>, vector<64x8xf32>,
    %34 = vector.extract_strided_slice %16 {offsets = [0, 8], sizes = [64, 8], strides = [1, 1]} : vector<128x96xbf16> to vector<64x8xbf16>
    %35 = vector.extract_strided_slice %16 {offsets = [0, 40], sizes = [64, 8], strides = [1, 1]} : vector<128x96xbf16> to vector<64x8xbf16>
    %36 = vector.extract_strided_slice %16 {offsets = [0, 72], sizes = [64, 8], strides = [1, 1]} : vector<128x96xbf16> to vector<64x8xbf16>
    %cst_18 = arith.constant dense<0.000000e+00> : vector<64x64xf32>
    %37 = tpu.matmul %34, %35, %cst_18 {dimension_numbers = #tpu.dot_dimension_numbers<[1], [1], [0], [0], [0, 0, 1, 0], [], []>} : vector<64x8xbf16>, vector<64x8xbf16>, vector<64x64xf32> -> vector<64x64xf32>
    %cst_19 = arith.constant dense<0xFF800000> : vector<64xf32>
    %38 = vector.multi_reduction <maximumf>, %37, %cst_19 [1] : vector<64x64xf32> to vector<64xf32>
    %39 = vector.shape_cast %38 : vector<64xf32> to vector<64x1xf32>
    %40 = vector.broadcast %39 : vector<64x1xf32> to vector<64x64xf32>
    %41 = arith.subf %37, %40 : vector<64x64xf32>
    %42 = math.exp %41 : vector<64x64xf32>
    %cst_20 = arith.constant dense<0.000000e+00> : vector<64xf32>
    %43 = vector.multi_reduction <add>, %42, %cst_20 [1] : vector<64x64xf32> to vector<64xf32>
    %44 = vector.shape_cast %43 : vector<64xf32> to vector<64x1xf32>
    %45 = tpu.reciprocal %44 {approx = true} : vector<64x1xf32> -> vector<64x1xf32>
    %46 = vector.broadcast %45 : vector<64x1xf32> to vector<64x64xf32>
    %47 = arith.mulf %42, %46 : vector<64x64xf32>
    %48 = arith.truncf %47 : vector<64x64xf32> to vector<64x64xbf16>
    %cst_21 = arith.constant dense<0.000000e+00> : vector<64x8xf32>
    %49 = tpu.matmul %48, %36, %cst_21 {dimension_numbers = #tpu.dot_dimension_numbers<[1], [0], [0], [1], [0, 0, 1, 1], [], []>} : vector<64x64xbf16>, vector<64x8xbf16>, vector<64x8xf32> -> vector<64x8xf32>
    %c0_22 = arith.constant 0 : index
    %c8 = arith.constant 8 : index
    %50 = vector.load %arg10[%c0_22, %c8] : memref<128x32xf32, #tpu.memory_space<vmem>>, vector<64x8xf32>
    tpu.vector_store %arg10[%c0_22, %c8], %49 {strides = array<i32>} : memref<128x32xf32, #tpu.memory_space<vmem>>, vector<64x8xf32>,
    %51 = vector.extract_strided_slice %16 {offsets = [0, 16], sizes = [64, 8], strides = [1, 1]} : vector<128x96xbf16> to vector<64x8xbf16>
    %52 = vector.extract_strided_slice %16 {offsets = [0, 48], sizes = [64, 8], strides = [1, 1]} : vector<128x96xbf16> to vector<64x8xbf16>
    %53 = vector.extract_strided_slice %16 {offsets = [0, 80], sizes = [64, 8], strides = [1, 1]} : vector<128x96xbf16> to vector<64x8xbf16>
    %cst_23 = arith.constant dense<0.000000e+00> : vector<64x64xf32>
    %54 = tpu.matmul %51, %52, %cst_23 {dimension_numbers = #tpu.dot_dimension_numbers<[1], [1], [0], [0], [0, 0, 1, 0], [], []>} : vector<64x8xbf16>, vector<64x8xbf16>, vector<64x64xf32> -> vector<64x64xf32>
    %cst_24 = arith.constant dense<0xFF800000> : vector<64xf32>
    %55 = vector.multi_reduction <maximumf>, %54, %cst_24 [1] : vector<64x64xf32> to vector<64xf32>
    %56 = vector.shape_cast %55 : vector<64xf32> to vector<64x1xf32>
    %57 = vector.broadcast %56 : vector<64x1xf32> to vector<64x64xf32>
    %58 = arith.subf %54, %57 : vector<64x64xf32>
    %59 = math.exp %58 : vector<64x64xf32>
    %cst_25 = arith.constant dense<0.000000e+00> : vector<64xf32>
    %60 = vector.multi_reduction <add>, %59, %cst_25 [1] : vector<64x64xf32> to vector<64xf32>
    %61 = vector.shape_cast %60 : vector<64xf32> to vector<64x1xf32>
    %62 = tpu.reciprocal %61 {approx = true} : vector<64x1xf32> -> vector<64x1xf32>
    %63 = vector.broadcast %62 : vector<64x1xf32> to vector<64x64xf32>
    %64 = arith.mulf %59, %63 : vector<64x64xf32>
    %65 = arith.truncf %64 : vector<64x64xf32> to vector<64x64xbf16>
    %cst_26 = arith.constant dense<0.000000e+00> : vector<64x8xf32>
    %66 = tpu.matmul %65, %53, %cst_26 {dimension_numbers = #tpu.dot_dimension_numbers<[1], [0], [0], [1], [0, 0, 1, 1], [], []>} : vector<64x64xbf16>, vector<64x8xbf16>, vector<64x8xf32> -> vector<64x8xf32>
    %c0_27 = arith.constant 0 : index
    %c16 = arith.constant 16 : index
    %67 = vector.load %arg10[%c0_27, %c16] : memref<128x32xf32, #tpu.memory_space<vmem>>, vector<64x8xf32>
    tpu.vector_store %arg10[%c0_27, %c16], %66 {strides = array<i32>} : memref<128x32xf32, #tpu.memory_space<vmem>>, vector<64x8xf32>,
    %68 = vector.extract_strided_slice %16 {offsets = [0, 24], sizes = [64, 8], strides = [1, 1]} : vector<128x96xbf16> to vector<64x8xbf16>
    %69 = vector.extract_strided_slice %16 {offsets = [0, 56], sizes = [64, 8], strides = [1, 1]} : vector<128x96xbf16> to vector<64x8xbf16>
    %70 = vector.extract_strided_slice %16 {offsets = [0, 88], sizes = [64, 8], strides = [1, 1]} : vector<128x96xbf16> to vector<64x8xbf16>
    %cst_28 = arith.constant dense<0.000000e+00> : vector<64x64xf32>
    %71 = tpu.matmul %68, %69, %cst_28 {dimension_numbers = #tpu.dot_dimension_numbers<[1], [1], [0], [0], [0, 0, 1, 0], [], []>} : vector<64x8xbf16>, vector<64x8xbf16>, vector<64x64xf32> -> vector<64x64xf32>
    %cst_29 = arith.constant dense<0xFF800000> : vector<64xf32>
    %72 = vector.multi_reduction <maximumf>, %71, %cst_29 [1] : vector<64x64xf32> to vector<64xf32>
    %73 = vector.shape_cast %72 : vector<64xf32> to vector<64x1xf32>
    %74 = vector.broadcast %73 : vector<64x1xf32> to vector<64x64xf32>
    %75 = arith.subf %71, %74 : vector<64x64xf32>
    %76 = math.exp %75 : vector<64x64xf32>
    %cst_30 = arith.constant dense<0.000000e+00> : vector<64xf32>
    %77 = vector.multi_reduction <add>, %76, %cst_30 [1] : vector<64x64xf32> to vector<64xf32>
    %78 = vector.shape_cast %77 : vector<64xf32> to vector<64x1xf32>
    %79 = tpu.reciprocal %78 {approx = true} : vector<64x1xf32> -> vector<64x1xf32>
    %80 = vector.broadcast %79 : vector<64x1xf32> to vector<64x64xf32>
    %81 = arith.mulf %76, %80 : vector<64x64xf32>
    %82 = arith.truncf %81 : vector<64x64xf32> to vector<64x64xbf16>
    %cst_31 = arith.constant dense<0.000000e+00> : vector<64x8xf32>
    %83 = tpu.matmul %82, %70, %cst_31 {dimension_numbers = #tpu.dot_dimension_numbers<[1], [0], [0], [1], [0, 0, 1, 1], [], []>} : vector<64x64xbf16>, vector<64x8xbf16>, vector<64x8xf32> -> vector<64x8xf32>
    %c0_32 = arith.constant 0 : index
    %c24 = arith.constant 24 : index
    %84 = vector.load %arg10[%c0_32, %c24] : memref<128x32xf32, #tpu.memory_space<vmem>>, vector<64x8xf32>
    tpu.vector_store %arg10[%c0_32, %c24], %83 {strides = array<i32>} : memref<128x32xf32, #tpu.memory_space<vmem>>, vector<64x8xf32>,
    %85 = vector.extract_strided_slice %16 {offsets = [64, 0], sizes = [64, 8], strides = [1, 1]} : vector<128x96xbf16> to vector<64x8xbf16>
    %86 = vector.extract_strided_slice %16 {offsets = [64, 32], sizes = [64, 8], strides = [1, 1]} : vector<128x96xbf16> to vector<64x8xbf16>
    %87 = vector.extract_strided_slice %16 {offsets = [64, 64], sizes = [64, 8], strides = [1, 1]} : vector<128x96xbf16> to vector<64x8xbf16>
    %cst_33 = arith.constant dense<0.000000e+00> : vector<64x64xf32>
    %88 = tpu.matmul %85, %86, %cst_33 {dimension_numbers = #tpu.dot_dimension_numbers<[1], [1], [0], [0], [0, 0, 1, 0], [], []>} : vector<64x8xbf16>, vector<64x8xbf16>, vector<64x64xf32> -> vector<64x64xf32>
    %cst_34 = arith.constant dense<0xFF800000> : vector<64xf32>
    %89 = vector.multi_reduction <maximumf>, %88, %cst_34 [1] : vector<64x64xf32> to vector<64xf32>
    %90 = vector.shape_cast %89 : vector<64xf32> to vector<64x1xf32>
    %91 = vector.broadcast %90 : vector<64x1xf32> to vector<64x64xf32>
    %92 = arith.subf %88, %91 : vector<64x64xf32>
    %93 = math.exp %92 : vector<64x64xf32>
    %cst_35 = arith.constant dense<0.000000e+00> : vector<64xf32>
    %94 = vector.multi_reduction <add>, %93, %cst_35 [1] : vector<64x64xf32> to vector<64xf32>
    %95 = vector.shape_cast %94 : vector<64xf32> to vector<64x1xf32>
    %96 = tpu.reciprocal %95 {approx = true} : vector<64x1xf32> -> vector<64x1xf32>
    %97 = vector.broadcast %96 : vector<64x1xf32> to vector<64x64xf32>
    %98 = arith.mulf %93, %97 : vector<64x64xf32>
    %99 = arith.truncf %98 : vector<64x64xf32> to vector<64x64xbf16>
    %cst_36 = arith.constant dense<0.000000e+00> : vector<64x8xf32>
    %100 = tpu.matmul %99, %87, %cst_36 {dimension_numbers = #tpu.dot_dimension_numbers<[1], [0], [0], [1], [0, 0, 1, 1], [], []>} : vector<64x64xbf16>, vector<64x8xbf16>, vector<64x8xf32> -> vector<64x8xf32>
    %c64 = arith.constant 64 : index
    %c0_37 = arith.constant 0 : index
    %101 = vector.load %arg10[%c64, %c0_37] : memref<128x32xf32, #tpu.memory_space<vmem>>, vector<64x8xf32>
    tpu.vector_store %arg10[%c64, %c0_37], %100 {strides = array<i32>} : memref<128x32xf32, #tpu.memory_space<vmem>>, vector<64x8xf32>,
    %102 = vector.extract_strided_slice %16 {offsets = [64, 8], sizes = [64, 8], strides = [1, 1]} : vector<128x96xbf16> to vector<64x8xbf16>
    %103 = vector.extract_strided_slice %16 {offsets = [64, 40], sizes = [64, 8], strides = [1, 1]} : vector<128x96xbf16> to vector<64x8xbf16>
    %104 = vector.extract_strided_slice %16 {offsets = [64, 72], sizes = [64, 8], strides = [1, 1]} : vector<128x96xbf16> to vector<64x8xbf16>
    %cst_38 = arith.constant dense<0.000000e+00> : vector<64x64xf32>
    %105 = tpu.matmul %102, %103, %cst_38 {dimension_numbers = #tpu.dot_dimension_numbers<[1], [1], [0], [0], [0, 0, 1, 0], [], []>} : vector<64x8xbf16>, vector<64x8xbf16>, vector<64x64xf32> -> vector<64x64xf32>
    %cst_39 = arith.constant dense<0xFF800000> : vector<64xf32>
    %106 = vector.multi_reduction <maximumf>, %105, %cst_39 [1] : vector<64x64xf32> to vector<64xf32>
    %107 = vector.shape_cast %106 : vector<64xf32> to vector<64x1xf32>
    %108 = vector.broadcast %107 : vector<64x1xf32> to vector<64x64xf32>
    %109 = arith.subf %105, %108 : vector<64x64xf32>
    %110 = math.exp %109 : vector<64x64xf32>
    %cst_40 = arith.constant dense<0.000000e+00> : vector<64xf32>
    %111 = vector.multi_reduction <add>, %110, %cst_40 [1] : vector<64x64xf32> to vector<64xf32>
    %112 = vector.shape_cast %111 : vector<64xf32> to vector<64x1xf32>
    %113 = tpu.reciprocal %112 {approx = true} : vector<64x1xf32> -> vector<64x1xf32>
    %114 = vector.broadcast %113 : vector<64x1xf32> to vector<64x64xf32>
    %115 = arith.mulf %110, %114 : vector<64x64xf32>
    %116 = arith.truncf %115 : vector<64x64xf32> to vector<64x64xbf16>
    %cst_41 = arith.constant dense<0.000000e+00> : vector<64x8xf32>
    %117 = tpu.matmul %116, %104, %cst_41 {dimension_numbers = #tpu.dot_dimension_numbers<[1], [0], [0], [1], [0, 0, 1, 1], [], []>} : vector<64x64xbf16>, vector<64x8xbf16>, vector<64x8xf32> -> vector<64x8xf32>
    %c64_42 = arith.constant 64 : index
    %c8_43 = arith.constant 8 : index
    %118 = vector.load %arg10[%c64_42, %c8_43] : memref<128x32xf32, #tpu.memory_space<vmem>>, vector<64x8xf32>
    tpu.vector_store %arg10[%c64_42, %c8_43], %117 {strides = array<i32>} : memref<128x32xf32, #tpu.memory_space<vmem>>, vector<64x8xf32>,
    %119 = vector.extract_strided_slice %16 {offsets = [64, 16], sizes = [64, 8], strides = [1, 1]} : vector<128x96xbf16> to vector<64x8xbf16>
    %120 = vector.extract_strided_slice %16 {offsets = [64, 48], sizes = [64, 8], strides = [1, 1]} : vector<128x96xbf16> to vector<64x8xbf16>
    %121 = vector.extract_strided_slice %16 {offsets = [64, 80], sizes = [64, 8], strides = [1, 1]} : vector<128x96xbf16> to vector<64x8xbf16>
    %cst_44 = arith.constant dense<0.000000e+00> : vector<64x64xf32>
    %122 = tpu.matmul %119, %120, %cst_44 {dimension_numbers = #tpu.dot_dimension_numbers<[1], [1], [0], [0], [0, 0, 1, 0], [], []>} : vector<64x8xbf16>, vector<64x8xbf16>, vector<64x64xf32> -> vector<64x64xf32>
    %cst_45 = arith.constant dense<0xFF800000> : vector<64xf32>
    %123 = vector.multi_reduction <maximumf>, %122, %cst_45 [1] : vector<64x64xf32> to vector<64xf32>
    %124 = vector.shape_cast %123 : vector<64xf32> to vector<64x1xf32>
    %125 = vector.broadcast %124 : vector<64x1xf32> to vector<64x64xf32>
    %126 = arith.subf %122, %125 : vector<64x64xf32>
    %127 = math.exp %126 : vector<64x64xf32>
    %cst_46 = arith.constant dense<0.000000e+00> : vector<64xf32>
    %128 = vector.multi_reduction <add>, %127, %cst_46 [1] : vector<64x64xf32> to vector<64xf32>
    %129 = vector.shape_cast %128 : vector<64xf32> to vector<64x1xf32>
    %130 = tpu.reciprocal %129 {approx = true} : vector<64x1xf32> -> vector<64x1xf32>
    %131 = vector.broadcast %130 : vector<64x1xf32> to vector<64x64xf32>
    %132 = arith.mulf %127, %131 : vector<64x64xf32>
    %133 = arith.truncf %132 : vector<64x64xf32> to vector<64x64xbf16>
    %cst_47 = arith.constant dense<0.000000e+00> : vector<64x8xf32>
    %134 = tpu.matmul %133, %121, %cst_47 {dimension_numbers = #tpu.dot_dimension_numbers<[1], [0], [0], [1], [0, 0, 1, 1], [], []>} : vector<64x64xbf16>, vector<64x8xbf16>, vector<64x8xf32> -> vector<64x8xf32>
    %c64_48 = arith.constant 64 : index
    %c16_49 = arith.constant 16 : index
    %135 = vector.load %arg10[%c64_48, %c16_49] : memref<128x32xf32, #tpu.memory_space<vmem>>, vector<64x8xf32>
    tpu.vector_store %arg10[%c64_48, %c16_49], %134 {strides = array<i32>} : memref<128x32xf32, #tpu.memory_space<vmem>>, vector<64x8xf32>,
    %136 = vector.extract_strided_slice %16 {offsets = [64, 24], sizes = [64, 8], strides = [1, 1]} : vector<128x96xbf16> to vector<64x8xbf16>
    %137 = vector.extract_strided_slice %16 {offsets = [64, 56], sizes = [64, 8], strides = [1, 1]} : vector<128x96xbf16> to vector<64x8xbf16>
    %138 = vector.extract_strided_slice %16 {offsets = [64, 88], sizes = [64, 8], strides = [1, 1]} : vector<128x96xbf16> to vector<64x8xbf16>
    %cst_50 = arith.constant dense<0.000000e+00> : vector<64x64xf32>
    %139 = tpu.matmul %136, %137, %cst_50 {dimension_numbers = #tpu.dot_dimension_numbers<[1], [1], [0], [0], [0, 0, 1, 0], [], []>} : vector<64x8xbf16>, vector<64x8xbf16>, vector<64x64xf32> -> vector<64x64xf32>
    %cst_51 = arith.constant dense<0xFF800000> : vector<64xf32>
    %140 = vector.multi_reduction <maximumf>, %139, %cst_51 [1] : vector<64x64xf32> to vector<64xf32>
    %141 = vector.shape_cast %140 : vector<64xf32> to vector<64x1xf32>
    %142 = vector.broadcast %141 : vector<64x1xf32> to vector<64x64xf32>
    %143 = arith.subf %139, %142 : vector<64x64xf32>
    %144 = math.exp %143 : vector<64x64xf32>
    %cst_52 = arith.constant dense<0.000000e+00> : vector<64xf32>
    %145 = vector.multi_reduction <add>, %144, %cst_52 [1] : vector<64x64xf32> to vector<64xf32>
    %146 = vector.shape_cast %145 : vector<64xf32> to vector<64x1xf32>
    %147 = tpu.reciprocal %146 {approx = true} : vector<64x1xf32> -> vector<64x1xf32>
    %148 = vector.broadcast %147 : vector<64x1xf32> to vector<64x64xf32>
    %149 = arith.mulf %144, %148 : vector<64x64xf32>
    %150 = arith.truncf %149 : vector<64x64xf32> to vector<64x64xbf16>
    %cst_53 = arith.constant dense<0.000000e+00> : vector<64x8xf32>
    %151 = tpu.matmul %150, %138, %cst_53 {dimension_numbers = #tpu.dot_dimension_numbers<[1], [0], [0], [1], [0, 0, 1, 1], [], []>} : vector<64x64xbf16>, vector<64x8xbf16>, vector<64x8xf32> -> vector<64x8xf32>
    %c64_54 = arith.constant 64 : index
    %c24_55 = arith.constant 24 : index
    %152 = vector.load %arg10[%c64_54, %c24_55] : memref<128x32xf32, #tpu.memory_space<vmem>>, vector<64x8xf32>
    tpu.vector_store %arg10[%c64_54, %c24_55], %151 {strides = array<i32>} : memref<128x32xf32, #tpu.memory_space<vmem>>, vector<64x8xf32>,
    %c0_56 = arith.constant 0 : index
    %c0_57 = arith.constant 0 : index
    %153 = vector.load %arg10[%c0_56, %c0_57] : memref<128x32xf32, #tpu.memory_space<vmem>>, vector<128x32xf32>
    %c0_58 = arith.constant 0 : index
    %c0_59 = arith.constant 0 : index
    %c0_60 = arith.constant 0 : index
    %154 = vector.load %arg6[%c0_58, %c0_59, %c0_60] : memref<2x32x32xbf16, #tpu.memory_space<vmem>>, vector<1x32x32xbf16>
    %155 = vector.shape_cast %154 : vector<1x32x32xbf16> to vector<32x32xbf16>
    %156 = arith.truncf %153 : vector<128x32xf32> to vector<128x32xbf16>
    %cst_61 = arith.constant dense<0.000000e+00> : vector<128x32xf32>
    %157 = tpu.matmul %156, %155, %cst_61 {dimension_numbers = #tpu.dot_dimension_numbers<[1], [0], [0], [1], [0, 0, 1, 1], [], []>} : vector<128x32xbf16>, vector<32x32xbf16>, vector<128x32xf32> -> vector<128x32xf32>
    %c0_62 = arith.constant 0 : index
    %c0_63 = arith.constant 0 : index
    %c0_64 = arith.constant 0 : index
    %158 = vector.load %arg7[%c0_62, %c0_63, %c0_64] : memref<2x1x32xf32, #tpu.memory_space<vmem>>, vector<1x1x32xf32>
    %159 = vector.shape_cast %158 : vector<1x1x32xf32> to vector<1x32xf32>
    %160 = vector.broadcast %159 : vector<1x32xf32> to vector<128x32xf32>
    %161 = arith.addf %157, %160 : vector<128x32xf32>
    %162 = arith.addf %161, %7 : vector<128x32xf32>
    %c0_65 = arith.constant 0 : index
    %c0_66 = arith.constant 0 : index
    %c0_67 = arith.constant 0 : index
    %163 = vector.load %arg8[%c0_65, %c0_66, %c0_67] : memref<2x32x32xbf16, #tpu.memory_space<vmem>>, vector<1x32x32xbf16>
    %164 = vector.shape_cast %163 : vector<1x32x32xbf16> to vector<32x32xbf16>
    %165 = arith.truncf %162 : vector<128x32xf32> to vector<128x32xbf16>
    %cst_68 = arith.constant dense<0.000000e+00> : vector<128x32xf32>
    %166 = tpu.matmul %165, %164, %cst_68 {dimension_numbers = #tpu.dot_dimension_numbers<[1], [0], [0], [1], [0, 0, 1, 1], [], []>} : vector<128x32xbf16>, vector<32x32xbf16>, vector<128x32xf32> -> vector<128x32xf32>
    %167 = arith.addf %166, %162 : vector<128x32xf32>
    %c1 = arith.constant 1 : index
    %c0_69 = arith.constant 0 : index
    %c0_70 = arith.constant 0 : index
    %168 = vector.load %arg4[%c1, %c0_69, %c0_70] : memref<2x32x96xbf16, #tpu.memory_space<vmem>>, vector<1x32x96xbf16>
    %169 = vector.shape_cast %168 : vector<1x32x96xbf16> to vector<32x96xbf16>
    %170 = arith.truncf %167 : vector<128x32xf32> to vector<128x32xbf16>
    %cst_71 = arith.constant dense<0.000000e+00> : vector<128x96xf32>
    %171 = tpu.matmul %170, %169, %cst_71 {dimension_numbers = #tpu.dot_dimension_numbers<[1], [0], [0], [1], [0, 0, 1, 1], [], []>} : vector<128x32xbf16>, vector<32x96xbf16>, vector<128x96xf32> -> vector<128x96xf32>
    %c1_72 = arith.constant 1 : index
    %c0_73 = arith.constant 0 : index
    %c0_74 = arith.constant 0 : index
    %172 = vector.load %arg5[%c1_72, %c0_73, %c0_74] : memref<2x1x96xf32, #tpu.memory_space<vmem>>, vector<1x1x96xf32>
    %173 = vector.shape_cast %172 : vector<1x1x96xf32> to vector<1x96xf32>
    %174 = vector.broadcast %173 : vector<1x96xf32> to vector<128x96xf32>
    %175 = arith.addf %171, %174 : vector<128x96xf32>
    %176 = arith.truncf %175 : vector<128x96xf32> to vector<128x96xbf16>
    %177 = vector.extract_strided_slice %176 {offsets = [0, 0], sizes = [64, 8], strides = [1, 1]} : vector<128x96xbf16> to vector<64x8xbf16>
    %178 = vector.extract_strided_slice %176 {offsets = [0, 32], sizes = [64, 8], strides = [1, 1]} : vector<128x96xbf16> to vector<64x8xbf16>
    %179 = vector.extract_strided_slice %176 {offsets = [0, 64], sizes = [64, 8], strides = [1, 1]} : vector<128x96xbf16> to vector<64x8xbf16>
    %cst_75 = arith.constant dense<0.000000e+00> : vector<64x64xf32>
    %180 = tpu.matmul %177, %178, %cst_75 {dimension_numbers = #tpu.dot_dimension_numbers<[1], [1], [0], [0], [0, 0, 1, 0], [], []>} : vector<64x8xbf16>, vector<64x8xbf16>, vector<64x64xf32> -> vector<64x64xf32>
    %cst_76 = arith.constant dense<0xFF800000> : vector<64xf32>
    %181 = vector.multi_reduction <maximumf>, %180, %cst_76 [1] : vector<64x64xf32> to vector<64xf32>
    %182 = vector.shape_cast %181 : vector<64xf32> to vector<64x1xf32>
    %183 = vector.broadcast %182 : vector<64x1xf32> to vector<64x64xf32>
    %184 = arith.subf %180, %183 : vector<64x64xf32>
    %185 = math.exp %184 : vector<64x64xf32>
    %cst_77 = arith.constant dense<0.000000e+00> : vector<64xf32>
    %186 = vector.multi_reduction <add>, %185, %cst_77 [1] : vector<64x64xf32> to vector<64xf32>
    %187 = vector.shape_cast %186 : vector<64xf32> to vector<64x1xf32>
    %188 = tpu.reciprocal %187 {approx = true} : vector<64x1xf32> -> vector<64x1xf32>
    %189 = vector.broadcast %188 : vector<64x1xf32> to vector<64x64xf32>
    %190 = arith.mulf %185, %189 : vector<64x64xf32>
    %191 = arith.truncf %190 : vector<64x64xf32> to vector<64x64xbf16>
    %cst_78 = arith.constant dense<0.000000e+00> : vector<64x8xf32>
    %192 = tpu.matmul %191, %179, %cst_78 {dimension_numbers = #tpu.dot_dimension_numbers<[1], [0], [0], [1], [0, 0, 1, 1], [], []>} : vector<64x64xbf16>, vector<64x8xbf16>, vector<64x8xf32> -> vector<64x8xf32>
    %c0_79 = arith.constant 0 : index
    %c0_80 = arith.constant 0 : index
    %193 = vector.load %arg10[%c0_79, %c0_80] : memref<128x32xf32, #tpu.memory_space<vmem>>, vector<64x8xf32>
    tpu.vector_store %arg10[%c0_79, %c0_80], %192 {strides = array<i32>} : memref<128x32xf32, #tpu.memory_space<vmem>>, vector<64x8xf32>,
    %194 = vector.extract_strided_slice %176 {offsets = [0, 8], sizes = [64, 8], strides = [1, 1]} : vector<128x96xbf16> to vector<64x8xbf16>
    %195 = vector.extract_strided_slice %176 {offsets = [0, 40], sizes = [64, 8], strides = [1, 1]} : vector<128x96xbf16> to vector<64x8xbf16>
    %196 = vector.extract_strided_slice %176 {offsets = [0, 72], sizes = [64, 8], strides = [1, 1]} : vector<128x96xbf16> to vector<64x8xbf16>
    %cst_81 = arith.constant dense<0.000000e+00> : vector<64x64xf32>
    %197 = tpu.matmul %194, %195, %cst_81 {dimension_numbers = #tpu.dot_dimension_numbers<[1], [1], [0], [0], [0, 0, 1, 0], [], []>} : vector<64x8xbf16>, vector<64x8xbf16>, vector<64x64xf32> -> vector<64x64xf32>
    %cst_82 = arith.constant dense<0xFF800000> : vector<64xf32>
    %198 = vector.multi_reduction <maximumf>, %197, %cst_82 [1] : vector<64x64xf32> to vector<64xf32>
    %199 = vector.shape_cast %198 : vector<64xf32> to vector<64x1xf32>
    %200 = vector.broadcast %199 : vector<64x1xf32> to vector<64x64xf32>
    %201 = arith.subf %197, %200 : vector<64x64xf32>
    %202 = math.exp %201 : vector<64x64xf32>
    %cst_83 = arith.constant dense<0.000000e+00> : vector<64xf32>
    %203 = vector.multi_reduction <add>, %202, %cst_83 [1] : vector<64x64xf32> to vector<64xf32>
    %204 = vector.shape_cast %203 : vector<64xf32> to vector<64x1xf32>
    %205 = tpu.reciprocal %204 {approx = true} : vector<64x1xf32> -> vector<64x1xf32>
    %206 = vector.broadcast %205 : vector<64x1xf32> to vector<64x64xf32>
    %207 = arith.mulf %202, %206 : vector<64x64xf32>
    %208 = arith.truncf %207 : vector<64x64xf32> to vector<64x64xbf16>
    %cst_84 = arith.constant dense<0.000000e+00> : vector<64x8xf32>
    %209 = tpu.matmul %208, %196, %cst_84 {dimension_numbers = #tpu.dot_dimension_numbers<[1], [0], [0], [1], [0, 0, 1, 1], [], []>} : vector<64x64xbf16>, vector<64x8xbf16>, vector<64x8xf32> -> vector<64x8xf32>
    %c0_85 = arith.constant 0 : index
    %c8_86 = arith.constant 8 : index
    %210 = vector.load %arg10[%c0_85, %c8_86] : memref<128x32xf32, #tpu.memory_space<vmem>>, vector<64x8xf32>
    tpu.vector_store %arg10[%c0_85, %c8_86], %209 {strides = array<i32>} : memref<128x32xf32, #tpu.memory_space<vmem>>, vector<64x8xf32>,
    %211 = vector.extract_strided_slice %176 {offsets = [0, 16], sizes = [64, 8], strides = [1, 1]} : vector<128x96xbf16> to vector<64x8xbf16>
    %212 = vector.extract_strided_slice %176 {offsets = [0, 48], sizes = [64, 8], strides = [1, 1]} : vector<128x96xbf16> to vector<64x8xbf16>
    %213 = vector.extract_strided_slice %176 {offsets = [0, 80], sizes = [64, 8], strides = [1, 1]} : vector<128x96xbf16> to vector<64x8xbf16>
    %cst_87 = arith.constant dense<0.000000e+00> : vector<64x64xf32>
    %214 = tpu.matmul %211, %212, %cst_87 {dimension_numbers = #tpu.dot_dimension_numbers<[1], [1], [0], [0], [0, 0, 1, 0], [], []>} : vector<64x8xbf16>, vector<64x8xbf16>, vector<64x64xf32> -> vector<64x64xf32>
    %cst_88 = arith.constant dense<0xFF800000> : vector<64xf32>
    %215 = vector.multi_reduction <maximumf>, %214, %cst_88 [1] : vector<64x64xf32> to vector<64xf32>
    %216 = vector.shape_cast %215 : vector<64xf32> to vector<64x1xf32>
    %217 = vector.broadcast %216 : vector<64x1xf32> to vector<64x64xf32>
    %218 = arith.subf %214, %217 : vector<64x64xf32>
    %219 = math.exp %218 : vector<64x64xf32>
    %cst_89 = arith.constant dense<0.000000e+00> : vector<64xf32>
    %220 = vector.multi_reduction <add>, %219, %cst_89 [1] : vector<64x64xf32> to vector<64xf32>
    %221 = vector.shape_cast %220 : vector<64xf32> to vector<64x1xf32>
    %222 = tpu.reciprocal %221 {approx = true} : vector<64x1xf32> -> vector<64x1xf32>
    %223 = vector.broadcast %222 : vector<64x1xf32> to vector<64x64xf32>
    %224 = arith.mulf %219, %223 : vector<64x64xf32>
    %225 = arith.truncf %224 : vector<64x64xf32> to vector<64x64xbf16>
    %cst_90 = arith.constant dense<0.000000e+00> : vector<64x8xf32>
    %226 = tpu.matmul %225, %213, %cst_90 {dimension_numbers = #tpu.dot_dimension_numbers<[1], [0], [0], [1], [0, 0, 1, 1], [], []>} : vector<64x64xbf16>, vector<64x8xbf16>, vector<64x8xf32> -> vector<64x8xf32>
    %c0_91 = arith.constant 0 : index
    %c16_92 = arith.constant 16 : index
    %227 = vector.load %arg10[%c0_91, %c16_92] : memref<128x32xf32, #tpu.memory_space<vmem>>, vector<64x8xf32>
    tpu.vector_store %arg10[%c0_91, %c16_92], %226 {strides = array<i32>} : memref<128x32xf32, #tpu.memory_space<vmem>>, vector<64x8xf32>,
    %228 = vector.extract_strided_slice %176 {offsets = [0, 24], sizes = [64, 8], strides = [1, 1]} : vector<128x96xbf16> to vector<64x8xbf16>
    %229 = vector.extract_strided_slice %176 {offsets = [0, 56], sizes = [64, 8], strides = [1, 1]} : vector<128x96xbf16> to vector<64x8xbf16>
    %230 = vector.extract_strided_slice %176 {offsets = [0, 88], sizes = [64, 8], strides = [1, 1]} : vector<128x96xbf16> to vector<64x8xbf16>
    %cst_93 = arith.constant dense<0.000000e+00> : vector<64x64xf32>
    %231 = tpu.matmul %228, %229, %cst_93 {dimension_numbers = #tpu.dot_dimension_numbers<[1], [1], [0], [0], [0, 0, 1, 0], [], []>} : vector<64x8xbf16>, vector<64x8xbf16>, vector<64x64xf32> -> vector<64x64xf32>
    %cst_94 = arith.constant dense<0xFF800000> : vector<64xf32>
    %232 = vector.multi_reduction <maximumf>, %231, %cst_94 [1] : vector<64x64xf32> to vector<64xf32>
    %233 = vector.shape_cast %232 : vector<64xf32> to vector<64x1xf32>
    %234 = vector.broadcast %233 : vector<64x1xf32> to vector<64x64xf32>
    %235 = arith.subf %231, %234 : vector<64x64xf32>
    %236 = math.exp %235 : vector<64x64xf32>
    %cst_95 = arith.constant dense<0.000000e+00> : vector<64xf32>
    %237 = vector.multi_reduction <add>, %236, %cst_95 [1] : vector<64x64xf32> to vector<64xf32>
    %238 = vector.shape_cast %237 : vector<64xf32> to vector<64x1xf32>
    %239 = tpu.reciprocal %238 {approx = true} : vector<64x1xf32> -> vector<64x1xf32>
    %240 = vector.broadcast %239 : vector<64x1xf32> to vector<64x64xf32>
    %241 = arith.mulf %236, %240 : vector<64x64xf32>
    %242 = arith.truncf %241 : vector<64x64xf32> to vector<64x64xbf16>
    %cst_96 = arith.constant dense<0.000000e+00> : vector<64x8xf32>
    %243 = tpu.matmul %242, %230, %cst_96 {dimension_numbers = #tpu.dot_dimension_numbers<[1], [0], [0], [1], [0, 0, 1, 1], [], []>} : vector<64x64xbf16>, vector<64x8xbf16>, vector<64x8xf32> -> vector<64x8xf32>
    %c0_97 = arith.constant 0 : index
    %c24_98 = arith.constant 24 : index
    %244 = vector.load %arg10[%c0_97, %c24_98] : memref<128x32xf32, #tpu.memory_space<vmem>>, vector<64x8xf32>
    tpu.vector_store %arg10[%c0_97, %c24_98], %243 {strides = array<i32>} : memref<128x32xf32, #tpu.memory_space<vmem>>, vector<64x8xf32>,
    %245 = vector.extract_strided_slice %176 {offsets = [64, 0], sizes = [64, 8], strides = [1, 1]} : vector<128x96xbf16> to vector<64x8xbf16>
    %246 = vector.extract_strided_slice %176 {offsets = [64, 32], sizes = [64, 8], strides = [1, 1]} : vector<128x96xbf16> to vector<64x8xbf16>
    %247 = vector.extract_strided_slice %176 {offsets = [64, 64], sizes = [64, 8], strides = [1, 1]} : vector<128x96xbf16> to vector<64x8xbf16>
    %cst_99 = arith.constant dense<0.000000e+00> : vector<64x64xf32>
    %248 = tpu.matmul %245, %246, %cst_99 {dimension_numbers = #tpu.dot_dimension_numbers<[1], [1], [0], [0], [0, 0, 1, 0], [], []>} : vector<64x8xbf16>, vector<64x8xbf16>, vector<64x64xf32> -> vector<64x64xf32>
    %cst_100 = arith.constant dense<0xFF800000> : vector<64xf32>
    %249 = vector.multi_reduction <maximumf>, %248, %cst_100 [1] : vector<64x64xf32> to vector<64xf32>
    %250 = vector.shape_cast %249 : vector<64xf32> to vector<64x1xf32>
    %251 = vector.broadcast %250 : vector<64x1xf32> to vector<64x64xf32>
    %252 = arith.subf %248, %251 : vector<64x64xf32>
    %253 = math.exp %252 : vector<64x64xf32>
    %cst_101 = arith.constant dense<0.000000e+00> : vector<64xf32>
    %254 = vector.multi_reduction <add>, %253, %cst_101 [1] : vector<64x64xf32> to vector<64xf32>
    %255 = vector.shape_cast %254 : vector<64xf32> to vector<64x1xf32>
    %256 = tpu.reciprocal %255 {approx = true} : vector<64x1xf32> -> vector<64x1xf32>
    %257 = vector.broadcast %256 : vector<64x1xf32> to vector<64x64xf32>
    %258 = arith.mulf %253, %257 : vector<64x64xf32>
    %259 = arith.truncf %258 : vector<64x64xf32> to vector<64x64xbf16>
    %cst_102 = arith.constant dense<0.000000e+00> : vector<64x8xf32>
    %260 = tpu.matmul %259, %247, %cst_102 {dimension_numbers = #tpu.dot_dimension_numbers<[1], [0], [0], [1], [0, 0, 1, 1], [], []>} : vector<64x64xbf16>, vector<64x8xbf16>, vector<64x8xf32> -> vector<64x8xf32>
    %c64_103 = arith.constant 64 : index
    %c0_104 = arith.constant 0 : index
    %261 = vector.load %arg10[%c64_103, %c0_104] : memref<128x32xf32, #tpu.memory_space<vmem>>, vector<64x8xf32>
    tpu.vector_store %arg10[%c64_103, %c0_104], %260 {strides = array<i32>} : memref<128x32xf32, #tpu.memory_space<vmem>>, vector<64x8xf32>,
    %262 = vector.extract_strided_slice %176 {offsets = [64, 8], sizes = [64, 8], strides = [1, 1]} : vector<128x96xbf16> to vector<64x8xbf16>
    %263 = vector.extract_strided_slice %176 {offsets = [64, 40], sizes = [64, 8], strides = [1, 1]} : vector<128x96xbf16> to vector<64x8xbf16>
    %264 = vector.extract_strided_slice %176 {offsets = [64, 72], sizes = [64, 8], strides = [1, 1]} : vector<128x96xbf16> to vector<64x8xbf16>
    %cst_105 = arith.constant dense<0.000000e+00> : vector<64x64xf32>
    %265 = tpu.matmul %262, %263, %cst_105 {dimension_numbers = #tpu.dot_dimension_numbers<[1], [1], [0], [0], [0, 0, 1, 0], [], []>} : vector<64x8xbf16>, vector<64x8xbf16>, vector<64x64xf32> -> vector<64x64xf32>
    %cst_106 = arith.constant dense<0xFF800000> : vector<64xf32>
    %266 = vector.multi_reduction <maximumf>, %265, %cst_106 [1] : vector<64x64xf32> to vector<64xf32>
    %267 = vector.shape_cast %266 : vector<64xf32> to vector<64x1xf32>
    %268 = vector.broadcast %267 : vector<64x1xf32> to vector<64x64xf32>
    %269 = arith.subf %265, %268 : vector<64x64xf32>
    %270 = math.exp %269 : vector<64x64xf32>
    %cst_107 = arith.constant dense<0.000000e+00> : vector<64xf32>
    %271 = vector.multi_reduction <add>, %270, %cst_107 [1] : vector<64x64xf32> to vector<64xf32>
    %272 = vector.shape_cast %271 : vector<64xf32> to vector<64x1xf32>
    %273 = tpu.reciprocal %272 {approx = true} : vector<64x1xf32> -> vector<64x1xf32>
    %274 = vector.broadcast %273 : vector<64x1xf32> to vector<64x64xf32>
    %275 = arith.mulf %270, %274 : vector<64x64xf32>
    %276 = arith.truncf %275 : vector<64x64xf32> to vector<64x64xbf16>
    %cst_108 = arith.constant dense<0.000000e+00> : vector<64x8xf32>
    %277 = tpu.matmul %276, %264, %cst_108 {dimension_numbers = #tpu.dot_dimension_numbers<[1], [0], [0], [1], [0, 0, 1, 1], [], []>} : vector<64x64xbf16>, vector<64x8xbf16>, vector<64x8xf32> -> vector<64x8xf32>
    %c64_109 = arith.constant 64 : index
    %c8_110 = arith.constant 8 : index
    %278 = vector.load %arg10[%c64_109, %c8_110] : memref<128x32xf32, #tpu.memory_space<vmem>>, vector<64x8xf32>
    tpu.vector_store %arg10[%c64_109, %c8_110], %277 {strides = array<i32>} : memref<128x32xf32, #tpu.memory_space<vmem>>, vector<64x8xf32>,
    %279 = vector.extract_strided_slice %176 {offsets = [64, 16], sizes = [64, 8], strides = [1, 1]} : vector<128x96xbf16> to vector<64x8xbf16>
    %280 = vector.extract_strided_slice %176 {offsets = [64, 48], sizes = [64, 8], strides = [1, 1]} : vector<128x96xbf16> to vector<64x8xbf16>
    %281 = vector.extract_strided_slice %176 {offsets = [64, 80], sizes = [64, 8], strides = [1, 1]} : vector<128x96xbf16> to vector<64x8xbf16>
    %cst_111 = arith.constant dense<0.000000e+00> : vector<64x64xf32>
    %282 = tpu.matmul %279, %280, %cst_111 {dimension_numbers = #tpu.dot_dimension_numbers<[1], [1], [0], [0], [0, 0, 1, 0], [], []>} : vector<64x8xbf16>, vector<64x8xbf16>, vector<64x64xf32> -> vector<64x64xf32>
    %cst_112 = arith.constant dense<0xFF800000> : vector<64xf32>
    %283 = vector.multi_reduction <maximumf>, %282, %cst_112 [1] : vector<64x64xf32> to vector<64xf32>
    %284 = vector.shape_cast %283 : vector<64xf32> to vector<64x1xf32>
    %285 = vector.broadcast %284 : vector<64x1xf32> to vector<64x64xf32>
    %286 = arith.subf %282, %285 : vector<64x64xf32>
    %287 = math.exp %286 : vector<64x64xf32>
    %cst_113 = arith.constant dense<0.000000e+00> : vector<64xf32>
    %288 = vector.multi_reduction <add>, %287, %cst_113 [1] : vector<64x64xf32> to vector<64xf32>
    %289 = vector.shape_cast %288 : vector<64xf32> to vector<64x1xf32>
    %290 = tpu.reciprocal %289 {approx = true} : vector<64x1xf32> -> vector<64x1xf32>
    %291 = vector.broadcast %290 : vector<64x1xf32> to vector<64x64xf32>
    %292 = arith.mulf %287, %291 : vector<64x64xf32>
    %293 = arith.truncf %292 : vector<64x64xf32> to vector<64x64xbf16>
    %cst_114 = arith.constant dense<0.000000e+00> : vector<64x8xf32>
    %294 = tpu.matmul %293, %281, %cst_114 {dimension_numbers = #tpu.dot_dimension_numbers<[1], [0], [0], [1], [0, 0, 1, 1], [], []>} : vector<64x64xbf16>, vector<64x8xbf16>, vector<64x8xf32> -> vector<64x8xf32>
    %c64_115 = arith.constant 64 : index
    %c16_116 = arith.constant 16 : index
    %295 = vector.load %arg10[%c64_115, %c16_116] : memref<128x32xf32, #tpu.memory_space<vmem>>, vector<64x8xf32>
    tpu.vector_store %arg10[%c64_115, %c16_116], %294 {strides = array<i32>} : memref<128x32xf32, #tpu.memory_space<vmem>>, vector<64x8xf32>,
    %296 = vector.extract_strided_slice %176 {offsets = [64, 24], sizes = [64, 8], strides = [1, 1]} : vector<128x96xbf16> to vector<64x8xbf16>
    %297 = vector.extract_strided_slice %176 {offsets = [64, 56], sizes = [64, 8], strides = [1, 1]} : vector<128x96xbf16> to vector<64x8xbf16>
    %298 = vector.extract_strided_slice %176 {offsets = [64, 88], sizes = [64, 8], strides = [1, 1]} : vector<128x96xbf16> to vector<64x8xbf16>
    %cst_117 = arith.constant dense<0.000000e+00> : vector<64x64xf32>
    %299 = tpu.matmul %296, %297, %cst_117 {dimension_numbers = #tpu.dot_dimension_numbers<[1], [1], [0], [0], [0, 0, 1, 0], [], []>} : vector<64x8xbf16>, vector<64x8xbf16>, vector<64x64xf32> -> vector<64x64xf32>
    %cst_118 = arith.constant dense<0xFF800000> : vector<64xf32>
    %300 = vector.multi_reduction <maximumf>, %299, %cst_118 [1] : vector<64x64xf32> to vector<64xf32>
    %301 = vector.shape_cast %300 : vector<64xf32> to vector<64x1xf32>
    %302 = vector.broadcast %301 : vector<64x1xf32> to vector<64x64xf32>
    %303 = arith.subf %299, %302 : vector<64x64xf32>
    %304 = math.exp %303 : vector<64x64xf32>
    %cst_119 = arith.constant dense<0.000000e+00> : vector<64xf32>
    %305 = vector.multi_reduction <add>, %304, %cst_119 [1] : vector<64x64xf32> to vector<64xf32>
    %306 = vector.shape_cast %305 : vector<64xf32> to vector<64x1xf32>
    %307 = tpu.reciprocal %306 {approx = true} : vector<64x1xf32> -> vector<64x1xf32>
    %308 = vector.broadcast %307 : vector<64x1xf32> to vector<64x64xf32>
    %309 = arith.mulf %304, %308 : vector<64x64xf32>
    %310 = arith.truncf %309 : vector<64x64xf32> to vector<64x64xbf16>
    %cst_120 = arith.constant dense<0.000000e+00> : vector<64x8xf32>
    %311 = tpu.matmul %310, %298, %cst_120 {dimension_numbers = #tpu.dot_dimension_numbers<[1], [0], [0], [1], [0, 0, 1, 1], [], []>} : vector<64x64xbf16>, vector<64x8xbf16>, vector<64x8xf32> -> vector<64x8xf32>
    %c64_121 = arith.constant 64 : index
    %c24_122 = arith.constant 24 : index
    %312 = vector.load %arg10[%c64_121, %c24_122] : memref<128x32xf32, #tpu.memory_space<vmem>>, vector<64x8xf32>
    tpu.vector_store %arg10[%c64_121, %c24_122], %311 {strides = array<i32>} : memref<128x32xf32, #tpu.memory_space<vmem>>, vector<64x8xf32>,
    %c0_123 = arith.constant 0 : index
    %c0_124 = arith.constant 0 : index
    %313 = vector.load %arg10[%c0_123, %c0_124] : memref<128x32xf32, #tpu.memory_space<vmem>>, vector<128x32xf32>
    %c1_125 = arith.constant 1 : index
    %c0_126 = arith.constant 0 : index
    %c0_127 = arith.constant 0 : index
    %314 = vector.load %arg6[%c1_125, %c0_126, %c0_127] : memref<2x32x32xbf16, #tpu.memory_space<vmem>>, vector<1x32x32xbf16>
    %315 = vector.shape_cast %314 : vector<1x32x32xbf16> to vector<32x32xbf16>
    %316 = arith.truncf %313 : vector<128x32xf32> to vector<128x32xbf16>
    %cst_128 = arith.constant dense<0.000000e+00> : vector<128x32xf32>
    %317 = tpu.matmul %316, %315, %cst_128 {dimension_numbers = #tpu.dot_dimension_numbers<[1], [0], [0], [1], [0, 0, 1, 1], [], []>} : vector<128x32xbf16>, vector<32x32xbf16>, vector<128x32xf32> -> vector<128x32xf32>
    %c1_129 = arith.constant 1 : index
    %c0_130 = arith.constant 0 : index
    %c0_131 = arith.constant 0 : index
    %318 = vector.load %arg7[%c1_129, %c0_130, %c0_131] : memref<2x1x32xf32, #tpu.memory_space<vmem>>, vector<1x1x32xf32>
    %319 = vector.shape_cast %318 : vector<1x1x32xf32> to vector<1x32xf32>
    %320 = vector.broadcast %319 : vector<1x32xf32> to vector<128x32xf32>
    %321 = arith.addf %317, %320 : vector<128x32xf32>
    %322 = arith.addf %321, %167 : vector<128x32xf32>
    %c1_132 = arith.constant 1 : index
    %c0_133 = arith.constant 0 : index
    %c0_134 = arith.constant 0 : index
    %323 = vector.load %arg8[%c1_132, %c0_133, %c0_134] : memref<2x32x32xbf16, #tpu.memory_space<vmem>>, vector<1x32x32xbf16>
    %324 = vector.shape_cast %323 : vector<1x32x32xbf16> to vector<32x32xbf16>
    %325 = arith.truncf %322 : vector<128x32xf32> to vector<128x32xbf16>
    %cst_135 = arith.constant dense<0.000000e+00> : vector<128x32xf32>
    %326 = tpu.matmul %325, %324, %cst_135 {dimension_numbers = #tpu.dot_dimension_numbers<[1], [0], [0], [1], [0, 0, 1, 1], [], []>} : vector<128x32xbf16>, vector<32x32xbf16>, vector<128x32xf32> -> vector<128x32xf32>
    %327 = arith.addf %326, %322 : vector<128x32xf32>
    %c0_136 = arith.constant 0 : index
    %c0_137 = arith.constant 0 : index
    %328 = vector.load %arg9[%c0_136, %c0_137] : memref<128x32xf32, #tpu.memory_space<vmem>>, vector<128x32xf32>
    tpu.vector_store %arg9[%c0_136, %c0_137], %327 {strides = array<i32>} : memref<128x32xf32, #tpu.memory_space<vmem>>, vector<128x32xf32>,
    return
  }
  func.func @transform_0(%arg0: i32) -> (i32, i32) {
    %c0_i32 = arith.constant 0 : i32
    %c0_i32_0 = arith.constant 0 : i32
    return %arg0, %c0_i32 : i32, i32
  }
  func.func @transform_1(%arg0: i32) -> (i32, i32) {
    %c0_i32 = arith.constant 0 : i32
    %c0_i32_0 = arith.constant 0 : i32
    %c0_i32_1 = arith.constant 0 : i32
    return %c0_i32, %c0_i32_0 : i32, i32
  }
  func.func @transform_2(%arg0: i32) -> (i32, i32) {
    %c0_i32 = arith.constant 0 : i32
    %c0_i32_0 = arith.constant 0 : i32
    %c0_i32_1 = arith.constant 0 : i32
    return %c0_i32, %c0_i32_0 : i32, i32
  }
  func.func @transform_3(%arg0: i32) -> (i32, i32, i32) {
    %c0_i32 = arith.constant 0 : i32
    %c0_i32_0 = arith.constant 0 : i32
    %c0_i32_1 = arith.constant 0 : i32
    %c0_i32_2 = arith.constant 0 : i32
    return %c0_i32, %c0_i32_0, %c0_i32_1 : i32, i32, i32
  }
  func.func @transform_4(%arg0: i32) -> (i32, i32, i32) {
    %c0_i32 = arith.constant 0 : i32
    %c0_i32_0 = arith.constant 0 : i32
    %c0_i32_1 = arith.constant 0 : i32
    %c0_i32_2 = arith.constant 0 : i32
    return %c0_i32, %c0_i32_0, %c0_i32_1 : i32, i32, i32
  }
  func.func @transform_5(%arg0: i32) -> (i32, i32, i32) {
    %c0_i32 = arith.constant 0 : i32
    %c0_i32_0 = arith.constant 0 : i32
    %c0_i32_1 = arith.constant 0 : i32
    %c0_i32_2 = arith.constant 0 : i32
    return %c0_i32, %c0_i32_0, %c0_i32_1 : i32, i32, i32
  }
  func.func @transform_6(%arg0: i32) -> (i32, i32, i32) {
    %c0_i32 = arith.constant 0 : i32
    %c0_i32_0 = arith.constant 0 : i32
    %c0_i32_1 = arith.constant 0 : i32
    %c0_i32_2 = arith.constant 0 : i32
    return %c0_i32, %c0_i32_0, %c0_i32_1 : i32, i32, i32
  }
  func.func @transform_7(%arg0: i32) -> (i32, i32, i32) {
    %c0_i32 = arith.constant 0 : i32
    %c0_i32_0 = arith.constant 0 : i32
    %c0_i32_1 = arith.constant 0 : i32
    %c0_i32_2 = arith.constant 0 : i32
    return %c0_i32, %c0_i32_0, %c0_i32_1 : i32, i32, i32
  }
  func.func @transform_8(%arg0: i32) -> (i32, i32) {
    %c0_i32 = arith.constant 0 : i32
    %c0_i32_0 = arith.constant 0 : i32
    return %arg0, %c0_i32 : i32, i32
  }
}

</mosaic_0001>

<bundles_post_ra>
// kernel: transformer_block_forward.1
= control target key start
LH: loop header
LB: loop body
LE: loop exit
PB: predicated region body
PF: predicated region fallthrough
CT: control target
= control target key end

     0   :  { %13 = vsyncpa [#allocation4], 0  ;;  %s10845_s0 = inlined_call_operand.hbm [shape: f32[128,32], index: 0, kind: input, shape index: {}]   ;;  %s10846_s1 = inlined_call_operand.hbm [shape: bf16[32,32], index: 1, kind: input, shape index: {}]   ;;  %s10847_s2 = inlined_call_operand.vmem [shape: f32[1,32], index: 2, kind: input, shape index: {}]   ;;  %s10848_s3 = inlined_call_operand.hbm [shape: bf16[2,32,96], index: 3, kind: input, shape index: {}]   ;;  %s10849_s4 = inlined_call_operand.vmem [shape: f32[2,1,96], index: 4, kind: input, shape index: {}]   ;;  %s10850_s5 = inlined_call_operand.hbm [shape: bf16[2,32,32], index: 5, kind: input, shape index: {}]   ;;  %s10851_s6 = inlined_call_operand.vmem [shape: f32[2,1,32], index: 6, kind: input, shape index: {}]   ;;  %s10852_s7 = inlined_call_operand.hbm [shape: bf16[2,32,32], index: 7, kind: input, shape index: {}]   ;;  %s10853_s8 = inlined_call_operand.hbm [shape: f32[128,32], index: 8, kind: output, shape index: {}]  }
   0x1   :  { %14 = vsyncpa [#allocation7], 0 }
   0x2   :  { %15 = vsyncpa [#allocation10], 0 }
   0x3   :  { %16 = vsyncpa [#allocation5], 0  ;;  %s8307_s27 = smov [#allocation6]  }
   0x4   :  { %s34_s28 = sshll.u32 %s8307_s27, 4  ;;  %s35_s28 = int_to_ptr.vmem [resolvable:$true] %s34_s28 }
   0x5   :  { %s8187_s29 = scalar_lea.vmem %s35_s28, 256  ;;  %p8192_p1 = scmp.lt.s32.totalorder %s35_s28, %s35_s28 }
   0x6   :  { %p8188_p0 = scmp.ne.s32.totalorder %s35_s28, %s8187_s29  ;;  %p8193_p2 = scmp.lt.s32.totalorder %s8187_s29, %s8187_s29 }
   0x8   :  { %p8194_p3 = por %p8193_p2, %p8192_p1 }
   0xa   :  { %p8195_p4 = pnand %p8194_p3, %p8188_p0 }
   0xc   :  { %8198 = shalt.err (!%p8195_p4)
}
   0xd   :  { %s8308_s30 = smov 64   ;;  %s8309_s9 = smov 4  }
   0xe   :  { %40 = dma.hbm_to_vmem [thread:$0]  %s10846_s1, 256, %s35_s28, [#allocation7], %s8308_s30, %s8308_s30, %s8309_s9  }
   0xf   :  { %s8310_s12 = smov [#allocation9]   ;;  %s8311_s14 = smov [#allocation3]  }
  0x10   :  { %s62_s13 = sshll.u32 %s8310_s12, 4  ;;  %s22_s15 = sshll.u32 %s8311_s14, 4  ;;  %s63_s13 = int_to_ptr.vmem [resolvable:$true] %s62_s13  ;;  %s23_s15 = int_to_ptr.vmem [resolvable:$true] %s22_s15 }
  0x11   :  { %s8207_s16 = scalar_lea.vmem %s63_s13, 512  ;;  %p8212_p6 = scmp.lt.s32.totalorder %s63_s13, %s63_s13 }
  0x12   :  { %p8208_p5 = scmp.ne.s32.totalorder %s63_s13, %s8207_s16  ;;  %p8213_p7 = scmp.lt.s32.totalorder %s8207_s16, %s8207_s16 }
  0x14   :  { %p8214_p8 = por %p8213_p7, %p8212_p6 }
  0x16   :  { %p8215_p9 = pnand %p8214_p8, %p8208_p5 }
  0x18   :  { %8218 = shalt.err (!%p8215_p9)
}
  0x19   :  { %68 = dma.hbm_to_vmem [thread:$0]  %s10850_s5, 512, %s63_s13, [#allocation10], %s8308_s30, %s8308_s30, %s8309_s9  }
  0x1a   :  { %s8227_s1 = scalar_lea.vmem %s23_s15, 2048  ;;  %p8232_p11 = scmp.lt.s32.totalorder %s23_s15, %s23_s15 }
  0x1b   :  { %p8228_p10 = scmp.ne.s32.totalorder %s23_s15, %s8227_s1  ;;  %p8233_p12 = scmp.lt.s32.totalorder %s8227_s1, %s8227_s1 }
  0x1d   :  { %p8234_p13 = por %p8233_p12, %p8232_p11 }
  0x1f   :  { %p8235_p0 = pnand %p8234_p13, %p8228_p10 }
  0x21   :  { %8238 = shalt.err (!%p8235_p0)
}
  0x22   :  { %s8312_s19 = smov 128   ;;  %s8313_s20 = smov 8  }
  0x23   :  { %28 = dma.hbm_to_vmem [thread:$0]  %s10845_s0, 2048, %s23_s15, [#allocation4], %s8312_s19, %s8312_s19, %s8313_s20  }
  0x24   :  { %s8314_s23 = smov [#allocation8]   ;;  %s8315_s5 = smov [#allocation11]  }
  0x25   :  { %s48_s24 = sshll.u32 %s8314_s23, 4  ;;  %s76_s25 = sshll.u32 %s8315_s5, 4  ;;  %s49_s24 = int_to_ptr.vmem [resolvable:$true] %s48_s24  ;;  %s77_s25 = int_to_ptr.vmem [resolvable:$true] %s76_s25 }
  0x26   :  { %s8247_s26 = scalar_lea.vmem %s49_s24, 512  ;;  %p8252_p2 = scmp.lt.s32.totalorder %s49_s24, %s49_s24 }
  0x27   :  { %p8248_p1 = scmp.ne.s32.totalorder %s49_s24, %s8247_s26  ;;  %p8253_p3 = scmp.lt.s32.totalorder %s8247_s26, %s8247_s26 }
  0x29   :  { %p8254_p4 = por %p8253_p3, %p8252_p2 }
  0x2b   :  { %p8255_p5 = pnand %p8254_p4, %p8248_p1 }
  0x2d   :  { %8258 = shalt.err (!%p8255_p5)
}
  0x2e   :  { %54 = dma.hbm_to_vmem [thread:$0]  %s10848_s3, 512, %s49_s24, [#allocation7], %s8308_s30, %s8308_s30, %s8309_s9  }
  0x2f   :  { %s8267_s0 = scalar_lea.vmem %s77_s25, 512  ;;  %p8272_p7 = scmp.lt.s32.totalorder %s77_s25, %s77_s25 }
  0x30   :  { %p8268_p6 = scmp.ne.s32.totalorder %s77_s25, %s8267_s0  ;;  %p8273_p8 = scmp.lt.s32.totalorder %s8267_s0, %s8267_s0 }
  0x32   :  { %p8274_p9 = por %p8273_p8, %p8272_p7 }
  0x34   :  { %p8275_p10 = pnand %p8274_p9, %p8268_p6 }
  0x36   :  { %8278 = shalt.err (!%p8275_p10)
}
  0x37   :  { %82 = dma.hbm_to_vmem [thread:$0]  %s10852_s7, 512, %s77_s25, [#allocation10], %s8308_s30, %s8308_s30, %s8309_s9  }
  0x38   :  { %8299 = dma.done.wait [#allocation4], 2048  }
  0x39   :  { %8300 = vsyncadd [#allocation4], 4294965248 }
  0x3a   :  { %8301 = dma.done.wait [#allocation7], 768  }
  0x3b   :  { %8302 = vsyncadd [#allocation7], 4294966528 }
  0x3c   :  { %8303 = dma.done.wait [#allocation10], 1024  }
  0x3d   :  { %8304 = vsyncadd [#allocation10], 4294966272  ;;  %v7652_v0 = vld [vmem:[#allocation6 + $0x8] sm:$0xff]   ;;  %v7653_v1 = vld [vmem:[#allocation6] sm:$0xff]   ;;  %vm146_vm0 = vcmask 261120   ;;  %vm456_vm1 = vcmask 64512  }
  0x3e   :  { %6910 = vmatprep.subr.bf16.mxu0 %v7652_v0  ;;  %v99_v2 = vld [vmem:[#allocation3] sm:$0xff]  ;;  %v100_v3 = vld [vmem:[#allocation3 + $0x8] sm:$0xff]  ;;  %v101_v5 = vld [vmem:[#allocation3 + $0x10] sm:$0xff]  ;;  %s8316_s11 = smov 96   ;;  %s8317_s12 = smov 88   ;;  %vm546_vm2 = vcmask 523264  }
  0x3f   :  { %6911 = vmatpush3.bf16.msra.mxu0 %v7652_v0  ;;  %v119_v4 = vpack.c.bf16 %v100_v3, %v99_v2  ;;  %v102_v6 = vld [vmem:[#allocation3 + $0x18] sm:$0xff]  ;;  %v103_v7 = vld [vmem:[#allocation3 + $0x20] sm:$0xff]  ;;  %v104_v8 = vld [vmem:[#allocation3 + $0x28] sm:$0xff]  ;;  %s8318_s13 = smov 120   ;;  %s8319_s14 = smov 56   ;;  %vm1054_vm3 = vcmask 130112  }
  0x40   :  { %6912 = vmatprep.subr.bf16.mxu0 %v7653_v1  ;;  %v120_v9 = vpack.c.bf16 %v102_v6, %v101_v5  ;;  %v121_v10 = vpack.c.bf16 %v104_v8, %v103_v7  ;;  %v105_v11 = vld [vmem:[#allocation3 + $0x30] sm:$0xff]  ;;  %v106_v12 = vld [vmem:[#allocation3 + $0x38] sm:$0xff]  ;;  %v8411_v18 = vld [vmem:[%s10847_s2] ss:$0 sm:$0xff]  ;;  %s8320_s15 = smov 80   ;;  %s8321_s16 = smov 112  }
  0x41   :  { %6914 = vmatprep.mubr.msk.bf16.mxu0 %vm146_vm0, %v119_v4  ;;  %v122_v13 = vpack.c.bf16 %v106_v12, %v105_v11  ;;  %v7654_v14 = vld [vmem:[#allocation8 + $0x8] sm:$0xff]   ;;  %v7655_v15 = vld [vmem:[#allocation8] sm:$0xff]   ;;  %v8449_v45 = vld [vmem:[#allocation3 + $0x40] sm:$0xff]  ;;  %s8322_s17 = smov 48   ;;  %s8323_s18 = smov 72   ;;  %vm1381_vm4 = vcmask 195712  }
  0x42   :  { %6930 = vmatprep.subr.bf16.mxu1 %v7654_v14  ;;  %v8451_v46 = vld [vmem:[#allocation3 + $0x48] sm:$0xff]  ;;  %v109_v48 = vld [vmem:[#allocation3 + $0x50] sm:$0xff]  ;;  %v110_v49 = vld [vmem:[#allocation3 + $0x58] sm:$0xff]  ;;  %s8324_s1 = smov 104   ;;  %s8325_s21 = smov 40   ;;  %vm1708_vm5 = vcmask 261312  }
  0x43   :  { %6913 = vmatpush3.bf16.msra.mxu0 %v7653_v1  ;;  %6931 = vmatpush3.bf16.msra.mxu1 %v7654_v14  ;;  %v123_v47 = vpack.c.bf16 %v8451_v46, %v8449_v45  ;;  %v124_v50 = vpack.c.bf16 %v110_v49, %v109_v48  ;;  %v8457_v51 = vld [vmem:[#allocation3 + $0x60] sm:$0xff]  ;;  %v8459_v52 = vld [vmem:[#allocation3 + $0x68] sm:$0xff]  ;;  %v8463_v54 = vld [vmem:[#allocation3 + $0x70] sm:$0xff]  ;;  %s8326_s24 = smov 16   ;;  %s8327_s5 = smov 24  }
  0x44   :  { %6932 = vmatprep.subr.bf16.mxu1 %v7655_v15  ;;  %v125_v53 = vpack.c.bf16 %v8459_v52, %v8457_v51  ;;  %v8465_v55 = vld [vmem:[#allocation3 + $0x78] sm:$0xff]  ;;  %v8474_v58 = vld [vmem:[%s10849_s4] ss:$0 sm:$0xff] }
  0x45   :  { %v126_v56 = vpack.c.bf16 %v8465_v55, %v8463_v54 }
  0x46   :  { %6915 = vmatmul.mubr.msk.bf16.vlgmr.msra.gmra.mxu0 %vm146_vm0, %v120_v9 }
  0x47   :  { %6918 = vmatprep.mubr.msk.bf16.mxu0 %vm146_vm0, %v121_v10  ;;  %6933 = vmatpush3.bf16.msra.mxu1 %v7655_v15 }
  0x4e   :  { %6919 = vmatmul.mubr.msk.bf16.gmra.mxu0 %vm146_vm0, %v122_v13 }
  0x4f   :  { %6922 = vmatprep.mubr.msk.bf16.mxu0 %vm146_vm0, %v123_v47 }
  0x56   :  { %6923 = vmatmul.mubr.msk.bf16.gmra.mxu0 %vm146_vm0, %v124_v50 }
  0x57   :  { %6926 = vmatprep.mubr.msk.bf16.mxu0 %vm146_vm0, %v125_v53 }
  0x5e   :  { %6927 = vmatmul.mubr.msk.bf16.gmra.mxu0 %vm146_vm0, %v126_v56 }
 0x106   :  { %v6916_v16 = vpop.f32.mrf.mxu0 }
 0x107   :  { %v214_v22 = vadd.f32 %v6916_v16, %v8411_v18 }
 0x108   :  { %v205_v17 = vpop.f32.mrf.mxu0 }
 0x109   :  { %v206_v20 = vadd.f32 %v8411_v18, %v205_v17  ;;  %v8423_v29 = vadd.f32 %v214_v22, %v101_v5 }
 0x10a   :  { %v6917_v19 = vpop.f32.mrf.mxu0 }
 0x10b   :  { %v217_v21 = vadd.f32 %v6917_v19, %v8411_v18  ;;  %v8419_v27 = vadd.f32 %v206_v20, %v99_v2  ;;  %10883 = vst [vmem:[#allocation17_spill] sm:$0xff] %v8423_v29 }
 0x10c   :  { %v208_v23 = vpop.f32.mrf.mxu0 }
 0x10d   :  { %v209_v24 = vadd.f32 %v8411_v18, %v208_v23  ;;  %v8417_v25 = vadd.f32 %v217_v21, %v102_v6 }
 0x10e   :  { %v6920_v26 = vpop.f32.mrf.mxu0 }
 0x10f   :  { %v8421_v28 = vadd.f32 %v209_v24, %v100_v3  ;;  %v289_v32 = vpack.c.bf16 %v8417_v25, %v8423_v29  ;;  %v230_v36 = vadd.f32 %v6920_v26, %v8411_v18 }
 0x110   :  { %v221_v30 = vpop.f32.mrf.mxu0 }
 0x111   :  { %v288_v31 = vpack.c.bf16 %v8421_v28, %v8419_v27  ;;  %v222_v34 = vadd.f32 %v8411_v18, %v221_v30  ;;  %v8441_v42 = vadd.f32 %v230_v36, %v105_v11 }
 0x112   :  { %v6921_v33 = vpop.f32.mrf.mxu0 }
 0x113   :  { %v233_v35 = vadd.f32 %v6921_v33, %v8411_v18  ;;  %6934 = vmatprep.mubr.msk.bf16.mxu1 %vm146_vm0, %v288_v31  ;;  %v8437_v40 = vadd.f32 %v222_v34, %v103_v7  ;;  %10887 = vst [vmem:[#allocation21_spill] sm:$0xff] %v8441_v42 }
 0x114   :  { %v224_v37 = vpop.f32.mrf.mxu0  ;;  %6935 = vmatmul.mubr.msk.bf16.vlgmr.msra.gmra.mxu1 %vm146_vm0, %v289_v32 }
 0x115   :  { %v225_v38 = vadd.f32 %v8411_v18, %v224_v37  ;;  %v8435_v39 = vadd.f32 %v233_v35, %v106_v12  ;;  %10885 = vst [vmem:[#allocation19_spill] sm:$0xff] %v8437_v40 }
 0x116   :  { %v6924_v14 = vpop.f32.mrf.mxu0 }
 0x117   :  { %10884 = vst [vmem:[#allocation18_spill] sm:$0xff] %v8435_v39  ;;  %v8439_v41 = vadd.f32 %v225_v38, %v104_v8  ;;  %v291_v44 = vpack.c.bf16 %v8435_v39, %v8441_v42  ;;  %v246_v15 = vadd.f32 %v6924_v14, %v8411_v18 }
 0x118   :  { %v237_v16 = vpop.f32.mrf.mxu0 }
 0x119   :  { %10886 = vst [vmem:[#allocation20_spill] sm:$0xff] %v8439_v41  ;;  %v290_v43 = vpack.c.bf16 %v8439_v41, %v8437_v40  ;;  %v238_v17 = vadd.f32 %v8411_v18, %v237_v16  ;;  %v8525_v21 = vadd.f32 %v246_v15, %v109_v48 }
 0x11a   :  { %v6925_v19 = vpop.f32.mrf.mxu0 }
 0x11b   :  { %6938 = vmatprep.mubr.msk.bf16.mxu1 %vm146_vm0, %v290_v43  ;;  %v249_v20 = vadd.f32 %v6925_v19, %v8411_v18  ;;  %10888 = vst [vmem:[#allocation22_spill] sm:$0xff] %v8525_v21  ;;  %v8528_v23 = vadd.f32 %v238_v17, %v8449_v45 }
 0x11c   :  { %6939 = vmatmul.mubr.msk.bf16.gmra.mxu1 %vm146_vm0, %v291_v44  ;;  %v240_v22 = vpop.f32.mrf.mxu0 }
 0x11d   :  { %10889 = vst [vmem:[#allocation23_spill] sm:$0xff] %v8528_v23  ;;  %v8530_v24 = vadd.f32 %v249_v20, %v110_v49  ;;  %v241_v26 = vadd.f32 %v8411_v18, %v240_v22 }
 0x11e   :  { %v6928_v30 = vpop.f32.mrf.mxu0 }
 0x11f   :  { %10890 = vst [vmem:[#allocation24_spill] sm:$0xff] %v8530_v24  ;;  %v8534_v31 = vadd.f32 %v241_v26, %v8451_v46  ;;  %v293_v32 = vpack.c.bf16 %v8530_v24, %v8525_v21  ;;  %v262_v33 = vadd.f32 %v6928_v30, %v8411_v18 }
 0x120   :  { %v253_v34 = vpop.f32.mrf.mxu0 }
 0x121   :  { %10891 = vst [vmem:[#allocation25_spill] sm:$0xff] %v8534_v31  ;;  %v292_v35 = vpack.c.bf16 %v8534_v31, %v8528_v23  ;;  %v254_v36 = vadd.f32 %v8411_v18, %v253_v34  ;;  %v8545_v43 = vadd.f32 %v262_v33, %v8463_v54 }
 0x122   :  { %v6929_v37 = vpop.f32.mrf.mxu0 }
 0x123   :  { %v265_v38 = vadd.f32 %v6929_v37, %v8411_v18  ;;  %6942 = vmatprep.mubr.msk.bf16.mxu1 %vm146_vm0, %v292_v35  ;;  %10892 = vst [vmem:[#allocation26_spill] sm:$0xff] %v8545_v43  ;;  %v8549_v45 = vadd.f32 %v254_v36, %v8457_v51 }
 0x124   :  { %v256_v44 = vpop.f32.mrf.mxu0  ;;  %6943 = vmatmul.mubr.msk.bf16.gmra.mxu1 %vm146_vm0, %v293_v32 }
 0x125   :  { %10893 = vst [vmem:[#allocation27_spill] sm:$0xff] %v8549_v45  ;;  %v8552_v46 = vadd.f32 %v265_v38, %v8465_v55  ;;  %v257_v47 = vadd.f32 %v8411_v18, %v256_v44 }
 0x127   :  { %10894 = vst [vmem:[#allocation28_spill] sm:$0xff] %v8552_v46  ;;  %v8556_v48 = vadd.f32 %v257_v47, %v8459_v52  ;;  %v295_v49 = vpack.c.bf16 %v8552_v46, %v8545_v43 }
 0x129   :  { %10895 = vst [vmem:[#allocation29_spill] sm:$0xff] %v8556_v48  ;;  %v294_v50 = vpack.c.bf16 %v8556_v48, %v8549_v45 }
 0x12b   :  { %6946 = vmatprep.mubr.msk.bf16.mxu1 %vm146_vm0, %v294_v50 }
 0x12c   :  { %6947 = vmatmul.mubr.msk.bf16.gmra.mxu1 %vm146_vm0, %v295_v49 }
 0x1d4   :  { %v6936_v57 = vpop.f32.mrf.mxu1 }
 0x1d5   :  { %v382_v61 = vadd.f32 %v6936_v57, %v8474_v58 }
 0x1d6   :  { %v373_v59 = vpop.f32.mrf.mxu1 }
 0x1d7   :  { %v374_v0 = vadd.f32 %v8474_v58, %v373_v59 }
 0x1d8   :  { %v6937_v60 = vpop.f32.mrf.mxu1 }
 0x1d9   :  { %v385_v62 = vadd.f32 %v6937_v60, %v8474_v58 }
 0x1da   :  { %v376_v63 = vpop.f32.mrf.mxu1 }
 0x1db   :  { %v8479_v1 = vpack.c.bf16 %v385_v62, %v382_v61  ;;  %v377_v2 = vadd.f32 %v8474_v58, %v376_v63 }
 0x1dc   :  { %v6940_v3 = vpop.f32.mrf.mxu1 }
 0x1dd   :  { %v8482_v4 = vpack.c.bf16 %v377_v2, %v374_v0  ;;  %450 = vrot.lane.b32.xlu1 %v8479_v1, %s8316_s11  ;;  %v398_v7 = vadd.f32 %v6940_v3, %v8474_v58 }
 0x1de   :  { %v389_v5 = vpop.f32.mrf.mxu1 }
 0x1df   :  { %6958 = vmatprep.mubr.msk.bf16.mxu0 %vm456_vm1, %v8482_v4  ;;  %v390_v10 = vadd.f32 %v8474_v58, %v389_v5 }
 0x1e0   :  { %v6941_v6 = vpop.f32.mrf.mxu1 }
 0x1e1   :  { %v401_v8 = vadd.f32 %v6941_v6, %v8474_v58  ;;  %448 = vrot.lane.b32.xlu1 %v8482_v4, %s8316_s11 }
 0x1e2   :  { %v392_v9 = vpop.f32.mrf.mxu1 }
 0x1e3   :  { %v8493_v11 = vpack.c.bf16 %v401_v8, %v398_v7  ;;  %v393_v12 = vadd.f32 %v8474_v58, %v392_v9 }
 0x1e5   :  { %v8496_v13 = vpack.c.bf16 %v393_v12, %v390_v10  ;;  %454 = vrot.lane.b32.xlu0 %v8493_v11, %s8316_s11 }
 0x1e7   :  { %748 = vrot.lane.b32.xlu1 %v8496_v13, %s8317_s12 }
 0x1e9   :  { %452 = vrot.lane.b32.xlu0 %v8496_v13, %s8316_s11 }
 0x1eb   :  { %744 = vrot.lane.b32.xlu1 %v8482_v4, %s8317_s12 }
 0x1ed   :  { %750 = vrot.lane.b32.xlu0 %v8493_v11, %s8317_s12 }
 0x1ef   :  { %738 = vrot.lane.b32.xlu1 %v8479_v1, %s8318_s13 }
 0x1f1   :  { %746 = vrot.lane.b32.xlu0 %v8479_v1, %s8317_s12 }
 0x1f3   :  { %742 = vrot.lane.b32.xlu1 %v8493_v11, %s8318_s13 }
 0x1f5   :  { %736 = vrot.lane.b32.xlu0 %v8482_v4, %s8318_s13 }
 0x1f7   :  { %645 = vrot.lane.b32.xlu1 %v8493_v11, %s8308_s30 }
 0x1f9   :  { %740 = vrot.lane.b32.xlu0 %v8496_v13, %s8318_s13 }
 0x1fb   :  { %643 = vrot.lane.b32.xlu1 %v8496_v13, %s8308_s30 }
 0x24f   :  { %v451_v51 = vpop.permute.xlu1 %450 }
 0x250   :  { %v473_v61 = vsel %vm456_vm1, %v451_v51, 0 }
 0x253   :  { %v449_v53 = vpop.permute.xlu1 %448 }
 0x254   :  { %v470_v0 = vsel %vm456_vm1, %v449_v53, 0 }
 0x257   :  { %v455_v54 = vpop.permute.xlu0 %454 }
 0x258   :  { %7566 = vmatprep.subr.msk.bf16.mxu0 %vm456_vm1, %v455_v54  ;;  %v479_v18 = vsel %vm456_vm1, %v455_v54, 0 }
 0x259   :  { %6951 = vmatpush3.bf16.xpose.msra.mxu0 %v479_v18  ;;  %v749_v52 = vpop.permute.xlu1 %748  ;;  %v6944_v18 = vpop.f32.mrf.mxu1 }
 0x25a   :  { %v771_v7 = vsel %vm456_vm1, %v749_v52, 0 }
 0x25b   :  { %v453_v55 = vpop.permute.xlu0 %452 }
 0x25c   :  { %7567 = vmatprep.subr.msk.bf16.mxu0 %vm456_vm1, %v453_v55  ;;  %v476_v57 = vsel %vm456_vm1, %v453_v55, 0  ;;  %v414_v55 = vadd.f32 %v6944_v18, %v8474_v58 }
 0x25d   :  { %v745_v56 = vpop.permute.xlu1 %744 }
 0x25e   :  { %v765_v9 = vsel %vm456_vm1, %v745_v56, 0 }
 0x25f   :  { %v751_v2 = vpop.permute.xlu0 %750 }
 0x260   :  { %v774_v3 = vsel %vm456_vm1, %v751_v2, 0 }
 0x261   :  { %6953 = vmatpush3.bf16.xpose.msra.mxu0 %v476_v57  ;;  %v739_v59 = vpop.permute.xlu1 %738 }
 0x262   :  { %7568 = vmatprep.subr.msk.bf16.mxu0 %vm456_vm1, %v451_v51 }
 0x263   :  { %v747_v5 = vpop.permute.xlu0 %746 }
 0x264   :  { %v768_v8 = vsel %vm456_vm1, %v747_v5, 0 }
 0x265   :  { %v743_v60 = vpop.permute.xlu1 %742 }
 0x267   :  { %v737_v6 = vpop.permute.xlu0 %736 }
 0x269   :  { %6955 = vmatpush3.bf16.xpose.msra.mxu0 %v473_v61  ;;  %v646_v62 = vpop.permute.xlu1 %645 }
 0x26a   :  { %7569 = vmatprep.subr.msk.bf16.mxu0 %vm456_vm1, %v449_v53  ;;  %6966 = vmatprep.subr.bf16.mxu1 %v646_v62 }
 0x26b   :  { %6967 = vmatpush3.bf16.msra.mxu1 %v646_v62  ;;  %v741_v10 = vpop.permute.xlu0 %740 }
 0x26d   :  { %v644_v63 = vpop.permute.xlu1 %643 }
 0x26e   :  { %6968 = vmatprep.subr.bf16.mxu1 %v644_v63 }
 0x26f   :  { %6969 = vmatpush3.bf16.msra.mxu1 %v644_v63 }
 0x271   :  { %6957 = vmatpush3.bf16.xpose.msra.mxu0 %v470_v0 }
 0x272   :  { %7570 = vmatprep.subr.msk.bf16.mxu0 %vm456_vm1, %v751_v2 }
 0x278   :  { %6959 = vmatmul.mubr.msk.bf16.vlgmr.msra.gmra.mxu0 %vm456_vm1, %v8479_v1 }
 0x279   :  { %6962 = vmatprep.mubr.msk.bf16.mxu0 %vm456_vm1, %v8496_v13  ;;  %6983 = vmatpush3.bf16.xpose.msra.mxu0 %v774_v3 }
 0x27a   :  { %7571 = vmatprep.subr.msk.bf16.mxu0 %vm456_vm1, %v749_v52  ;;  %v8638_v52 = vpop.f32.mrf.mxu1 }
 0x280   :  { %6963 = vmatmul.mubr.msk.bf16.gmra.mxu0 %vm456_vm1, %v8493_v11 }
 0x281   :  { %6985 = vmatpush3.bf16.xpose.msra.mxu0 %v771_v7  ;;  %6990 = vmatprep.mubr.msk.bf16.mxu0 %vm456_vm1, %v737_v6 }
 0x282   :  { %7572 = vmatprep.subr.msk.bf16.mxu0 %vm456_vm1, %v747_v5 }
 0x289   :  { %6987 = vmatpush3.bf16.xpose.msra.mxu0 %v768_v8 }
 0x28a   :  { %7573 = vmatprep.subr.msk.bf16.mxu0 %vm456_vm1, %v745_v56  ;;  %v6945_v56 = vpop.f32.mrf.mxu1 }
 0x28b   :  { %v417_v57 = vadd.f32 %v6945_v56, %v8474_v58 }
 0x291   :  { %6989 = vmatpush3.bf16.xpose.msra.mxu0 %v765_v9 }
 0x298   :  { %6991 = vmatmul.mubr.msk.bf16.vlgmr.msra.gmra.mxu0 %vm456_vm1, %v739_v59  ;;  %v8644_v59 = vpop.f32.mrf.mxu1 }
 0x299   :  { %6994 = vmatprep.mubr.msk.bf16.mxu0 %vm456_vm1, %v741_v10 }
 0x29a   :  { %v6948_v61 = vpop.f32.mrf.mxu1 }
 0x29b   :  { %v430_v63 = vadd.f32 %v6948_v61, %v8474_v58 }
 0x29c   :  { %v8650_v62 = vpop.f32.mrf.mxu1 }
 0x29e   :  { %v6949_v0 = vpop.f32.mrf.mxu1 }
 0x29f   :  { %v433_v2 = vadd.f32 %v6949_v0, %v8474_v58 }
 0x2a0   :  { %6995 = vmatmul.mubr.msk.bf16.gmra.mxu0 %vm456_vm1, %v743_v60  ;;  %v8646_v60 = vpack.c.bf16 %v417_v57, %v414_v55 }
 0x2a1   :  { %v8658_v3 = vpack.c.bf16 %v433_v2, %v430_v63 }
 0x338   :  { %v8590_v12 = vpop.f32.mrf.mxu0 }
 0x339   :  { %v553_v14 = vsel %vm546_vm2, %v8590_v12, -inf }
 0x33a   :  { %554 = vmax.xlane.f32.xlu0 %v553_v14  ;;  %v8594_v15 = vpop.f32.mrf.mxu0 }
 0x33b   :  { %v547_v17 = vsel %vm546_vm2, %v8594_v15, -inf }
 0x33c   :  { %v8596_v16 = vpop.f32.mrf.mxu0 }
 0x33d   :  { %v556_v26 = vsel %vm546_vm2, %v8596_v16, -inf }
 0x33e   :  { %548 = vmax.xlane.f32.xlu0 %v547_v17  ;;  %v8600_v19 = vpop.f32.mrf.mxu0 }
 0x33f   :  { %v550_v20 = vsel %vm546_vm2, %v8600_v19, -inf }
 0x340   :  { %551 = vmax.xlane.f32.xlu1 %v550_v20  ;;  %v8604_v22 = vpop.f32.mrf.mxu0 }
 0x341   :  { %v565_v32 = vsel %vm546_vm2, %v8604_v22, -inf }
 0x342   :  { %557 = vmax.xlane.f32.xlu0 %v556_v26  ;;  %v8608_v30 = vpop.f32.mrf.mxu0 }
 0x343   :  { %v559_v36 = vsel %vm546_vm2, %v8608_v30, -inf }
 0x344   :  { %566 = vmax.xlane.f32.xlu1 %v565_v32  ;;  %v8612_v33 = vpop.f32.mrf.mxu0 }
 0x345   :  { %v568_v34 = vsel %vm546_vm2, %v8612_v33, -inf }
 0x346   :  { %569 = vmax.xlane.f32.xlu0 %v568_v34  ;;  %v8616_v35 = vpop.f32.mrf.mxu0 }
 0x347   :  { %v562_v37 = vsel %vm546_vm2, %v8616_v35, -inf }
 0x348   :  { %560 = vmax.xlane.f32.xlu1 %v559_v36 }
 0x34a   :  { %563 = vmax.xlane.f32.xlu0 %v562_v37 }
 0x358   :  { %v8622_v38 = vpop.f32.mrf.mxu0 }
 0x359   :  { %v847_v44 = vsel %vm546_vm2, %v8622_v38, -inf }
 0x35a   :  { %848 = vmax.xlane.f32.xlu1 %v847_v44  ;;  %v8626_v47 = vpop.f32.mrf.mxu0 }
 0x35b   :  { %v841_v50 = vsel %vm546_vm2, %v8626_v47, -inf }
 0x35c   :  { %v8628_v49 = vpop.f32.mrf.mxu0 }
 0x35d   :  { %v850_v51 = vsel %vm546_vm2, %v8628_v49, -inf }
 0x35e   :  { %842 = vmax.xlane.f32.xlu1 %v841_v50  ;;  %v8634_v53 = vpop.f32.mrf.mxu0  ;;  %851 = vmax.xlane.f32.xlu0 %v850_v51 }
 0x35f   :  { %v844_v54 = vsel %vm546_vm2, %v8634_v53, -inf }
 0x360   :  { %v8660_v5 = vpop.f32.mrf.mxu0 }
 0x361   :  { %v859_v10 = vsel %vm546_vm2, %v8660_v5, -inf }
 0x362   :  { %845 = vmax.xlane.f32.xlu0 %v844_v54  ;;  %v8662_v6 = vpop.f32.mrf.mxu0 }
 0x363   :  { %v853_v14 = vsel %vm546_vm2, %v8662_v6, -inf }
 0x364   :  { %v8664_v7 = vpop.f32.mrf.mxu0 }
 0x365   :  { %v862_v8 = vsel %vm546_vm2, %v8664_v7, -inf }
 0x366   :  { %v8668_v9 = vpop.f32.mrf.mxu0 }
 0x367   :  { %v856_v58 = vsel %vm546_vm2, %v8668_v9, -inf }
 0x36f   :  { %639 = vrot.lane.b32.xlu1 %v8482_v4, %s8308_s30 }
 0x373   :  { %939 = vrot.lane.b32.xlu1 %v8493_v11, %s8319_s14 }
 0x377   :  { %937 = vrot.lane.b32.xlu1 %v8496_v13, %s8319_s14 }
 0x378   :  { %641 = vrot.lane.b32.xlu0 %v8479_v1, %s8308_s30 }
 0x397   :  { %863 = vmax.xlane.f32.xlu0 %v862_v8 }
 0x39b   :  { %860 = vmax.xlane.f32.xlu1 %v859_v10  ;;  %857 = vmax.xlane.f32.xlu0 %v856_v58 }
 0x39f   :  { %854 = vmax.xlane.f32.xlu1 %v853_v14 }
 0x3b0   :  { %935 = vrot.lane.b32.xlu1 %v8479_v1, %s8319_s14 }
 0x3c3   :  { %v555_v17 = vpop.xlane.xlu0 %554 }
 0x3c4   :  { %v573_v20 = vsub.f32 %v8590_v12, %v555_v17 }
 0x3c6   :  { %v583_v26 = vmul.f32 1.442695, %v573_v20 }
 0x3c7   :  { %v549_v32 = vpop.xlane.xlu0 %548 }
 0x3c8   :  { %7666 = vpow2.f32 %v583_v26  ;;  %v571_v34 = vsub.f32 %v8594_v15, %v549_v32 }
 0x3c9   :  { %v552_v36 = vpop.xlane.xlu1 %551 }
 0x3ca   :  { %v579_v37 = vmul.f32 1.442695, %v571_v34  ;;  %v572_v44 = vsub.f32 %v8600_v19, %v552_v36 }
 0x3cb   :  { %v558_v50 = vpop.xlane.xlu0 %557 }
 0x3cc   :  { %7668 = vpow2.f32 %v579_v37  ;;  %v574_v51 = vsub.f32 %v8596_v16, %v558_v50  ;;  %v581_v54 = vmul.f32 1.442695, %v572_v44 }
 0x3cd   :  { %v567_v18 = vpop.xlane.xlu1 %566 }
 0x3ce   :  { %v585_v55 = vmul.f32 1.442695, %v574_v51  ;;  %v577_v56 = vsub.f32 %v8604_v22, %v567_v18 }
 0x3cf   :  { %v570_v57 = vpop.xlane.xlu0 %569 }
 0x3d0   :  { %7670 = vpow2.f32 %v585_v55  ;;  %v591_v12 = vmul.f32 1.442695, %v577_v56  ;;  %v578_v61 = vsub.f32 %v8612_v33, %v570_v57 }
 0x3d1   :  { %7672 = vpow2.f32 %v581_v54  ;;  %v561_v15 = vpop.xlane.xlu1 %560 }
 0x3d2   :  { %7674 = vpow2.f32 %v591_v12  ;;  %v593_v63 = vmul.f32 1.442695, %v578_v61  ;;  %v575_v19 = vsub.f32 %v8608_v30, %v561_v15 }
 0x3d3   :  { %v564_v0 = vpop.xlane.xlu0 %563 }
 0x3d4   :  { %v587_v2 = vmul.f32 1.442695, %v575_v19  ;;  %v576_v16 = vsub.f32 %v8616_v35, %v564_v0  ;;  %7676 = vpow2.f32 %v593_v63 }
 0x3d5   :  { %v8686_v8 = vpop.eup %7666 }
 0x3d6   :  { %7678 = vpow2.f32 %v587_v2  ;;  %v589_v22 = vmul.f32 1.442695, %v576_v16  ;;  %v601_v10 = vsel %vm546_vm2, %v8686_v8, 0.0 }
 0x3d7   :  { %602 = vadd.xlane.f32.xlu1 %v601_v10 }
 0x3d8   :  { %7680 = vpow2.f32 %v589_v22 }
 0x3d9   :  { %v8690_v33 = vpop.eup %7668 }
 0x3da   :  { %v595_v58 = vsel %vm546_vm2, %v8690_v33, 0.0 }
 0x3db   :  { %596 = vadd.xlane.f32.xlu1 %v595_v58 }
 0x3dd   :  { %v8694_v30 = vpop.eup %7670 }
 0x3de   :  { %v8696_v14 = vpop.eup %7672  ;;  %v604_v35 = vsel %vm546_vm2, %v8694_v30, 0.0 }
 0x3df   :  { %v8700_v17 = vpop.eup %7674  ;;  %605 = vadd.xlane.f32.xlu0 %v604_v35  ;;  %v598_v32 = vsel %vm546_vm2, %v8696_v14, 0.0 }
 0x3e0   :  { %v613_v20 = vsel %vm546_vm2, %v8700_v17, 0.0 }
 0x3e1   :  { %614 = vadd.xlane.f32.xlu1 %v613_v20  ;;  %v8704_v26 = vpop.eup %7676 }
 0x3e2   :  { %v616_v51 = vsel %vm546_vm2, %v8704_v26, 0.0 }
 0x3e3   :  { %v8708_v34 = vpop.eup %7678  ;;  %v849_v36 = vpop.xlane.xlu1 %848  ;;  %599 = vadd.xlane.f32.xlu0 %v598_v32 }
 0x3e4   :  { %v867_v37 = vsub.f32 %v8622_v38, %v849_v36  ;;  %v607_v44 = vsel %vm546_vm2, %v8708_v34, 0.0 }
 0x3e5   :  { %608 = vadd.xlane.f32.xlu1 %v607_v44  ;;  %v8715_v54 = vpop.eup %7680 }
 0x3e6   :  { %v877_v50 = vmul.f32 1.442695, %v867_v37  ;;  %v610_v61 = vsel %vm546_vm2, %v8715_v54, 0.0 }
 0x3e7   :  { %v843_v18 = vpop.xlane.xlu1 %842  ;;  %617 = vadd.xlane.f32.xlu0 %v616_v51  ;;  %v852_v55 = vpop.xlane.xlu0 %851 }
 0x3e8   :  { %7682 = vpow2.f32 %v877_v50  ;;  %v865_v56 = vsub.f32 %v8626_v47, %v843_v18  ;;  %v868_v57 = vsub.f32 %v8628_v49, %v852_v55 }
 0x3ea   :  { %v873_v12 = vmul.f32 1.442695, %v865_v56  ;;  %v879_v38 = vmul.f32 1.442695, %v868_v57 }
 0x3eb   :  { %611 = vadd.xlane.f32.xlu0 %v610_v61  ;;  %v846_v15 = vpop.xlane.xlu0 %845  ;;  %v640_v0 = vpop.permute.xlu1 %639 }
 0x3ec   :  { %7684 = vpow2.f32 %v873_v12  ;;  %v866_v63 = vsub.f32 %v8634_v53, %v846_v15 }
 0x3ed   :  { %7686 = vpow2.f32 %v879_v38 }
 0x3ee   :  { %v875_v19 = vmul.f32 1.442695, %v866_v63 }
 0x3ef   :  { %v642_v2 = vpop.permute.xlu0 %641  ;;  %v8724_v49 = vpop.permute.xlu1 %939 }
 0x3f0   :  { %6970 = vmatprep.subr.bf16.mxu1 %v642_v2  ;;  %7688 = vpow2.f32 %v875_v19 }
 0x3f1   :  { %6971 = vmatpush3.bf16.msra.mxu1 %v642_v2 }
 0x3f2   :  { %6972 = vmatprep.subr.bf16.mxu1 %v640_v0 }
 0x3f3   :  { %v8747_v32 = vpop.permute.xlu1 %937 }
 0x3f5   :  { %v8722_v47 = vpop.eup %7682  ;;  %6973 = vmatpush3.bf16.msra.mxu1 %v640_v0 }
 0x3f6   :  { %1077 = vrot.lane.b32.xlu1 %v8493_v11, %s8320_s15  ;;  %6998 = vmatprep.subr.bf16.mxu1 %v8724_v49  ;;  %v895_v53 = vsel %vm546_vm2, %v8722_v47, 0.0 }
 0x3f7   :  { %896 = vadd.xlane.f32.xlu0 %v895_v53 }
 0x3f9   :  { %v8731_v16 = vpop.eup %7684 }
 0x3fa   :  { %1075 = vrot.lane.b32.xlu1 %v8496_v13, %s8320_s15  ;;  %v889_v22 = vsel %vm546_vm2, %v8731_v16, 0.0  ;;  %v8737_v10 = vpop.eup %7686 }
 0x3fb   :  { %890 = vadd.xlane.f32.xlu0 %v889_v22  ;;  %v898_v58 = vsel %vm546_vm2, %v8737_v10, 0.0 }
 0x3fd   :  { %v8741_v35 = vpop.eup %7688 }
 0x3fe   :  { %v892_v20 = vsel %vm546_vm2, %v8741_v35, 0.0 }
 0x3ff   :  { %899 = vadd.xlane.f32.xlu0 %v898_v58 }
 0x403   :  { %893 = vadd.xlane.f32.xlu0 %v892_v20 }
 0x419   :  { %933 = vrot.lane.b32.xlu0 %v8482_v4, %s8319_s14 }
 0x420   :  { %v864_v36 = vpop.xlane.xlu0 %863 }
 0x421   :  { %v872_v18 = vsub.f32 %v8664_v7, %v864_v36 }
 0x423   :  { %v887_v38 = vmul.f32 1.442695, %v872_v18 }
 0x424   :  { %v861_v37 = vpop.xlane.xlu1 %860  ;;  %v858_v44 = vpop.xlane.xlu0 %857 }
 0x425   :  { %v871_v50 = vsub.f32 %v8660_v5, %v861_v37  ;;  %v870_v51 = vsub.f32 %v8668_v9, %v858_v44 }
 0x427   :  { %v885_v55 = vmul.f32 1.442695, %v871_v50  ;;  %v883_v56 = vmul.f32 1.442695, %v870_v51 }
 0x428   :  { %v855_v57 = vpop.xlane.xlu1 %854 }
 0x429   :  { %7690 = vpow2.f32 %v885_v55  ;;  %v869_v12 = vsub.f32 %v8662_v6, %v855_v57 }
 0x42a   :  { %7692 = vpow2.f32 %v883_v56 }
 0x42b   :  { %v881_v61 = vmul.f32 1.442695, %v869_v12 }
 0x42c   :  { %v936_v2 = vpop.permute.xlu1 %935 }
 0x42d   :  { %7694 = vpow2.f32 %v881_v61 }
 0x42e   :  { %7696 = vpow2.f32 %v887_v38 }
 0x436   :  { %v8753_v15 = vpop.eup %7690 }
 0x437   :  { %v907_v5 = vsel %vm546_vm2, %v8753_v15, 0.0  ;;  %v8757_v63 = vpop.eup %7692 }
 0x438   :  { %908 = vadd.xlane.f32.xlu0 %v907_v5  ;;  %v904_v6 = vsel %vm546_vm2, %v8757_v63, 0.0 }
 0x43a   :  { %v8759_v7 = vpop.eup %7694 }
 0x43b   :  { %v901_v9 = vsel %vm546_vm2, %v8759_v7, 0.0  ;;  %v8765_v19 = vpop.eup %7696 }
 0x43c   :  { %902 = vadd.xlane.f32.xlu1 %v901_v9  ;;  %905 = vadd.xlane.f32.xlu0 %v904_v6  ;;  %v910_v0 = vsel %vm546_vm2, %v8765_v19, 0.0 }
 0x440   :  { %911 = vadd.xlane.f32.xlu1 %v910_v0 }
 0x451   :  { %1071 = vrot.lane.b32.xlu1 %v8482_v4, %s8320_s15 }
 0x452   :  { %1073 = vrot.lane.b32.xlu0 %v8479_v1, %s8320_s15 }
 0x455   :  { %1065 = vrot.lane.b32.xlu1 %v8479_v1, %s8321_s16 }
 0x456   :  { %1063 = vrot.lane.b32.xlu0 %v8482_v4, %s8321_s16 }
 0x459   :  { %1069 = vrot.lane.b32.xlu1 %v8493_v11, %s8321_s16 }
 0x45a   :  { %1067 = vrot.lane.b32.xlu0 %v8496_v13, %s8321_s16 }
 0x45d   :  { %1266 = vrot.lane.b32.xlu1 %v8493_v11, %s8322_s17 }
 0x460   :  { %v603_v53 = vpop.xlane.xlu1 %602 }
 0x464   :  { %v597_v22 = vpop.xlane.xlu1 %596 }
 0x468   :  { %v606_v58 = vpop.xlane.xlu0 %605 }
 0x469   :  { %7698 = vrcp.f32 %v606_v58 }
 0x46a   :  { %v615_v20 = vpop.xlane.xlu1 %614  ;;  %7700 = vrcp.f32 %v597_v22 }
 0x46b   :  { %7702 = vrcp.f32 %v603_v53 }
 0x46c   :  { %v600_v36 = vpop.xlane.xlu0 %599 }
 0x46d   :  { %7704 = vrcp.f32 %v600_v36 }
 0x46e   :  { %v609_v37 = vpop.xlane.xlu1 %608 }
 0x470   :  { %v618_v44 = vpop.xlane.xlu0 %617 }
 0x471   :  { %7706 = vrcp.f32 %v618_v44 }
 0x472   :  { %7708 = vrcp.f32 %v609_v37 }
 0x473   :  { %7710 = vrcp.f32 %v615_v20 }
 0x474   :  { %v612_v50 = vpop.xlane.xlu0 %611 }
 0x475   :  { %7712 = vrcp.f32 %v612_v50 }
 0x476   :  { %v7699_v51 = vpop.eup %7698 }
 0x477   :  { %v7701_v18 = vpop.eup %7700  ;;  %v630_v57 = vmul.f32 %v7699_v51, %v8694_v30 }
 0x478   :  { %v7703_v55 = vpop.eup %7702  ;;  %v627_v12 = vmul.f32 %v7701_v18, %v8690_v33 }
 0x479   :  { %v629_v61 = vmul.f32 %v7703_v55, %v8686_v8 }
 0x47a   :  { %v7705_v56 = vpop.eup %7704 }
 0x47b   :  { %v628_v38 = vmul.f32 %v7705_v56, %v8696_v14  ;;  %v636_v9 = vpack.c.bf16 %v630_v57, %v629_v61 }
 0x47d   :  { %v635_v5 = vpack.c.bf16 %v628_v38, %v627_v12 }
 0x47e   :  { %v7707_v6 = vpop.eup %7706 }
 0x47f   :  { %6974 = vmatprep.mubr.msk.bf16.mxu1 %vm546_vm2, %v635_v5  ;;  %v7709_v0 = vpop.eup %7708  ;;  %v634_v33 = vmul.f32 %v7707_v6, %v8704_v26 }
 0x480   :  { %6975 = vmatmul.mubr.msk.bf16.vlgmr.msra.gmra.mxu1 %vm546_vm2, %v636_v9  ;;  %v897_v53 = vpop.xlane.xlu0 %896  ;;  %v7711_v22 = vpop.eup %7710  ;;  %v631_v30 = vmul.f32 %v7709_v0, %v8708_v34 }
 0x481   :  { %6999 = vmatpush3.bf16.msra.mxu1 %v8724_v49  ;;  %v633_v20 = vmul.f32 %v7711_v22, %v8700_v17 }
 0x482   :  { %v7713_v58 = vpop.eup %7712  ;;  %7000 = vmatprep.subr.bf16.mxu1 %v8747_v32 }
 0x483   :  { %v632_v8 = vmul.f32 %v7713_v58, %v8715_v54  ;;  %v638_v37 = vpack.c.bf16 %v634_v33, %v633_v20  ;;  %v1078_v54 = vpop.permute.xlu1 %1077 }
 0x484   :  { %v891_v14 = vpop.xlane.xlu0 %890  ;;  %v1101_v12 = vsel %vm456_vm1, %v1078_v54, 0 }
 0x485   :  { %7001 = vmatpush3.bf16.msra.mxu1 %v8747_v32  ;;  %v637_v36 = vpack.c.bf16 %v632_v8, %v631_v30 }
 0x486   :  { %7002 = vmatprep.subr.bf16.mxu1 %v936_v2 }
 0x487   :  { %6978 = vmatprep.mubr.msk.bf16.mxu1 %vm546_vm2, %v637_v36  ;;  %v1076_v38 = vpop.permute.xlu1 %1075 }
 0x488   :  { %6979 = vmatmul.mubr.msk.bf16.gmra.mxu1 %vm546_vm2, %v638_v37  ;;  %v900_v49 = vpop.xlane.xlu0 %899 }
 0x489   :  { %7003 = vmatpush3.bf16.msra.mxu1 %v936_v2  ;;  %7714 = vrcp.f32 %v900_v49 }
 0x48a   :  { %7716 = vrcp.f32 %v891_v14 }
 0x48b   :  { %7718 = vrcp.f32 %v897_v53 }
 0x48c   :  { %v894_v26 = vpop.xlane.xlu0 %893 }
 0x48d   :  { %7720 = vrcp.f32 %v894_v26 }
 0x490   :  { %v934_v34 = vpop.permute.xlu0 %933 }
 0x491   :  { %7004 = vmatprep.subr.bf16.mxu1 %v934_v34 }
 0x492   :  { %7005 = vmatpush3.bf16.msra.mxu1 %v934_v34 }
 0x493   :  { %7574 = vmatprep.subr.msk.bf16.mxu1 %vm456_vm1, %v1078_v54 }
 0x496   :  { %v7715_v17 = vpop.eup %7714 }
 0x497   :  { %v7717_v32 = vpop.eup %7716  ;;  %v924_v51 = vmul.f32 %v7715_v17, %v8737_v10  ;;  %v1098_v10 = vsel %vm456_vm1, %v1076_v38, 0 }
 0x498   :  { %v7719_v44 = vpop.eup %7718  ;;  %v921_v18 = vmul.f32 %v7717_v32, %v8731_v16 }
 0x499   :  { %v923_v55 = vmul.f32 %v7719_v44, %v8722_v47 }
 0x49a   :  { %v7721_v50 = vpop.eup %7720 }
 0x49b   :  { %v922_v2 = vmul.f32 %v7721_v50, %v8741_v35  ;;  %v930_v57 = vpack.c.bf16 %v924_v51, %v923_v55 }
 0x49d   :  { %v929_v56 = vpack.c.bf16 %v922_v2, %v921_v18 }
 0x49f   :  { %7006 = vmatprep.mubr.msk.bf16.mxu1 %vm546_vm2, %v929_v56 }
 0x4a0   :  { %7007 = vmatmul.mubr.msk.bf16.vlgmr.msra.gmra.mxu1 %vm546_vm2, %v930_v57 }
 0x4a1   :  { %7015 = vmatpush3.bf16.xpose.msra.mxu1 %v1101_v12 }
 0x4a2   :  { %7575 = vmatprep.subr.msk.bf16.mxu1 %vm456_vm1, %v1076_v38 }
 0x4a9   :  { %7017 = vmatpush3.bf16.xpose.msra.mxu1 %v1098_v10 }
 0x4c1   :  { %v909_v16 = vpop.xlane.xlu0 %908 }
 0x4c5   :  { %v903_v61 = vpop.xlane.xlu1 %902  ;;  %v906_v35 = vpop.xlane.xlu0 %905 }
 0x4c6   :  { %7722 = vrcp.f32 %v903_v61 }
 0x4c7   :  { %7724 = vrcp.f32 %v906_v35 }
 0x4c8   :  { %7726 = vrcp.f32 %v909_v16 }
 0x4c9   :  { %v912_v47 = vpop.xlane.xlu1 %911  ;;  %v1074_v5 = vpop.permute.xlu0 %1073 }
 0x4ca   :  { %7728 = vrcp.f32 %v912_v47  ;;  %7576 = vmatprep.subr.msk.bf16.mxu1 %vm456_vm1, %v1074_v5  ;;  %v1095_v9 = vsel %vm456_vm1, %v1074_v5, 0 }
 0x4cb   :  { %7019 = vmatpush3.bf16.xpose.msra.mxu1 %v1095_v9 }
 0x4cd   :  { %v1072_v6 = vpop.permute.xlu1 %1071  ;;  %v1064_v54 = vpop.permute.xlu0 %1063 }
 0x4ce   :  { %7577 = vmatprep.subr.msk.bf16.mxu1 %vm456_vm1, %v1072_v6  ;;  %v1092_v53 = vsel %vm456_vm1, %v1072_v6, 0 }
 0x4d1   :  { %v1066_v0 = vpop.permute.xlu1 %1065 }
 0x4d3   :  { %v7723_v22 = vpop.eup %7722  ;;  %7021 = vmatpush3.bf16.xpose.msra.mxu1 %v1092_v53 }
 0x4d4   :  { %v7725_v58 = vpop.eup %7724  ;;  %v925_v33 = vmul.f32 %v7723_v22, %v8759_v7  ;;  %v1068_v7 = vpop.permute.xlu0 %1067 }
 0x4d5   :  { %v7727_v30 = vpop.eup %7726  ;;  %v1070_v8 = vpop.permute.xlu1 %1069  ;;  %v926_v14 = vmul.f32 %v7725_v58, %v8757_v63 }
 0x4d6   :  { %v927_v37 = vmul.f32 %v7727_v30, %v8753_v15  ;;  %v8822_v15 = vpop.f32.mrf.mxu1 }
 0x4d7   :  { %v7729_v20 = vpop.eup %7728  ;;  %v931_v36 = vpack.c.bf16 %v926_v14, %v925_v33 }
 0x4d8   :  { %v928_v49 = vmul.f32 %v7729_v20, %v8765_v19 }
 0x4d9   :  { %7010 = vmatprep.mubr.msk.bf16.mxu1 %vm546_vm2, %v931_v36  ;;  %v1267_v26 = vpop.permute.xlu1 %1266 }
 0x4da   :  { %7030 = vmatprep.subr.bf16.mxu0 %v1267_v26  ;;  %v932_v34 = vpack.c.bf16 %v928_v49, %v927_v37 }
 0x4db   :  { %7031 = vmatpush3.bf16.msra.mxu0 %v1267_v26 }
 0x4dc   :  { %7011 = vmatmul.mubr.msk.bf16.gmra.mxu1 %vm546_vm2, %v932_v34 }
 0x4dd   :  { %7022 = vmatprep.mubr.msk.bf16.mxu1 %vm456_vm1, %v1064_v54 }
 0x4e4   :  { %7023 = vmatmul.mubr.msk.bf16.vlgmr.msra.gmra.mxu1 %vm456_vm1, %v1066_v0 }
 0x4e5   :  { %7026 = vmatprep.mubr.msk.bf16.mxu1 %vm456_vm1, %v1068_v7 }
 0x4ec   :  { %7027 = vmatmul.mubr.msk.bf16.gmra.mxu1 %vm456_vm1, %v1070_v8 }
 0x540   :  { %v6976_v63 = vpop.f32.mrf.mxu1 }
 0x541   :  { %730 = vst.msk [vmem:[#allocation2 + $0x10] sm:$0xff] %vm456_vm1, %v6976_v63 }
 0x542   :  { %v697_v19 = vpop.f32.mrf.mxu1 }
 0x543   :  { %728 = vst.msk [vmem:[#allocation2] sm:$0xff] %vm456_vm1, %v697_v19 }
 0x544   :  { %v6977_v17 = vpop.f32.mrf.mxu1 }
 0x545   :  { %731 = vst.msk [vmem:[#allocation2 + $0x18] sm:$0xff] %vm456_vm1, %v6977_v17 }
 0x546   :  { %v700_v32 = vpop.f32.mrf.mxu1 }
 0x547   :  { %729 = vst.msk [vmem:[#allocation2 + $0x8] sm:$0xff] %vm456_vm1, %v700_v32 }
 0x548   :  { %v6980_v44 = vpop.f32.mrf.mxu1 }
 0x549   :  { %734 = vst.msk [vmem:[#allocation2 + $0x30] sm:$0xff] %vm456_vm1, %v6980_v44 }
 0x54a   :  { %v713_v50 = vpop.f32.mrf.mxu1 }
 0x54b   :  { %732 = vst.msk [vmem:[#allocation2 + $0x20] sm:$0xff] %vm456_vm1, %v713_v50 }
 0x54c   :  { %v6981_v51 = vpop.f32.mrf.mxu1 }
 0x54d   :  { %735 = vst.msk [vmem:[#allocation2 + $0x38] sm:$0xff] %vm456_vm1, %v6981_v51 }
 0x54e   :  { %v716_v18 = vpop.f32.mrf.mxu1 }
 0x54f   :  { %733 = vst.msk [vmem:[#allocation2 + $0x28] sm:$0xff] %vm456_vm1, %v716_v18 }
 0x560   :  { %v8832_v2 = vpop.f32.mrf.mxu1 }
 0x562   :  { %v8834_v55 = vpop.f32.mrf.mxu1 }
 0x564   :  { %v8836_v56 = vpop.f32.mrf.mxu1 }
 0x566   :  { %v8838_v57 = vpop.f32.mrf.mxu1 }
 0x59c   :  { %v8840_v12 = vpop.f32.mrf.mxu1 }
 0x59e   :  { %v8842_v38 = vpop.f32.mrf.mxu1 }
 0x5a0   :  { %v8844_v10 = vpop.f32.mrf.mxu1 }
 0x5a2   :  { %v8846_v16 = vpop.f32.mrf.mxu1 }
 0x5a4   :  { %v7024_v61 = vpop.f32.mrf.mxu1 }
 0x5a5   :  { %v1174_v35 = vsel %vm546_vm2, %v7024_v61, -inf }
 0x5a6   :  { %1175 = vmax.xlane.f32.xlu0 %v1174_v35  ;;  %v1137_v47 = vpop.f32.mrf.mxu1 }
 0x5a7   :  { %v1168_v9 = vsel %vm546_vm2, %v1137_v47, -inf }
 0x5a8   :  { %v7025_v5 = vpop.f32.mrf.mxu1 }
 0x5a9   :  { %v1177_v22 = vsel %vm546_vm2, %v7025_v5, -inf }
 0x5aa   :  { %1169 = vmax.xlane.f32.xlu0 %v1168_v9  ;;  %v1140_v6 = vpop.f32.mrf.mxu1 }
 0x5ab   :  { %v1171_v0 = vsel %vm546_vm2, %v1140_v6, -inf }
 0x5ac   :  { %1172 = vmax.xlane.f32.xlu1 %v1171_v0  ;;  %v7028_v53 = vpop.f32.mrf.mxu1 }
 0x5ad   :  { %v1186_v33 = vsel %vm546_vm2, %v7028_v53, -inf }
 0x5ae   :  { %1178 = vmax.xlane.f32.xlu0 %v1177_v22  ;;  %v1153_v58 = vpop.f32.mrf.mxu1 }
 0x5af   :  { %v1180_v20 = vsel %vm546_vm2, %v1153_v58, -inf }
 0x5b0   :  { %1187 = vmax.xlane.f32.xlu1 %v1186_v33  ;;  %v7029_v30 = vpop.f32.mrf.mxu1 }
 0x5b1   :  { %v1189_v8 = vsel %vm546_vm2, %v7029_v30, -inf }
 0x5b2   :  { %1190 = vmax.xlane.f32.xlu0 %v1189_v8  ;;  %v1156_v14 = vpop.f32.mrf.mxu1 }
 0x5b3   :  { %v1183_v36 = vsel %vm546_vm2, %v1156_v14, -inf }
 0x5b4   :  { %1181 = vmax.xlane.f32.xlu1 %v1180_v20 }
 0x5b6   :  { %1184 = vmax.xlane.f32.xlu0 %v1183_v36 }
 0x5c5   :  { %1262 = vrot.lane.b32.xlu1 %v8479_v1, %s8322_s17 }
 0x5cc   :  { %1264 = vrot.lane.b32.xlu0 %v8496_v13, %s8322_s17 }
 0x62f   :  { %v1176_v37 = vpop.xlane.xlu0 %1175 }
 0x630   :  { %v1194_v49 = vsub.f32 %v7024_v61, %v1176_v37 }
 0x632   :  { %v1204_v26 = vmul.f32 1.442695, %v1194_v49 }
 0x633   :  { %v1170_v34 = vpop.xlane.xlu0 %1169 }
 0x634   :  { %7730 = vpow2.f32 %v1204_v26  ;;  %v1192_v54 = vsub.f32 %v1137_v47, %v1170_v34 }
 0x635   :  { %v1173_v7 = vpop.xlane.xlu1 %1172 }
 0x636   :  { %v1200_v63 = vmul.f32 1.442695, %v1192_v54  ;;  %v1193_v19 = vsub.f32 %v1140_v6, %v1173_v7 }
 0x637   :  { %v1179_v17 = vpop.xlane.xlu0 %1178 }
 0x638   :  { %7732 = vpow2.f32 %v1200_v63  ;;  %v1195_v32 = vsub.f32 %v7025_v5, %v1179_v17  ;;  %v1202_v50 = vmul.f32 1.442695, %v1193_v19 }
 0x639   :  { %v1188_v44 = vpop.xlane.xlu1 %1187 }
 0x63a   :  { %v1206_v51 = vmul.f32 1.442695, %v1195_v32  ;;  %v1198_v49 = vsub.f32 %v7028_v53, %v1188_v44 }
 0x63b   :  { %v1191_v18 = vpop.xlane.xlu0 %1190 }
 0x63c   :  { %7734 = vpow2.f32 %v1206_v51  ;;  %v1199_v26 = vsub.f32 %v7029_v30, %v1191_v18  ;;  %v1212_v54 = vmul.f32 1.442695, %v1198_v49 }
 0x63d   :  { %7736 = vpow2.f32 %v1202_v50  ;;  %v1182_v35 = vpop.xlane.xlu1 %1181 }
 0x63e   :  { %v1196_v37 = vsub.f32 %v1153_v58, %v1182_v35  ;;  %v1214_v7 = vmul.f32 1.442695, %v1199_v26 }
 0x63f   :  { %v1185_v9 = vpop.xlane.xlu0 %1184 }
 0x640   :  { %v1208_v34 = vmul.f32 1.442695, %v1196_v37  ;;  %v1197_v63 = vsub.f32 %v1156_v14, %v1185_v9 }
 0x641   :  { %v8860_v0 = vpop.eup %7730  ;;  %v1263_v22 = vpop.permute.xlu1 %1262 }
 0x642   :  { %v1222_v61 = vsel %vm546_vm2, %v8860_v0, 0.0  ;;  %7738 = vpow2.f32 %v1208_v34  ;;  %v1210_v19 = vmul.f32 1.442695, %v1197_v63 }
 0x643   :  { %1223 = vadd.xlane.f32.xlu1 %v1222_v61  ;;  %v1265_v47 = vpop.permute.xlu0 %1264  ;;  %7740 = vpow2.f32 %v1212_v54 }
 0x644   :  { %7032 = vmatprep.subr.bf16.mxu0 %v1265_v47  ;;  %7742 = vpow2.f32 %v1214_v7 }
 0x645   :  { %v8864_v6 = vpop.eup %7732  ;;  %7033 = vmatpush3.bf16.msra.mxu0 %v1265_v47  ;;  %7744 = vpow2.f32 %v1210_v19 }
 0x646   :  { %7034 = vmatprep.subr.bf16.mxu0 %v1263_v22  ;;  %v1216_v5 = vsel %vm546_vm2, %v8864_v6, 0.0 }
 0x647   :  { %1217 = vadd.xlane.f32.xlu1 %v1216_v5 }
 0x649   :  { %v7735_v33 = vpop.eup %7734  ;;  %7035 = vmatpush3.bf16.msra.mxu0 %v1263_v22 }
 0x64a   :  { %v1225_v8 = vsel %vm546_vm2, %v7735_v33, 0.0  ;;  %v7737_v20 = vpop.eup %7736 }
 0x64b   :  { %1226 = vadd.xlane.f32.xlu0 %v1225_v8  ;;  %v1219_v36 = vsel %vm546_vm2, %v7737_v20, 0.0 }
 0x64f   :  { %1220 = vadd.xlane.f32.xlu0 %v1219_v36  ;;  %v8876_v17 = vpop.eup %7738 }
 0x650   :  { %v8878_v32 = vpop.eup %7740  ;;  %v1228_v50 = vsel %vm546_vm2, %v8876_v17, 0.0 }
 0x651   :  { %v8882_v51 = vpop.eup %7742  ;;  %v1234_v53 = vsel %vm546_vm2, %v8878_v32, 0.0 }
 0x652   :  { %v1237_v58 = vsel %vm546_vm2, %v8882_v51, 0.0  ;;  %v8888_v30 = vpop.eup %7744 }
 0x653   :  { %v1231_v14 = vsel %vm546_vm2, %v8888_v30, 0.0 }
 0x658   :  { %1404 = vrot.lane.b32.xlu1 %v8493_v11, %s8323_s18 }
 0x65c   :  { %1402 = vrot.lane.b32.xlu1 %v8496_v13, %s8323_s18 }
 0x665   :  { %1260 = vrot.lane.b32.xlu0 %v8482_v4, %s8322_s17 }
 0x680   :  { %1229 = vadd.xlane.f32.xlu1 %v1228_v50 }
 0x684   :  { %1235 = vadd.xlane.f32.xlu0 %v1234_v53  ;;  %1238 = vadd.xlane.f32.xlu1 %v1237_v58 }
 0x688   :  { %1232 = vadd.xlane.f32.xlu0 %v1231_v14 }
 0x695   :  { %1398 = vrot.lane.b32.xlu1 %v8482_v4, %s8323_s18 }
 0x699   :  { %1392 = vrot.lane.b32.xlu1 %v8479_v1, %s8324_s1 }
 0x69d   :  { %1396 = vrot.lane.b32.xlu1 %v8493_v11, %s8324_s1 }
 0x69e   :  { %1400 = vrot.lane.b32.xlu0 %v8479_v1, %s8323_s18 }
 0x6a1   :  { %1593 = vrot.lane.b32.xlu1 %v8493_v11, %s8325_s21 }
 0x6a2   :  { %1390 = vrot.lane.b32.xlu0 %v8482_v4, %s8324_s1 }
 0x6a6   :  { %1394 = vrot.lane.b32.xlu0 %v8496_v13, %s8324_s1 }
 0x6cc   :  { %v1224_v44 = vpop.xlane.xlu1 %1223 }
 0x6d0   :  { %v1218_v18 = vpop.xlane.xlu1 %1217 }
 0x6d4   :  { %v1227_v35 = vpop.xlane.xlu0 %1226  ;;  %v1405_v47 = vpop.permute.xlu1 %1404 }
 0x6d5   :  { %7746 = vrcp.f32 %v1227_v35  ;;  %v1428_v7 = vsel %vm456_vm1, %v1405_v47, 0 }
 0x6d6   :  { %7748 = vrcp.f32 %v1218_v18 }
 0x6d7   :  { %7750 = vrcp.f32 %v1224_v44 }
 0x6d8   :  { %v1221_v9 = vpop.xlane.xlu0 %1220  ;;  %v1403_v63 = vpop.permute.xlu1 %1402 }
 0x6d9   :  { %7752 = vrcp.f32 %v1221_v9  ;;  %v1425_v19 = vsel %vm456_vm1, %v1403_v63, 0 }
 0x6dc   :  { %v1261_v61 = vpop.permute.xlu0 %1260 }
 0x6dd   :  { %7036 = vmatprep.subr.bf16.mxu0 %v1261_v61 }
 0x6de   :  { %7037 = vmatpush3.bf16.msra.mxu0 %v1261_v61 }
 0x6df   :  { %7578 = vmatprep.subr.msk.bf16.mxu0 %vm456_vm1, %v1405_v47 }
 0x6e2   :  { %v7747_v11 = vpop.eup %7746 }
 0x6e3   :  { %v7749_v22 = vpop.eup %7748  ;;  %v1251_v36 = vmul.f32 %v7747_v11, %v7735_v33 }
 0x6e4   :  { %v7751_v5 = vpop.eup %7750  ;;  %v1248_v37 = vmul.f32 %v7749_v22, %v8864_v6 }
 0x6e5   :  { %v1250_v26 = vmul.f32 %v7751_v5, %v8860_v0 }
 0x6e6   :  { %v7753_v8 = vpop.eup %7752 }
 0x6e7   :  { %v1249_v49 = vmul.f32 %v7753_v8, %v7737_v20  ;;  %v1257_v54 = vpack.c.bf16 %v1251_v36, %v1250_v26 }
 0x6e9   :  { %v1256_v34 = vpack.c.bf16 %v1249_v49, %v1248_v37 }
 0x6eb   :  { %7038 = vmatprep.mubr.msk.bf16.mxu0 %vm546_vm2, %v1256_v34 }
 0x6ec   :  { %7039 = vmatmul.mubr.msk.bf16.vlgmr.msra.gmra.mxu0 %vm546_vm2, %v1257_v54 }
 0x6ed   :  { %7047 = vmatpush3.bf16.xpose.msra.mxu0 %v1428_v7 }
 0x6ee   :  { %7579 = vmatprep.subr.msk.bf16.mxu0 %vm456_vm1, %v1403_v63 }
 0x6f5   :  { %7049 = vmatpush3.bf16.xpose.msra.mxu0 %v1425_v19 }
 0x709   :  { %v1230_v33 = vpop.xlane.xlu1 %1229 }
 0x70d   :  { %v1239_v6 = vpop.xlane.xlu1 %1238  ;;  %v1236_v20 = vpop.xlane.xlu0 %1235 }
 0x70e   :  { %7754 = vrcp.f32 %v1239_v6 }
 0x70f   :  { %7756 = vrcp.f32 %v1236_v20 }
 0x710   :  { %7758 = vrcp.f32 %v1230_v33 }
 0x711   :  { %v1399_v0 = vpop.permute.xlu1 %1398  ;;  %v1233_v50 = vpop.xlane.xlu0 %1232 }
 0x712   :  { %7760 = vrcp.f32 %v1233_v50  ;;  %v1419_v47 = vsel %vm456_vm1, %v1399_v0, 0 }
 0x715   :  { %v1393_v53 = vpop.permute.xlu1 %1392  ;;  %v1401_v58 = vpop.permute.xlu0 %1400 }
 0x716   :  { %7580 = vmatprep.subr.msk.bf16.mxu0 %vm456_vm1, %v1401_v58  ;;  %v1422_v14 = vsel %vm456_vm1, %v1401_v58, 0 }
 0x717   :  { %7051 = vmatpush3.bf16.xpose.msra.mxu0 %v1422_v14 }
 0x718   :  { %7581 = vmatprep.subr.msk.bf16.mxu0 %vm456_vm1, %v1399_v0 }
 0x719   :  { %v1397_v44 = vpop.permute.xlu1 %1396  ;;  %v1391_v26 = vpop.permute.xlu0 %1390 }
 0x71b   :  { %v7755_v18 = vpop.eup %7754 }
 0x71c   :  { %v7757_v35 = vpop.eup %7756  ;;  %v1255_v5 = vmul.f32 %v7755_v18, %v8882_v51 }
 0x71d   :  { %v7759_v9 = vpop.eup %7758  ;;  %v1594_v61 = vpop.permute.xlu1 %1593  ;;  %v1254_v22 = vmul.f32 %v7757_v35, %v8878_v32 }
 0x71e   :  { %7062 = vmatprep.subr.bf16.mxu1 %v1594_v61  ;;  %v1252_v8 = vmul.f32 %v7759_v9, %v8876_v17  ;;  %v1395_v34 = vpop.permute.xlu0 %1394 }
 0x71f   :  { %v7761_v11 = vpop.eup %7760  ;;  %7053 = vmatpush3.bf16.xpose.msra.mxu0 %v1419_v47  ;;  %7063 = vmatpush3.bf16.msra.mxu1 %v1594_v61  ;;  %v1259_v49 = vpack.c.bf16 %v1255_v5, %v1254_v22 }
 0x720   :  { %v1253_v36 = vmul.f32 %v7761_v11, %v8888_v30 }
 0x722   :  { %v1258_v37 = vpack.c.bf16 %v1253_v36, %v1252_v8 }
 0x724   :  { %7042 = vmatprep.mubr.msk.bf16.mxu0 %vm546_vm2, %v1258_v37 }
 0x725   :  { %7043 = vmatmul.mubr.msk.bf16.gmra.mxu0 %vm546_vm2, %v1259_v49 }
 0x726   :  { %7054 = vmatprep.mubr.msk.bf16.mxu0 %vm456_vm1, %v1391_v26 }
 0x72d   :  { %7055 = vmatmul.mubr.msk.bf16.vlgmr.msra.gmra.mxu0 %vm456_vm1, %v1393_v53 }
 0x72e   :  { %7058 = vmatprep.mubr.msk.bf16.mxu0 %vm456_vm1, %v1395_v34 }
 0x735   :  { %7059 = vmatmul.mubr.msk.bf16.gmra.mxu0 %vm456_vm1, %v1397_v44 }
 0x7ac   :  { %v8928_v32 = vpop.f32.mrf.mxu0 }
 0x7ae   :  { %v8930_v17 = vpop.f32.mrf.mxu0 }
 0x7b0   :  { %v8932_v51 = vpop.f32.mrf.mxu0 }
 0x7b2   :  { %v8934_v30 = vpop.f32.mrf.mxu0 }
 0x7e5   :  { %v8936_v54 = vpop.f32.mrf.mxu0 }
 0x7e7   :  { %v8938_v7 = vpop.f32.mrf.mxu0 }
 0x7e9   :  { %v8940_v63 = vpop.f32.mrf.mxu0 }
 0x7eb   :  { %v8942_v19 = vpop.f32.mrf.mxu0 }
 0x7ed   :  { %v7056_v33 = vpop.f32.mrf.mxu0 }
 0x7ee   :  { %v1501_v6 = vsel %vm546_vm2, %v7056_v33, -inf }
 0x7ef   :  { %1502 = vmax.xlane.f32.xlu0 %v1501_v6  ;;  %v1464_v20 = vpop.f32.mrf.mxu0 }
 0x7f0   :  { %v1495_v50 = vsel %vm546_vm2, %v1464_v20, -inf }
 0x7f1   :  { %v7057_v0 = vpop.f32.mrf.mxu0 }
 0x7f2   :  { %v1504_v44 = vsel %vm546_vm2, %v7057_v0, -inf }
 0x7f3   :  { %1496 = vmax.xlane.f32.xlu0 %v1495_v50  ;;  %v1467_v53 = vpop.f32.mrf.mxu0 }
 0x7f4   :  { %v1498_v58 = vsel %vm546_vm2, %v1467_v53, -inf }
 0x7f5   :  { %1499 = vmax.xlane.f32.xlu1 %v1498_v58  ;;  %v8947_v14 = vpop.f32.mrf.mxu0 }
 0x7f6   :  { %v1513_v35 = vsel %vm546_vm2, %v8947_v14, -inf }
 0x7f7   :  { %1505 = vmax.xlane.f32.xlu0 %v1504_v44  ;;  %v1480_v18 = vpop.f32.mrf.mxu0 }
 0x7f8   :  { %v1507_v11 = vsel %vm546_vm2, %v1480_v18, -inf }
 0x7f9   :  { %1514 = vmax.xlane.f32.xlu1 %v1513_v35  ;;  %v7061_v9 = vpop.f32.mrf.mxu0 }
 0x7fa   :  { %v1516_v61 = vsel %vm546_vm2, %v7061_v9, -inf }
 0x7fb   :  { %1517 = vmax.xlane.f32.xlu0 %v1516_v61  ;;  %v1483_v47 = vpop.f32.mrf.mxu0 }
 0x7fc   :  { %v1510_v22 = vsel %vm546_vm2, %v1483_v47, -inf }
 0x7fd   :  { %1508 = vmax.xlane.f32.xlu1 %v1507_v11 }
 0x7ff   :  { %1511 = vmax.xlane.f32.xlu0 %v1510_v22 }
 0x80e   :  { %1589 = vrot.lane.b32.xlu1 %v8479_v1, %s8325_s21 }
 0x815   :  { %1591 = vrot.lane.b32.xlu0 %v8496_v13, %s8325_s21 }
 0x878   :  { %v1503_v5 = vpop.xlane.xlu0 %1502 }
 0x879   :  { %v1521_v8 = vsub.f32 %v7056_v33, %v1503_v5 }
 0x87b   :  { %v1531_v36 = vmul.f32 1.442695, %v1521_v8 }
 0x87c   :  { %v1497_v37 = vpop.xlane.xlu0 %1496 }
 0x87d   :  { %7762 = vpow2.f32 %v1531_v36  ;;  %v1519_v49 = vsub.f32 %v1464_v20, %v1497_v37 }
 0x87e   :  { %v1500_v26 = vpop.xlane.xlu1 %1499 }
 0x87f   :  { %v1527_v34 = vmul.f32 1.442695, %v1519_v49  ;;  %v1520_v6 = vsub.f32 %v1467_v53, %v1500_v26  ;;  %v8178_v26 = vld [vmem:[%s10849_s4] ss:$0 sm:$0xff] }
 0x880   :  { %v1506_v50 = vpop.xlane.xlu0 %1505 }
 0x881   :  { %7764 = vpow2.f32 %v1527_v34  ;;  %v1522_v58 = vsub.f32 %v7057_v0, %v1506_v50  ;;  %v1529_v35 = vmul.f32 1.442695, %v1520_v6  ;;  %v422_v34 = vadd.f32 %v8178_v26, %v8650_v62 }
 0x882   :  { %v1515_v44 = vpop.xlane.xlu1 %1514  ;;  %v425_v6 = vadd.f32 %v8178_v26, %v8822_v15 }
 0x883   :  { %v1533_v61 = vmul.f32 1.442695, %v1522_v58 }
 0x884   :  { %v1518_v11 = vpop.xlane.xlu0 %1517  ;;  %v8976_v50 = vpack.c.bf16 %v425_v6, %v422_v34 }
 0x885   :  { %7766 = vpow2.f32 %v1533_v61  ;;  %v1526_v61 = vsub.f32 %v7061_v9, %v1518_v11  ;;  %v406_v11 = vadd.f32 %v8178_v26, %v8638_v52 }
 0x886   :  { %7768 = vpow2.f32 %v1529_v35  ;;  %v1509_v1 = vpop.xlane.xlu1 %1508  ;;  %v1525_v35 = vsub.f32 %v8947_v14, %v1515_v44 }
 0x887   :  { %v1523_v58 = vsub.f32 %v1480_v18, %v1509_v1  ;;  %v1541_v62 = vmul.f32 1.442695, %v1526_v61  ;;  %v409_v1 = vadd.f32 %v8178_v26, %v8644_v59 }
 0x888   :  { %v1512_v13 = vpop.xlane.xlu0 %1511 }
 0x889   :  { %v1524_v15 = vsub.f32 %v1483_v47, %v1512_v13  ;;  %v9001_v13 = vpack.c.bf16 %v409_v1, %v406_v11 }
 0x88a   :  { %v8959_v22 = vpop.eup %7762  ;;  %v1590_v5 = vpop.permute.xlu1 %1589 }
 0x88b   :  { %v1549_v33 = vsel %vm546_vm2, %v8959_v22, 0.0 }
 0x88c   :  { %1550 = vadd.xlane.f32.xlu1 %v1549_v33  ;;  %v1592_v20 = vpop.permute.xlu0 %1591  ;;  %v1535_v33 = vmul.f32 1.442695, %v1523_v58 }
 0x88d   :  { %7064 = vmatprep.subr.bf16.mxu1 %v1592_v20 }
 0x88e   :  { %v8963_v53 = vpop.eup %7764  ;;  %7065 = vmatpush3.bf16.msra.mxu1 %v1592_v20  ;;  %v1539_v20 = vmul.f32 1.442695, %v1525_v35  ;;  %7770 = vpow2.f32 %v1535_v33 }
 0x88f   :  { %7066 = vmatprep.subr.bf16.mxu1 %v1590_v5  ;;  %v1543_v0 = vsel %vm546_vm2, %v8963_v53, 0.0 }
 0x890   :  { %1544 = vadd.xlane.f32.xlu1 %v1543_v0  ;;  %7772 = vpow2.f32 %v1539_v20 }
 0x891   :  { %7774 = vpow2.f32 %v1541_v62 }
 0x892   :  { %v7767_v8 = vpop.eup %7766  ;;  %7067 = vmatpush3.bf16.msra.mxu1 %v1590_v5  ;;  %v1537_v5 = vmul.f32 1.442695, %v1524_v15 }
 0x893   :  { %v1552_v36 = vsel %vm546_vm2, %v7767_v8, 0.0  ;;  %v7769_v37 = vpop.eup %7768 }
 0x894   :  { %1553 = vadd.xlane.f32.xlu0 %v1552_v36  ;;  %v1546_v49 = vsel %vm546_vm2, %v7769_v37, 0.0  ;;  %7776 = vpow2.f32 %v1537_v5 }
 0x898   :  { %1547 = vadd.xlane.f32.xlu0 %v1546_v49 }
 0x89b   :  { %v8983_v0 = vpop.eup %7770 }
 0x89d   :  { %v8985_v36 = vpop.eup %7772 }
 0x89e   :  { %v8989_v18 = vpop.eup %7774  ;;  %v1561_v14 = vsel %vm546_vm2, %v8985_v36, 0.0 }
 0x89f   :  { %v1564_v9 = vsel %vm546_vm2, %v8989_v18, 0.0 }
 0x8a1   :  { %1727 = vrot.lane.b32.xlu1 %v8658_v3, %s8316_s11  ;;  %v8995_v47 = vpop.eup %7776 }
 0x8a2   :  { %v1558_v44 = vsel %vm546_vm2, %v8995_v47, 0.0 }
 0x8a5   :  { %1725 = vrot.lane.b32.xlu1 %v8976_v50, %s8316_s11 }
 0x8ae   :  { %1587 = vrot.lane.b32.xlu0 %v8482_v4, %s8325_s21  ;;  %v1555_v4 = vsel %vm546_vm2, %v8983_v0, 0.0 }
 0x8c9   :  { %1556 = vadd.xlane.f32.xlu1 %v1555_v4 }
 0x8cd   :  { %1562 = vadd.xlane.f32.xlu0 %v1561_v14  ;;  %1565 = vadd.xlane.f32.xlu1 %v1564_v9 }
 0x8d1   :  { %1559 = vadd.xlane.f32.xlu0 %v1558_v44 }
 0x8de   :  { %1721 = vrot.lane.b32.xlu1 %v9001_v13, %s8316_s11 }
 0x8e2   :  { %1916 = vrot.lane.b32.xlu1 %v8658_v3, %s8308_s30 }
 0x8e7   :  { %1723 = vrot.lane.b32.xlu0 %v8646_v60, %s8316_s11 }
 0x915   :  { %v1551_v49 = vpop.xlane.xlu1 %1550 }
 0x919   :  { %v1545_v34 = vpop.xlane.xlu1 %1544 }
 0x91d   :  { %v1554_v6 = vpop.xlane.xlu0 %1553  ;;  %v1728_v26 = vpop.permute.xlu1 %1727 }
 0x91e   :  { %7778 = vrcp.f32 %v1554_v6  ;;  %v1751_v9 = vsel %vm456_vm1, %v1728_v26, 0 }
 0x91f   :  { %7780 = vrcp.f32 %v1545_v34 }
 0x920   :  { %7782 = vrcp.f32 %v1551_v49 }
 0x921   :  { %v1548_v52 = vpop.xlane.xlu0 %1547  ;;  %v1726_v44 = vpop.permute.xlu1 %1725 }
 0x922   :  { %7784 = vrcp.f32 %v1548_v52  ;;  %v1748_v11 = vsel %vm456_vm1, %v1726_v44, 0 }
 0x925   :  { %v1588_v59 = vpop.permute.xlu0 %1587 }
 0x926   :  { %7068 = vmatprep.subr.bf16.mxu1 %v1588_v59 }
 0x927   :  { %7069 = vmatpush3.bf16.msra.mxu1 %v1588_v59 }
 0x928   :  { %7582 = vmatprep.subr.msk.bf16.mxu1 %vm456_vm1, %v1728_v26 }
 0x92b   :  { %v7779_v58 = vpop.eup %7778 }
 0x92c   :  { %v7781_v35 = vpop.eup %7780  ;;  %v1578_v20 = vmul.f32 %v7779_v58, %v7767_v8 }
 0x92d   :  { %v7783_v61 = vpop.eup %7782  ;;  %v1575_v62 = vmul.f32 %v7781_v35, %v8963_v53 }
 0x92e   :  { %v1577_v5 = vmul.f32 %v7783_v61, %v8959_v22 }
 0x92f   :  { %v7785_v33 = vpop.eup %7784 }
 0x930   :  { %v1576_v15 = vmul.f32 %v7785_v33, %v7769_v37  ;;  %v1584_v14 = vpack.c.bf16 %v1578_v20, %v1577_v5 }
 0x932   :  { %v1583_v4 = vpack.c.bf16 %v1576_v15, %v1575_v62 }
 0x934   :  { %7070 = vmatprep.mubr.msk.bf16.mxu1 %vm546_vm2, %v1583_v4 }
 0x935   :  { %7071 = vmatmul.mubr.msk.bf16.vlgmr.msra.gmra.mxu1 %vm546_vm2, %v1584_v14 }
 0x936   :  { %7079 = vmatpush3.bf16.xpose.msra.mxu1 %v1751_v9 }
 0x937   :  { %7583 = vmatprep.subr.msk.bf16.mxu1 %vm456_vm1, %v1726_v44 }
 0x93e   :  { %7081 = vmatpush3.bf16.xpose.msra.mxu1 %v1748_v11 }
 0x952   :  { %v1557_v8 = vpop.xlane.xlu1 %1556 }
 0x956   :  { %v1566_v53 = vpop.xlane.xlu1 %1565  ;;  %v1563_v37 = vpop.xlane.xlu0 %1562 }
 0x957   :  { %7786 = vrcp.f32 %v1566_v53 }
 0x958   :  { %7788 = vrcp.f32 %v1563_v37 }
 0x959   :  { %7790 = vrcp.f32 %v1557_v8 }
 0x95a   :  { %v1722_v22 = vpop.permute.xlu1 %1721  ;;  %v1560_v1 = vpop.xlane.xlu0 %1559 }
 0x95b   :  { %7792 = vrcp.f32 %v1560_v1  ;;  %v1742_v58 = vsel %vm456_vm1, %v1722_v22, 0 }
 0x95e   :  { %v1917_v49 = vpop.permute.xlu1 %1916  ;;  %v1724_v34 = vpop.permute.xlu0 %1723 }
 0x95f   :  { %7584 = vmatprep.subr.msk.bf16.mxu1 %vm456_vm1, %v1724_v34  ;;  %7094 = vmatprep.subr.bf16.mxu0 %v1917_v49  ;;  %v1745_v6 = vsel %vm456_vm1, %v1724_v34, 0 }
 0x960   :  { %7083 = vmatpush3.bf16.xpose.msra.mxu1 %v1745_v6  ;;  %7095 = vmatpush3.bf16.msra.mxu0 %v1917_v49 }
 0x961   :  { %7585 = vmatprep.subr.msk.bf16.mxu1 %vm456_vm1, %v1722_v22 }
 0x964   :  { %v7787_v52 = vpop.eup %7786 }
 0x965   :  { %v7789_v59 = vpop.eup %7788  ;;  %v1582_v33 = vmul.f32 %v7787_v52, %v8989_v18 }
 0x966   :  { %v7791_v26 = vpop.eup %7790  ;;  %v1581_v61 = vmul.f32 %v7789_v59, %v8985_v36 }
 0x967   :  { %v1579_v20 = vmul.f32 %v7791_v26, %v8983_v0 }
 0x968   :  { %v7793_v35 = vpop.eup %7792  ;;  %7085 = vmatpush3.bf16.xpose.msra.mxu1 %v1742_v58  ;;  %v1586_v5 = vpack.c.bf16 %v1582_v33, %v1581_v61 }
 0x969   :  { %v1580_v62 = vmul.f32 %v7793_v35, %v8995_v47 }
 0x96b   :  { %v1585_v15 = vpack.c.bf16 %v1580_v62, %v1579_v20 }
 0x96d   :  { %7074 = vmatprep.mubr.msk.bf16.mxu1 %vm546_vm2, %v1585_v15 }
 0x96e   :  { %7075 = vmatmul.mubr.msk.bf16.gmra.mxu1 %vm546_vm2, %v1586_v5 }
 0x96f   :  { %7086 = vmatprep.mubr.msk.bf16.mxu1 %vm456_vm1, %v9001_v13 }
 0x976   :  { %7087 = vmatmul.mubr.msk.bf16.vlgmr.msra.gmra.mxu1 %vm456_vm1, %v8646_v60 }
 0x977   :  { %7090 = vmatprep.mubr.msk.bf16.mxu1 %vm456_vm1, %v8976_v50 }
 0x97e   :  { %7091 = vmatmul.mubr.msk.bf16.gmra.mxu1 %vm456_vm1, %v8658_v3 }
 0x9f5   :  { %v9035_v0 = vpop.f32.mrf.mxu1 }
 0x9f7   :  { %v9037_v36 = vpop.f32.mrf.mxu1 }
 0x9f9   :  { %v9039_v18 = vpop.f32.mrf.mxu1 }
 0x9fb   :  { %v9041_v47 = vpop.f32.mrf.mxu1 }
 0xa2e   :  { %v9043_v4 = vpop.f32.mrf.mxu1 }
 0xa30   :  { %v9045_v14 = vpop.f32.mrf.mxu1 }
 0xa32   :  { %v9047_v9 = vpop.f32.mrf.mxu1 }
 0xa34   :  { %v9049_v44 = vpop.f32.mrf.mxu1 }
 0xa36   :  { %v7088_v11 = vpop.f32.mrf.mxu1 }
 0xa37   :  { %v1824_v8 = vsel %vm546_vm2, %v7088_v11, -inf }
 0xa38   :  { %1825 = vmax.xlane.f32.xlu0 %v1824_v8  ;;  %v1787_v53 = vpop.f32.mrf.mxu1 }
 0xa39   :  { %v1818_v22 = vsel %vm546_vm2, %v1787_v53, -inf }
 0xa3a   :  { %v7089_v37 = vpop.f32.mrf.mxu1 }
 0xa3b   :  { %v1827_v6 = vsel %vm546_vm2, %v7089_v37, -inf }
 0xa3c   :  { %1819 = vmax.xlane.f32.xlu0 %v1818_v22  ;;  %v1790_v1 = vpop.f32.mrf.mxu1 }
 0xa3d   :  { %v1821_v49 = vsel %vm546_vm2, %v1790_v1, -inf }
 0xa3e   :  { %1822 = vmax.xlane.f32.xlu1 %v1821_v49  ;;  %v7092_v34 = vpop.f32.mrf.mxu1 }
 0xa3f   :  { %v1836_v59 = vsel %vm546_vm2, %v7092_v34, -inf }
 0xa40   :  { %1828 = vmax.xlane.f32.xlu0 %v1827_v6  ;;  %v1803_v52 = vpop.f32.mrf.mxu1 }
 0xa41   :  { %v1830_v61 = vsel %vm546_vm2, %v1803_v52, -inf }
 0xa42   :  { %1837 = vmax.xlane.f32.xlu1 %v1836_v59  ;;  %v7093_v26 = vpop.f32.mrf.mxu1 }
 0xa43   :  { %v1839_v58 = vsel %vm546_vm2, %v7093_v26, -inf }
 0xa44   :  { %1840 = vmax.xlane.f32.xlu0 %v1839_v58  ;;  %v1806_v35 = vpop.f32.mrf.mxu1 }
 0xa45   :  { %v1833_v33 = vsel %vm546_vm2, %v1806_v35, -inf }
 0xa46   :  { %1831 = vmax.xlane.f32.xlu1 %v1830_v61 }
 0xa48   :  { %1834 = vmax.xlane.f32.xlu0 %v1833_v33 }
 0xa57   :  { %1912 = vrot.lane.b32.xlu1 %v8646_v60, %s8308_s30 }
 0xa5e   :  { %1914 = vrot.lane.b32.xlu0 %v8976_v50, %s8308_s30 }
 0xac1   :  { %v1826_v20 = vpop.xlane.xlu0 %1825 }
 0xac2   :  { %v1844_v62 = vsub.f32 %v7088_v11, %v1826_v20 }
 0xac4   :  { %v1854_v15 = vmul.f32 1.442695, %v1844_v62 }
 0xac5   :  { %v1820_v5 = vpop.xlane.xlu0 %1819 }
 0xac6   :  { %7794 = vpow2.f32 %v1854_v15  ;;  %v1842_v8 = vsub.f32 %v1787_v53, %v1820_v5 }
 0xac7   :  { %v1823_v22 = vpop.xlane.xlu1 %1822 }
 0xac8   :  { %v1850_v49 = vmul.f32 1.442695, %v1842_v8  ;;  %v1843_v6 = vsub.f32 %v1790_v1, %v1823_v22 }
 0xac9   :  { %v1829_v59 = vpop.xlane.xlu0 %1828 }
 0xaca   :  { %7796 = vpow2.f32 %v1850_v49  ;;  %v1845_v58 = vsub.f32 %v7089_v37, %v1829_v59  ;;  %v1852_v33 = vmul.f32 1.442695, %v1843_v6 }
 0xacb   :  { %v1838_v61 = vpop.xlane.xlu1 %1837 }
 0xacc   :  { %v1856_v43 = vmul.f32 1.442695, %v1845_v58  ;;  %v1848_v22 = vsub.f32 %v7092_v34, %v1838_v61 }
 0xacd   :  { %v1841_v48 = vpop.xlane.xlu0 %1840 }
 0xace   :  { %7798 = vpow2.f32 %v1856_v43  ;;  %v1849_v49 = vsub.f32 %v7093_v26, %v1841_v48  ;;  %v1862_v59 = vmul.f32 1.442695, %v1848_v22 }
 0xacf   :  { %7800 = vpow2.f32 %v1852_v33  ;;  %v1832_v45 = vpop.xlane.xlu1 %1831 }
 0xad0   :  { %v1846_v8 = vsub.f32 %v1803_v52, %v1832_v45  ;;  %v1864_v58 = vmul.f32 1.442695, %v1849_v49 }
 0xad1   :  { %v1835_v46 = vpop.xlane.xlu0 %1834 }
 0xad2   :  { %v1858_v6 = vmul.f32 1.442695, %v1846_v8  ;;  %v1847_v33 = vsub.f32 %v1806_v35, %v1835_v46 }
 0xad3   :  { %v9063_v21 = vpop.eup %7794  ;;  %v1913_v20 = vpop.permute.xlu1 %1912 }
 0xad4   :  { %v1872_v11 = vsel %vm546_vm2, %v9063_v21, 0.0  ;;  %7802 = vpow2.f32 %v1858_v6 }
 0xad5   :  { %1873 = vadd.xlane.f32.xlu1 %v1872_v11  ;;  %v1915_v53 = vpop.permute.xlu0 %1914  ;;  %7804 = vpow2.f32 %v1862_v59  ;;  %v1860_v11 = vmul.f32 1.442695, %v1847_v33 }
 0xad6   :  { %7096 = vmatprep.subr.bf16.mxu0 %v1915_v53  ;;  %7806 = vpow2.f32 %v1864_v58 }
 0xad7   :  { %v9067_v1 = vpop.eup %7796  ;;  %7097 = vmatpush3.bf16.msra.mxu0 %v1915_v53  ;;  %7808 = vpow2.f32 %v1860_v11 }
 0xad8   :  { %7098 = vmatprep.subr.bf16.mxu0 %v1913_v20  ;;  %v1866_v37 = vsel %vm546_vm2, %v9067_v1, 0.0 }
 0xad9   :  { %1867 = vadd.xlane.f32.xlu1 %v1866_v37 }
 0xadb   :  { %v7799_v43 = vpop.eup %7798  ;;  %7099 = vmatpush3.bf16.msra.mxu0 %v1913_v20 }
 0xadc   :  { %v1875_v62 = vsel %vm546_vm2, %v7799_v43, 0.0  ;;  %v7801_v15 = vpop.eup %7800 }
 0xadd   :  { %1876 = vadd.xlane.f32.xlu0 %v1875_v62  ;;  %v1869_v5 = vsel %vm546_vm2, %v7801_v15, 0.0 }
 0xae1   :  { %1870 = vadd.xlane.f32.xlu0 %v1869_v5  ;;  %v9079_v53 = vpop.eup %7802 }
 0xae2   :  { %v9081_v20 = vpop.eup %7804  ;;  %v1878_v37 = vsel %vm546_vm2, %v9079_v53, 0.0 }
 0xae3   :  { %v9085_v62 = vpop.eup %7806  ;;  %v1884_v46 = vsel %vm546_vm2, %v9081_v20, 0.0 }
 0xae4   :  { %v1887_v45 = vsel %vm546_vm2, %v9085_v62, 0.0  ;;  %v9091_v48 = vpop.eup %7808 }
 0xae5   :  { %v1881_v34 = vsel %vm546_vm2, %v9091_v48, 0.0 }
 0xaea   :  { %2021 = vrot.lane.b32.xlu1 %v8658_v3, %s8317_s12 }
 0xaee   :  { %2019 = vrot.lane.b32.xlu1 %v8976_v50, %s8317_s12 }
 0xaf7   :  { %1910 = vrot.lane.b32.xlu0 %v9001_v13, %s8308_s30 }
 0xb12   :  { %1879 = vadd.xlane.f32.xlu1 %v1878_v37 }
 0xb16   :  { %1888 = vadd.xlane.f32.xlu1 %v1887_v45  ;;  %1885 = vadd.xlane.f32.xlu0 %v1884_v46 }
 0xb1a   :  { %1882 = vadd.xlane.f32.xlu0 %v1881_v34 }
 0xb27   :  { %2015 = vrot.lane.b32.xlu1 %v9001_v13, %s8317_s12 }
 0xb2b   :  { %2009 = vrot.lane.b32.xlu1 %v8646_v60, %s8318_s13 }
 0xb2f   :  { %2013 = vrot.lane.b32.xlu1 %v8658_v3, %s8318_s13 }
 0xb30   :  { %2017 = vrot.lane.b32.xlu0 %v8646_v60, %s8317_s12 }
 0xb33   :  { %2210 = vrot.lane.b32.xlu1 %v8658_v3, %s8319_s14 }
 0xb34   :  { %2007 = vrot.lane.b32.xlu0 %v9001_v13, %s8318_s13 }
 0xb38   :  { %2011 = vrot.lane.b32.xlu0 %v8976_v50, %s8318_s13 }
 0xb5e   :  { %v1874_v52 = vpop.xlane.xlu1 %1873 }
 0xb62   :  { %v1868_v26 = vpop.xlane.xlu1 %1867 }
 0xb66   :  { %v1877_v35 = vpop.xlane.xlu0 %1876  ;;  %v2022_v8 = vpop.permute.xlu1 %2021 }
 0xb67   :  { %7810 = vrcp.f32 %v1877_v35  ;;  %v2045_v34 = vsel %vm456_vm1, %v2022_v8, 0 }
 0xb68   :  { %7812 = vrcp.f32 %v1868_v26 }
 0xb69   :  { %7814 = vrcp.f32 %v1874_v52 }
 0xb6a   :  { %v1871_v61 = vpop.xlane.xlu0 %1870  ;;  %v2020_v52 = vpop.permute.xlu1 %2019 }
 0xb6b   :  { %7816 = vrcp.f32 %v1871_v61  ;;  %v2042_v26 = vsel %vm456_vm1, %v2020_v52, 0 }
 0xb6e   :  { %v1911_v5 = vpop.permute.xlu0 %1910 }
 0xb6f   :  { %7100 = vmatprep.subr.bf16.mxu0 %v1911_v5 }
 0xb70   :  { %7101 = vmatpush3.bf16.msra.mxu0 %v1911_v5 }
 0xb71   :  { %7586 = vmatprep.subr.msk.bf16.mxu0 %vm456_vm1, %v2022_v8 }
 0xb74   :  { %v7811_v22 = vpop.eup %7810 }
 0xb75   :  { %v7813_v49 = vpop.eup %7812  ;;  %v1901_v58 = vmul.f32 %v7811_v22, %v7799_v43 }
 0xb76   :  { %v7815_v6 = vpop.eup %7814  ;;  %v1898_v33 = vmul.f32 %v7813_v49, %v9067_v1 }
 0xb77   :  { %v1900_v37 = vmul.f32 %v7815_v6, %v9063_v21 }
 0xb78   :  { %v7817_v59 = vpop.eup %7816 }
 0xb79   :  { %v1899_v11 = vmul.f32 %v7817_v59, %v7801_v15  ;;  %v1907_v46 = vpack.c.bf16 %v1901_v58, %v1900_v37 }
 0xb7b   :  { %v1906_v45 = vpack.c.bf16 %v1899_v11, %v1898_v33 }
 0xb7d   :  { %7102 = vmatprep.mubr.msk.bf16.mxu0 %vm546_vm2, %v1906_v45 }
 0xb7e   :  { %7103 = vmatmul.mubr.msk.bf16.vlgmr.msra.gmra.mxu0 %vm546_vm2, %v1907_v46 }
 0xb7f   :  { %7111 = vmatpush3.bf16.xpose.msra.mxu0 %v2045_v34 }
 0xb80   :  { %7587 = vmatprep.subr.msk.bf16.mxu0 %vm456_vm1, %v2020_v52 }
 0xb87   :  { %7113 = vmatpush3.bf16.xpose.msra.mxu0 %v2042_v26 }
 0xb9b   :  { %v1880_v43 = vpop.xlane.xlu1 %1879 }
 0xb9f   :  { %v1889_v1 = vpop.xlane.xlu1 %1888  ;;  %v1886_v15 = vpop.xlane.xlu0 %1885 }
 0xba0   :  { %7818 = vrcp.f32 %v1889_v1 }
 0xba1   :  { %7820 = vrcp.f32 %v1886_v15 }
 0xba2   :  { %7822 = vrcp.f32 %v1880_v43 }
 0xba3   :  { %v2016_v21 = vpop.permute.xlu1 %2015  ;;  %v1883_v35 = vpop.xlane.xlu0 %1882 }
 0xba4   :  { %7824 = vrcp.f32 %v1883_v35  ;;  %v2036_v33 = vsel %vm456_vm1, %v2016_v21, 0 }
 0xba7   :  { %v2010_v61 = vpop.permute.xlu1 %2009  ;;  %v2018_v5 = vpop.permute.xlu0 %2017 }
 0xba8   :  { %7588 = vmatprep.subr.msk.bf16.mxu0 %vm456_vm1, %v2018_v5  ;;  %v2039_v8 = vsel %vm456_vm1, %v2018_v5, 0 }
 0xba9   :  { %7115 = vmatpush3.bf16.xpose.msra.mxu0 %v2039_v8 }
 0xbaa   :  { %7589 = vmatprep.subr.msk.bf16.mxu0 %vm456_vm1, %v2016_v21 }
 0xbab   :  { %v2014_v22 = vpop.permute.xlu1 %2013  ;;  %v2008_v43 = vpop.permute.xlu0 %2007 }
 0xbad   :  { %v7819_v49 = vpop.eup %7818 }
 0xbae   :  { %v7821_v6 = vpop.eup %7820  ;;  %v1905_v45 = vmul.f32 %v7819_v49, %v9085_v62 }
 0xbaf   :  { %v7823_v59 = vpop.eup %7822  ;;  %v2211_v58 = vpop.permute.xlu1 %2210  ;;  %v1904_v37 = vmul.f32 %v7821_v6, %v9081_v20 }
 0xbb0   :  { %7126 = vmatprep.subr.bf16.mxu1 %v2211_v58  ;;  %v1902_v46 = vmul.f32 %v7823_v59, %v9079_v53  ;;  %v2012_v1 = vpop.permute.xlu0 %2011 }
 0xbb1   :  { %v7825_v11 = vpop.eup %7824  ;;  %7117 = vmatpush3.bf16.xpose.msra.mxu0 %v2036_v33  ;;  %7127 = vmatpush3.bf16.msra.mxu1 %v2211_v58  ;;  %v1909_v26 = vpack.c.bf16 %v1905_v45, %v1904_v37 }
 0xbb2   :  { %v1903_v34 = vmul.f32 %v7825_v11, %v9091_v48 }
 0xbb4   :  { %v1908_v52 = vpack.c.bf16 %v1903_v34, %v1902_v46 }
 0xbb6   :  { %7106 = vmatprep.mubr.msk.bf16.mxu0 %vm546_vm2, %v1908_v52 }
 0xbb7   :  { %7107 = vmatmul.mubr.msk.bf16.gmra.mxu0 %vm546_vm2, %v1909_v26 }
 0xbb8   :  { %7118 = vmatprep.mubr.msk.bf16.mxu0 %vm456_vm1, %v2008_v43 }
 0xbbf   :  { %7119 = vmatmul.mubr.msk.bf16.vlgmr.msra.gmra.mxu0 %vm456_vm1, %v2010_v61 }
 0xbc0   :  { %7122 = vmatprep.mubr.msk.bf16.mxu0 %vm456_vm1, %v2012_v1 }
 0xbc7   :  { %7123 = vmatmul.mubr.msk.bf16.gmra.mxu0 %vm456_vm1, %v2014_v22 }
 0xc3e   :  { %v7104_v20 = vpop.f32.mrf.mxu0 }
 0xc3f   :  { %2001 = vst.msk [vmem:[#allocation2 + $0x50] sm:$0xff] %vm456_vm1, %v7104_v20 }
 0xc40   :  { %v1968_v53 = vpop.f32.mrf.mxu0 }
 0xc41   :  { %1999 = vst.msk [vmem:[#allocation2 + $0x40] sm:$0xff] %vm456_vm1, %v1968_v53 }
 0xc42   :  { %v7105_v62 = vpop.f32.mrf.mxu0 }
 0xc43   :  { %2002 = vst.msk [vmem:[#allocation2 + $0x58] sm:$0xff] %vm456_vm1, %v7105_v62 }
 0xc44   :  { %v1971_v48 = vpop.f32.mrf.mxu0 }
 0xc45   :  { %2000 = vst.msk [vmem:[#allocation2 + $0x48] sm:$0xff] %vm456_vm1, %v1971_v48 }
 0xc77   :  { %v7108_v15 = vpop.f32.mrf.mxu0 }
 0xc78   :  { %2005 = vst.msk [vmem:[#allocation2 + $0x70] sm:$0xff] %vm456_vm1, %v7108_v15 }
 0xc79   :  { %v1984_v21 = vpop.f32.mrf.mxu0 }
 0xc7a   :  { %2003 = vst.msk [vmem:[#allocation2 + $0x60] sm:$0xff] %vm456_vm1, %v1984_v21 }
 0xc7b   :  { %v7109_v35 = vpop.f32.mrf.mxu0 }
 0xc7c   :  { %2006 = vst.msk [vmem:[#allocation2 + $0x78] sm:$0xff] %vm456_vm1, %v7109_v35 }
 0xc7d   :  { %v1987_v61 = vpop.f32.mrf.mxu0 }
 0xc7e   :  { %2004 = vst.msk [vmem:[#allocation2 + $0x68] sm:$0xff] %vm456_vm1, %v1987_v61 }
 0xc7f   :  { %v7120_v5 = vpop.f32.mrf.mxu0 }
 0xc80   :  { %v2118_v8 = vsel %vm546_vm2, %v7120_v5, -inf }
 0xc81   :  { %2119 = vmax.xlane.f32.xlu0 %v2118_v8  ;;  %v2081_v22 = vpop.f32.mrf.mxu0 }
 0xc82   :  { %v2112_v6 = vsel %vm546_vm2, %v2081_v22, -inf }
 0xc83   :  { %v7121_v49 = vpop.f32.mrf.mxu0 }
 0xc84   :  { %v2121_v11 = vsel %vm546_vm2, %v7121_v49, -inf }
 0xc85   :  { %2113 = vmax.xlane.f32.xlu0 %v2112_v6  ;;  %v2084_v59 = vpop.f32.mrf.mxu0 }
 0xc86   :  { %v2115_v58 = vsel %vm546_vm2, %v2084_v59, -inf }
 0xc87   :  { %2116 = vmax.xlane.f32.xlu1 %v2115_v58  ;;  %v7124_v33 = vpop.f32.mrf.mxu0 }
 0xc88   :  { %v2130_v45 = vsel %vm546_vm2, %v7124_v33, -inf }
 0xc89   :  { %2122 = vmax.xlane.f32.xlu0 %v2121_v11  ;;  %v2097_v37 = vpop.f32.mrf.mxu0 }
 0xc8a   :  { %v2124_v26 = vsel %vm546_vm2, %v2097_v37, -inf }
 0xc8b   :  { %2131 = vmax.xlane.f32.xlu1 %v2130_v45  ;;  %v7125_v46 = vpop.f32.mrf.mxu0 }
 0xc8c   :  { %v2133_v34 = vsel %vm546_vm2, %v7125_v46, -inf }
 0xc8d   :  { %2134 = vmax.xlane.f32.xlu0 %v2133_v34  ;;  %v2100_v52 = vpop.f32.mrf.mxu0 }
 0xc8e   :  { %v2127_v43 = vsel %vm546_vm2, %v2100_v52, -inf }
 0xc8f   :  { %2125 = vmax.xlane.f32.xlu1 %v2124_v26 }
 0xc91   :  { %2128 = vmax.xlane.f32.xlu0 %v2127_v43 }
 0xca0   :  { %2206 = vrot.lane.b32.xlu1 %v8646_v60, %s8319_s14 }
 0xca7   :  { %2208 = vrot.lane.b32.xlu0 %v8976_v50, %s8319_s14 }
 0xd0a   :  { %v2120_v1 = vpop.xlane.xlu0 %2119 }
 0xd0b   :  { %v2138_v20 = vsub.f32 %v7120_v5, %v2120_v1 }
 0xd0d   :  { %v2148_v53 = vmul.f32 1.442695, %v2138_v20 }
 0xd0e   :  { %v2114_v62 = vpop.xlane.xlu0 %2113 }
 0xd0f   :  { %7826 = vpow2.f32 %v2148_v53  ;;  %v2136_v48 = vsub.f32 %v2081_v22, %v2114_v62 }
 0xd10   :  { %v2117_v15 = vpop.xlane.xlu1 %2116 }
 0xd11   :  { %v2144_v21 = vmul.f32 1.442695, %v2136_v48  ;;  %v2137_v35 = vsub.f32 %v2084_v59, %v2117_v15 }
 0xd12   :  { %v2123_v61 = vpop.xlane.xlu0 %2122 }
 0xd13   :  { %7828 = vpow2.f32 %v2144_v21  ;;  %v2139_v8 = vsub.f32 %v7121_v49, %v2123_v61  ;;  %v2146_v58 = vmul.f32 1.442695, %v2137_v35 }
 0xd14   :  { %v2132_v6 = vpop.xlane.xlu1 %2131 }
 0xd15   :  { %v2150_v11 = vmul.f32 1.442695, %v2139_v8  ;;  %v2142_v21 = vsub.f32 %v7124_v33, %v2132_v6 }
 0xd16   :  { %v2135_v45 = vpop.xlane.xlu0 %2134 }
 0xd17   :  { %7830 = vpow2.f32 %v2150_v11  ;;  %v2143_v35 = vsub.f32 %v7125_v46, %v2135_v45  ;;  %v2156_v8 = vmul.f32 1.442695, %v2142_v21 }
 0xd18   :  { %7832 = vpow2.f32 %v2146_v58  ;;  %v2126_v34 = vpop.xlane.xlu1 %2125 }
 0xd19   :  { %v2140_v15 = vsub.f32 %v2097_v37, %v2126_v34  ;;  %v2158_v58 = vmul.f32 1.442695, %v2143_v35 }
 0xd1a   :  { %v2129_v26 = vpop.xlane.xlu0 %2128 }
 0xd1b   :  { %v2152_v61 = vmul.f32 1.442695, %v2140_v15  ;;  %v2141_v11 = vsub.f32 %v2100_v52, %v2129_v26 }
 0xd1c   :  { %v9151_v43 = vpop.eup %7826  ;;  %v2207_v1 = vpop.permute.xlu1 %2206 }
 0xd1d   :  { %v2166_v5 = vsel %vm546_vm2, %v9151_v43, 0.0  ;;  %7834 = vpow2.f32 %v2152_v61 }
 0xd1e   :  { %2167 = vadd.xlane.f32.xlu1 %v2166_v5  ;;  %v2209_v22 = vpop.permute.xlu0 %2208  ;;  %7836 = vpow2.f32 %v2156_v8  ;;  %v2154_v5 = vmul.f32 1.442695, %v2141_v11 }
 0xd1f   :  { %7128 = vmatprep.subr.bf16.mxu1 %v2209_v22  ;;  %7838 = vpow2.f32 %v2158_v58 }
 0xd20   :  { %v9155_v59 = vpop.eup %7828  ;;  %7129 = vmatpush3.bf16.msra.mxu1 %v2209_v22  ;;  %7840 = vpow2.f32 %v2154_v5 }
 0xd21   :  { %7130 = vmatprep.subr.bf16.mxu1 %v2207_v1  ;;  %v2160_v49 = vsel %vm546_vm2, %v9155_v59, 0.0 }
 0xd22   :  { %2161 = vadd.xlane.f32.xlu1 %v2160_v49 }
 0xd24   :  { %v7831_v20 = vpop.eup %7830  ;;  %7131 = vmatpush3.bf16.msra.mxu1 %v2207_v1 }
 0xd25   :  { %v2169_v53 = vsel %vm546_vm2, %v7831_v20, 0.0  ;;  %v7833_v62 = vpop.eup %7832 }
 0xd26   :  { %2170 = vadd.xlane.f32.xlu0 %v2169_v53  ;;  %v2163_v48 = vsel %vm546_vm2, %v7833_v62, 0.0 }
 0xd2a   :  { %2164 = vadd.xlane.f32.xlu0 %v2163_v48  ;;  %v9167_v22 = vpop.eup %7834 }
 0xd2b   :  { %v9169_v1 = vpop.eup %7836  ;;  %v2172_v49 = vsel %vm546_vm2, %v9167_v22, 0.0 }
 0xd2c   :  { %v9173_v53 = vpop.eup %7838  ;;  %v2178_v33 = vsel %vm546_vm2, %v9169_v1, 0.0 }
 0xd2d   :  { %v2181_v37 = vsel %vm546_vm2, %v9173_v53, 0.0  ;;  %v9179_v46 = vpop.eup %7840 }
 0xd2e   :  { %v2175_v52 = vsel %vm546_vm2, %v9179_v46, 0.0 }
 0xd33   :  { %2347 = vrot.lane.b32.xlu1 %v8658_v3, %s8320_s15 }
 0xd37   :  { %2345 = vrot.lane.b32.xlu1 %v8976_v50, %s8320_s15 }
 0xd40   :  { %2204 = vrot.lane.b32.xlu0 %v9001_v13, %s8319_s14 }
 0xd5b   :  { %2173 = vadd.xlane.f32.xlu1 %v2172_v49 }
 0xd5f   :  { %2179 = vadd.xlane.f32.xlu0 %v2178_v33  ;;  %2182 = vadd.xlane.f32.xlu1 %v2181_v37 }
 0xd63   :  { %2176 = vadd.xlane.f32.xlu0 %v2175_v52 }
 0xd70   :  { %2341 = vrot.lane.b32.xlu1 %v9001_v13, %s8320_s15 }
 0xd74   :  { %2335 = vrot.lane.b32.xlu1 %v8646_v60, %s8321_s16 }
 0xd78   :  { %2339 = vrot.lane.b32.xlu1 %v8658_v3, %s8321_s16 }
 0xd79   :  { %2343 = vrot.lane.b32.xlu0 %v8646_v60, %s8320_s15 }
 0xd7c   :  { %2536 = vrot.lane.b32.xlu1 %v8658_v3, %s8322_s17 }
 0xd7d   :  { %2333 = vrot.lane.b32.xlu0 %v9001_v13, %s8321_s16 }
 0xd81   :  { %2337 = vrot.lane.b32.xlu0 %v8976_v50, %s8321_s16 }
 0xda7   :  { %v2168_v6 = vpop.xlane.xlu1 %2167 }
 0xdab   :  { %v2162_v45 = vpop.xlane.xlu1 %2161 }
 0xdaf   :  { %v2171_v34 = vpop.xlane.xlu0 %2170  ;;  %v2348_v15 = vpop.permute.xlu1 %2347 }
 0xdb0   :  { %7842 = vrcp.f32 %v2171_v34  ;;  %v2371_v52 = vsel %vm456_vm1, %v2348_v15, 0 }
 0xdb1   :  { %7844 = vrcp.f32 %v2162_v45 }
 0xdb2   :  { %7846 = vrcp.f32 %v2168_v6 }
 0xdb3   :  { %v2165_v26 = vpop.xlane.xlu0 %2164  ;;  %v2346_v6 = vpop.permute.xlu1 %2345 }
 0xdb4   :  { %7848 = vrcp.f32 %v2165_v26  ;;  %v2368_v45 = vsel %vm456_vm1, %v2346_v6, 0 }
 0xdb7   :  { %v2205_v48 = vpop.permute.xlu0 %2204 }
 0xdb8   :  { %7132 = vmatprep.subr.bf16.mxu1 %v2205_v48 }
 0xdb9   :  { %7133 = vmatpush3.bf16.msra.mxu1 %v2205_v48 }
 0xdba   :  { %7590 = vmatprep.subr.msk.bf16.mxu1 %vm456_vm1, %v2348_v15 }
 0xdbd   :  { %v7843_v21 = vpop.eup %7842 }
 0xdbe   :  { %v7845_v35 = vpop.eup %7844  ;;  %v2195_v58 = vmul.f32 %v7843_v21, %v7831_v20 }
 0xdbf   :  { %v7847_v61 = vpop.eup %7846  ;;  %v2192_v11 = vmul.f32 %v7845_v35, %v9155_v59 }
 0xdc0   :  { %v2194_v49 = vmul.f32 %v7847_v61, %v9151_v43 }
 0xdc1   :  { %v7849_v8 = vpop.eup %7848 }
 0xdc2   :  { %v2193_v5 = vmul.f32 %v7849_v8, %v7833_v62  ;;  %v2201_v37 = vpack.c.bf16 %v2195_v58, %v2194_v49 }
 0xdc4   :  { %v2200_v33 = vpack.c.bf16 %v2193_v5, %v2192_v11 }
 0xdc6   :  { %7134 = vmatprep.mubr.msk.bf16.mxu1 %vm546_vm2, %v2200_v33 }
 0xdc7   :  { %7135 = vmatmul.mubr.msk.bf16.vlgmr.msra.gmra.mxu1 %vm546_vm2, %v2201_v37 }
 0xdc8   :  { %7143 = vmatpush3.bf16.xpose.msra.mxu1 %v2371_v52 }
 0xdc9   :  { %7591 = vmatprep.subr.msk.bf16.mxu1 %vm456_vm1, %v2346_v6 }
 0xdd0   :  { %7145 = vmatpush3.bf16.xpose.msra.mxu1 %v2368_v45 }
 0xde4   :  { %v2174_v20 = vpop.xlane.xlu1 %2173 }
 0xde8   :  { %v2183_v59 = vpop.xlane.xlu1 %2182  ;;  %v2180_v62 = vpop.xlane.xlu0 %2179 }
 0xde9   :  { %7850 = vrcp.f32 %v2183_v59 }
 0xdea   :  { %7852 = vrcp.f32 %v2180_v62 }
 0xdeb   :  { %7854 = vrcp.f32 %v2174_v20 }
 0xdec   :  { %v2342_v43 = vpop.permute.xlu1 %2341  ;;  %v2177_v34 = vpop.xlane.xlu0 %2176 }
 0xded   :  { %7856 = vrcp.f32 %v2177_v34  ;;  %v2362_v11 = vsel %vm456_vm1, %v2342_v43, 0 }
 0xdf0   :  { %v2336_v26 = vpop.permute.xlu1 %2335  ;;  %v2344_v48 = vpop.permute.xlu0 %2343 }
 0xdf1   :  { %7592 = vmatprep.subr.msk.bf16.mxu1 %vm456_vm1, %v2344_v48  ;;  %v2365_v15 = vsel %vm456_vm1, %v2344_v48, 0 }
 0xdf2   :  { %7147 = vmatpush3.bf16.xpose.msra.mxu1 %v2365_v15 }
 0xdf3   :  { %7593 = vmatprep.subr.msk.bf16.mxu1 %vm456_vm1, %v2342_v43 }
 0xdf4   :  { %v2340_v21 = vpop.permute.xlu1 %2339  ;;  %v2334_v20 = vpop.permute.xlu0 %2333 }
 0xdf6   :  { %v7851_v35 = vpop.eup %7850 }
 0xdf7   :  { %v7853_v61 = vpop.eup %7852  ;;  %v2199_v33 = vmul.f32 %v7851_v35, %v9173_v53 }
 0xdf8   :  { %v7855_v8 = vpop.eup %7854  ;;  %v2537_v58 = vpop.permute.xlu1 %2536  ;;  %v2198_v49 = vmul.f32 %v7853_v61, %v9169_v1 }
 0xdf9   :  { %7158 = vmatprep.subr.bf16.mxu0 %v2537_v58  ;;  %v2196_v37 = vmul.f32 %v7855_v8, %v9167_v22  ;;  %v2338_v59 = vpop.permute.xlu0 %2337 }
 0xdfa   :  { %v7857_v5 = vpop.eup %7856  ;;  %7149 = vmatpush3.bf16.xpose.msra.mxu1 %v2362_v11  ;;  %7159 = vmatpush3.bf16.msra.mxu0 %v2537_v58  ;;  %v2203_v45 = vpack.c.bf16 %v2199_v33, %v2198_v49 }
 0xdfb   :  { %v2197_v52 = vmul.f32 %v7857_v5, %v9179_v46 }
 0xdfd   :  { %v2202_v6 = vpack.c.bf16 %v2197_v52, %v2196_v37 }
 0xdff   :  { %7138 = vmatprep.mubr.msk.bf16.mxu1 %vm546_vm2, %v2202_v6 }
 0xe00   :  { %7139 = vmatmul.mubr.msk.bf16.gmra.mxu1 %vm546_vm2, %v2203_v45 }
 0xe01   :  { %7150 = vmatprep.mubr.msk.bf16.mxu1 %vm456_vm1, %v2334_v20 }
 0xe08   :  { %7151 = vmatmul.mubr.msk.bf16.vlgmr.msra.gmra.mxu1 %vm456_vm1, %v2336_v26 }
 0xe09   :  { %7154 = vmatprep.mubr.msk.bf16.mxu1 %vm456_vm1, %v2338_v59 }
 0xe10   :  { %7155 = vmatmul.mubr.msk.bf16.gmra.mxu1 %vm456_vm1, %v2340_v21 }
 0xe87   :  { %v9219_v1 = vpop.f32.mrf.mxu1 }
 0xe89   :  { %v9221_v22 = vpop.f32.mrf.mxu1 }
 0xe8b   :  { %v9223_v53 = vpop.f32.mrf.mxu1 }
 0xe8d   :  { %v9225_v46 = vpop.f32.mrf.mxu1 }
 0xec0   :  { %v9227_v62 = vpop.f32.mrf.mxu1 }
 0xec2   :  { %v9229_v43 = vpop.f32.mrf.mxu1 }
 0xec4   :  { %v9231_v34 = vpop.f32.mrf.mxu1 }
 0xec6   :  { %v9233_v48 = vpop.f32.mrf.mxu1 }
 0xec8   :  { %v7152_v26 = vpop.f32.mrf.mxu1 }
 0xec9   :  { %v2444_v15 = vsel %vm546_vm2, %v7152_v26, -inf }
 0xeca   :  { %2445 = vmax.xlane.f32.xlu0 %v2444_v15  ;;  %v2407_v21 = vpop.f32.mrf.mxu1 }
 0xecb   :  { %v2438_v61 = vsel %vm546_vm2, %v2407_v21, -inf }
 0xecc   :  { %v7153_v35 = vpop.f32.mrf.mxu1 }
 0xecd   :  { %v2447_v5 = vsel %vm546_vm2, %v7153_v35, -inf }
 0xece   :  { %2439 = vmax.xlane.f32.xlu0 %v2438_v61  ;;  %v2410_v8 = vpop.f32.mrf.mxu1 }
 0xecf   :  { %v2441_v58 = vsel %vm546_vm2, %v2410_v8, -inf }
 0xed0   :  { %2442 = vmax.xlane.f32.xlu1 %v2441_v58  ;;  %v7156_v11 = vpop.f32.mrf.mxu1 }
 0xed1   :  { %v2456_v33 = vsel %vm546_vm2, %v7156_v11, -inf }
 0xed2   :  { %2448 = vmax.xlane.f32.xlu0 %v2447_v5  ;;  %v2423_v49 = vpop.f32.mrf.mxu1 }
 0xed3   :  { %v2450_v45 = vsel %vm546_vm2, %v2423_v49, -inf }
 0xed4   :  { %2457 = vmax.xlane.f32.xlu1 %v2456_v33  ;;  %v7157_v37 = vpop.f32.mrf.mxu1 }
 0xed5   :  { %v2459_v52 = vsel %vm546_vm2, %v7157_v37, -inf }
 0xed6   :  { %2460 = vmax.xlane.f32.xlu0 %v2459_v52  ;;  %v2426_v6 = vpop.f32.mrf.mxu1 }
 0xed7   :  { %v2453_v20 = vsel %vm546_vm2, %v2426_v6, -inf }
 0xed8   :  { %2451 = vmax.xlane.f32.xlu1 %v2450_v45 }
 0xeda   :  { %2454 = vmax.xlane.f32.xlu0 %v2453_v20 }
 0xee9   :  { %2532 = vrot.lane.b32.xlu1 %v8646_v60, %s8322_s17 }
 0xef0   :  { %2534 = vrot.lane.b32.xlu0 %v8976_v50, %s8322_s17 }
 0xf53   :  { %v2446_v59 = vpop.xlane.xlu0 %2445 }
 0xf54   :  { %v2464_v15 = vsub.f32 %v7152_v26, %v2446_v59 }
 0xf56   :  { %v2474_v61 = vmul.f32 1.442695, %v2464_v15 }
 0xf57   :  { %v2440_v58 = vpop.xlane.xlu0 %2439 }
 0xf58   :  { %7858 = vpow2.f32 %v2474_v61  ;;  %v2462_v5 = vsub.f32 %v2407_v21, %v2440_v58 }
 0xf59   :  { %v2443_v33 = vpop.xlane.xlu1 %2442 }
 0xf5a   :  { %v2470_v52 = vmul.f32 1.442695, %v2462_v5  ;;  %v2463_v31 = vsub.f32 %v2410_v8, %v2443_v33 }
 0xf5b   :  { %v2449_v23 = vpop.xlane.xlu0 %2448 }
 0xf5c   :  { %7860 = vpow2.f32 %v2470_v52  ;;  %v2465_v45 = vsub.f32 %v7153_v35, %v2449_v23  ;;  %v2472_v20 = vmul.f32 1.442695, %v2463_v31 }
 0xf5d   :  { %v2458_v24 = vpop.xlane.xlu1 %2457 }
 0xf5e   :  { %v2476_v42 = vmul.f32 1.442695, %v2465_v45  ;;  %v2468_v58 = vsub.f32 %v7156_v11, %v2458_v24 }
 0xf5f   :  { %v2461_v41 = vpop.xlane.xlu0 %2460 }
 0xf60   :  { %7862 = vpow2.f32 %v2476_v42  ;;  %v2469_v5 = vsub.f32 %v7157_v37, %v2461_v41  ;;  %v2482_v52 = vmul.f32 1.442695, %v2468_v58 }
 0xf61   :  { %7864 = vpow2.f32 %v2472_v20  ;;  %v2452_v40 = vpop.xlane.xlu1 %2451 }
 0xf62   :  { %v2466_v61 = vsub.f32 %v2423_v49, %v2452_v40  ;;  %v2484_v45 = vmul.f32 1.442695, %v2469_v5 }
 0xf63   :  { %v2455_v39 = vpop.xlane.xlu0 %2454 }
 0xf64   :  { %v2478_v33 = vmul.f32 1.442695, %v2466_v61  ;;  %v2467_v20 = vsub.f32 %v2426_v6, %v2455_v39 }
 0xf65   :  { %v9247_v29 = vpop.eup %7858  ;;  %v2533_v59 = vpop.permute.xlu1 %2532 }
 0xf66   :  { %v2492_v26 = vsel %vm546_vm2, %v9247_v29, 0.0  ;;  %7866 = vpow2.f32 %v2478_v33 }
 0xf67   :  { %2493 = vadd.xlane.f32.xlu1 %v2492_v26  ;;  %v2535_v21 = vpop.permute.xlu0 %2534  ;;  %7868 = vpow2.f32 %v2482_v52  ;;  %v2480_v26 = vmul.f32 1.442695, %v2467_v20 }
 0xf68   :  { %7160 = vmatprep.subr.bf16.mxu0 %v2535_v21  ;;  %7870 = vpow2.f32 %v2484_v45 }
 0xf69   :  { %v9251_v8 = vpop.eup %7860  ;;  %7161 = vmatpush3.bf16.msra.mxu0 %v2535_v21  ;;  %7872 = vpow2.f32 %v2480_v26 }
 0xf6a   :  { %7162 = vmatprep.subr.bf16.mxu0 %v2533_v59  ;;  %v2486_v23 = vsel %vm546_vm2, %v9251_v8, 0.0 }
 0xf6b   :  { %2487 = vadd.xlane.f32.xlu1 %v2486_v23 }
 0xf6d   :  { %v9255_v42 = vpop.eup %7862  ;;  %7163 = vmatpush3.bf16.msra.mxu0 %v2533_v59 }
 0xf6e   :  { %v2495_v31 = vsel %vm546_vm2, %v9255_v42, 0.0  ;;  %v9259_v35 = vpop.eup %7864 }
 0xf6f   :  { %2496 = vadd.xlane.f32.xlu0 %v2495_v31  ;;  %v2489_v15 = vsel %vm546_vm2, %v9259_v35, 0.0 }
 0xf73   :  { %2490 = vadd.xlane.f32.xlu0 %v2489_v15  ;;  %v9269_v21 = vpop.eup %7866 }
 0xf74   :  { %v9271_v59 = vpop.eup %7868  ;;  %v2498_v23 = vsel %vm546_vm2, %v9269_v21, 0.0 }
 0xf75   :  { %v9275_v31 = vpop.eup %7870  ;;  %v2504_v40 = vsel %vm546_vm2, %v9271_v59, 0.0 }
 0xf76   :  { %v2507_v39 = vsel %vm546_vm2, %v9275_v31, 0.0  ;;  %v9281_v41 = vpop.eup %7872 }
 0xf77   :  { %v2501_v24 = vsel %vm546_vm2, %v9281_v41, 0.0 }
 0xf7c   :  { %2673 = vrot.lane.b32.xlu1 %v8658_v3, %s8323_s18 }
 0xf80   :  { %2671 = vrot.lane.b32.xlu1 %v8976_v50, %s8323_s18 }
 0xf89   :  { %2530 = vrot.lane.b32.xlu0 %v9001_v13, %s8322_s17 }
 0xfa4   :  { %2499 = vadd.xlane.f32.xlu1 %v2498_v23 }
 0xfa8   :  { %2505 = vadd.xlane.f32.xlu0 %v2504_v40  ;;  %2508 = vadd.xlane.f32.xlu1 %v2507_v39 }
 0xfac   :  { %2502 = vadd.xlane.f32.xlu0 %v2501_v24 }
 0xfb9   :  { %2667 = vrot.lane.b32.xlu1 %v9001_v13, %s8323_s18 }
 0xfbd   :  { %2661 = vrot.lane.b32.xlu1 %v8646_v60, %s8324_s1 }
 0xfc1   :  { %2665 = vrot.lane.b32.xlu1 %v8658_v3, %s8324_s1 }
 0xfc2   :  { %2669 = vrot.lane.b32.xlu0 %v8646_v60, %s8323_s18 }
 0xfc5   :  { %2862 = vrot.lane.b32.xlu1 %v8658_v3, %s8325_s21 }
 0xfc6   :  { %2659 = vrot.lane.b32.xlu0 %v9001_v13, %s8324_s1 }
 0xfc9   :  { %2858 = vrot.lane.b32.xlu1 %v8646_v60, %s8325_s21 }
 0xfca   :  { %2663 = vrot.lane.b32.xlu0 %v8976_v50, %s8324_s1 }
 0xfcd   :  { %2856 = vrot.lane.b32.xlu1 %v9001_v13, %s8325_s21 }
 0xfce   :  { %2860 = vrot.lane.b32.xlu0 %v8976_v50, %s8325_s21 }
 0xfd1   :  { %1032 = vrot.lane.b32.xlu1 %v8838_v57, %s8313_s20 }
 0xfd2   :  { %1030 = vrot.lane.b32.xlu0 %v8834_v55, %s8313_s20 }
 0xfd5   :  { %1036 = vrot.lane.b32.xlu1 %v8836_v56, %s8313_s20 }
 0xfd6   :  { %1034 = vrot.lane.b32.xlu0 %v8832_v2, %s8313_s20 }
 0xff0   :  { %v2494_v60 = vpop.xlane.xlu1 %2493 }
 0xff4   :  { %v2488_v3 = vpop.xlane.xlu1 %2487 }
 0xff8   :  { %v2497_v11 = vpop.xlane.xlu0 %2496  ;;  %v2674_v57 = vpop.permute.xlu1 %2673 }
 0xff9   :  { %7874 = vrcp.f32 %v2497_v11  ;;  %v2697_v33 = vsel %vm456_vm1, %v2674_v57, 0 }
 0xffa   :  { %7876 = vrcp.f32 %v2488_v3 }
 0xffb   :  { %7878 = vrcp.f32 %v2494_v60 }
 0xffc   :  { %v2491_v13 = vpop.xlane.xlu0 %2490  ;;  %v2672_v52 = vpop.permute.xlu1 %2671 }
 0xffd   :  { %7880 = vrcp.f32 %v2491_v13 }
0x1000   :  { %v2531_v50 = vpop.permute.xlu0 %2530 }
0x1001   :  { %7164 = vmatprep.subr.bf16.mxu0 %v2531_v50 }
0x1002   :  { %7165 = vmatpush3.bf16.msra.mxu0 %v2531_v50 }
0x1003   :  { %7594 = vmatprep.subr.msk.bf16.mxu0 %vm456_vm1, %v2674_v57 }
0x1006   :  { %v7875_v55 = vpop.eup %7874 }
0x1007   :  { %v7877_v49 = vpop.eup %7876  ;;  %v2521_v2 = vmul.f32 %v7875_v55, %v9255_v42  ;;  %v2694_v42 = vsel %vm456_vm1, %v2672_v52, 0 }
0x1008   :  { %v7879_v56 = vpop.eup %7878  ;;  %v2518_v6 = vmul.f32 %v7877_v49, %v9251_v8 }
0x1009   :  { %v2520_v61 = vmul.f32 %v7879_v56, %v9247_v29 }
0x100a   :  { %v7881_v37 = vpop.eup %7880 }
0x100b   :  { %v2519_v15 = vmul.f32 %v7881_v37, %v9259_v35  ;;  %v2527_v5 = vpack.c.bf16 %v2521_v2, %v2520_v61 }
0x100d   :  { %v2526_v58 = vpack.c.bf16 %v2519_v15, %v2518_v6 }
0x100f   :  { %7166 = vmatprep.mubr.msk.bf16.mxu0 %vm546_vm2, %v2526_v58 }
0x1010   :  { %7167 = vmatmul.mubr.msk.bf16.vlgmr.msra.gmra.mxu0 %vm546_vm2, %v2527_v5 }
0x1011   :  { %7175 = vmatpush3.bf16.xpose.msra.mxu0 %v2697_v33 }
0x1012   :  { %7595 = vmatprep.subr.msk.bf16.mxu0 %vm456_vm1, %v2672_v52 }
0x1019   :  { %7177 = vmatpush3.bf16.xpose.msra.mxu0 %v2694_v42 }
0x102d   :  { %v2500_v8 = vpop.xlane.xlu1 %2499 }
0x1031   :  { %v2509_v45 = vpop.xlane.xlu1 %2508  ;;  %v2506_v35 = vpop.xlane.xlu0 %2505 }
0x1032   :  { %7882 = vrcp.f32 %v2509_v45 }
0x1033   :  { %7884 = vrcp.f32 %v2506_v35 }
0x1034   :  { %7886 = vrcp.f32 %v2500_v8 }
0x1035   :  { %v2668_v29 = vpop.permute.xlu1 %2667  ;;  %v2503_v20 = vpop.xlane.xlu0 %2502 }
0x1036   :  { %7888 = vrcp.f32 %v2503_v20  ;;  %v2688_v57 = vsel %vm456_vm1, %v2668_v29, 0 }
0x1039   :  { %v2662_v26 = vpop.permute.xlu1 %2661  ;;  %v2670_v23 = vpop.permute.xlu0 %2669 }
0x103a   :  { %7596 = vmatprep.subr.msk.bf16.mxu0 %vm456_vm1, %v2670_v23  ;;  %v2691_v40 = vsel %vm456_vm1, %v2670_v23, 0 }
0x103b   :  { %7179 = vmatpush3.bf16.xpose.msra.mxu0 %v2691_v40 }
0x103c   :  { %7597 = vmatprep.subr.msk.bf16.mxu0 %vm456_vm1, %v2668_v29 }
0x103d   :  { %v2666_v39 = vpop.permute.xlu1 %2665  ;;  %v2660_v24 = vpop.permute.xlu0 %2659 }
0x103f   :  { %v7883_v60 = vpop.eup %7882 }
0x1040   :  { %v7885_v3 = vpop.eup %7884  ;;  %v2525_v56 = vmul.f32 %v7883_v60, %v9275_v31 }
0x1041   :  { %v7887_v11 = vpop.eup %7886  ;;  %v2863_v13 = vpop.permute.xlu1 %2862  ;;  %v2524_v49 = vmul.f32 %v7885_v3, %v9271_v59 }
0x1042   :  { %v2664_v50 = vpop.permute.xlu0 %2663  ;;  %7190 = vmatprep.subr.bf16.mxu1 %v2863_v13  ;;  %v2522_v37 = vmul.f32 %v7887_v11, %v9269_v21 }
0x1043   :  { %v7889_v55 = vpop.eup %7888  ;;  %7181 = vmatpush3.bf16.xpose.msra.mxu0 %v2688_v57  ;;  %7191 = vmatpush3.bf16.msra.mxu1 %v2863_v13  ;;  %v2529_v58 = vpack.c.bf16 %v2525_v56, %v2524_v49 }
0x1044   :  { %v2523_v2 = vmul.f32 %v7889_v55, %v9281_v41 }
0x1045   :  { %v2859_v6 = vpop.permute.xlu1 %2858 }
0x1046   :  { %v2861_v15 = vpop.permute.xlu0 %2860  ;;  %v2528_v61 = vpack.c.bf16 %v2523_v2, %v2522_v37 }
0x1047   :  { %7192 = vmatprep.subr.bf16.mxu1 %v2861_v15 }
0x1048   :  { %7193 = vmatpush3.bf16.msra.mxu1 %v2861_v15  ;;  %7170 = vmatprep.mubr.msk.bf16.mxu0 %vm546_vm2, %v2528_v61 }
0x1049   :  { %7194 = vmatprep.subr.bf16.mxu1 %v2859_v6  ;;  %v2857_v5 = vpop.permute.xlu1 %2856  ;;  %7171 = vmatmul.mubr.msk.bf16.gmra.mxu0 %vm546_vm2, %v2529_v58 }
0x104a   :  { %v1031_v59 = vpop.permute.xlu0 %1030  ;;  %7182 = vmatprep.mubr.msk.bf16.mxu0 %vm456_vm1, %v2660_v24 }
0x104b   :  { %1055 = vst.msk [vmem:[#allocation2] sm:$0xff] %vm1054_vm3, %v1031_v59 }
0x104c   :  { %7195 = vmatpush3.bf16.msra.mxu1 %v2859_v6 }
0x104d   :  { %7196 = vmatprep.subr.bf16.mxu1 %v2857_v5  ;;  %v1033_v21 = vpop.permute.xlu1 %1032 }
0x104e   :  { %v1035_v31 = vpop.permute.xlu0 %1034  ;;  %1056 = vst.msk [vmem:[#allocation2 + $0x8] sm:$0xff] %vm1054_vm3, %v1033_v21 }
0x104f   :  { %1057 = vst.msk [vmem:[#allocation2 + $0x10] sm:$0xff] %vm1054_vm3, %v1035_v31 }
0x1050   :  { %7197 = vmatpush3.bf16.msra.mxu1 %v2857_v5 }
0x1051   :  { %v1037_v41 = vpop.permute.xlu1 %1036  ;;  %7183 = vmatmul.mubr.msk.bf16.vlgmr.msra.gmra.mxu0 %vm456_vm1, %v2662_v26 }
0x1052   :  { %1058 = vst.msk [vmem:[#allocation2 + $0x18] sm:$0xff] %vm1054_vm3, %v1037_v41  ;;  %7186 = vmatprep.mubr.msk.bf16.mxu0 %vm456_vm1, %v2664_v50 }
0x1059   :  { %7187 = vmatmul.mubr.msk.bf16.gmra.mxu0 %vm456_vm1, %v2666_v39 }
0x10d0   :  { %v9341_v33 = vpop.f32.mrf.mxu0 }
0x10d2   :  { %v9343_v52 = vpop.f32.mrf.mxu0 }
0x10d4   :  { %v9345_v42 = vpop.f32.mrf.mxu0 }
0x10d6   :  { %v9347_v8 = vpop.f32.mrf.mxu0 }
0x1109   :  { %v9349_v45 = vpop.f32.mrf.mxu0 }
0x110b   :  { %v9351_v35 = vpop.f32.mrf.mxu0 }
0x110d   :  { %v9353_v29 = vpop.f32.mrf.mxu0 }
0x110f   :  { %v9355_v20 = vpop.f32.mrf.mxu0 }
0x1111   :  { %v7184_v26 = vpop.f32.mrf.mxu0 }
0x1112   :  { %v2770_v23 = vsel %vm546_vm2, %v7184_v26, -inf }
0x1113   :  { %2771 = vmax.xlane.f32.xlu0 %v2770_v23  ;;  %v2733_v40 = vpop.f32.mrf.mxu0 }
0x1114   :  { %v2764_v24 = vsel %vm546_vm2, %v2733_v40, -inf }
0x1115   :  { %v7185_v39 = vpop.f32.mrf.mxu0 }
0x1116   :  { %v2773_v13 = vsel %vm546_vm2, %v7185_v39, -inf }
0x1117   :  { %2765 = vmax.xlane.f32.xlu0 %v2764_v24  ;;  %v2736_v60 = vpop.f32.mrf.mxu0 }
0x1118   :  { %v2767_v3 = vsel %vm546_vm2, %v2736_v60, -inf }
0x1119   :  { %2768 = vmax.xlane.f32.xlu1 %v2767_v3  ;;  %v7188_v11 = vpop.f32.mrf.mxu0 }
0x111a   :  { %v2782_v57 = vsel %vm546_vm2, %v7188_v11, -inf }
0x111b   :  { %2774 = vmax.xlane.f32.xlu0 %v2773_v13  ;;  %v2749_v50 = vpop.f32.mrf.mxu0 }
0x111c   :  { %v2776_v37 = vsel %vm546_vm2, %v2749_v50, -inf }
0x111d   :  { %2783 = vmax.xlane.f32.xlu1 %v2782_v57  ;;  %v7189_v55 = vpop.f32.mrf.mxu0 }
0x111e   :  { %v2785_v49 = vsel %vm546_vm2, %v7189_v55, -inf }
0x111f   :  { %2786 = vmax.xlane.f32.xlu0 %v2785_v49  ;;  %v2752_v56 = vpop.f32.mrf.mxu0 }
0x1120   :  { %v2779_v2 = vsel %vm546_vm2, %v2752_v56, -inf }
0x1121   :  { %2777 = vmax.xlane.f32.xlu1 %v2776_v37 }
0x1123   :  { %2780 = vmax.xlane.f32.xlu0 %v2779_v2 }
0x1132   :  { %1359 = vrot.lane.b32.xlu1 %v8934_v30, %s8326_s24 }
0x1136   :  { %1363 = vrot.lane.b32.xlu1 %v8932_v51, %s8326_s24 }
0x1139   :  { %1357 = vrot.lane.b32.xlu0 %v8930_v17, %s8326_s24 }
0x113a   :  { %1686 = vrot.lane.b32.xlu1 %v9041_v47, %s8327_s5 }
0x113d   :  { %1361 = vrot.lane.b32.xlu0 %v8928_v32, %s8326_s24 }
0x113e   :  { %1690 = vrot.lane.b32.xlu1 %v9039_v18, %s8327_s5 }
0x1141   :  { %1684 = vrot.lane.b32.xlu0 %v9037_v36, %s8327_s5 }
0x1142   :  { %1040 = vrot.lane.b32.xlu1 %v8846_v16, %s8313_s20 }
0x1145   :  { %1688 = vrot.lane.b32.xlu0 %v9035_v0, %s8327_s5 }
0x1146   :  { %1044 = vrot.lane.b32.xlu1 %v8844_v10, %s8313_s20 }
0x1149   :  { %1038 = vrot.lane.b32.xlu0 %v8842_v38, %s8313_s20 }
0x114a   :  { %1367 = vrot.lane.b32.xlu1 %v8942_v19, %s8326_s24 }
0x114d   :  { %1042 = vrot.lane.b32.xlu0 %v8840_v12, %s8313_s20 }
0x1151   :  { %1365 = vrot.lane.b32.xlu0 %v8938_v7, %s8326_s24 }
0x119c   :  { %v2772_v32 = vpop.xlane.xlu0 %2771 }
0x119d   :  { %v2790_v16 = vsub.f32 %v7184_v26, %v2772_v32 }
0x119f   :  { %v2800_v17 = vmul.f32 1.442695, %v2790_v16 }
0x11a0   :  { %v2766_v51 = vpop.xlane.xlu0 %2765 }
0x11a1   :  { %7890 = vpow2.f32 %v2800_v17  ;;  %v2788_v30 = vsub.f32 %v2733_v40, %v2766_v51 }
0x11a2   :  { %v2769_v0 = vpop.xlane.xlu1 %2768 }
0x11a3   :  { %v2796_v10 = vmul.f32 1.442695, %v2788_v30  ;;  %v2789_v36 = vsub.f32 %v2736_v60, %v2769_v0 }
0x11a4   :  { %v2775_v18 = vpop.xlane.xlu0 %2774 }
0x11a5   :  { %7892 = vpow2.f32 %v2796_v10  ;;  %v2791_v38 = vsub.f32 %v7185_v39, %v2775_v18  ;;  %v2798_v47 = vmul.f32 1.442695, %v2789_v36 }
0x11a6   :  { %v2784_v19 = vpop.xlane.xlu1 %2783 }
0x11a7   :  { %v2802_v6 = vmul.f32 1.442695, %v2791_v38  ;;  %v2794_v15 = vsub.f32 %v7188_v11, %v2784_v19 }
0x11a8   :  { %v2787_v12 = vpop.xlane.xlu0 %2786 }
0x11a9   :  { %7894 = vpow2.f32 %v2802_v6  ;;  %v2808_v61 = vmul.f32 1.442695, %v2794_v15  ;;  %v2795_v7 = vsub.f32 %v7189_v55, %v2787_v12 }
0x11aa   :  { %7896 = vpow2.f32 %v2798_v47  ;;  %v2778_v58 = vpop.xlane.xlu1 %2777 }
0x11ab   :  { %7898 = vpow2.f32 %v2808_v61  ;;  %v2810_v5 = vmul.f32 1.442695, %v2795_v7  ;;  %v2792_v59 = vsub.f32 %v2749_v50, %v2778_v58  ;;  %v9445_v61 = vld [vmem:[#allocation9 + $0x8] sm:$0xff]  }
0x11ac   :  { %v2781_v21 = vpop.xlane.xlu0 %2780  ;;  %7206 = vmatprep.subr.bf16.mxu1 %v9445_v61 }
0x11ad   :  { %v2804_v31 = vmul.f32 1.442695, %v2792_v59  ;;  %v2793_v41 = vsub.f32 %v2752_v56, %v2781_v21  ;;  %7900 = vpow2.f32 %v2810_v5  ;;  %v7657_v21 = vld [vmem:[#allocation9] sm:$0xff]  }
0x11ae   :  { %v9393_v26 = vpop.eup %7890  ;;  %v1360_v23 = vpop.permute.xlu1 %1359 }
0x11af   :  { %7902 = vpow2.f32 %v2804_v31  ;;  %v2806_v40 = vmul.f32 1.442695, %v2793_v41  ;;  %1383 = vst.msk [vmem:[#allocation2 + $0x8] sm:$0xff] %vm1381_vm4, %v1360_v23  ;;  %v2818_v39 = vsel %vm546_vm2, %v9393_v26, 0.0 }
0x11b0   :  { %2819 = vadd.xlane.f32.xlu1 %v2818_v39  ;;  %v1358_v24 = vpop.permute.xlu0 %1357 }
0x11b1   :  { %1382 = vst.msk [vmem:[#allocation2] sm:$0xff] %vm1381_vm4, %v1358_v24  ;;  %7904 = vpow2.f32 %v2806_v40 }
0x11b2   :  { %v9399_v60 = vpop.eup %7892  ;;  %v1364_v3 = vpop.permute.xlu1 %1363 }
0x11b3   :  { %1385 = vst.msk [vmem:[#allocation2 + $0x18] sm:$0xff] %vm1381_vm4, %v1364_v3  ;;  %v2812_v11 = vsel %vm546_vm2, %v9399_v60, 0.0 }
0x11b4   :  { %2813 = vadd.xlane.f32.xlu1 %v2812_v11  ;;  %v1362_v13 = vpop.permute.xlu0 %1361 }
0x11b5   :  { %1384 = vst.msk [vmem:[#allocation2 + $0x10] sm:$0xff] %vm1381_vm4, %v1362_v13 }
0x11b6   :  { %v9405_v50 = vpop.eup %7894  ;;  %v1687_v57 = vpop.permute.xlu1 %1686 }
0x11b7   :  { %v9407_v55 = vpop.eup %7896  ;;  %1710 = vst.msk [vmem:[#allocation2 + $0x8] sm:$0xff] %vm1708_vm5, %v1687_v57  ;;  %v2821_v49 = vsel %vm546_vm2, %v9405_v50, 0.0 }
0x11b8   :  { %v9412_v56 = vpop.eup %7898  ;;  %2822 = vadd.xlane.f32.xlu0 %v2821_v49  ;;  %v1685_v37 = vpop.permute.xlu0 %1684  ;;  %v2815_v17 = vsel %vm546_vm2, %v9407_v55, 0.0 }
0x11b9   :  { %1709 = vst.msk [vmem:[#allocation2] sm:$0xff] %vm1708_vm5, %v1685_v37  ;;  %v2830_v2 = vsel %vm546_vm2, %v9412_v56, 0.0 }
0x11ba   :  { %v1691_v32 = vpop.permute.xlu1 %1690  ;;  %2831 = vadd.xlane.f32.xlu1 %v2830_v2  ;;  %v9417_v16 = vpop.eup %7900 }
0x11bb   :  { %1712 = vst.msk [vmem:[#allocation2 + $0x18] sm:$0xff] %vm1708_vm5, %v1691_v32  ;;  %v2833_v36 = vsel %vm546_vm2, %v9417_v16, 0.0 }
0x11bc   :  { %v9422_v51 = vpop.eup %7902  ;;  %2816 = vadd.xlane.f32.xlu0 %v2815_v17  ;;  %v1689_v30 = vpop.permute.xlu0 %1688 }
0x11bd   :  { %1711 = vst.msk [vmem:[#allocation2 + $0x10] sm:$0xff] %vm1708_vm5, %v1689_v30  ;;  %v2824_v0 = vsel %vm546_vm2, %v9422_v51, 0.0 }
0x11be   :  { %v1041_v10 = vpop.permute.xlu1 %1040  ;;  %2825 = vadd.xlane.f32.xlu1 %v2824_v0  ;;  %v9430_v18 = vpop.eup %7904  ;;  %v2986_v37 = vld [vmem:[#allocation2 + $0x8] sm:$0xff] }
0x11bf   :  { %1060 = vst.msk [vmem:[#allocation2 + $0x28] sm:$0xff] %vm1054_vm3, %v1041_v10  ;;  %v2827_v19 = vsel %vm546_vm2, %v9430_v18, 0.0 }
0x11c0   :  { %2834 = vadd.xlane.f32.xlu0 %v2833_v36  ;;  %v1039_v38 = vpop.permute.xlu0 %1038 }
0x11c1   :  { %1059 = vst.msk [vmem:[#allocation2 + $0x20] sm:$0xff] %vm1054_vm3, %v1039_v38 }
0x11c2   :  { %v1045_v47 = vpop.permute.xlu1 %1044  ;;  %v2988_v30 = vld [vmem:[#allocation2 + $0x18] sm:$0xff] }
0x11c3   :  { %1062 = vst.msk [vmem:[#allocation2 + $0x38] sm:$0xff] %vm1054_vm3, %v1045_v47 }
0x11c4   :  { %2828 = vadd.xlane.f32.xlu0 %v2827_v19  ;;  %v1043_v6 = vpop.permute.xlu0 %1042 }
0x11c5   :  { %1061 = vst.msk [vmem:[#allocation2 + $0x30] sm:$0xff] %vm1054_vm3, %v1043_v6 }
0x11c6   :  { %v1368_v15 = vpop.permute.xlu1 %1367 }
0x11c7   :  { %1387 = vst.msk [vmem:[#allocation2 + $0x28] sm:$0xff] %vm1381_vm4, %v1368_v15 }
0x11c8   :  { %v1366_v12 = vpop.permute.xlu0 %1365 }
0x11c9   :  { %1386 = vst.msk [vmem:[#allocation2 + $0x20] sm:$0xff] %vm1381_vm4, %v1366_v12 }
0x11cf   :  { %1371 = vrot.lane.b32.xlu1 %v8940_v63, %s8326_s24 }
0x11d3   :  { %1694 = vrot.lane.b32.xlu1 %v9049_v44, %s8327_s5 }
0x11d7   :  { %1698 = vrot.lane.b32.xlu1 %v9047_v9, %s8327_s5 }
0x11da   :  { %1369 = vrot.lane.b32.xlu0 %v8936_v54, %s8326_s24 }
0x11db   :  { %2303 = vrot.lane.b32.xlu1 %v9225_v46, %s8313_s20 }
0x11de   :  { %1692 = vrot.lane.b32.xlu0 %v9045_v14, %s8327_s5 }
0x11df   :  { %2307 = vrot.lane.b32.xlu1 %v9223_v53, %s8313_s20 }
0x11e2   :  { %1696 = vrot.lane.b32.xlu0 %v9043_v4, %s8327_s5 }
0x11e3   :  { %2629 = vrot.lane.b32.xlu1 %v9347_v8, %s8326_s24 }
0x11e6   :  { %2301 = vrot.lane.b32.xlu0 %v9221_v22, %s8313_s20 }
0x11e7   :  { %2633 = vrot.lane.b32.xlu1 %v9345_v42, %s8326_s24 }
0x11ea   :  { %2305 = vrot.lane.b32.xlu0 %v9219_v1, %s8313_s20 }
0x11eb   :  { %2311 = vrot.lane.b32.xlu1 %v9233_v48, %s8313_s20 }
0x11ee   :  { %2627 = vrot.lane.b32.xlu0 %v9343_v52, %s8326_s24 }
0x11ef   :  { %2315 = vrot.lane.b32.xlu1 %v9231_v34, %s8313_s20 }
0x11f2   :  { %2631 = vrot.lane.b32.xlu0 %v9341_v33, %s8326_s24 }
0x11f3   :  { %2637 = vrot.lane.b32.xlu1 %v9355_v20, %s8326_s24 }
0x11f6   :  { %2309 = vrot.lane.b32.xlu0 %v9229_v43, %s8313_s20 }
0x11fa   :  { %2313 = vrot.lane.b32.xlu0 %v9227_v62, %s8313_s20 }
0x11fe   :  { %2635 = vrot.lane.b32.xlu0 %v9351_v35, %s8326_s24 }
0x1239   :  { %v2820_v54 = vpop.xlane.xlu1 %2819 }
0x123d   :  { %v2814_v63 = vpop.xlane.xlu1 %2813 }
0x1241   :  { %v2823_v4 = vpop.xlane.xlu0 %2822 }
0x1242   :  { %7906 = vrcp.f32 %v2823_v4  ;;  %v7658_v4 = vld [vmem:[#allocation11 + $0x8] sm:$0xff]  }
0x1243   :  { %v2832_v14 = vpop.xlane.xlu1 %2831  ;;  %7908 = vrcp.f32 %v2814_v63  ;;  %7226 = vmatprep.subr.bf16.mxu0 %v7658_v4 }
0x1244   :  { %7910 = vrcp.f32 %v2820_v54  ;;  %7227 = vmatpush3.bf16.msra.mxu0 %v7658_v4 }
0x1245   :  { %v2817_v9 = vpop.xlane.xlu0 %2816 }
0x1246   :  { %7912 = vrcp.f32 %v2817_v9 }
0x1247   :  { %v2826_v44 = vpop.xlane.xlu1 %2825 }
0x1249   :  { %v2835_v1 = vpop.xlane.xlu0 %2834 }
0x124a   :  { %7914 = vrcp.f32 %v2835_v1 }
0x124b   :  { %v1372_v22 = vpop.permute.xlu1 %1371  ;;  %7916 = vrcp.f32 %v2826_v44 }
0x124c   :  { %1389 = vst.msk [vmem:[#allocation2 + $0x38] sm:$0xff] %vm1381_vm4, %v1372_v22  ;;  %7918 = vrcp.f32 %v2832_v14  ;;  %v7659_v14 = vld [vmem:[#allocation11] sm:$0xff]  }
0x124d   :  { %v2829_v53 = vpop.xlane.xlu0 %2828  ;;  %7228 = vmatprep.subr.bf16.mxu0 %v7659_v14 }
0x124e   :  { %7920 = vrcp.f32 %v2829_v53  ;;  %7229 = vmatpush3.bf16.msra.mxu0 %v7659_v14 }
0x124f   :  { %v1695_v46 = vpop.permute.xlu1 %1694  ;;  %v7907_v62 = vpop.eup %7906 }
0x1250   :  { %1714 = vst.msk [vmem:[#allocation2 + $0x28] sm:$0xff] %vm1708_vm5, %v1695_v46  ;;  %v7909_v43 = vpop.eup %7908  ;;  %v2847_v52 = vmul.f32 %v7907_v62, %v9405_v50  ;;  %v2985_v50 = vld [vmem:[#allocation2] sm:$0xff] }
0x1251   :  { %v1370_v34 = vpop.permute.xlu0 %1369  ;;  %v7911_v48 = vpop.eup %7910  ;;  %v2844_v8 = vmul.f32 %v7909_v43, %v9399_v60  ;;  %v3005_v2 = vpack.c.bf16 %v2986_v37, %v2985_v50 }
0x1252   :  { %1388 = vst.msk [vmem:[#allocation2 + $0x30] sm:$0xff] %vm1381_vm4, %v1370_v34  ;;  %v2846_v20 = vmul.f32 %v7911_v48, %v9393_v26 }
0x1253   :  { %v7913_v33 = vpop.eup %7912  ;;  %v1699_v42 = vpop.permute.xlu1 %1698 }
0x1254   :  { %1716 = vst.msk [vmem:[#allocation2 + $0x38] sm:$0xff] %vm1708_vm5, %v1699_v42  ;;  %v2845_v35 = vmul.f32 %v7913_v33, %v9407_v55  ;;  %v2853_v59 = vpack.c.bf16 %v2847_v52, %v2846_v20  ;;  %v7660_v33 = vld [vmem:[#allocation8 + $0x18] sm:$0xff]   ;;  %v7661_v52 = vld [vmem:[#allocation8 + $0x10] sm:$0xff]  }
0x1255   :  { %v1693_v7 = vpop.permute.xlu0 %1692 }
0x1256   :  { %1713 = vst.msk [vmem:[#allocation2 + $0x20] sm:$0xff] %vm1708_vm5, %v1693_v7  ;;  %v2852_v58 = vpack.c.bf16 %v2845_v35, %v2844_v8 }
0x1257   :  { %v2304_v5 = vpop.permute.xlu1 %2303  ;;  %v7915_v31 = vpop.eup %7914  ;;  %v2990_v36 = vld [vmem:[#allocation2 + $0x28] sm:$0xff] }
0x1258   :  { %2326 = vst.msk [vmem:[#allocation2 + $0x48] sm:$0xff] %vm1054_vm3, %v2304_v5  ;;  %7198 = vmatprep.mubr.msk.bf16.mxu1 %vm546_vm2, %v2852_v58  ;;  %v7917_v41 = vpop.eup %7916  ;;  %v2851_v24 = vmul.f32 %v7915_v31, %v9417_v16  ;;  %v2987_v16 = vld [vmem:[#allocation2 + $0x10] sm:$0xff] }
0x1259   :  { %7199 = vmatmul.mubr.msk.bf16.vlgmr.msra.gmra.mxu1 %vm546_vm2, %v2853_v59  ;;  %v1697_v23 = vpop.permute.xlu0 %1696  ;;  %v7919_v40 = vpop.eup %7918  ;;  %v2848_v60 = vmul.f32 %v7917_v41, %v9422_v51  ;;  %v3006_v10 = vpack.c.bf16 %v2988_v30, %v2987_v16  ;;  %v10896_v31 = vld [vmem:[#allocation17_spill] sm:$0xff] }
0x125a   :  { %1715 = vst.msk [vmem:[#allocation2 + $0x30] sm:$0xff] %vm1708_vm5, %v1697_v23  ;;  %7207 = vmatpush3.bf16.msra.mxu1 %v9445_v61  ;;  %v2850_v13 = vmul.f32 %v7919_v40, %v9412_v56 }
0x125b   :  { %v7921_v26 = vpop.eup %7920  ;;  %v2308_v39 = vpop.permute.xlu1 %2307  ;;  %7208 = vmatprep.subr.bf16.mxu1 %v7657_v21  ;;  %v2992_v15 = vld [vmem:[#allocation2 + $0x38] sm:$0xff] }
0x125c   :  { %2328 = vst.msk [vmem:[#allocation2 + $0x58] sm:$0xff] %vm1054_vm3, %v2308_v39  ;;  %v2849_v3 = vmul.f32 %v7921_v26, %v9430_v18  ;;  %v2855_v49 = vpack.c.bf16 %v2851_v24, %v2850_v13  ;;  %v10898_v13 = vld [vmem:[#allocation19_spill] sm:$0xff] }
0x125d   :  { %v2302_v11 = vpop.permute.xlu0 %2301  ;;  %v2989_v51 = vld [vmem:[#allocation2 + $0x20] sm:$0xff] }
0x125e   :  { %2325 = vst.msk [vmem:[#allocation2 + $0x40] sm:$0xff] %vm1054_vm3, %v2302_v11  ;;  %v2854_v57 = vpack.c.bf16 %v2849_v3, %v2848_v60  ;;  %7209 = vmatpush3.bf16.msra.mxu1 %v7657_v21  ;;  %v3007_v18 = vpack.c.bf16 %v2990_v36, %v2989_v51  ;;  %v10897_v3 = vld [vmem:[#allocation18_spill] sm:$0xff] }
0x125f   :  { %v2630_v55 = vpop.permute.xlu1 %2629  ;;  %7246 = vmatprep.subr.bf16.mxu1 %v7660_v33 }
0x1260   :  { %2652 = vst.msk [vmem:[#allocation2 + $0x48] sm:$0xff] %vm1381_vm4, %v2630_v55  ;;  %7202 = vmatprep.mubr.msk.bf16.mxu1 %vm546_vm2, %v2854_v57  ;;  %v10899_v57 = vld [vmem:[#allocation20_spill] sm:$0xff] }
0x1261   :  { %7203 = vmatmul.mubr.msk.bf16.gmra.mxu1 %vm546_vm2, %v2855_v49  ;;  %v2306_v32 = vpop.permute.xlu0 %2305  ;;  %v2991_v19 = vld [vmem:[#allocation2 + $0x30] sm:$0xff] }
0x1262   :  { %2327 = vst.msk [vmem:[#allocation2 + $0x50] sm:$0xff] %vm1054_vm3, %v2306_v32  ;;  %7210 = vmatprep.mubr.msk.bf16.mxu1 %vm146_vm0, %v3005_v2  ;;  %v3008_v61 = vpack.c.bf16 %v2992_v15, %v2991_v19  ;;  %v10900_v49 = vld [vmem:[#allocation21_spill] sm:$0xff] }
0x1263   :  { %v2634_v56 = vpop.permute.xlu1 %2633 }
0x1264   :  { %2654 = vst.msk [vmem:[#allocation2 + $0x58] sm:$0xff] %vm1381_vm4, %v2634_v56 }
0x1265   :  { %v2628_v17 = vpop.permute.xlu0 %2627 }
0x1266   :  { %2651 = vst.msk [vmem:[#allocation2 + $0x40] sm:$0xff] %vm1381_vm4, %v2628_v17 }
0x1267   :  { %v2312_v0 = vpop.permute.xlu1 %2311 }
0x1268   :  { %2330 = vst.msk [vmem:[#allocation2 + $0x68] sm:$0xff] %vm1054_vm3, %v2312_v0 }
0x1269   :  { %7211 = vmatmul.mubr.msk.bf16.vlgmr.msra.gmra.mxu1 %vm146_vm0, %v3006_v10  ;;  %v2632_v38 = vpop.permute.xlu0 %2631 }
0x126a   :  { %2653 = vst.msk [vmem:[#allocation2 + $0x50] sm:$0xff] %vm1381_vm4, %v2632_v38  ;;  %7214 = vmatprep.mubr.msk.bf16.mxu1 %vm146_vm0, %v3007_v18  ;;  %7247 = vmatpush3.bf16.msra.mxu1 %v7660_v33 }
0x126b   :  { %v2316_v47 = vpop.permute.xlu1 %2315  ;;  %7248 = vmatprep.subr.bf16.mxu1 %v7661_v52 }
0x126c   :  { %2332 = vst.msk [vmem:[#allocation2 + $0x78] sm:$0xff] %vm1054_vm3, %v2316_v47 }
0x126d   :  { %v2310_v6 = vpop.permute.xlu0 %2309 }
0x126e   :  { %2329 = vst.msk [vmem:[#allocation2 + $0x60] sm:$0xff] %vm1054_vm3, %v2310_v6  ;;  %7249 = vmatpush3.bf16.msra.mxu1 %v7661_v52 }
0x126f   :  { %v2638_v12 = vpop.permute.xlu1 %2637 }
0x1270   :  { %2656 = vst.msk [vmem:[#allocation2 + $0x68] sm:$0xff] %vm1381_vm4, %v2638_v12 }
0x1271   :  { %7215 = vmatmul.mubr.msk.bf16.gmra.mxu1 %vm146_vm0, %v3008_v61  ;;  %v2314_v54 = vpop.permute.xlu0 %2313 }
0x1272   :  { %2331 = vst.msk [vmem:[#allocation2 + $0x70] sm:$0xff] %vm1054_vm3, %v2314_v54 }
0x1275   :  { %v2636_v63 = vpop.permute.xlu0 %2635 }
0x1276   :  { %2655 = vst.msk [vmem:[#allocation2 + $0x60] sm:$0xff] %vm1381_vm4, %v2636_v63 }
0x1319   :  { %v7200_v9 = vpop.f32.mrf.mxu1 }
0x131a   :  { %2957 = vrot.lane.b32.xlu0 %v7200_v9, %s8327_s5 }
0x131b   :  { %v2914_v44 = vpop.f32.mrf.mxu1 }
0x131d   :  { %v7201_v1 = vpop.f32.mrf.mxu1 }
0x131e   :  { %2953 = vrot.lane.b32.xlu0 %v2914_v44, %s8327_s5  ;;  %2959 = vrot.lane.b32.xlu1 %v7201_v1, %s8327_s5 }
0x131f   :  { %v2917_v22 = vpop.f32.mrf.mxu1 }
0x1321   :  { %v7204_v53 = vpop.f32.mrf.mxu1 }
0x1322   :  { %2639 = vrot.lane.b32.xlu0 %v9349_v45, %s8326_s24  ;;  %2955 = vrot.lane.b32.xlu1 %v2917_v22, %s8327_s5  ;;  %v9533_v45 = vld [vmem:[%s10851_s6] ss:$0 sm:$0xff] }
0x1323   :  { %v2930_v46 = vpop.f32.mrf.mxu1 }
0x1325   :  { %v7205_v62 = vpop.f32.mrf.mxu1 }
0x1326   :  { %2641 = vrot.lane.b32.xlu1 %v9353_v29, %s8326_s24  ;;  %2961 = vrot.lane.b32.xlu0 %v2930_v46, %s8327_s5 }
0x1327   :  { %v2933_v43 = vpop.f32.mrf.mxu1 }
0x1329   :  { %v7212_v34 = vpop.f32.mrf.mxu1 }
0x132a   :  { %2965 = vrot.lane.b32.xlu0 %v7204_v53, %s8327_s5  ;;  %2963 = vrot.lane.b32.xlu1 %v2933_v43, %s8327_s5  ;;  %v3099_v35 = vadd.f32 %v7212_v34, %v9533_v45 }
0x132b   :  { %v3090_v48 = vpop.f32.mrf.mxu1 }
0x132c   :  { %v3091_v29 = vadd.f32 %v9533_v45, %v3090_v48  ;;  %v9550_v41 = vadd.f32 %v3099_v35, %v10896_v31 }
0x132d   :  { %v7213_v42 = vpop.f32.mrf.mxu1 }
0x132e   :  { %v3102_v8 = vadd.f32 %v7213_v42, %v9533_v45  ;;  %2967 = vrot.lane.b32.xlu1 %v7205_v62, %s8327_s5  ;;  %v9544_v59 = vadd.f32 %v3091_v29, %v8419_v27 }
0x132f   :  { %v3093_v20 = vpop.f32.mrf.mxu1 }
0x1330   :  { %v3094_v7 = vadd.f32 %v9533_v45, %v3093_v20  ;;  %v9541_v58 = vadd.f32 %v3102_v8, %v8417_v25 }
0x1331   :  { %v7216_v5 = vpop.f32.mrf.mxu1 }
0x1332   :  { %v9547_v21 = vadd.f32 %v3094_v7, %v8421_v28  ;;  %v3174_v26 = vpack.c.bf16 %v9541_v58, %v9550_v41  ;;  %v3115_v28 = vadd.f32 %v7216_v5, %v9533_v45 }
0x1333   :  { %v3106_v23 = vpop.f32.mrf.mxu1 }
0x1334   :  { %v3173_v40 = vpack.c.bf16 %v9547_v21, %v9544_v59  ;;  %v3107_v39 = vadd.f32 %v9533_v45, %v3106_v23  ;;  %v3159_v37 = vadd.f32 %v3115_v28, %v10900_v49  ;;  %v10909_v28 = vld [vmem:[#allocation24_spill] sm:$0xff] }
0x1335   :  { %v7217_v25 = vpop.f32.mrf.mxu1 }
0x1336   :  { %v3118_v27 = vadd.f32 %v7217_v25, %v9533_v45  ;;  %7230 = vmatprep.mubr.msk.bf16.mxu0 %vm146_vm0, %v3173_v40  ;;  %v3157_v50 = vadd.f32 %v3107_v39, %v10898_v13 }
0x1337   :  { %v3109_v24 = vpop.f32.mrf.mxu1  ;;  %7231 = vmatmul.mubr.msk.bf16.vlgmr.msra.gmra.mxu0 %vm146_vm0, %v3174_v26 }
0x1338   :  { %v3110_v60 = vadd.f32 %v9533_v45, %v3109_v24  ;;  %v3160_v11 = vadd.f32 %v3118_v27, %v10897_v3 }
0x133a   :  { %v3158_v55 = vadd.f32 %v3110_v60, %v10899_v57  ;;  %v3176_v32 = vpack.c.bf16 %v3160_v11, %v3159_v37  ;;  %v10910_v60 = vld [vmem:[#allocation23_spill] sm:$0xff] }
0x133c   :  { %v3175_v2 = vpack.c.bf16 %v3158_v55, %v3157_v50 }
0x133e   :  { %7234 = vmatprep.mubr.msk.bf16.mxu0 %vm146_vm0, %v3175_v2 }
0x133f   :  { %7235 = vmatmul.mubr.msk.bf16.gmra.mxu0 %vm146_vm0, %v3176_v32 }
0x138c   :  { %v2958_v56 = vpop.permute.xlu0 %2957 }
0x138d   :  { %2979 = vst.msk [vmem:[#allocation2 + $0x50] sm:$0xff] %vm1708_vm5, %v2958_v56 }
0x1390   :  { %v2960_v16 = vpop.permute.xlu1 %2959  ;;  %v2954_v17 = vpop.permute.xlu0 %2953 }
0x1391   :  { %2980 = vst.msk [vmem:[#allocation2 + $0x58] sm:$0xff] %vm1708_vm5, %v2960_v16  ;;  %2977 = vst.msk [vmem:[#allocation2 + $0x40] sm:$0xff] %vm1708_vm5, %v2954_v17 }
0x1394   :  { %v2956_v51 = vpop.permute.xlu1 %2955  ;;  %v2640_v30 = vpop.permute.xlu0 %2639  ;;  %v2995_v15 = vld [vmem:[#allocation2 + $0x50] sm:$0xff] }
0x1395   :  { %2978 = vst.msk [vmem:[#allocation2 + $0x48] sm:$0xff] %vm1708_vm5, %v2956_v51 }
0x1396   :  { %2657 = vst.msk [vmem:[#allocation2 + $0x70] sm:$0xff] %vm1381_vm4, %v2640_v30 }
0x1398   :  { %v2642_v0 = vpop.permute.xlu1 %2641  ;;  %v2962_v10 = vpop.permute.xlu0 %2961  ;;  %v2996_v36 = vld [vmem:[#allocation2 + $0x58] sm:$0xff]  ;;  %v2993_v47 = vld [vmem:[#allocation2 + $0x40] sm:$0xff] }
0x1399   :  { %2658 = vst.msk [vmem:[#allocation2 + $0x78] sm:$0xff] %vm1381_vm4, %v2642_v0  ;;  %v3010_v12 = vpack.c.bf16 %v2996_v36, %v2995_v15  ;;  %v10913_v0 = vld [vmem:[#allocation28_spill] sm:$0xff]  ;;  %v10914_v36 = vld [vmem:[#allocation27_spill] sm:$0xff] }
0x139a   :  { %2981 = vst.msk [vmem:[#allocation2 + $0x60] sm:$0xff] %vm1708_vm5, %v2962_v10 }
0x139c   :  { %v2964_v18 = vpop.permute.xlu1 %2963  ;;  %v2966_v38 = vpop.permute.xlu0 %2965  ;;  %v2994_v19 = vld [vmem:[#allocation2 + $0x48] sm:$0xff] }
0x139d   :  { %2982 = vst.msk [vmem:[#allocation2 + $0x68] sm:$0xff] %vm1708_vm5, %v2964_v18  ;;  %2983 = vst.msk [vmem:[#allocation2 + $0x70] sm:$0xff] %vm1708_vm5, %v2966_v38  ;;  %v3009_v6 = vpack.c.bf16 %v2994_v19, %v2993_v47  ;;  %v10915_v38 = vld [vmem:[#allocation29_spill] sm:$0xff]  ;;  %v10916_v19 = vld [vmem:[#allocation26_spill] sm:$0xff] }
0x139f   :  { %7218 = vmatprep.mubr.msk.bf16.mxu1 %vm146_vm0, %v3009_v6 }
0x13a0   :  { %v2968_v61 = vpop.permute.xlu1 %2967  ;;  %7219 = vmatmul.mubr.msk.bf16.gmra.mxu1 %vm146_vm0, %v3010_v12 }
0x13a1   :  { %2984 = vst.msk [vmem:[#allocation2 + $0x78] sm:$0xff] %vm1708_vm5, %v2968_v61  ;;  %v2997_v54 = vld [vmem:[#allocation2 + $0x60] sm:$0xff] }
0x13a4   :  { %v2998_v63 = vld [vmem:[#allocation2 + $0x68] sm:$0xff]  ;;  %v2999_v14 = vld [vmem:[#allocation2 + $0x70] sm:$0xff] }
0x13a5   :  { %v3011_v4 = vpack.c.bf16 %v2998_v63, %v2997_v54  ;;  %v9661_v63 = vld [vmem:[%s10849_s4 + $0x1] ss:$0 sm:$0xff] }
0x13a7   :  { %7222 = vmatprep.mubr.msk.bf16.mxu1 %vm146_vm0, %v3011_v4 }
0x13a8   :  { %v3000_v9 = vld [vmem:[#allocation2 + $0x78] sm:$0xff] }
0x13a9   :  { %v3012_v44 = vpack.c.bf16 %v3000_v9, %v2999_v14 }
0x13ab   :  { %7223 = vmatmul.mubr.msk.bf16.gmra.mxu1 %vm146_vm0, %v3012_v44 }
0x13f7   :  { %v7232_v1 = vpop.f32.mrf.mxu0 }
0x13f8   :  { %v9592_v48 = vadd.f32 %v7232_v1, %v9550_v41 }
0x13f9   :  { %v3251_v22 = vpop.f32.mrf.mxu0 }
0x13fa   :  { %v9586_v43 = vadd.f32 %v3251_v22, %v9544_v59  ;;  %10904 = vst [vmem:[#allocation20_spill] sm:$0xff] %v9592_v48 }
0x13fb   :  { %v7233_v53 = vpop.f32.mrf.mxu0 }
0x13fc   :  { %v9583_v46 = vadd.f32 %v7233_v53, %v9541_v58  ;;  %10902 = vst [vmem:[#allocation18_spill] sm:$0xff] %v9586_v43 }
0x13fd   :  { %v3254_v62 = vpop.f32.mrf.mxu0 }
0x13fe   :  { %10901 = vst [vmem:[#allocation17_spill] sm:$0xff] %v9583_v46  ;;  %v9589_v34 = vadd.f32 %v3254_v62, %v9547_v21  ;;  %v3320_v42 = vpack.c.bf16 %v9583_v46, %v9592_v48 }
0x13ff   :  { %v7236_v33 = vpop.f32.mrf.mxu0 }
0x1400   :  { %10903 = vst [vmem:[#allocation19_spill] sm:$0xff] %v9589_v34  ;;  %v3319_v52 = vpack.c.bf16 %v9589_v34, %v9586_v43  ;;  %v9606_v5 = vadd.f32 %v7236_v33, %v3159_v37 }
0x1401   :  { %v3267_v29 = vpop.f32.mrf.mxu0 }
0x1402   :  { %7250 = vmatprep.mubr.msk.bf16.mxu1 %vm146_vm0, %v3319_v52  ;;  %v9602_v7 = vadd.f32 %v3267_v29, %v3157_v50  ;;  %10908 = vst [vmem:[#allocation32_spill] sm:$0xff] %v9606_v5  ;;  %v10912_v50 = vld [vmem:[#allocation22_spill] sm:$0xff] }
0x1403   :  { %v7237_v8 = vpop.f32.mrf.mxu0  ;;  %7251 = vmatmul.mubr.msk.bf16.vlgmr.msra.gmra.mxu1 %vm146_vm0, %v3320_v42 }
0x1404   :  { %v9600_v35 = vadd.f32 %v7237_v8, %v3160_v11  ;;  %10906 = vst [vmem:[#allocation30_spill] sm:$0xff] %v9602_v7  ;;  %v10911_v11 = vld [vmem:[#allocation25_spill] sm:$0xff] }
0x1405   :  { %v3270_v20 = vpop.f32.mrf.mxu0 }
0x1406   :  { %10905 = vst [vmem:[#allocation21_spill] sm:$0xff] %v9600_v35  ;;  %v9604_v58 = vadd.f32 %v3270_v20, %v3158_v55  ;;  %v3322_v21 = vpack.c.bf16 %v9600_v35, %v9606_v5 }
0x1408   :  { %10907 = vst [vmem:[#allocation31_spill] sm:$0xff] %v9604_v58  ;;  %v3321_v59 = vpack.c.bf16 %v9604_v58, %v9602_v7 }
0x140a   :  { %7254 = vmatprep.mubr.msk.bf16.mxu1 %vm146_vm0, %v3321_v59 }
0x140b   :  { %7255 = vmatmul.mubr.msk.bf16.gmra.mxu1 %vm146_vm0, %v3322_v21 }
0x1460   :  { %v7220_v31 = vpop.f32.mrf.mxu1 }
0x1461   :  { %v3131_v25 = vadd.f32 %v7220_v31, %v9533_v45 }
0x1462   :  { %v3122_v41 = vpop.f32.mrf.mxu1 }
0x1463   :  { %v3123_v40 = vadd.f32 %v9533_v45, %v3122_v41  ;;  %v9628_v57 = vadd.f32 %v3131_v25, %v10912_v50 }
0x1464   :  { %v7221_v23 = vpop.f32.mrf.mxu1 }
0x1465   :  { %v3134_v26 = vadd.f32 %v7221_v23, %v9533_v45  ;;  %v9622_v3 = vadd.f32 %v3123_v40, %v10910_v60 }
0x1466   :  { %v3125_v39 = vpop.f32.mrf.mxu1 }
0x1467   :  { %v3126_v27 = vadd.f32 %v9533_v45, %v3125_v39  ;;  %v9619_v24 = vadd.f32 %v3134_v26, %v10909_v28 }
0x1469   :  { %v9625_v13 = vadd.f32 %v3126_v27, %v10911_v11  ;;  %v3178_v37 = vpack.c.bf16 %v9619_v24, %v9628_v57 }
0x146b   :  { %v3177_v55 = vpack.c.bf16 %v9625_v13, %v9622_v3  ;;  %v7224_v49 = vpop.f32.mrf.mxu1 }
0x146c   :  { %v3147_v17 = vadd.f32 %v7224_v49, %v9533_v45 }
0x146d   :  { %v3138_v2 = vpop.f32.mrf.mxu1  ;;  %7238 = vmatprep.mubr.msk.bf16.mxu0 %vm146_vm0, %v3177_v55 }
0x146e   :  { %7239 = vmatmul.mubr.msk.bf16.gmra.mxu0 %vm146_vm0, %v3178_v37  ;;  %v3139_v56 = vadd.f32 %v9533_v45, %v3138_v2  ;;  %v9650_v6 = vadd.f32 %v3147_v17, %v10916_v19 }
0x146f   :  { %v7225_v32 = vpop.f32.mrf.mxu1 }
0x1470   :  { %v3150_v16 = vadd.f32 %v7225_v32, %v9533_v45  ;;  %v9644_v18 = vadd.f32 %v3139_v56, %v10914_v36 }
0x1471   :  { %v3141_v51 = vpop.f32.mrf.mxu1 }
0x1472   :  { %v3142_v30 = vadd.f32 %v9533_v45, %v3141_v51  ;;  %v9641_v10 = vadd.f32 %v3150_v16, %v10913_v0 }
0x1474   :  { %v9647_v47 = vadd.f32 %v3142_v30, %v10915_v38  ;;  %v3180_v12 = vpack.c.bf16 %v9641_v10, %v9650_v6 }
0x1476   :  { %v3179_v15 = vpack.c.bf16 %v9647_v47, %v9644_v18 }
0x1478   :  { %7242 = vmatprep.mubr.msk.bf16.mxu0 %vm146_vm0, %v3179_v15 }
0x1479   :  { %7243 = vmatmul.mubr.msk.bf16.gmra.mxu0 %vm146_vm0, %v3180_v12 }
0x14c3   :  { %v7252_v45 = vpop.f32.mrf.mxu1 }
0x14c4   :  { %v3414_v21 = vadd.f32 %v7252_v45, %v9661_v63 }
0x14c5   :  { %v3405_v61 = vpop.f32.mrf.mxu1 }
0x14c6   :  { %v3406_v14 = vadd.f32 %v9661_v63, %v3405_v61 }
0x14c7   :  { %v7253_v54 = vpop.f32.mrf.mxu1 }
0x14c8   :  { %v3417_v20 = vadd.f32 %v7253_v54, %v9661_v63 }
0x14c9   :  { %v3408_v4 = vpop.f32.mrf.mxu1 }
0x14ca   :  { %v3409_v9 = vadd.f32 %v9661_v63, %v3408_v4  ;;  %v9687_v31 = vpack.c.bf16 %v3417_v20, %v3414_v21 }
0x14cb   :  { %v7256_v44 = vpop.f32.mrf.mxu1 }
0x14cc   :  { %v9665_v1 = vpack.c.bf16 %v3409_v9, %v3406_v14  ;;  %v3430_v62 = vadd.f32 %v7256_v44, %v9661_v63 }
0x14cd   :  { %v3421_v22 = vpop.f32.mrf.mxu1 }
0x14ce   :  { %7274 = vmatprep.mubr.msk.bf16.mxu0 %vm456_vm1, %v9665_v1  ;;  %v3422_v8 = vadd.f32 %v9661_v63, %v3421_v22 }
0x14cf   :  { %v7257_v53 = vpop.f32.mrf.mxu1 }
0x14d0   :  { %v3433_v33 = vadd.f32 %v7257_v53, %v9661_v63 }
0x14d1   :  { %v3424_v52 = vpop.f32.mrf.mxu1 }
0x14d2   :  { %v9671_v42 = vpack.c.bf16 %v3433_v33, %v3430_v62  ;;  %v3425_v29 = vadd.f32 %v9661_v63, %v3424_v52 }
0x14d4   :  { %3780 = vrot.lane.b32.xlu1 %v9671_v42, %s8317_s12  ;;  %3486 = vrot.lane.b32.xlu0 %v9671_v42, %s8316_s11  ;;  %v9680_v59 = vpack.c.bf16 %v3425_v29, %v3422_v8 }
0x14d8   :  { %3778 = vrot.lane.b32.xlu1 %v9680_v59, %s8317_s12  ;;  %3484 = vrot.lane.b32.xlu0 %v9680_v59, %s8316_s11 }
0x14dc   :  { %3776 = vrot.lane.b32.xlu1 %v9687_v31, %s8317_s12  ;;  %3482 = vrot.lane.b32.xlu0 %v9687_v31, %s8316_s11 }
0x14e0   :  { %3774 = vrot.lane.b32.xlu1 %v9665_v1, %s8317_s12  ;;  %3480 = vrot.lane.b32.xlu0 %v9665_v1, %s8316_s11 }
0x14e4   :  { %4106 = vrot.lane.b32.xlu1 %v9671_v42, %s8320_s15  ;;  %3766 = vrot.lane.b32.xlu0 %v9665_v1, %s8318_s13 }
0x14e8   :  { %4104 = vrot.lane.b32.xlu1 %v9680_v59, %s8320_s15  ;;  %3768 = vrot.lane.b32.xlu0 %v9687_v31, %s8318_s13 }
0x14ec   :  { %3770 = vrot.lane.b32.xlu1 %v9680_v59, %s8318_s13  ;;  %4102 = vrot.lane.b32.xlu0 %v9687_v31, %s8320_s15 }
0x14f0   :  { %4100 = vrot.lane.b32.xlu1 %v9665_v1, %s8320_s15  ;;  %3772 = vrot.lane.b32.xlu0 %v9671_v42, %s8318_s13 }
0x14f4   :  { %4094 = vrot.lane.b32.xlu1 %v9687_v31, %s8321_s16  ;;  %4092 = vrot.lane.b32.xlu0 %v9665_v1, %s8321_s16 }
0x14f8   :  { %4098 = vrot.lane.b32.xlu1 %v9671_v42, %s8321_s16  ;;  %4096 = vrot.lane.b32.xlu0 %v9680_v59, %s8321_s16 }
0x14fc   :  { %3675 = vrot.lane.b32.xlu1 %v9671_v42, %s8308_s30  ;;  %3671 = vrot.lane.b32.xlu0 %v9687_v31, %s8308_s30 }
0x1500   :  { %3669 = vrot.lane.b32.xlu1 %v9665_v1, %s8308_s30  ;;  %3969 = vrot.lane.b32.xlu0 %v9671_v42, %s8319_s14 }
0x1504   :  { %3965 = vrot.lane.b32.xlu1 %v9687_v31, %s8319_s14  ;;  %4295 = vrot.lane.b32.xlu0 %v9671_v42, %s8322_s17 }
0x1508   :  { %3963 = vrot.lane.b32.xlu1 %v9665_v1, %s8319_s14  ;;  %3967 = vrot.lane.b32.xlu0 %v9680_v59, %s8319_s14 }
0x150c   :  { %3673 = vrot.lane.b32.xlu1 %v9680_v59, %s8308_s30 }
0x152e   :  { %v7240_v41 = vpop.f32.mrf.mxu0 }
0x152f   :  { %v9749_v28 = vadd.f32 %v7240_v41, %v9628_v57 }
0x1530   :  { %v3283_v23 = vpop.f32.mrf.mxu0 }
0x1531   :  { %v9743_v39 = vadd.f32 %v3283_v23, %v9622_v3  ;;  %10920 = vst [vmem:[#allocation22_spill] sm:$0xff] %v9749_v28 }
0x1532   :  { %v7241_v40 = vpop.f32.mrf.mxu0 }
0x1533   :  { %v9740_v26 = vadd.f32 %v7241_v40, %v9619_v24  ;;  %10918 = vst [vmem:[#allocation23_spill] sm:$0xff] %v9743_v39 }
0x1534   :  { %v3286_v25 = vpop.f32.mrf.mxu0 }
0x1535   :  { %10917 = vst [vmem:[#allocation24_spill] sm:$0xff] %v9740_v26  ;;  %v9746_v27 = vadd.f32 %v3286_v25, %v9625_v13  ;;  %v3324_v11 = vpack.c.bf16 %v9740_v26, %v9749_v28 }
0x1537   :  { %10919 = vst [vmem:[#allocation25_spill] sm:$0xff] %v9746_v27  ;;  %v3323_v60 = vpack.c.bf16 %v9746_v27, %v9743_v39 }
0x1539   :  { %v7244_v50 = vpop.f32.mrf.mxu0  ;;  %7258 = vmatprep.mubr.msk.bf16.mxu1 %vm146_vm0, %v3323_v60 }
0x153a   :  { %7259 = vmatmul.mubr.msk.bf16.gmra.mxu1 %vm146_vm0, %v3324_v11  ;;  %v9767_v37 = vadd.f32 %v7244_v50, %v9650_v6 }
0x153b   :  { %v3299_v24 = vpop.f32.mrf.mxu0 }
0x153c   :  { %v9761_v57 = vadd.f32 %v3299_v24, %v9644_v18  ;;  %10924 = vst [vmem:[#allocation26_spill] sm:$0xff] %v9767_v37 }
0x153d   :  { %v7245_v3 = vpop.f32.mrf.mxu0 }
0x153e   :  { %v9758_v55 = vadd.f32 %v7245_v3, %v9641_v10  ;;  %10922 = vst [vmem:[#allocation27_spill] sm:$0xff] %v9761_v57 }
0x153f   :  { %v3302_v13 = vpop.f32.mrf.mxu0 }
0x1540   :  { %10921 = vst [vmem:[#allocation28_spill] sm:$0xff] %v9758_v55  ;;  %v9764_v49 = vadd.f32 %v3302_v13, %v9647_v47  ;;  %v3326_v32 = vpack.c.bf16 %v9758_v55, %v9767_v37 }
0x1542   :  { %10923 = vst [vmem:[#allocation29_spill] sm:$0xff] %v9764_v49  ;;  %v3325_v2 = vpack.c.bf16 %v9764_v49, %v9761_v57 }
0x1544   :  { %7262 = vmatprep.mubr.msk.bf16.mxu1 %vm146_vm0, %v3325_v2 }
0x1545   :  { %7263 = vmatmul.mubr.msk.bf16.gmra.mxu1 %vm146_vm0, %v3326_v32 }
0x1546   :  { %v3781_v56 = vpop.permute.xlu1 %3780  ;;  %v3487_v16 = vpop.permute.xlu0 %3486 }
0x1547   :  { %7598 = vmatprep.subr.msk.bf16.mxu0 %vm456_vm1, %v3487_v16  ;;  %7602 = vmatprep.subr.msk.bf16.mxu1 %vm456_vm1, %v3781_v56  ;;  %v3510_v17 = vsel %vm456_vm1, %v3487_v16, 0  ;;  %v3804_v51 = vsel %vm456_vm1, %v3781_v56, 0 }
0x1548   :  { %7267 = vmatpush3.bf16.xpose.msra.mxu0 %v3510_v17  ;;  %7299 = vmatpush3.bf16.xpose.msra.mxu1 %v3804_v51 }
0x154a   :  { %v3779_v30 = vpop.permute.xlu1 %3778  ;;  %v3485_v0 = vpop.permute.xlu0 %3484 }
0x154b   :  { %7599 = vmatprep.subr.msk.bf16.mxu0 %vm456_vm1, %v3485_v0  ;;  %7603 = vmatprep.subr.msk.bf16.mxu1 %vm456_vm1, %v3779_v30  ;;  %v3507_v18 = vsel %vm456_vm1, %v3485_v0, 0  ;;  %v3801_v38 = vsel %vm456_vm1, %v3779_v30, 0 }
0x154e   :  { %v3777_v10 = vpop.permute.xlu1 %3776  ;;  %v3483_v36 = vpop.permute.xlu0 %3482 }
0x154f   :  { %v3504_v12 = vsel %vm456_vm1, %v3483_v36, 0  ;;  %v3798_v45 = vsel %vm456_vm1, %v3777_v10, 0 }
0x1550   :  { %7269 = vmatpush3.bf16.xpose.msra.mxu0 %v3507_v18  ;;  %7301 = vmatpush3.bf16.xpose.msra.mxu1 %v3801_v38 }
0x1551   :  { %7600 = vmatprep.subr.msk.bf16.mxu0 %vm456_vm1, %v3483_v36  ;;  %7604 = vmatprep.subr.msk.bf16.mxu1 %vm456_vm1, %v3777_v10 }
0x1552   :  { %v3775_v47 = vpop.permute.xlu1 %3774  ;;  %v3481_v19 = vpop.permute.xlu0 %3480 }
0x1553   :  { %v3501_v14 = vsel %vm456_vm1, %v3481_v19, 0  ;;  %v3795_v9 = vsel %vm456_vm1, %v3775_v47, 0 }
0x1556   :  { %v4107_v6 = vpop.permute.xlu1 %4106  ;;  %v3767_v15 = vpop.permute.xlu0 %3766 }
0x1557   :  { %7306 = vmatprep.mubr.msk.bf16.mxu1 %vm456_vm1, %v3767_v15  ;;  %v4130_v62 = vsel %vm456_vm1, %v4107_v6, 0 }
0x1558   :  { %7271 = vmatpush3.bf16.xpose.msra.mxu0 %v3504_v12  ;;  %7303 = vmatpush3.bf16.xpose.msra.mxu1 %v3798_v45 }
0x1559   :  { %7601 = vmatprep.subr.msk.bf16.mxu0 %vm456_vm1, %v3481_v19  ;;  %7605 = vmatprep.subr.msk.bf16.mxu1 %vm456_vm1, %v3775_v47 }
0x155a   :  { %v4105_v61 = vpop.permute.xlu1 %4104  ;;  %v3769_v54 = vpop.permute.xlu0 %3768 }
0x155b   :  { %v4127_v20 = vsel %vm456_vm1, %v4105_v61, 0 }
0x155e   :  { %v3771_v4 = vpop.permute.xlu1 %3770  ;;  %v4103_v22 = vpop.permute.xlu0 %4102 }
0x155f   :  { %v4124_v23 = vsel %vm456_vm1, %v4103_v22, 0 }
0x1560   :  { %7273 = vmatpush3.bf16.xpose.msra.mxu0 %v3501_v14  ;;  %7305 = vmatpush3.bf16.xpose.msra.mxu1 %v3795_v9 }
0x1561   :  { %7606 = vmatprep.subr.msk.bf16.mxu1 %vm456_vm1, %v4107_v6 }
0x1562   :  { %v4101_v44 = vpop.permute.xlu1 %4100  ;;  %v3773_v33 = vpop.permute.xlu0 %3772 }
0x1563   :  { %v4121_v50 = vsel %vm456_vm1, %v4101_v44, 0 }
0x1566   :  { %v4095_v53 = vpop.permute.xlu1 %4094  ;;  %v4093_v8 = vpop.permute.xlu0 %4092 }
0x1567   :  { %7275 = vmatmul.mubr.msk.bf16.vlgmr.msra.gmra.mxu0 %vm456_vm1, %v9687_v31  ;;  %7307 = vmatmul.mubr.msk.bf16.vlgmr.msra.gmra.mxu1 %vm456_vm1, %v3769_v54 }
0x1568   :  { %7278 = vmatprep.mubr.msk.bf16.mxu0 %vm456_vm1, %v9680_v59  ;;  %7310 = vmatprep.mubr.msk.bf16.mxu1 %vm456_vm1, %v3771_v4 }
0x1569   :  { %7331 = vmatpush3.bf16.xpose.msra.mxu1 %v4130_v62 }
0x156a   :  { %7607 = vmatprep.subr.msk.bf16.mxu1 %vm456_vm1, %v4105_v61  ;;  %v4099_v52 = vpop.permute.xlu1 %4098  ;;  %v4097_v40 = vpop.permute.xlu0 %4096 }
0x156e   :  { %v3676_v29 = vpop.permute.xlu1 %3675  ;;  %v3672_v11 = vpop.permute.xlu0 %3671 }
0x156f   :  { %7279 = vmatmul.mubr.msk.bf16.gmra.mxu0 %vm456_vm1, %v9671_v42  ;;  %7282 = vmatprep.subr.bf16.mxu0 %v3676_v29 }
0x1570   :  { %7311 = vmatmul.mubr.msk.bf16.gmra.mxu1 %vm456_vm1, %v3773_v33  ;;  %7283 = vmatpush3.bf16.msra.mxu0 %v3676_v29 }
0x1571   :  { %7333 = vmatpush3.bf16.xpose.msra.mxu1 %v4127_v20  ;;  %7338 = vmatprep.mubr.msk.bf16.mxu1 %vm456_vm1, %v4093_v8 }
0x1572   :  { %7608 = vmatprep.subr.msk.bf16.mxu1 %vm456_vm1, %v4103_v22  ;;  %v3670_v21 = vpop.permute.xlu1 %3669  ;;  %v9814_v24 = vpop.permute.xlu0 %3969 }
0x1576   :  { %v9807_v41 = vpop.permute.xlu1 %3965 }
0x1579   :  { %7335 = vmatpush3.bf16.xpose.msra.mxu1 %v4124_v23 }
0x157a   :  { %7609 = vmatprep.subr.msk.bf16.mxu1 %vm456_vm1, %v4101_v44  ;;  %v9811_v25 = vpop.permute.xlu1 %3963 }
0x157e   :  { %v3674_v60 = vpop.permute.xlu1 %3673 }
0x157f   :  { %7284 = vmatprep.subr.bf16.mxu0 %v3674_v60 }
0x1580   :  { %7285 = vmatpush3.bf16.msra.mxu0 %v3674_v60 }
0x1581   :  { %7337 = vmatpush3.bf16.xpose.msra.mxu1 %v4121_v50  ;;  %7286 = vmatprep.subr.bf16.mxu0 %v3672_v11 }
0x1584   :  { %7287 = vmatpush3.bf16.msra.mxu0 %v3672_v11 }
0x1585   :  { %7288 = vmatprep.subr.bf16.mxu0 %v3670_v21 }
0x1588   :  { %7339 = vmatmul.mubr.msk.bf16.vlgmr.msra.gmra.mxu1 %vm456_vm1, %v4095_v53  ;;  %7289 = vmatpush3.bf16.msra.mxu0 %v3670_v21 }
0x1589   :  { %7342 = vmatprep.mubr.msk.bf16.mxu1 %vm456_vm1, %v4097_v40  ;;  %7314 = vmatprep.subr.bf16.mxu0 %v9814_v24 }
0x1590   :  { %7343 = vmatmul.mubr.msk.bf16.gmra.mxu1 %vm456_vm1, %v4099_v52 }
0x15fa   :  { %v7260_v3 = vpop.f32.mrf.mxu1 }
0x15fb   :  { %v3446_v32 = vadd.f32 %v7260_v3, %v9661_v63 }
0x15fc   :  { %v3437_v13 = vpop.f32.mrf.mxu1 }
0x15fd   :  { %v3438_v17 = vadd.f32 %v9661_v63, %v3437_v13 }
0x15fe   :  { %v7261_v2 = vpop.f32.mrf.mxu1 }
0x15ff   :  { %v3449_v56 = vadd.f32 %v7261_v2, %v9661_v63 }
0x1600   :  { %v3440_v16 = vpop.f32.mrf.mxu1 }
0x1601   :  { %v9823_v51 = vpack.c.bf16 %v3449_v56, %v3446_v32  ;;  %v3441_v30 = vadd.f32 %v9661_v63, %v3440_v16 }
0x1603   :  { %v9826_v0 = vpack.c.bf16 %v3441_v30, %v3438_v17 }
0x1605   :  { %v7264_v10 = vpop.f32.mrf.mxu1 }
0x1606   :  { %v3462_v38 = vadd.f32 %v7264_v10, %v9661_v63 }
0x1607   :  { %v3453_v36 = vpop.f32.mrf.mxu1 }
0x1608   :  { %v3454_v6 = vadd.f32 %v9661_v63, %v3453_v36 }
0x1609   :  { %v7265_v18 = vpop.f32.mrf.mxu1 }
0x160a   :  { %v3465_v47 = vadd.f32 %v7265_v18, %v9661_v63 }
0x160b   :  { %v3456_v19 = vpop.f32.mrf.mxu1 }
0x160c   :  { %v9831_v15 = vpack.c.bf16 %v3465_v47, %v3462_v38  ;;  %v3457_v12 = vadd.f32 %v9661_v63, %v3456_v19 }
0x160e   :  { %v9834_v45 = vpack.c.bf16 %v3457_v12, %v3454_v6 }
0x1627   :  { %v9836_v61 = vpop.f32.mrf.mxu0  ;;  %v9838_v54 = vpop.f32.mrf.mxu1 }
0x1628   :  { %v3583_v4 = vsel %vm546_vm2, %v9836_v61, -inf  ;;  %v3877_v14 = vsel %vm546_vm2, %v9838_v54, -inf }
0x1629   :  { %3584 = vmax.xlane.f32.xlu0 %v3583_v4  ;;  %v9844_v9 = vpop.f32.mrf.mxu0  ;;  %3878 = vmax.xlane.f32.xlu1 %v3877_v14  ;;  %v9846_v44 = vpop.f32.mrf.mxu1 }
0x162a   :  { %v3577_v63 = vsel %vm546_vm2, %v9844_v9, -inf  ;;  %v3871_v53 = vsel %vm546_vm2, %v9846_v44, -inf }
0x162b   :  { %v9848_v22 = vpop.f32.mrf.mxu0  ;;  %v9854_v62 = vpop.f32.mrf.mxu1 }
0x162c   :  { %v3586_v52 = vsel %vm546_vm2, %v9848_v22, -inf  ;;  %v3880_v23 = vsel %vm546_vm2, %v9854_v62, -inf }
0x162d   :  { %3578 = vmax.xlane.f32.xlu0 %v3577_v63  ;;  %v9856_v33 = vpop.f32.mrf.mxu0  ;;  %3872 = vmax.xlane.f32.xlu1 %v3871_v53  ;;  %v9862_v8 = vpop.f32.mrf.mxu1 }
0x162e   :  { %v3580_v29 = vsel %vm546_vm2, %v9856_v33, -inf  ;;  %v3874_v11 = vsel %vm546_vm2, %v9862_v8, -inf }
0x162f   :  { %v9864_v20 = vpop.f32.mrf.mxu0 }
0x1630   :  { %v3595_v21 = vsel %vm546_vm2, %v9864_v20, -inf  ;;  %v9870_v40 = vpop.f32.mrf.mxu1 }
0x1631   :  { %3587 = vmax.xlane.f32.xlu0 %v3586_v52  ;;  %3581 = vmax.xlane.f32.xlu1 %v3580_v29  ;;  %v9872_v60 = vpop.f32.mrf.mxu0  ;;  %v3889_v50 = vsel %vm546_vm2, %v9870_v40, -inf }
0x1632   :  { %v9878_v3 = vpop.f32.mrf.mxu1  ;;  %v3589_v32 = vsel %vm546_vm2, %v9872_v60, -inf }
0x1633   :  { %v9880_v13 = vpop.f32.mrf.mxu0  ;;  %v3883_v38 = vsel %vm546_vm2, %v9878_v3, -inf }
0x1634   :  { %v3598_v2 = vsel %vm546_vm2, %v9880_v13, -inf  ;;  %v9886_v56 = vpop.f32.mrf.mxu1 }
0x1635   :  { %3596 = vmax.xlane.f32.xlu1 %v3595_v21  ;;  %3881 = vmax.xlane.f32.xlu0 %v3880_v23  ;;  %v3892_v16 = vsel %vm546_vm2, %v9886_v56, -inf  ;;  %v9890_v17 = vpop.f32.mrf.mxu0 }
0x1636   :  { %v3592_v30 = vsel %vm546_vm2, %v9890_v17, -inf  ;;  %v9898_v10 = vpop.f32.mrf.mxu1 }
0x1637   :  { %v3886_v4 = vsel %vm546_vm2, %v9898_v10, -inf }
0x1639   :  { %3875 = vmax.xlane.f32.xlu0 %v3874_v11  ;;  %3890 = vmax.xlane.f32.xlu1 %v3889_v50 }
0x163d   :  { %3599 = vmax.xlane.f32.xlu0 %v3598_v2  ;;  %3590 = vmax.xlane.f32.xlu1 %v3589_v32  ;;  %v9936_v32 = vpop.permute.xlu0 %4295 }
0x1641   :  { %3893 = vmax.xlane.f32.xlu0 %v3892_v16  ;;  %v9938_v16 = vpop.permute.xlu0 %3967 }
0x1645   :  { %3593 = vmax.xlane.f32.xlu0 %v3592_v30 }
0x1648   :  { %v9900_v36 = vpop.f32.mrf.mxu1 }
0x1649   :  { %v4203_v19 = vsel %vm546_vm2, %v9900_v36, -inf }
0x164a   :  { %v9902_v18 = vpop.f32.mrf.mxu1 }
0x164b   :  { %v4197_v12 = vsel %vm546_vm2, %v9902_v18, -inf }
0x164c   :  { %v9906_v47 = vpop.f32.mrf.mxu1 }
0x164d   :  { %v4206_v53 = vsel %vm546_vm2, %v9906_v47, -inf }
0x164e   :  { %4293 = vrot.lane.b32.xlu1 %v9680_v59, %s8322_s17  ;;  %v9910_v6 = vpop.f32.mrf.mxu1 }
0x164f   :  { %v4200_v21 = vsel %vm546_vm2, %v9910_v6, -inf }
0x1650   :  { %v9916_v14 = vpop.f32.mrf.mxu1 }
0x1651   :  { %v4215_v63 = vsel %vm546_vm2, %v9916_v14, -inf }
0x1652   :  { %v9922_v52 = vpop.f32.mrf.mxu1 }
0x1653   :  { %v4209_v29 = vsel %vm546_vm2, %v9922_v52, -inf }
0x1654   :  { %v9928_v23 = vpop.f32.mrf.mxu1 }
0x1655   :  { %v4218_v11 = vsel %vm546_vm2, %v9928_v23, -inf }
0x1656   :  { %v9932_v50 = vpop.f32.mrf.mxu1 }
0x1657   :  { %v4212_v2 = vsel %vm546_vm2, %v9932_v50, -inf }
0x165b   :  { %4291 = vrot.lane.b32.xlu0 %v9687_v31, %s8322_s17 }
0x1672   :  { %3884 = vmax.xlane.f32.xlu1 %v3883_v38 }
0x1676   :  { %4204 = vmax.xlane.f32.xlu1 %v4203_v19 }
0x167a   :  { %4198 = vmax.xlane.f32.xlu1 %v4197_v12  ;;  %3887 = vmax.xlane.f32.xlu0 %v3886_v4 }
0x167e   :  { %4216 = vmax.xlane.f32.xlu1 %v4215_v63  ;;  %4207 = vmax.xlane.f32.xlu0 %v4206_v53 }
0x1682   :  { %4210 = vmax.xlane.f32.xlu1 %v4209_v29  ;;  %4201 = vmax.xlane.f32.xlu0 %v4200_v21 }
0x1686   :  { %4219 = vmax.xlane.f32.xlu0 %v4218_v11 }
0x168a   :  { %4213 = vmax.xlane.f32.xlu0 %v4212_v2 }
0x16b2   :  { %v3585_v30 = vpop.xlane.xlu0 %3584  ;;  %v3879_v38 = vpop.xlane.xlu1 %3878 }
0x16b3   :  { %v3603_v19 = vsub.f32 %v9836_v61, %v3585_v30  ;;  %v3897_v12 = vsub.f32 %v9838_v54, %v3879_v38 }
0x16b5   :  { %v3613_v4 = vmul.f32 1.442695, %v3603_v19  ;;  %v3907_v63 = vmul.f32 1.442695, %v3897_v12 }
0x16b6   :  { %v3579_v53 = vpop.xlane.xlu0 %3578  ;;  %v3873_v29 = vpop.xlane.xlu1 %3872 }
0x16b7   :  { %7922 = vpow2.f32 %v3613_v4  ;;  %v3601_v21 = vsub.f32 %v9844_v9, %v3579_v53  ;;  %v3895_v11 = vsub.f32 %v9846_v44, %v3873_v29 }
0x16b8   :  { %7924 = vpow2.f32 %v3907_v63 }
0x16b9   :  { %v3609_v2 = vmul.f32 1.442695, %v3601_v21  ;;  %v3903_v37 = vmul.f32 1.442695, %v3895_v11 }
0x16ba   :  { %v3588_v49 = vpop.xlane.xlu0 %3587  ;;  %v3582_v57 = vpop.xlane.xlu1 %3581 }
0x16bb   :  { %7926 = vpow2.f32 %v3609_v2  ;;  %v3604_v55 = vsub.f32 %v9848_v22, %v3588_v49  ;;  %v3602_v54 = vsub.f32 %v9856_v33, %v3582_v57 }
0x16bc   :  { %7928 = vpow2.f32 %v3903_v37 }
0x16bd   :  { %v3615_v61 = vmul.f32 1.442695, %v3604_v55  ;;  %v3611_v4 = vmul.f32 1.442695, %v3602_v54 }
0x16be   :  { %v3597_v30 = vpop.xlane.xlu1 %3596  ;;  %v3882_v38 = vpop.xlane.xlu0 %3881 }
0x16bf   :  { %7930 = vpow2.f32 %v3615_v61  ;;  %v3607_v19 = vsub.f32 %v9864_v20, %v3597_v30  ;;  %v3898_v9 = vsub.f32 %v9854_v62, %v3882_v38 }
0x16c1   :  { %v3621_v44 = vmul.f32 1.442695, %v3607_v19  ;;  %v3909_v12 = vmul.f32 1.442695, %v3898_v9 }
0x16c2   :  { %v3876_v63 = vpop.xlane.xlu0 %3875  ;;  %v3891_v53 = vpop.xlane.xlu1 %3890 }
0x16c3   :  { %7932 = vpow2.f32 %v3621_v44  ;;  %v3896_v29 = vsub.f32 %v9862_v8, %v3876_v63  ;;  %v3901_v49 = vsub.f32 %v9870_v40, %v3891_v53 }
0x16c4   :  { %v9950_v55 = vpop.eup %7922  ;;  %7934 = vpow2.f32 %v3909_v12 }
0x16c5   :  { %v9952_v57 = vpop.eup %7924  ;;  %v3915_v37 = vmul.f32 1.442695, %v3901_v49  ;;  %v3631_v22 = vsel %vm546_vm2, %v9950_v55, 0.0  ;;  %7936 = vpow2.f32 %v3611_v4  ;;  %v3905_v62 = vmul.f32 1.442695, %v3896_v29 }
0x16c6   :  { %v3600_v33 = vpop.xlane.xlu0 %3599  ;;  %v3591_v20 = vpop.xlane.xlu1 %3590  ;;  %3632 = vadd.xlane.f32.xlu1 %v3631_v22  ;;  %v3925_v21 = vsel %vm546_vm2, %v9952_v57, 0.0 }
0x16c7   :  { %v3608_v8 = vsub.f32 %v9880_v13, %v3600_v33  ;;  %v3605_v40 = vsub.f32 %v9872_v60, %v3591_v20  ;;  %3926 = vadd.xlane.f32.xlu0 %v3925_v21  ;;  %7938 = vpow2.f32 %v3915_v37 }
0x16c8   :  { %v9960_v11 = vpop.eup %7926  ;;  %7940 = vpow2.f32 %v3905_v62 }
0x16c9   :  { %v9962_v2 = vpop.eup %7928  ;;  %v3617_v61 = vmul.f32 1.442695, %v3605_v40  ;;  %v3625_v54 = vsel %vm546_vm2, %v9960_v11, 0.0  ;;  %v3623_v30 = vmul.f32 1.442695, %v3608_v8 }
0x16ca   :  { %v3894_v38 = vpop.xlane.xlu0 %3893  ;;  %3626 = vadd.xlane.f32.xlu1 %v3625_v54  ;;  %v3919_v19 = vsel %vm546_vm2, %v9962_v2, 0.0 }
0x16cb   :  { %3920 = vadd.xlane.f32.xlu0 %v3919_v19  ;;  %7942 = vpow2.f32 %v3617_v61  ;;  %v3902_v19 = vsub.f32 %v9886_v56, %v3894_v38 }
0x16cc   :  { %v9968_v13 = vpop.eup %7930  ;;  %7944 = vpow2.f32 %v3623_v30  ;;  %v10005_v30 = vpop.permute.xlu1 %4293 }
0x16cd   :  { %v3634_v60 = vsel %vm546_vm2, %v9968_v13, 0.0 }
0x16ce   :  { %v3594_v9 = vpop.xlane.xlu0 %3593 }
0x16cf   :  { %v3606_v44 = vsub.f32 %v9890_v17, %v3594_v9  ;;  %3635 = vadd.xlane.f32.xlu0 %v3634_v60 }
0x16d0   :  { %v9973_v12 = vpop.eup %7932 }
0x16d1   :  { %v9975_v4 = vpop.eup %7934  ;;  %v3619_v63 = vmul.f32 1.442695, %v3606_v44  ;;  %v3643_v53 = vsel %vm546_vm2, %v9973_v12, 0.0  ;;  %v3917_v44 = vmul.f32 1.442695, %v3902_v19 }
0x16d2   :  { %3644 = vadd.xlane.f32.xlu1 %v3643_v53  ;;  %v3928_v29 = vsel %vm546_vm2, %v9975_v4, 0.0  ;;  %v9981_v49 = vpop.eup %7936  ;;  %v10009_v53 = vpop.permute.xlu0 %4291 }
0x16d3   :  { %7946 = vpow2.f32 %v3619_v63  ;;  %3929 = vadd.xlane.f32.xlu0 %v3928_v29  ;;  %v3628_v22 = vsel %vm546_vm2, %v9981_v49, 0.0 }
0x16d4   :  { %v9983_v37 = vpop.eup %7938 }
0x16d5   :  { %v3937_v17 = vsel %vm546_vm2, %v9983_v37, 0.0  ;;  %v9989_v62 = vpop.eup %7940 }
0x16d6   :  { %3938 = vadd.xlane.f32.xlu1 %v3937_v17  ;;  %v3922_v21 = vsel %vm546_vm2, %v9989_v62, 0.0 }
0x16d7   :  { %3629 = vadd.xlane.f32.xlu0 %v3628_v22 }
0x16d8   :  { %v9991_v33 = vpop.eup %7942 }
0x16d9   :  { %v3637_v20 = vsel %vm546_vm2, %v9991_v33, 0.0  ;;  %v9997_v8 = vpop.eup %7944 }
0x16da   :  { %3638 = vadd.xlane.f32.xlu1 %v3637_v20  ;;  %v3646_v40 = vsel %vm546_vm2, %v9997_v8, 0.0 }
0x16db   :  { %3923 = vadd.xlane.f32.xlu0 %v3922_v21 }
0x16df   :  { %3647 = vadd.xlane.f32.xlu0 %v3646_v40 }
0x16e0   :  { %v10001_v61 = vpop.eup %7946 }
0x16e1   :  { %v3640_v54 = vsel %vm546_vm2, %v10001_v61, 0.0 }
0x16e3   :  { %3641 = vadd.xlane.f32.xlu0 %v3640_v54 }
0x16fb   :  { %v3885_v60 = vpop.xlane.xlu1 %3884 }
0x16fc   :  { %v3899_v9 = vsub.f32 %v9878_v3, %v3885_v60 }
0x16fe   :  { %v3911_v63 = vmul.f32 1.442695, %v3899_v9 }
0x16ff   :  { %v4205_v29 = vpop.xlane.xlu1 %4204 }
0x1700   :  { %7948 = vpow2.f32 %v3911_v63  ;;  %v4223_v17 = vsub.f32 %v9900_v36, %v4205_v29 }
0x1701   :  { %7950 = vpow2.f32 %v3917_v44 }
0x1702   :  { %v4233_v22 = vmul.f32 1.442695, %v4223_v17 }
0x1703   :  { %v4199_v20 = vpop.xlane.xlu1 %4198  ;;  %v3888_v21 = vpop.xlane.xlu0 %3887 }
0x1704   :  { %v4221_v40 = vsub.f32 %v9902_v18, %v4199_v20  ;;  %v3900_v54 = vsub.f32 %v9898_v10, %v3888_v21  ;;  %7952 = vpow2.f32 %v4233_v22 }
0x1706   :  { %v4229_v56 = vmul.f32 1.442695, %v4221_v40  ;;  %v3913_v38 = vmul.f32 1.442695, %v3900_v54 }
0x1707   :  { %v4208_v3 = vpop.xlane.xlu0 %4207 }
0x1708   :  { %v4224_v19 = vsub.f32 %v9906_v47, %v4208_v3  ;;  %7954 = vpow2.f32 %v3913_v38  ;;  %v4217_v3 = vpop.xlane.xlu1 %4216 }
0x1709   :  { %7956 = vpow2.f32 %v4229_v56 }
0x170a   :  { %v4235_v60 = vmul.f32 1.442695, %v4224_v19 }
0x170b   :  { %v4202_v9 = vpop.xlane.xlu0 %4201 }
0x170c   :  { %v4222_v36 = vsub.f32 %v9910_v6, %v4202_v9  ;;  %7958 = vpow2.f32 %v4235_v60  ;;  %v4227_v60 = vsub.f32 %v9916_v14, %v4217_v3  ;;  %v4211_v9 = vpop.xlane.xlu1 %4210 }
0x170d   :  { %v10016_v44 = vpop.eup %7948 }
0x170e   :  { %v4231_v63 = vmul.f32 1.442695, %v4222_v36  ;;  %v3931_v18 = vsel %vm546_vm2, %v10016_v44, 0.0  ;;  %v10020_v10 = vpop.eup %7950 }
0x170f   :  { %3932 = vadd.xlane.f32.xlu1 %v3931_v18  ;;  %v3940_v47 = vsel %vm546_vm2, %v10020_v10, 0.0  ;;  %v4220_v19 = vpop.xlane.xlu0 %4219  ;;  %v4241_v18 = vmul.f32 1.442695, %v4227_v60 }
0x1710   :  { %7960 = vpow2.f32 %v4231_v63  ;;  %v4225_v63 = vsub.f32 %v9922_v52, %v4211_v9 }
0x1711   :  { %v10024_v29 = vpop.eup %7952  ;;  %7962 = vpow2.f32 %v4241_v18 }
0x1712   :  { %v4251_v6 = vsel %vm546_vm2, %v10024_v29, 0.0 }
0x1713   :  { %3941 = vadd.xlane.f32.xlu1 %v3940_v47  ;;  %v4214_v36 = vpop.xlane.xlu0 %4213 }
0x1714   :  { %v4226_v47 = vsub.f32 %v9932_v50, %v4214_v36 }
0x1715   :  { %v10026_v17 = vpop.eup %7954 }
0x1716   :  { %v10030_v22 = vpop.eup %7956  ;;  %v3934_v20 = vsel %vm546_vm2, %v10026_v17, 0.0 }
0x1717   :  { %4252 = vadd.xlane.f32.xlu1 %v4251_v6  ;;  %3935 = vadd.xlane.f32.xlu0 %v3934_v20  ;;  %v4245_v21 = vsel %vm546_vm2, %v10030_v22, 0.0  ;;  %v4237_v6 = vmul.f32 1.442695, %v4225_v63  ;;  %v4228_v20 = vsub.f32 %v9928_v23, %v4220_v19 }
0x1719   :  { %v10036_v40 = vpop.eup %7958  ;;  %7964 = vpow2.f32 %v4237_v6 }
0x171a   :  { %v4254_v56 = vsel %vm546_vm2, %v10036_v40, 0.0 }
0x171b   :  { %4246 = vadd.xlane.f32.xlu1 %v4245_v21  ;;  %v4239_v21 = vmul.f32 1.442695, %v4226_v47 }
0x171d   :  { %v10038_v54 = vpop.eup %7960  ;;  %7966 = vpow2.f32 %v4239_v21 }
0x171e   :  { %v4248_v38 = vsel %vm546_vm2, %v10038_v54, 0.0  ;;  %v10054_v28 = vpop.eup %7962 }
0x171f   :  { %4255 = vadd.xlane.f32.xlu1 %v4254_v56  ;;  %4249 = vadd.xlane.f32.xlu0 %v4248_v38  ;;  %v4243_v56 = vmul.f32 1.442695, %v4228_v20  ;;  %v4263_v52 = vsel %vm546_vm2, %v10054_v28, 0.0 }
0x1721   :  { %7968 = vpow2.f32 %v4243_v56 }
0x1726   :  { %v10056_v3 = vpop.eup %7964 }
0x1727   :  { %v4257_v19 = vsel %vm546_vm2, %v10056_v3, 0.0 }
0x172a   :  { %v10060_v50 = vpop.eup %7966 }
0x172b   :  { %v4260_v36 = vsel %vm546_vm2, %v10060_v50, 0.0 }
0x172e   :  { %v10064_v60 = vpop.eup %7968 }
0x172f   :  { %v4266_v18 = vsel %vm546_vm2, %v10064_v60, 0.0 }
0x1730   :  { %4432 = vrot.lane.b32.xlu1 %v9671_v42, %s8323_s18 }
0x1734   :  { %4430 = vrot.lane.b32.xlu1 %v9680_v59, %s8323_s18 }
0x1735   :  { %4289 = vrot.lane.b32.xlu0 %v9665_v1, %s8322_s17 }
0x174f   :  { %v3633_v14 = vpop.xlane.xlu1 %3632 }
0x1750   :  { %v3927_v38 = vpop.xlane.xlu0 %3926 }
0x1753   :  { %v3627_v23 = vpop.xlane.xlu1 %3626 }
0x1754   :  { %v3921_v27 = vpop.xlane.xlu0 %3920  ;;  %4264 = vadd.xlane.f32.xlu0 %v4263_v52 }
0x1758   :  { %v3636_v9 = vpop.xlane.xlu0 %3635  ;;  %4258 = vadd.xlane.f32.xlu1 %v4257_v19  ;;  %4261 = vadd.xlane.f32.xlu0 %v4260_v36 }
0x1759   :  { %7970 = vrcp.f32 %v3636_v9 }
0x175a   :  { %7972 = vrcp.f32 %v3627_v23 }
0x175b   :  { %v3645_v63 = vpop.xlane.xlu1 %3644  ;;  %7974 = vrcp.f32 %v3633_v14 }
0x175c   :  { %v3930_v47 = vpop.xlane.xlu0 %3929  ;;  %4267 = vadd.xlane.f32.xlu1 %v4266_v18 }
0x175f   :  { %v10070_v6 = vpop.xlane.xlu1 %3938 }
0x1760   :  { %v3630_v20 = vpop.xlane.xlu0 %3629 }
0x1761   :  { %7976 = vrcp.f32 %v3630_v20 }
0x1762   :  { %7978 = vrcp.f32 %v3921_v27 }
0x1763   :  { %v3639_v56 = vpop.xlane.xlu1 %3638 }
0x1764   :  { %v3924_v21 = vpop.xlane.xlu0 %3923  ;;  %7980 = vrcp.f32 %v3639_v56 }
0x1766   :  { %v7971_v19 = vpop.eup %7970 }
0x1767   :  { %v7973_v39 = vpop.eup %7972  ;;  %v3660_v14 = vmul.f32 %v7971_v19, %v9968_v13 }
0x1768   :  { %v3648_v52 = vpop.xlane.xlu0 %3647  ;;  %v7975_v23 = vpop.eup %7974  ;;  %v3657_v27 = vmul.f32 %v7973_v39, %v9960_v11 }
0x1769   :  { %7982 = vrcp.f32 %v3648_v52  ;;  %v3659_v20 = vmul.f32 %v7975_v23, %v9950_v55 }
0x176a   :  { %7984 = vrcp.f32 %v3924_v21 }
0x176b   :  { %7986 = vrcp.f32 %v3645_v63  ;;  %v3666_v21 = vpack.c.bf16 %v3660_v14, %v3659_v20 }
0x176c   :  { %v3642_v36 = vpop.xlane.xlu0 %3641 }
0x176d   :  { %7988 = vrcp.f32 %v3642_v36  ;;  %4426 = vrot.lane.b32.xlu1 %v9665_v1, %s8323_s18 }
0x176e   :  { %v7977_v9 = vpop.eup %7976  ;;  %4428 = vrot.lane.b32.xlu0 %v9687_v31, %s8323_s18  ;;  %7990 = vrcp.f32 %v3930_v47 }
0x176f   :  { %v3658_v18 = vmul.f32 %v7977_v9, %v9981_v49  ;;  %7992 = vrcp.f32 %v3927_v38  ;;  %v7979_v13 = vpop.eup %7978 }
0x1770   :  { %v3951_v23 = vmul.f32 %v7979_v13, %v9962_v2 }
0x1771   :  { %4420 = vrot.lane.b32.xlu1 %v9687_v31, %s8324_s1  ;;  %v3665_v63 = vpack.c.bf16 %v3658_v18, %v3657_v27  ;;  %v7981_v39 = vpop.eup %7980 }
0x1772   :  { %4418 = vrot.lane.b32.xlu0 %v9665_v1, %s8324_s1 }
0x1773   :  { %7290 = vmatprep.mubr.msk.bf16.mxu0 %vm546_vm2, %v3665_v63 }
0x1774   :  { %7291 = vmatmul.mubr.msk.bf16.vlgmr.msra.gmra.mxu0 %vm546_vm2, %v3666_v21 }
0x1775   :  { %4424 = vrot.lane.b32.xlu1 %v9671_v42, %s8324_s1  ;;  %7315 = vmatpush3.bf16.msra.mxu0 %v9814_v24  ;;  %v3661_v24 = vmul.f32 %v7981_v39, %v9991_v33 }
0x1776   :  { %v7983_v55 = vpop.eup %7982  ;;  %7316 = vmatprep.subr.bf16.mxu0 %v9938_v16  ;;  %4422 = vrot.lane.b32.xlu0 %v9680_v59, %s8324_s1 }
0x1777   :  { %v7985_v11 = vpop.eup %7984  ;;  %v3664_v47 = vmul.f32 %v7983_v55, %v9997_v8 }
0x1778   :  { %v7987_v49 = vpop.eup %7986  ;;  %v3952_v52 = vmul.f32 %v7985_v11, %v9989_v62 }
0x1779   :  { %4621 = vrot.lane.b32.xlu1 %v9671_v42, %s8325_s21  ;;  %7317 = vmatpush3.bf16.msra.mxu0 %v9938_v16  ;;  %v3663_v19 = vmul.f32 %v7987_v49, %v9973_v12 }
0x177a   :  { %v7989_v38 = vpop.eup %7988  ;;  %7318 = vmatprep.subr.bf16.mxu0 %v9807_v41  ;;  %v3959_v16 = vpack.c.bf16 %v3952_v52, %v3951_v23 }
0x177b   :  { %v3662_v56 = vmul.f32 %v7989_v38, %v10001_v61  ;;  %v3668_v42 = vpack.c.bf16 %v3664_v47, %v3663_v19  ;;  %v7991_v9 = vpop.eup %7990 }
0x177c   :  { %v7993_v33 = vpop.eup %7992  ;;  %v3954_v62 = vmul.f32 %v7991_v9, %v9975_v4 }
0x177d   :  { %v3667_v36 = vpack.c.bf16 %v3662_v56, %v3661_v24  ;;  %7319 = vmatpush3.bf16.msra.mxu0 %v9807_v41  ;;  %v3953_v41 = vmul.f32 %v7993_v33, %v9952_v57 }
0x177e   :  { %7320 = vmatprep.subr.bf16.mxu0 %v9811_v25 }
0x177f   :  { %7294 = vmatprep.mubr.msk.bf16.mxu0 %vm546_vm2, %v3667_v36  ;;  %v3960_v2 = vpack.c.bf16 %v3954_v62, %v3953_v41 }
0x1780   :  { %7295 = vmatmul.mubr.msk.bf16.gmra.mxu0 %vm546_vm2, %v3668_v42 }
0x1781   :  { %7322 = vmatprep.mubr.msk.bf16.mxu0 %vm546_vm2, %v3959_v16  ;;  %7321 = vmatpush3.bf16.msra.mxu0 %v9811_v25 }
0x1782   :  { %7346 = vmatprep.subr.bf16.mxu0 %v9936_v32 }
0x1788   :  { %7323 = vmatmul.mubr.msk.bf16.vlgmr.msra.gmra.mxu0 %vm546_vm2, %v3960_v2 }
0x1789   :  { %7347 = vmatpush3.bf16.msra.mxu0 %v9936_v32 }
0x178a   :  { %7348 = vmatprep.subr.bf16.mxu0 %v10005_v30 }
0x178d   :  { %7349 = vmatpush3.bf16.msra.mxu0 %v10005_v30 }
0x178e   :  { %7350 = vmatprep.subr.bf16.mxu0 %v10009_v53 }
0x1791   :  { %7351 = vmatpush3.bf16.msra.mxu0 %v10009_v53 }
0x1798   :  { %v3933_v12 = vpop.xlane.xlu1 %3932 }
0x179c   :  { %v3942_v4 = vpop.xlane.xlu1 %3941 }
0x179d   :  { %7994 = vrcp.f32 %v3942_v4 }
0x179e   :  { %7996 = vrcp.f32 %v3933_v12 }
0x179f   :  { %7998 = vrcp.f32 %v10070_v6 }
0x17a0   :  { %v4253_v25 = vpop.xlane.xlu1 %4252  ;;  %v3936_v57 = vpop.xlane.xlu0 %3935 }
0x17a1   :  { %8000 = vrcp.f32 %v3936_v57 }
0x17a2   :  { %8002 = vrcp.f32 %v4253_v25 }
0x17a4   :  { %v4247_v8 = vpop.xlane.xlu1 %4246 }
0x17a5   :  { %8004 = vrcp.f32 %v4247_v8 }
0x17a8   :  { %v4256_v32 = vpop.xlane.xlu1 %4255  ;;  %v4250_v61 = vpop.xlane.xlu0 %4249 }
0x17a9   :  { %8006 = vrcp.f32 %v4256_v32 }
0x17aa   :  { %8008 = vrcp.f32 %v4250_v61  ;;  %v7995_v30 = vpop.eup %7994 }
0x17ab   :  { %v7997_v14 = vpop.eup %7996  ;;  %v3958_v63 = vmul.f32 %v7995_v30, %v10020_v10 }
0x17ac   :  { %v4290_v27 = vpop.permute.xlu0 %4289  ;;  %v7999_v53 = vpop.eup %7998  ;;  %v3955_v6 = vmul.f32 %v7997_v14, %v10016_v44 }
0x17ad   :  { %7352 = vmatprep.subr.bf16.mxu0 %v4290_v27  ;;  %v4433_v20 = vpop.permute.xlu1 %4432  ;;  %v3957_v13 = vmul.f32 %v7999_v53, %v9983_v37 }
0x17ae   :  { %v8001_v18 = vpop.eup %8000  ;;  %7353 = vmatpush3.bf16.msra.mxu0 %v4290_v27  ;;  %v4456_v52 = vsel %vm456_vm1, %v4433_v20, 0 }
0x17af   :  { %7610 = vmatprep.subr.msk.bf16.mxu0 %vm456_vm1, %v4433_v20  ;;  %v3956_v21 = vmul.f32 %v8001_v18, %v10026_v17  ;;  %v3962_v55 = vpack.c.bf16 %v3958_v63, %v3957_v13  ;;  %v8003_v11 = vpop.eup %8002 }
0x17b0   :  { %v4279_v10 = vmul.f32 %v8003_v11, %v10024_v29 }
0x17b1   :  { %v3961_v39 = vpack.c.bf16 %v3956_v21, %v3955_v6  ;;  %v4431_v19 = vpop.permute.xlu1 %4430 }
0x17b2   :  { %v8005_v49 = vpop.eup %8004  ;;  %v4453_v29 = vsel %vm456_vm1, %v4431_v19, 0 }
0x17b3   :  { %7326 = vmatprep.mubr.msk.bf16.mxu0 %vm546_vm2, %v3961_v39  ;;  %v4277_v44 = vmul.f32 %v8005_v49, %v10030_v22 }
0x17b4   :  { %7327 = vmatmul.mubr.msk.bf16.gmra.mxu0 %vm546_vm2, %v3962_v55 }
0x17b6   :  { %v8007_v38 = vpop.eup %8006 }
0x17b7   :  { %v8009_v47 = vpop.eup %8008  ;;  %v4280_v24 = vmul.f32 %v8007_v38, %v10036_v40 }
0x17b8   :  { %v4278_v17 = vmul.f32 %v8009_v47, %v10038_v54 }
0x17b9   :  { %v4286_v56 = vpack.c.bf16 %v4280_v24, %v4279_v10 }
0x17ba   :  { %v4285_v37 = vpack.c.bf16 %v4278_v17, %v4277_v44 }
0x17bc   :  { %7354 = vmatprep.mubr.msk.bf16.mxu0 %vm546_vm2, %v4285_v37 }
0x17bd   :  { %7355 = vmatmul.mubr.msk.bf16.vlgmr.msra.gmra.mxu0 %vm546_vm2, %v4286_v56 }
0x17be   :  { %7363 = vmatpush3.bf16.xpose.msra.mxu0 %v4456_v52 }
0x17bf   :  { %7611 = vmatprep.subr.msk.bf16.mxu0 %vm456_vm1, %v4431_v19 }
0x17c6   :  { %7365 = vmatpush3.bf16.xpose.msra.mxu0 %v4453_v29 }
0x17dd   :  { %v4265_v40 = vpop.xlane.xlu0 %4264 }
0x17e1   :  { %v4259_v36 = vpop.xlane.xlu1 %4258  ;;  %v4262_v22 = vpop.xlane.xlu0 %4261 }
0x17e2   :  { %8010 = vrcp.f32 %v4259_v36 }
0x17e3   :  { %8012 = vrcp.f32 %v4262_v22 }
0x17e4   :  { %8014 = vrcp.f32 %v4265_v40 }
0x17e5   :  { %v4268_v54 = vpop.xlane.xlu1 %4267  ;;  %v4429_v23 = vpop.permute.xlu0 %4428 }
0x17e6   :  { %8016 = vrcp.f32 %v4268_v54  ;;  %7612 = vmatprep.subr.msk.bf16.mxu0 %vm456_vm1, %v4429_v23  ;;  %v4450_v42 = vsel %vm456_vm1, %v4429_v23, 0 }
0x17e7   :  { %7367 = vmatpush3.bf16.xpose.msra.mxu0 %v4450_v42 }
0x17e9   :  { %v4427_v9 = vpop.permute.xlu1 %4426  ;;  %v4419_v27 = vpop.permute.xlu0 %4418 }
0x17ea   :  { %7613 = vmatprep.subr.msk.bf16.mxu0 %vm456_vm1, %v4427_v9  ;;  %v4447_v62 = vsel %vm456_vm1, %v4427_v9, 0 }
0x17ed   :  { %v4421_v16 = vpop.permute.xlu1 %4420 }
0x17ef   :  { %v8011_v33 = vpop.eup %8010  ;;  %7369 = vmatpush3.bf16.xpose.msra.mxu0 %v4447_v62 }
0x17f0   :  { %v8013_v41 = vpop.eup %8012  ;;  %v4281_v2 = vmul.f32 %v8011_v33, %v10056_v3  ;;  %v4423_v3 = vpop.permute.xlu0 %4422 }
0x17f1   :  { %v8015_v12 = vpop.eup %8014  ;;  %v4425_v4 = vpop.permute.xlu1 %4424  ;;  %v4282_v25 = vmul.f32 %v8013_v41, %v10060_v50 }
0x17f2   :  { %v4283_v32 = vmul.f32 %v8015_v12, %v10054_v28 }
0x17f3   :  { %v8017_v57 = vpop.eup %8016  ;;  %v4287_v8 = vpack.c.bf16 %v4282_v25, %v4281_v2 }
0x17f4   :  { %v4284_v61 = vmul.f32 %v8017_v57, %v10064_v60 }
0x17f5   :  { %7358 = vmatprep.mubr.msk.bf16.mxu0 %vm546_vm2, %v4287_v8  ;;  %v4622_v30 = vpop.permute.xlu1 %4621 }
0x17f6   :  { %7378 = vmatprep.subr.bf16.mxu1 %v4622_v30  ;;  %v4288_v14 = vpack.c.bf16 %v4284_v61, %v4283_v32 }
0x17f7   :  { %7379 = vmatpush3.bf16.msra.mxu1 %v4622_v30 }
0x17f8   :  { %7359 = vmatmul.mubr.msk.bf16.gmra.mxu0 %vm546_vm2, %v4288_v14 }
0x17f9   :  { %7370 = vmatprep.mubr.msk.bf16.mxu0 %vm456_vm1, %v4419_v27 }
0x1800   :  { %7371 = vmatmul.mubr.msk.bf16.vlgmr.msra.gmra.mxu0 %vm456_vm1, %v4421_v16 }
0x1801   :  { %7374 = vmatprep.mubr.msk.bf16.mxu0 %vm456_vm1, %v4423_v3 }
0x1808   :  { %7375 = vmatmul.mubr.msk.bf16.gmra.mxu0 %vm456_vm1, %v4425_v4 }
0x1834   :  { %v7292_v28 = vpop.f32.mrf.mxu0 }
0x1835   :  { %3760 = vst.msk [vmem:[#allocation2 + $0x10] sm:$0xff] %vm456_vm1, %v7292_v28 }
0x1836   :  { %v3727_v50 = vpop.f32.mrf.mxu0 }
0x1837   :  { %3758 = vst.msk [vmem:[#allocation2] sm:$0xff] %vm456_vm1, %v3727_v50 }
0x1838   :  { %v7293_v60 = vpop.f32.mrf.mxu0 }
0x1839   :  { %3761 = vst.msk [vmem:[#allocation2 + $0x18] sm:$0xff] %vm456_vm1, %v7293_v60 }
0x183a   :  { %v3730_v53 = vpop.f32.mrf.mxu0 }
0x183b   :  { %3759 = vst.msk [vmem:[#allocation2 + $0x8] sm:$0xff] %vm456_vm1, %v3730_v53 }
0x1840   :  { %v7296_v18 = vpop.f32.mrf.mxu0 }
0x1841   :  { %3764 = vst.msk [vmem:[#allocation2 + $0x30] sm:$0xff] %vm456_vm1, %v7296_v18 }
0x1842   :  { %v3743_v20 = vpop.f32.mrf.mxu0 }
0x1843   :  { %3762 = vst.msk [vmem:[#allocation2 + $0x20] sm:$0xff] %vm456_vm1, %v3743_v20 }
0x1844   :  { %v7297_v63 = vpop.f32.mrf.mxu0 }
0x1845   :  { %3765 = vst.msk [vmem:[#allocation2 + $0x38] sm:$0xff] %vm456_vm1, %v7297_v63 }
0x1846   :  { %v3746_v6 = vpop.f32.mrf.mxu0 }
0x1847   :  { %3763 = vst.msk [vmem:[#allocation2 + $0x28] sm:$0xff] %vm456_vm1, %v3746_v6 }
0x1848   :  { %v10156_v21 = vpop.f32.mrf.mxu0 }
0x184a   :  { %v10158_v13 = vpop.f32.mrf.mxu0 }
0x184c   :  { %v10160_v39 = vpop.f32.mrf.mxu0 }
0x184e   :  { %v10162_v55 = vpop.f32.mrf.mxu0 }
0x1874   :  { %v10164_v11 = vpop.f32.mrf.mxu0 }
0x1876   :  { %v10166_v49 = vpop.f32.mrf.mxu0 }
0x1878   :  { %v10168_v38 = vpop.f32.mrf.mxu0 }
0x187a   :  { %v10170_v47 = vpop.f32.mrf.mxu0 }
0x187d   :  { %v10172_v10 = vpop.f32.mrf.mxu0 }
0x187f   :  { %v10174_v24 = vpop.f32.mrf.mxu0 }
0x1881   :  { %v10176_v44 = vpop.f32.mrf.mxu0 }
0x1883   :  { %v10178_v17 = vpop.f32.mrf.mxu0 }
0x18b8   :  { %v10180_v56 = vpop.f32.mrf.mxu0 }
0x18ba   :  { %v10182_v37 = vpop.f32.mrf.mxu0 }
0x18bc   :  { %v10184_v52 = vpop.f32.mrf.mxu0 }
0x18be   :  { %v10186_v19 = vpop.f32.mrf.mxu0 }
0x18c0   :  { %v7372_v29 = vpop.f32.mrf.mxu0 }
0x18c1   :  { %v4529_v40 = vsel %vm546_vm2, %v7372_v29, -inf }
0x18c2   :  { %4530 = vmax.xlane.f32.xlu0 %v4529_v40  ;;  %v4492_v36 = vpop.f32.mrf.mxu0 }
0x18c3   :  { %v4523_v54 = vsel %vm546_vm2, %v4492_v36, -inf }
0x18c4   :  { %v7373_v22 = vpop.f32.mrf.mxu0 }
0x18c5   :  { %v4532_v16 = vsel %vm546_vm2, %v7373_v22, -inf }
0x18c6   :  { %4524 = vmax.xlane.f32.xlu0 %v4523_v54  ;;  %v4495_v23 = vpop.f32.mrf.mxu0 }
0x18c7   :  { %v4526_v42 = vsel %vm546_vm2, %v4495_v23, -inf }
0x18c8   :  { %4527 = vmax.xlane.f32.xlu1 %v4526_v42  ;;  %v7376_v9 = vpop.f32.mrf.mxu0 }
0x18c9   :  { %v4541_v62 = vsel %vm546_vm2, %v7376_v9, -inf }
0x18ca   :  { %4533 = vmax.xlane.f32.xlu0 %v4532_v16  ;;  %v4508_v33 = vpop.f32.mrf.mxu0 }
0x18cb   :  { %v4535_v4 = vsel %vm546_vm2, %v4508_v33, -inf }
0x18cc   :  { %4542 = vmax.xlane.f32.xlu1 %v4541_v62  ;;  %v7377_v41 = vpop.f32.mrf.mxu0 }
0x18cd   :  { %v4544_v2 = vsel %vm546_vm2, %v7377_v41, -inf }
0x18ce   :  { %4545 = vmax.xlane.f32.xlu0 %v4544_v2  ;;  %v4511_v12 = vpop.f32.mrf.mxu0 }
0x18cf   :  { %v4538_v25 = vsel %vm546_vm2, %v4511_v12, -inf }
0x18d0   :  { %4536 = vmax.xlane.f32.xlu1 %v4535_v4 }
0x18d2   :  { %4539 = vmax.xlane.f32.xlu0 %v4538_v25 }
0x18e1   :  { %4617 = vrot.lane.b32.xlu1 %v9687_v31, %s8325_s21 }
0x18e8   :  { %4619 = vrot.lane.b32.xlu0 %v9680_v59, %s8325_s21 }
0x194b   :  { %v4531_v57 = vpop.xlane.xlu0 %4530 }
0x194c   :  { %v4549_v8 = vsub.f32 %v7372_v29, %v4531_v57 }
0x194e   :  { %v4559_v32 = vmul.f32 1.442695, %v4549_v8 }
0x194f   :  { %v4525_v61 = vpop.xlane.xlu0 %4524 }
0x1950   :  { %8018 = vpow2.f32 %v4559_v32  ;;  %v4547_v30 = vsub.f32 %v4492_v36, %v4525_v61 }
0x1951   :  { %v4528_v14 = vpop.xlane.xlu1 %4527 }
0x1952   :  { %v4555_v27 = vmul.f32 1.442695, %v4547_v30  ;;  %v4548_v3 = vsub.f32 %v4495_v23, %v4528_v14 }
0x1953   :  { %v4534_v28 = vpop.xlane.xlu0 %4533 }
0x1954   :  { %8020 = vpow2.f32 %v4555_v27  ;;  %v4550_v50 = vsub.f32 %v7373_v22, %v4534_v28  ;;  %v4557_v53 = vmul.f32 1.442695, %v4548_v3 }
0x1955   :  { %v4543_v60 = vpop.xlane.xlu1 %4542 }
0x1956   :  { %v4561_v18 = vmul.f32 1.442695, %v4550_v50  ;;  %v4553_v2 = vsub.f32 %v7376_v9, %v4543_v60 }
0x1957   :  { %v4546_v20 = vpop.xlane.xlu0 %4545 }
0x1958   :  { %8022 = vpow2.f32 %v4561_v18  ;;  %v4554_v4 = vsub.f32 %v7377_v41, %v4546_v20  ;;  %v4567_v57 = vmul.f32 1.442695, %v4553_v2 }
0x1959   :  { %8024 = vpow2.f32 %v4557_v53  ;;  %v4537_v31 = vpop.xlane.xlu1 %4536 }
0x195a   :  { %v4551_v62 = vsub.f32 %v4508_v33, %v4537_v31  ;;  %v4569_v8 = vmul.f32 1.442695, %v4554_v4 }
0x195b   :  { %v4540_v59 = vpop.xlane.xlu0 %4539 }
0x195c   :  { %v4563_v25 = vmul.f32 1.442695, %v4551_v62  ;;  %v4552_v32 = vsub.f32 %v4511_v12, %v4540_v59 }
0x195d   :  { %v10200_v63 = vpop.eup %8018  ;;  %v4618_v36 = vpop.permute.xlu1 %4617 }
0x195e   :  { %v4577_v6 = vsel %vm546_vm2, %v10200_v63, 0.0  ;;  %8026 = vpow2.f32 %v4563_v25  ;;  %v4565_v61 = vmul.f32 1.442695, %v4552_v32 }
0x195f   :  { %4578 = vadd.xlane.f32.xlu1 %v4577_v6  ;;  %v4620_v29 = vpop.permute.xlu0 %4619  ;;  %8028 = vpow2.f32 %v4567_v57 }
0x1960   :  { %7380 = vmatprep.subr.bf16.mxu1 %v4620_v29  ;;  %8030 = vpow2.f32 %v4569_v8 }
0x1961   :  { %v8021_v40 = vpop.eup %8020  ;;  %7381 = vmatpush3.bf16.msra.mxu1 %v4620_v29  ;;  %8032 = vpow2.f32 %v4565_v61 }
0x1962   :  { %7382 = vmatprep.subr.bf16.mxu1 %v4618_v36  ;;  %v4571_v22 = vsel %vm546_vm2, %v8021_v40, 0.0 }
0x1963   :  { %4572 = vadd.xlane.f32.xlu1 %v4571_v22 }
0x1965   :  { %v8023_v54 = vpop.eup %8022  ;;  %7383 = vmatpush3.bf16.msra.mxu1 %v4618_v36 }
0x1966   :  { %v4580_v23 = vsel %vm546_vm2, %v8023_v54, 0.0  ;;  %v8025_v42 = vpop.eup %8024 }
0x1967   :  { %4581 = vadd.xlane.f32.xlu0 %v4580_v23  ;;  %v4574_v16 = vsel %vm546_vm2, %v8025_v42, 0.0 }
0x196b   :  { %4575 = vadd.xlane.f32.xlu0 %v4574_v16  ;;  %v10213_v30 = vpop.eup %8026 }
0x196c   :  { %v10215_v14 = vpop.eup %8028  ;;  %v4583_v27 = vsel %vm546_vm2, %v10213_v30, 0.0 }
0x196d   :  { %v4589_v9 = vsel %vm546_vm2, %v10215_v14, 0.0 }
0x1974   :  { %4754 = vrot.lane.b32.xlu1 %v9831_v15, %s8316_s11 }
0x1978   :  { %4752 = vrot.lane.b32.xlu1 %v9834_v45, %s8316_s11 }
0x1981   :  { %4615 = vrot.lane.b32.xlu0 %v9665_v1, %s8325_s21  ;;  %v10219_v1 = vpop.eup %8030 }
0x1982   :  { %v4592_v33 = vsel %vm546_vm2, %v10219_v1, 0.0  ;;  %v10225_v41 = vpop.eup %8032 }
0x1983   :  { %v4586_v12 = vsel %vm546_vm2, %v10225_v41, 0.0 }
0x199c   :  { %4584 = vadd.xlane.f32.xlu1 %v4583_v27 }
0x19a0   :  { %4590 = vadd.xlane.f32.xlu0 %v4589_v9  ;;  %4593 = vadd.xlane.f32.xlu1 %v4592_v33 }
0x19a4   :  { %4587 = vadd.xlane.f32.xlu0 %v4586_v12 }
0x19b1   :  { %4748 = vrot.lane.b32.xlu1 %v9826_v0, %s8316_s11 }
0x19b5   :  { %4943 = vrot.lane.b32.xlu1 %v9831_v15, %s8308_s30 }
0x19ba   :  { %4750 = vrot.lane.b32.xlu0 %v9823_v51, %s8316_s11 }
0x19e8   :  { %v4579_v3 = vpop.xlane.xlu1 %4578 }
0x19ec   :  { %v4573_v28 = vpop.xlane.xlu1 %4572 }
0x19f0   :  { %v4582_v50 = vpop.xlane.xlu0 %4581  ;;  %v4755_v18 = vpop.permute.xlu1 %4754 }
0x19f1   :  { %8034 = vrcp.f32 %v4582_v50  ;;  %v4778_v2 = vsel %vm456_vm1, %v4755_v18, 0 }
0x19f2   :  { %8036 = vrcp.f32 %v4573_v28 }
0x19f3   :  { %8038 = vrcp.f32 %v4579_v3 }
0x19f4   :  { %v4576_v60 = vpop.xlane.xlu0 %4575  ;;  %v4753_v4 = vpop.permute.xlu1 %4752 }
0x19f5   :  { %8040 = vrcp.f32 %v4576_v60  ;;  %v4775_v25 = vsel %vm456_vm1, %v4753_v4, 0 }
0x19f8   :  { %v4616_v53 = vpop.permute.xlu0 %4615 }
0x19f9   :  { %7384 = vmatprep.subr.bf16.mxu1 %v4616_v53 }
0x19fa   :  { %7385 = vmatpush3.bf16.msra.mxu1 %v4616_v53 }
0x19fb   :  { %7614 = vmatprep.subr.msk.bf16.mxu1 %vm456_vm1, %v4755_v18 }
0x19fe   :  { %v8035_v20 = vpop.eup %8034 }
0x19ff   :  { %v8037_v31 = vpop.eup %8036  ;;  %v4606_v29 = vmul.f32 %v8035_v20, %v8023_v54 }
0x1a00   :  { %v8039_v59 = vpop.eup %8038  ;;  %v4603_v36 = vmul.f32 %v8037_v31, %v8021_v40 }
0x1a01   :  { %v4605_v23 = vmul.f32 %v8039_v59, %v10200_v63 }
0x1a02   :  { %v8041_v6 = vpop.eup %8040 }
0x1a03   :  { %v4604_v22 = vmul.f32 %v8041_v6, %v8025_v42  ;;  %v4612_v62 = vpack.c.bf16 %v4606_v29, %v4605_v23 }
0x1a05   :  { %v4611_v16 = vpack.c.bf16 %v4604_v22, %v4603_v36 }
0x1a07   :  { %7386 = vmatprep.mubr.msk.bf16.mxu1 %vm546_vm2, %v4611_v16 }
0x1a08   :  { %7387 = vmatmul.mubr.msk.bf16.vlgmr.msra.gmra.mxu1 %vm546_vm2, %v4612_v62 }
0x1a09   :  { %7395 = vmatpush3.bf16.xpose.msra.mxu1 %v4778_v2 }
0x1a0a   :  { %7615 = vmatprep.subr.msk.bf16.mxu1 %vm456_vm1, %v4753_v4 }
0x1a11   :  { %7397 = vmatpush3.bf16.xpose.msra.mxu1 %v4775_v25 }
0x1a25   :  { %v4585_v54 = vpop.xlane.xlu1 %4584 }
0x1a29   :  { %v4591_v40 = vpop.xlane.xlu0 %4590  ;;  %v4594_v42 = vpop.xlane.xlu1 %4593 }
0x1a2a   :  { %8042 = vrcp.f32 %v4591_v40 }
0x1a2b   :  { %8044 = vrcp.f32 %v4594_v42 }
0x1a2c   :  { %8046 = vrcp.f32 %v4585_v54 }
0x1a2d   :  { %v4588_v63 = vpop.xlane.xlu0 %4587  ;;  %v4749_v57 = vpop.permute.xlu1 %4748 }
0x1a2e   :  { %8048 = vrcp.f32 %v4588_v63  ;;  %v4769_v12 = vsel %vm456_vm1, %v4749_v57, 0 }
0x1a31   :  { %v4751_v8 = vpop.permute.xlu0 %4750  ;;  %v4944_v32 = vpop.permute.xlu1 %4943 }
0x1a32   :  { %7616 = vmatprep.subr.msk.bf16.mxu1 %vm456_vm1, %v4751_v8  ;;  %7410 = vmatprep.subr.bf16.mxu0 %v4944_v32  ;;  %v4772_v61 = vsel %vm456_vm1, %v4751_v8, 0 }
0x1a33   :  { %7399 = vmatpush3.bf16.xpose.msra.mxu1 %v4772_v61  ;;  %7411 = vmatpush3.bf16.msra.mxu0 %v4944_v32 }
0x1a34   :  { %7617 = vmatprep.subr.msk.bf16.mxu1 %vm456_vm1, %v4749_v57 }
0x1a37   :  { %v8043_v27 = vpop.eup %8042 }
0x1a38   :  { %v8045_v9 = vpop.eup %8044  ;;  %v4609_v28 = vmul.f32 %v8043_v27, %v10215_v14 }
0x1a39   :  { %v8047_v33 = vpop.eup %8046  ;;  %v4610_v50 = vmul.f32 %v8045_v9, %v10219_v1 }
0x1a3a   :  { %v4607_v60 = vmul.f32 %v8047_v33, %v10213_v30 }
0x1a3b   :  { %v8049_v3 = vpop.eup %8048  ;;  %7401 = vmatpush3.bf16.xpose.msra.mxu1 %v4769_v12  ;;  %v4614_v20 = vpack.c.bf16 %v4610_v50, %v4609_v28 }
0x1a3c   :  { %v4608_v53 = vmul.f32 %v8049_v3, %v10225_v41 }
0x1a3e   :  { %v4613_v18 = vpack.c.bf16 %v4608_v53, %v4607_v60 }
0x1a40   :  { %7390 = vmatprep.mubr.msk.bf16.mxu1 %vm546_vm2, %v4613_v18 }
0x1a41   :  { %7391 = vmatmul.mubr.msk.bf16.gmra.mxu1 %vm546_vm2, %v4614_v20 }
0x1a42   :  { %7402 = vmatprep.mubr.msk.bf16.mxu1 %vm456_vm1, %v9826_v0 }
0x1a49   :  { %7403 = vmatmul.mubr.msk.bf16.vlgmr.msra.gmra.mxu1 %vm456_vm1, %v9823_v51 }
0x1a4a   :  { %7406 = vmatprep.mubr.msk.bf16.mxu1 %vm456_vm1, %v9834_v45 }
0x1a51   :  { %7407 = vmatmul.mubr.msk.bf16.gmra.mxu1 %vm456_vm1, %v9831_v15 }
0x1ac8   :  { %v10260_v30 = vpop.f32.mrf.mxu1 }
0x1aca   :  { %v10262_v14 = vpop.f32.mrf.mxu1 }
0x1acc   :  { %v10264_v1 = vpop.f32.mrf.mxu1 }
0x1ace   :  { %v10266_v41 = vpop.f32.mrf.mxu1 }
0x1b01   :  { %v10268_v31 = vpop.f32.mrf.mxu1 }
0x1b03   :  { %v10270_v59 = vpop.f32.mrf.mxu1 }
0x1b05   :  { %v10272_v6 = vpop.f32.mrf.mxu1 }
0x1b07   :  { %v10274_v29 = vpop.f32.mrf.mxu1 }
0x1b09   :  { %v7404_v36 = vpop.f32.mrf.mxu1 }
0x1b0a   :  { %v4851_v22 = vsel %vm546_vm2, %v7404_v36, -inf }
0x1b0b   :  { %4852 = vmax.xlane.f32.xlu0 %v4851_v22  ;;  %v4814_v23 = vpop.f32.mrf.mxu1 }
0x1b0c   :  { %v4845_v62 = vsel %vm546_vm2, %v4814_v23, -inf }
0x1b0d   :  { %v7405_v16 = vpop.f32.mrf.mxu1 }
0x1b0e   :  { %v4854_v54 = vsel %vm546_vm2, %v7405_v16, -inf }
0x1b0f   :  { %4846 = vmax.xlane.f32.xlu0 %v4845_v62  ;;  %v4817_v2 = vpop.f32.mrf.mxu1 }
0x1b10   :  { %v4848_v4 = vsel %vm546_vm2, %v4817_v2, -inf }
0x1b11   :  { %4849 = vmax.xlane.f32.xlu1 %v4848_v4  ;;  %v7408_v25 = vpop.f32.mrf.mxu1 }
0x1b12   :  { %v4863_v42 = vsel %vm546_vm2, %v7408_v25, -inf }
0x1b13   :  { %4855 = vmax.xlane.f32.xlu0 %v4854_v54  ;;  %v4830_v40 = vpop.f32.mrf.mxu1 }
0x1b14   :  { %v4857_v32 = vsel %vm546_vm2, %v4830_v40, -inf }
0x1b15   :  { %4864 = vmax.xlane.f32.xlu1 %v4863_v42  ;;  %v7409_v63 = vpop.f32.mrf.mxu1 }
0x1b16   :  { %v4866_v57 = vsel %vm546_vm2, %v7409_v63, -inf }
0x1b17   :  { %4867 = vmax.xlane.f32.xlu0 %v4866_v57  ;;  %v4833_v8 = vpop.f32.mrf.mxu1 }
0x1b18   :  { %v4860_v61 = vsel %vm546_vm2, %v4833_v8, -inf }
0x1b19   :  { %4858 = vmax.xlane.f32.xlu1 %v4857_v32 }
0x1b1b   :  { %4861 = vmax.xlane.f32.xlu0 %v4860_v61 }
0x1b2a   :  { %4939 = vrot.lane.b32.xlu1 %v9823_v51, %s8308_s30 }
0x1b31   :  { %4941 = vrot.lane.b32.xlu0 %v9834_v45, %s8308_s30 }
0x1b94   :  { %v4853_v27 = vpop.xlane.xlu0 %4852 }
0x1b95   :  { %v4871_v9 = vsub.f32 %v7404_v36, %v4853_v27 }
0x1b97   :  { %v4881_v33 = vmul.f32 1.442695, %v4871_v9 }
0x1b98   :  { %v4847_v12 = vpop.xlane.xlu0 %4846 }
0x1b99   :  { %8050 = vpow2.f32 %v4881_v33  ;;  %v4869_v3 = vsub.f32 %v4814_v23, %v4847_v12 }
0x1b9a   :  { %v4850_v28 = vpop.xlane.xlu1 %4849 }
0x1b9b   :  { %v4877_v50 = vmul.f32 1.442695, %v4869_v3  ;;  %v4870_v60 = vsub.f32 %v4817_v2, %v4850_v28 }
0x1b9c   :  { %v4856_v53 = vpop.xlane.xlu0 %4855 }
0x1b9d   :  { %8052 = vpow2.f32 %v4877_v50  ;;  %v4872_v18 = vsub.f32 %v7405_v16, %v4856_v53  ;;  %v4879_v22 = vmul.f32 1.442695, %v4870_v60 }
0x1b9e   :  { %v4865_v20 = vpop.xlane.xlu1 %4864 }
0x1b9f   :  { %v4883_v62 = vmul.f32 1.442695, %v4872_v18  ;;  %v4875_v3 = vsub.f32 %v7408_v25, %v4865_v20 }
0x1ba0   :  { %v4868_v4 = vpop.xlane.xlu0 %4867 }
0x1ba1   :  { %8054 = vpow2.f32 %v4883_v62  ;;  %v4876_v28 = vsub.f32 %v7409_v63, %v4868_v4  ;;  %v4889_v60 = vmul.f32 1.442695, %v4875_v3 }
0x1ba2   :  { %8056 = vpow2.f32 %v4879_v22  ;;  %v4859_v54 = vpop.xlane.xlu1 %4858 }
0x1ba3   :  { %v4873_v12 = vsub.f32 %v4830_v40, %v4859_v54  ;;  %v4891_v53 = vmul.f32 1.442695, %v4876_v28 }
0x1ba4   :  { %v4862_v42 = vpop.xlane.xlu0 %4861 }
0x1ba5   :  { %v4885_v50 = vmul.f32 1.442695, %v4873_v12  ;;  %v4874_v18 = vsub.f32 %v4833_v8, %v4862_v42 }
0x1ba6   :  { %v10288_v57 = vpop.eup %8050  ;;  %v4940_v32 = vpop.permute.xlu1 %4939 }
0x1ba7   :  { %v4899_v36 = vsel %vm546_vm2, %v10288_v57, 0.0  ;;  %8058 = vpow2.f32 %v4885_v50  ;;  %v4887_v22 = vmul.f32 1.442695, %v4874_v18 }
0x1ba8   :  { %4900 = vadd.xlane.f32.xlu1 %v4899_v36  ;;  %v4942_v23 = vpop.permute.xlu0 %4941  ;;  %8060 = vpow2.f32 %v4889_v60 }
0x1ba9   :  { %7412 = vmatprep.subr.bf16.mxu0 %v4942_v23  ;;  %8062 = vpow2.f32 %v4891_v53 }
0x1baa   :  { %v10292_v2 = vpop.eup %8052  ;;  %7413 = vmatpush3.bf16.msra.mxu0 %v4942_v23  ;;  %8064 = vpow2.f32 %v4887_v22 }
0x1bab   :  { %7414 = vmatprep.subr.bf16.mxu0 %v4940_v32  ;;  %v4893_v16 = vsel %vm546_vm2, %v10292_v2, 0.0 }
0x1bac   :  { %4894 = vadd.xlane.f32.xlu1 %v4893_v16 }
0x1bae   :  { %v8055_v61 = vpop.eup %8054  ;;  %7415 = vmatpush3.bf16.msra.mxu0 %v4940_v32 }
0x1baf   :  { %v4902_v27 = vsel %vm546_vm2, %v8055_v61, 0.0  ;;  %v8057_v9 = vpop.eup %8056 }
0x1bb0   :  { %4903 = vadd.xlane.f32.xlu0 %v4902_v27  ;;  %v4896_v33 = vsel %vm546_vm2, %v8057_v9, 0.0 }
0x1bb4   :  { %4897 = vadd.xlane.f32.xlu0 %v4896_v33  ;;  %v10304_v62 = vpop.eup %8058 }
0x1bb5   :  { %v10306_v36 = vpop.eup %8060  ;;  %v4905_v23 = vsel %vm546_vm2, %v10304_v62, 0.0 }
0x1bb6   :  { %v10310_v32 = vpop.eup %8062  ;;  %v4911_v25 = vsel %vm546_vm2, %v10306_v36, 0.0 }
0x1bb7   :  { %v4914_v40 = vsel %vm546_vm2, %v10310_v32, 0.0  ;;  %v10316_v63 = vpop.eup %8064 }
0x1bb8   :  { %v4908_v8 = vsel %vm546_vm2, %v10316_v63, 0.0 }
0x1bbd   :  { %5048 = vrot.lane.b32.xlu1 %v9831_v15, %s8317_s12 }
0x1bc1   :  { %5046 = vrot.lane.b32.xlu1 %v9834_v45, %s8317_s12 }
0x1bca   :  { %4937 = vrot.lane.b32.xlu0 %v9826_v0, %s8308_s30 }
0x1be5   :  { %4906 = vadd.xlane.f32.xlu1 %v4905_v23 }
0x1be9   :  { %4912 = vadd.xlane.f32.xlu0 %v4911_v25  ;;  %4915 = vadd.xlane.f32.xlu1 %v4914_v40 }
0x1bed   :  { %4909 = vadd.xlane.f32.xlu0 %v4908_v8 }
0x1bfa   :  { %5042 = vrot.lane.b32.xlu1 %v9826_v0, %s8317_s12 }
0x1bfe   :  { %5036 = vrot.lane.b32.xlu1 %v9823_v51, %s8318_s13 }
0x1c02   :  { %5040 = vrot.lane.b32.xlu1 %v9831_v15, %s8318_s13 }
0x1c03   :  { %5044 = vrot.lane.b32.xlu0 %v9823_v51, %s8317_s12 }
0x1c06   :  { %5237 = vrot.lane.b32.xlu1 %v9831_v15, %s8319_s14 }
0x1c07   :  { %5034 = vrot.lane.b32.xlu0 %v9826_v0, %s8318_s13 }
0x1c0b   :  { %5038 = vrot.lane.b32.xlu0 %v9834_v45, %s8318_s13 }
0x1c31   :  { %v4901_v20 = vpop.xlane.xlu1 %4900 }
0x1c35   :  { %v4895_v4 = vpop.xlane.xlu1 %4894 }
0x1c39   :  { %v4904_v54 = vpop.xlane.xlu0 %4903  ;;  %v5049_v27 = vpop.permute.xlu1 %5048 }
0x1c3a   :  { %8066 = vrcp.f32 %v4904_v54  ;;  %v5072_v25 = vsel %vm456_vm1, %v5049_v27, 0 }
0x1c3b   :  { %8068 = vrcp.f32 %v4895_v4 }
0x1c3c   :  { %8070 = vrcp.f32 %v4901_v20 }
0x1c3d   :  { %v4898_v42 = vpop.xlane.xlu0 %4897  ;;  %v5047_v40 = vpop.permute.xlu1 %5046 }
0x1c3e   :  { %8072 = vrcp.f32 %v4898_v42  ;;  %v5069_v8 = vsel %vm456_vm1, %v5047_v40, 0 }
0x1c41   :  { %v4938_v16 = vpop.permute.xlu0 %4937 }
0x1c42   :  { %7416 = vmatprep.subr.bf16.mxu0 %v4938_v16 }
0x1c43   :  { %7417 = vmatpush3.bf16.msra.mxu0 %v4938_v16 }
0x1c44   :  { %7618 = vmatprep.subr.msk.bf16.mxu0 %vm456_vm1, %v5049_v27 }
0x1c47   :  { %v8067_v33 = vpop.eup %8066 }
0x1c48   :  { %v8069_v12 = vpop.eup %8068  ;;  %v4928_v50 = vmul.f32 %v8067_v33, %v8055_v61 }
0x1c49   :  { %v8071_v3 = vpop.eup %8070  ;;  %v4925_v60 = vmul.f32 %v8069_v12, %v10292_v2 }
0x1c4a   :  { %v4927_v18 = vmul.f32 %v8071_v3, %v10288_v57 }
0x1c4b   :  { %v8073_v28 = vpop.eup %8072 }
0x1c4c   :  { %v4926_v53 = vmul.f32 %v8073_v28, %v8057_v9  ;;  %v4934_v23 = vpack.c.bf16 %v4928_v50, %v4927_v18 }
0x1c4e   :  { %v4933_v22 = vpack.c.bf16 %v4926_v53, %v4925_v60 }
0x1c50   :  { %7418 = vmatprep.mubr.msk.bf16.mxu0 %vm546_vm2, %v4933_v22 }
0x1c51   :  { %7419 = vmatmul.mubr.msk.bf16.vlgmr.msra.gmra.mxu0 %vm546_vm2, %v4934_v23 }
0x1c52   :  { %7427 = vmatpush3.bf16.xpose.msra.mxu0 %v5072_v25 }
0x1c53   :  { %7619 = vmatprep.subr.msk.bf16.mxu0 %vm456_vm1, %v5047_v40 }
0x1c5a   :  { %7429 = vmatpush3.bf16.xpose.msra.mxu0 %v5069_v8 }
0x1c6e   :  { %v4907_v61 = vpop.xlane.xlu1 %4906 }
0x1c72   :  { %v4913_v2 = vpop.xlane.xlu0 %4912  ;;  %v4916_v9 = vpop.xlane.xlu1 %4915 }
0x1c73   :  { %8074 = vrcp.f32 %v4913_v2 }
0x1c74   :  { %8076 = vrcp.f32 %v4916_v9 }
0x1c75   :  { %8078 = vrcp.f32 %v4907_v61 }
0x1c76   :  { %v4910_v57 = vpop.xlane.xlu0 %4909  ;;  %v5043_v20 = vpop.permute.xlu1 %5042 }
0x1c77   :  { %8080 = vrcp.f32 %v4910_v57  ;;  %v5063_v28 = vsel %vm456_vm1, %v5043_v20, 0 }
0x1c7a   :  { %v5045_v4 = vpop.permute.xlu0 %5044  ;;  %v5037_v54 = vpop.permute.xlu1 %5036 }
0x1c7b   :  { %7620 = vmatprep.subr.msk.bf16.mxu0 %vm456_vm1, %v5045_v4  ;;  %v5066_v42 = vsel %vm456_vm1, %v5045_v4, 0 }
0x1c7c   :  { %7431 = vmatpush3.bf16.xpose.msra.mxu0 %v5066_v42 }
0x1c7d   :  { %7621 = vmatprep.subr.msk.bf16.mxu0 %vm456_vm1, %v5043_v20 }
0x1c7e   :  { %v5041_v16 = vpop.permute.xlu1 %5040  ;;  %v5035_v40 = vpop.permute.xlu0 %5034 }
0x1c80   :  { %v8075_v27 = vpop.eup %8074 }
0x1c81   :  { %v8077_v33 = vpop.eup %8076  ;;  %v4931_v60 = vmul.f32 %v8075_v27, %v10306_v36 }
0x1c82   :  { %v8079_v12 = vpop.eup %8078  ;;  %v5238_v3 = vpop.permute.xlu1 %5237  ;;  %v4932_v53 = vmul.f32 %v8077_v33, %v10310_v32 }
0x1c83   :  { %7442 = vmatprep.subr.bf16.mxu1 %v5238_v3  ;;  %v4929_v18 = vmul.f32 %v8079_v12, %v10304_v62  ;;  %v5039_v8 = vpop.permute.xlu0 %5038 }
0x1c84   :  { %v8081_v50 = vpop.eup %8080  ;;  %7433 = vmatpush3.bf16.xpose.msra.mxu0 %v5063_v28  ;;  %7443 = vmatpush3.bf16.msra.mxu1 %v5238_v3  ;;  %v4936_v25 = vpack.c.bf16 %v4932_v53, %v4931_v60 }
0x1c85   :  { %v4930_v22 = vmul.f32 %v8081_v50, %v10316_v63 }
0x1c87   :  { %v4935_v23 = vpack.c.bf16 %v4930_v22, %v4929_v18 }
0x1c89   :  { %7422 = vmatprep.mubr.msk.bf16.mxu0 %vm546_vm2, %v4935_v23 }
0x1c8a   :  { %7423 = vmatmul.mubr.msk.bf16.gmra.mxu0 %vm546_vm2, %v4936_v25 }
0x1c8b   :  { %7434 = vmatprep.mubr.msk.bf16.mxu0 %vm456_vm1, %v5035_v40 }
0x1c92   :  { %7435 = vmatmul.mubr.msk.bf16.vlgmr.msra.gmra.mxu0 %vm456_vm1, %v5037_v54 }
0x1c93   :  { %7438 = vmatprep.mubr.msk.bf16.mxu0 %vm456_vm1, %v5039_v8 }
0x1c9a   :  { %7439 = vmatmul.mubr.msk.bf16.gmra.mxu0 %vm456_vm1, %v5041_v16 }
0x1d11   :  { %v7420_v36 = vpop.f32.mrf.mxu0 }
0x1d12   :  { %5028 = vst.msk [vmem:[#allocation2 + $0x50] sm:$0xff] %vm456_vm1, %v7420_v36 }
0x1d13   :  { %v4995_v62 = vpop.f32.mrf.mxu0 }
0x1d14   :  { %5026 = vst.msk [vmem:[#allocation2 + $0x40] sm:$0xff] %vm456_vm1, %v4995_v62 }
0x1d15   :  { %v7421_v32 = vpop.f32.mrf.mxu0 }
0x1d16   :  { %5029 = vst.msk [vmem:[#allocation2 + $0x58] sm:$0xff] %vm456_vm1, %v7421_v32 }
0x1d17   :  { %v4998_v63 = vpop.f32.mrf.mxu0 }
0x1d18   :  { %5027 = vst.msk [vmem:[#allocation2 + $0x48] sm:$0xff] %vm456_vm1, %v4998_v63 }
0x1d4a   :  { %v7424_v61 = vpop.f32.mrf.mxu0 }
0x1d4b   :  { %5032 = vst.msk [vmem:[#allocation2 + $0x70] sm:$0xff] %vm456_vm1, %v7424_v61 }
0x1d4c   :  { %v5011_v2 = vpop.f32.mrf.mxu0 }
0x1d4d   :  { %5030 = vst.msk [vmem:[#allocation2 + $0x60] sm:$0xff] %vm456_vm1, %v5011_v2 }
0x1d4e   :  { %v7425_v9 = vpop.f32.mrf.mxu0 }
0x1d4f   :  { %5033 = vst.msk [vmem:[#allocation2 + $0x78] sm:$0xff] %vm456_vm1, %v7425_v9 }
0x1d50   :  { %v5014_v57 = vpop.f32.mrf.mxu0 }
0x1d51   :  { %5031 = vst.msk [vmem:[#allocation2 + $0x68] sm:$0xff] %vm456_vm1, %v5014_v57 }
0x1d52   :  { %v7436_v20 = vpop.f32.mrf.mxu0 }
0x1d53   :  { %v5145_v4 = vsel %vm546_vm2, %v7436_v20, -inf }
0x1d54   :  { %5146 = vmax.xlane.f32.xlu0 %v5145_v4  ;;  %v5108_v54 = vpop.f32.mrf.mxu0 }
0x1d55   :  { %v5139_v16 = vsel %vm546_vm2, %v5108_v54, -inf }
0x1d56   :  { %v7437_v42 = vpop.f32.mrf.mxu0 }
0x1d57   :  { %v5148_v3 = vsel %vm546_vm2, %v7437_v42, -inf }
0x1d58   :  { %5140 = vmax.xlane.f32.xlu0 %v5139_v16  ;;  %v5111_v27 = vpop.f32.mrf.mxu0 }
0x1d59   :  { %v5142_v33 = vsel %vm546_vm2, %v5111_v27, -inf }
0x1d5a   :  { %5143 = vmax.xlane.f32.xlu1 %v5142_v33  ;;  %v7440_v12 = vpop.f32.mrf.mxu0 }
0x1d5b   :  { %v5157_v50 = vsel %vm546_vm2, %v7440_v12, -inf }
0x1d5c   :  { %5149 = vmax.xlane.f32.xlu0 %v5148_v3  ;;  %v5124_v28 = vpop.f32.mrf.mxu0 }
0x1d5d   :  { %v5151_v22 = vsel %vm546_vm2, %v5124_v28, -inf }
0x1d5e   :  { %5158 = vmax.xlane.f32.xlu1 %v5157_v50  ;;  %v7441_v60 = vpop.f32.mrf.mxu0 }
0x1d5f   :  { %v5160_v53 = vsel %vm546_vm2, %v7441_v60, -inf }
0x1d60   :  { %5161 = vmax.xlane.f32.xlu0 %v5160_v53  ;;  %v5127_v18 = vpop.f32.mrf.mxu0 }
0x1d61   :  { %v5154_v23 = vsel %vm546_vm2, %v5127_v18, -inf }
0x1d62   :  { %5152 = vmax.xlane.f32.xlu1 %v5151_v22 }
0x1d64   :  { %5155 = vmax.xlane.f32.xlu0 %v5154_v23 }
0x1d73   :  { %5233 = vrot.lane.b32.xlu1 %v9823_v51, %s8319_s14 }
0x1d7a   :  { %5235 = vrot.lane.b32.xlu0 %v9834_v45, %s8319_s14 }
0x1ddd   :  { %v5147_v25 = vpop.xlane.xlu0 %5146 }
0x1dde   :  { %v5165_v40 = vsub.f32 %v7436_v20, %v5147_v25 }
0x1de0   :  { %v5175_v8 = vmul.f32 1.442695, %v5165_v40 }
0x1de1   :  { %v5141_v36 = vpop.xlane.xlu0 %5140 }
0x1de2   :  { %8082 = vpow2.f32 %v5175_v8  ;;  %v5163_v62 = vsub.f32 %v5108_v54, %v5141_v36 }
0x1de3   :  { %v5144_v32 = vpop.xlane.xlu1 %5143 }
0x1de4   :  { %v5171_v63 = vmul.f32 1.442695, %v5163_v62  ;;  %v5164_v61 = vsub.f32 %v5111_v27, %v5144_v32 }
0x1de5   :  { %v5150_v2 = vpop.xlane.xlu0 %5149 }
0x1de6   :  { %8084 = vpow2.f32 %v5171_v63  ;;  %v5166_v9 = vsub.f32 %v7437_v42, %v5150_v2  ;;  %v5173_v4 = vmul.f32 1.442695, %v5164_v61 }
0x1de7   :  { %v5159_v57 = vpop.xlane.xlu1 %5158 }
0x1de8   :  { %v5177_v16 = vmul.f32 1.442695, %v5166_v9  ;;  %v5169_v62 = vsub.f32 %v7440_v12, %v5159_v57 }
0x1de9   :  { %v5162_v33 = vpop.xlane.xlu0 %5161 }
0x1dea   :  { %8086 = vpow2.f32 %v5177_v16  ;;  %v5170_v32 = vsub.f32 %v7441_v60, %v5162_v33  ;;  %v5183_v61 = vmul.f32 1.442695, %v5169_v62 }
0x1deb   :  { %8088 = vpow2.f32 %v5173_v4  ;;  %v5153_v3 = vpop.xlane.xlu1 %5152 }
0x1dec   :  { %v5167_v36 = vsub.f32 %v5124_v28, %v5153_v3  ;;  %v5185_v2 = vmul.f32 1.442695, %v5170_v32 }
0x1ded   :  { %v5156_v50 = vpop.xlane.xlu0 %5155 }
0x1dee   :  { %v5179_v63 = vmul.f32 1.442695, %v5167_v36  ;;  %v5168_v9 = vsub.f32 %v5127_v18, %v5156_v50 }
0x1def   :  { %v10376_v53 = vpop.eup %8082  ;;  %v5234_v22 = vpop.permute.xlu1 %5233 }
0x1df0   :  { %v5193_v20 = vsel %vm546_vm2, %v10376_v53, 0.0  ;;  %8090 = vpow2.f32 %v5179_v63  ;;  %v5181_v4 = vmul.f32 1.442695, %v5168_v9 }
0x1df1   :  { %5194 = vadd.xlane.f32.xlu1 %v5193_v20  ;;  %v5236_v54 = vpop.permute.xlu0 %5235  ;;  %8092 = vpow2.f32 %v5183_v61 }
0x1df2   :  { %7444 = vmatprep.subr.bf16.mxu1 %v5236_v54  ;;  %8094 = vpow2.f32 %v5185_v2 }
0x1df3   :  { %v10380_v27 = vpop.eup %8084  ;;  %7445 = vmatpush3.bf16.msra.mxu1 %v5236_v54  ;;  %8096 = vpow2.f32 %v5181_v4 }
0x1df4   :  { %7446 = vmatprep.subr.bf16.mxu1 %v5234_v22  ;;  %v5187_v42 = vsel %vm546_vm2, %v10380_v27, 0.0 }
0x1df5   :  { %5188 = vadd.xlane.f32.xlu1 %v5187_v42 }
0x1df7   :  { %v8087_v23 = vpop.eup %8086  ;;  %7447 = vmatpush3.bf16.msra.mxu1 %v5234_v22 }
0x1df8   :  { %v5196_v25 = vsel %vm546_vm2, %v8087_v23, 0.0  ;;  %v8089_v40 = vpop.eup %8088 }
0x1df9   :  { %5197 = vadd.xlane.f32.xlu0 %v5196_v25  ;;  %v5190_v8 = vsel %vm546_vm2, %v8089_v40, 0.0 }
0x1dfd   :  { %5191 = vadd.xlane.f32.xlu0 %v5190_v8  ;;  %v10392_v16 = vpop.eup %8090 }
0x1dfe   :  { %v10394_v20 = vpop.eup %8092  ;;  %v5199_v54 = vsel %vm546_vm2, %v10392_v16, 0.0 }
0x1dff   :  { %v10398_v22 = vpop.eup %8094  ;;  %v5205_v12 = vsel %vm546_vm2, %v10394_v20, 0.0 }
0x1e00   :  { %v5208_v28 = vsel %vm546_vm2, %v10398_v22, 0.0  ;;  %v10404_v60 = vpop.eup %8096 }
0x1e01   :  { %v5202_v18 = vsel %vm546_vm2, %v10404_v60, 0.0 }
0x1e06   :  { %5374 = vrot.lane.b32.xlu1 %v9831_v15, %s8320_s15 }
0x1e0a   :  { %5372 = vrot.lane.b32.xlu1 %v9834_v45, %s8320_s15 }
0x1e13   :  { %5231 = vrot.lane.b32.xlu0 %v9826_v0, %s8319_s14 }
0x1e2e   :  { %5200 = vadd.xlane.f32.xlu1 %v5199_v54 }
0x1e32   :  { %5206 = vadd.xlane.f32.xlu0 %v5205_v12  ;;  %5209 = vadd.xlane.f32.xlu1 %v5208_v28 }
0x1e36   :  { %5203 = vadd.xlane.f32.xlu0 %v5202_v18 }
0x1e43   :  { %5368 = vrot.lane.b32.xlu1 %v9826_v0, %s8320_s15 }
0x1e47   :  { %5362 = vrot.lane.b32.xlu1 %v9823_v51, %s8321_s16 }
0x1e4b   :  { %5366 = vrot.lane.b32.xlu1 %v9831_v15, %s8321_s16 }
0x1e4c   :  { %5370 = vrot.lane.b32.xlu0 %v9823_v51, %s8320_s15 }
0x1e4f   :  { %5563 = vrot.lane.b32.xlu1 %v9831_v15, %s8322_s17 }
0x1e50   :  { %5360 = vrot.lane.b32.xlu0 %v9826_v0, %s8321_s16 }
0x1e54   :  { %5364 = vrot.lane.b32.xlu0 %v9834_v45, %s8321_s16 }
0x1e7a   :  { %v5195_v57 = vpop.xlane.xlu1 %5194 }
0x1e7e   :  { %v5189_v33 = vpop.xlane.xlu1 %5188 }
0x1e82   :  { %v5198_v3 = vpop.xlane.xlu0 %5197  ;;  %v5375_v25 = vpop.permute.xlu1 %5374 }
0x1e83   :  { %8098 = vrcp.f32 %v5198_v3  ;;  %v5398_v12 = vsel %vm456_vm1, %v5375_v25, 0 }
0x1e84   :  { %8100 = vrcp.f32 %v5189_v33 }
0x1e85   :  { %8102 = vrcp.f32 %v5195_v57 }
0x1e86   :  { %v5192_v50 = vpop.xlane.xlu0 %5191  ;;  %v5373_v28 = vpop.permute.xlu1 %5372 }
0x1e87   :  { %8104 = vrcp.f32 %v5192_v50  ;;  %v5395_v18 = vsel %vm456_vm1, %v5373_v28, 0 }
0x1e8a   :  { %v5232_v42 = vpop.permute.xlu0 %5231 }
0x1e8b   :  { %7448 = vmatprep.subr.bf16.mxu1 %v5232_v42 }
0x1e8c   :  { %7449 = vmatpush3.bf16.msra.mxu1 %v5232_v42 }
0x1e8d   :  { %7622 = vmatprep.subr.msk.bf16.mxu1 %vm456_vm1, %v5375_v25 }
0x1e90   :  { %v8099_v8 = vpop.eup %8098 }
0x1e91   :  { %v8101_v36 = vpop.eup %8100  ;;  %v5222_v63 = vmul.f32 %v8099_v8, %v8087_v23 }
0x1e92   :  { %v8103_v62 = vpop.eup %8102  ;;  %v5219_v61 = vmul.f32 %v8101_v36, %v10380_v27 }
0x1e93   :  { %v5221_v9 = vmul.f32 %v8103_v62, %v10376_v53 }
0x1e94   :  { %v8105_v32 = vpop.eup %8104 }
0x1e95   :  { %v5220_v2 = vmul.f32 %v8105_v32, %v8089_v40  ;;  %v5228_v54 = vpack.c.bf16 %v5222_v63, %v5221_v9 }
0x1e97   :  { %v5227_v4 = vpack.c.bf16 %v5220_v2, %v5219_v61 }
0x1e99   :  { %7450 = vmatprep.mubr.msk.bf16.mxu1 %vm546_vm2, %v5227_v4 }
0x1e9a   :  { %7451 = vmatmul.mubr.msk.bf16.vlgmr.msra.gmra.mxu1 %vm546_vm2, %v5228_v54 }
0x1e9b   :  { %7459 = vmatpush3.bf16.xpose.msra.mxu1 %v5398_v12 }
0x1e9c   :  { %7623 = vmatprep.subr.msk.bf16.mxu1 %vm456_vm1, %v5373_v28 }
0x1ea3   :  { %7461 = vmatpush3.bf16.xpose.msra.mxu1 %v5395_v18 }
0x1eb7   :  { %v5201_v23 = vpop.xlane.xlu1 %5200 }
0x1ebb   :  { %v5207_v27 = vpop.xlane.xlu0 %5206  ;;  %v5210_v40 = vpop.xlane.xlu1 %5209 }
0x1ebc   :  { %8106 = vrcp.f32 %v5207_v27 }
0x1ebd   :  { %8108 = vrcp.f32 %v5210_v40 }
0x1ebe   :  { %8110 = vrcp.f32 %v5201_v23 }
0x1ebf   :  { %v5204_v53 = vpop.xlane.xlu0 %5203  ;;  %v5369_v57 = vpop.permute.xlu1 %5368 }
0x1ec0   :  { %8112 = vrcp.f32 %v5204_v53  ;;  %v5389_v32 = vsel %vm456_vm1, %v5369_v57, 0 }
0x1ec3   :  { %v5371_v33 = vpop.permute.xlu0 %5370  ;;  %v5363_v3 = vpop.permute.xlu1 %5362 }
0x1ec4   :  { %7624 = vmatprep.subr.msk.bf16.mxu1 %vm456_vm1, %v5371_v33  ;;  %v5392_v50 = vsel %vm456_vm1, %v5371_v33, 0 }
0x1ec5   :  { %7463 = vmatpush3.bf16.xpose.msra.mxu1 %v5392_v50 }
0x1ec6   :  { %7625 = vmatprep.subr.msk.bf16.mxu1 %vm456_vm1, %v5369_v57 }
0x1ec7   :  { %v5367_v42 = vpop.permute.xlu1 %5366  ;;  %v5361_v28 = vpop.permute.xlu0 %5360 }
0x1ec9   :  { %v8107_v25 = vpop.eup %8106 }
0x1eca   :  { %v8109_v8 = vpop.eup %8108  ;;  %v5225_v61 = vmul.f32 %v8107_v25, %v10394_v20 }
0x1ecb   :  { %v8111_v36 = vpop.eup %8110  ;;  %v5564_v62 = vpop.permute.xlu1 %5563  ;;  %v5226_v2 = vmul.f32 %v8109_v8, %v10398_v22 }
0x1ecc   :  { %7474 = vmatprep.subr.bf16.mxu0 %v5564_v62  ;;  %v5223_v9 = vmul.f32 %v8111_v36, %v10392_v16  ;;  %v5365_v18 = vpop.permute.xlu0 %5364 }
0x1ecd   :  { %v8113_v63 = vpop.eup %8112  ;;  %7465 = vmatpush3.bf16.xpose.msra.mxu1 %v5389_v32  ;;  %7475 = vmatpush3.bf16.msra.mxu0 %v5564_v62  ;;  %v5230_v12 = vpack.c.bf16 %v5226_v2, %v5225_v61 }
0x1ece   :  { %v5224_v4 = vmul.f32 %v8113_v63, %v10404_v60 }
0x1ed0   :  { %v5229_v54 = vpack.c.bf16 %v5224_v4, %v5223_v9 }
0x1ed2   :  { %7454 = vmatprep.mubr.msk.bf16.mxu1 %vm546_vm2, %v5229_v54 }
0x1ed3   :  { %7455 = vmatmul.mubr.msk.bf16.gmra.mxu1 %vm546_vm2, %v5230_v12 }
0x1ed4   :  { %7466 = vmatprep.mubr.msk.bf16.mxu1 %vm456_vm1, %v5361_v28 }
0x1edb   :  { %7467 = vmatmul.mubr.msk.bf16.vlgmr.msra.gmra.mxu1 %vm456_vm1, %v5363_v3 }
0x1edc   :  { %7470 = vmatprep.mubr.msk.bf16.mxu1 %vm456_vm1, %v5365_v18 }
0x1ee3   :  { %7471 = vmatmul.mubr.msk.bf16.gmra.mxu1 %vm456_vm1, %v5367_v42 }
0x1f5a   :  { %v10444_v20 = vpop.f32.mrf.mxu1 }
0x1f5c   :  { %v10446_v16 = vpop.f32.mrf.mxu1 }
0x1f5e   :  { %v10448_v22 = vpop.f32.mrf.mxu1 }
0x1f60   :  { %v10450_v60 = vpop.f32.mrf.mxu1 }
0x1f93   :  { %v10452_v23 = vpop.f32.mrf.mxu1 }
0x1f94   :  { %10925 = vst [vmem:[#allocation33_spill] sm:$0xff] %v10452_v23 }
0x1f95   :  { %v10454_v27 = vpop.f32.mrf.mxu1 }
0x1f97   :  { %v10456_v40 = vpop.f32.mrf.mxu1 }
0x1f99   :  { %v10458_v53 = vpop.f32.mrf.mxu1 }
0x1f9b   :  { %v7468_v57 = vpop.f32.mrf.mxu1 }
0x1f9c   :  { %v5471_v33 = vsel %vm546_vm2, %v7468_v57, -inf }
0x1f9d   :  { %5472 = vmax.xlane.f32.xlu0 %v5471_v33  ;;  %v5434_v3 = vpop.f32.mrf.mxu1 }
0x1f9e   :  { %v5465_v42 = vsel %vm546_vm2, %v5434_v3, -inf }
0x1f9f   :  { %v7469_v50 = vpop.f32.mrf.mxu1 }
0x1fa0   :  { %v5474_v62 = vsel %vm546_vm2, %v7469_v50, -inf }
0x1fa1   :  { %5466 = vmax.xlane.f32.xlu0 %v5465_v42  ;;  %v5437_v25 = vpop.f32.mrf.mxu1 }
0x1fa2   :  { %v5468_v8 = vsel %vm546_vm2, %v5437_v25, -inf }
0x1fa3   :  { %5469 = vmax.xlane.f32.xlu1 %v5468_v8  ;;  %v7472_v36 = vpop.f32.mrf.mxu1 }
0x1fa4   :  { %v5483_v63 = vsel %vm546_vm2, %v7472_v36, -inf }
0x1fa5   :  { %5475 = vmax.xlane.f32.xlu0 %v5474_v62  ;;  %v5450_v32 = vpop.f32.mrf.mxu1 }
0x1fa6   :  { %v5477_v4 = vsel %vm546_vm2, %v5450_v32, -inf }
0x1fa7   :  { %5484 = vmax.xlane.f32.xlu1 %v5483_v63  ;;  %v7473_v61 = vpop.f32.mrf.mxu1 }
0x1fa8   :  { %v5486_v2 = vsel %vm546_vm2, %v7473_v61, -inf }
0x1fa9   :  { %5487 = vmax.xlane.f32.xlu0 %v5486_v2  ;;  %v5453_v9 = vpop.f32.mrf.mxu1 }
0x1faa   :  { %v5480_v54 = vsel %vm546_vm2, %v5453_v9, -inf }
0x1fab   :  { %5478 = vmax.xlane.f32.xlu1 %v5477_v4 }
0x1fad   :  { %5481 = vmax.xlane.f32.xlu0 %v5480_v54 }
0x1fbc   :  { %5559 = vrot.lane.b32.xlu1 %v9823_v51, %s8322_s17 }
0x1fc3   :  { %5561 = vrot.lane.b32.xlu0 %v9834_v45, %s8322_s17 }
0x2026   :  { %v5473_v12 = vpop.xlane.xlu0 %5472 }
0x2027   :  { %v5491_v28 = vsub.f32 %v7468_v57, %v5473_v12 }
0x2029   :  { %v5501_v18 = vmul.f32 1.442695, %v5491_v28 }
0x202a   :  { %v5467_v33 = vpop.xlane.xlu0 %5466 }
0x202b   :  { %8114 = vpow2.f32 %v5501_v18  ;;  %v5489_v42 = vsub.f32 %v5434_v3, %v5467_v33 }
0x202c   :  { %v5470_v8 = vpop.xlane.xlu1 %5469 }
0x202d   :  { %v5497_v62 = vmul.f32 1.442695, %v5489_v42  ;;  %v5490_v63 = vsub.f32 %v5437_v25, %v5470_v8 }
0x202e   :  { %v5476_v2 = vpop.xlane.xlu0 %5475 }
0x202f   :  { %8116 = vpow2.f32 %v5497_v62  ;;  %v5492_v4 = vsub.f32 %v7469_v50, %v5476_v2  ;;  %v5499_v54 = vmul.f32 1.442695, %v5490_v63 }
0x2030   :  { %v5485_v26 = vpop.xlane.xlu1 %5484 }
0x2031   :  { %v5503_v5 = vmul.f32 1.442695, %v5492_v4  ;;  %v5495_v8 = vsub.f32 %v7472_v36, %v5485_v26 }
0x2032   :  { %v5488_v58 = vpop.xlane.xlu0 %5487 }
0x2033   :  { %8118 = vpow2.f32 %v5503_v5  ;;  %v5496_v62 = vsub.f32 %v7473_v61, %v5488_v58  ;;  %v5509_v2 = vmul.f32 1.442695, %v5495_v8 }
0x2034   :  { %8120 = vpow2.f32 %v5499_v54  ;;  %v5479_v7 = vpop.xlane.xlu1 %5478 }
0x2035   :  { %v5493_v42 = vsub.f32 %v5450_v32, %v5479_v7  ;;  %v5511_v4 = vmul.f32 1.442695, %v5496_v62 }
0x2036   :  { %v5482_v35 = vpop.xlane.xlu0 %5481 }
0x2037   :  { %v5505_v63 = vmul.f32 1.442695, %v5493_v42  ;;  %v5494_v54 = vsub.f32 %v5453_v9, %v5482_v35 }
0x2038   :  { %v10472_v48 = vpop.eup %8114  ;;  %v5560_v12 = vpop.permute.xlu1 %5559 }
0x2039   :  { %v5519_v57 = vsel %vm546_vm2, %v10472_v48, 0.0  ;;  %8122 = vpow2.f32 %v5505_v63 }
0x203a   :  { %5520 = vadd.xlane.f32.xlu1 %v5519_v57  ;;  %v5562_v3 = vpop.permute.xlu0 %5561  ;;  %8124 = vpow2.f32 %v5509_v2  ;;  %v5507_v57 = vmul.f32 1.442695, %v5494_v54 }
0x203b   :  { %7476 = vmatprep.subr.bf16.mxu0 %v5562_v3  ;;  %8126 = vpow2.f32 %v5511_v4 }
0x203c   :  { %v10476_v25 = vpop.eup %8116  ;;  %7477 = vmatpush3.bf16.msra.mxu0 %v5562_v3  ;;  %8128 = vpow2.f32 %v5507_v57 }
0x203d   :  { %7478 = vmatprep.subr.bf16.mxu0 %v5560_v12  ;;  %v5513_v50 = vsel %vm546_vm2, %v10476_v25, 0.0 }
0x203e   :  { %5514 = vadd.xlane.f32.xlu1 %v5513_v50 }
0x2040   :  { %v8119_v5 = vpop.eup %8118  ;;  %7479 = vmatpush3.bf16.msra.mxu0 %v5560_v12 }
0x2041   :  { %v5522_v28 = vsel %vm546_vm2, %v8119_v5, 0.0  ;;  %v8121_v18 = vpop.eup %8120 }
0x2042   :  { %5523 = vadd.xlane.f32.xlu0 %v5522_v28  ;;  %v5516_v33 = vsel %vm546_vm2, %v8121_v18, 0.0 }
0x2046   :  { %5517 = vadd.xlane.f32.xlu0 %v5516_v33  ;;  %v10488_v3 = vpop.eup %8122 }
0x2047   :  { %v10490_v12 = vpop.eup %8124  ;;  %v5525_v50 = vsel %vm546_vm2, %v10488_v3, 0.0 }
0x2048   :  { %v10494_v28 = vpop.eup %8126  ;;  %v5531_v7 = vsel %vm546_vm2, %v10490_v12, 0.0 }
0x2049   :  { %v5534_v35 = vsel %vm546_vm2, %v10494_v28, 0.0  ;;  %v10500_v58 = vpop.eup %8128 }
0x204a   :  { %v5528_v26 = vsel %vm546_vm2, %v10500_v58, 0.0 }
0x204f   :  { %5700 = vrot.lane.b32.xlu1 %v9831_v15, %s8323_s18 }
0x2053   :  { %5698 = vrot.lane.b32.xlu1 %v9834_v45, %s8323_s18 }
0x205c   :  { %5557 = vrot.lane.b32.xlu0 %v9826_v0, %s8322_s17 }
0x2077   :  { %5526 = vadd.xlane.f32.xlu1 %v5525_v50 }
0x207b   :  { %5532 = vadd.xlane.f32.xlu0 %v5531_v7  ;;  %5535 = vadd.xlane.f32.xlu1 %v5534_v35 }
0x207f   :  { %5529 = vadd.xlane.f32.xlu0 %v5528_v26 }
0x208c   :  { %5694 = vrot.lane.b32.xlu1 %v9826_v0, %s8323_s18 }
0x2090   :  { %5688 = vrot.lane.b32.xlu1 %v9823_v51, %s8324_s1 }
0x2094   :  { %5692 = vrot.lane.b32.xlu1 %v9831_v15, %s8324_s1 }
0x2095   :  { %5696 = vrot.lane.b32.xlu0 %v9823_v51, %s8323_s18 }
0x2099   :  { %5686 = vrot.lane.b32.xlu0 %v9826_v0, %s8324_s1 }
0x209d   :  { %5690 = vrot.lane.b32.xlu0 %v9834_v45, %s8324_s1 }
0x20c3   :  { %v5521_v36 = vpop.xlane.xlu1 %5520 }
0x20c7   :  { %v5515_v32 = vpop.xlane.xlu1 %5514 }
0x20cb   :  { %v5524_v61 = vpop.xlane.xlu0 %5523  ;;  %v5701_v42 = vpop.permute.xlu1 %5700 }
0x20cc   :  { %8130 = vrcp.f32 %v5524_v61  ;;  %v5724_v26 = vsel %vm456_vm1, %v5701_v42, 0 }
0x20cd   :  { %8132 = vrcp.f32 %v5515_v32 }
0x20ce   :  { %8134 = vrcp.f32 %v5521_v36 }
0x20cf   :  { %v5518_v9 = vpop.xlane.xlu0 %5517  ;;  %v5699_v36 = vpop.permute.xlu1 %5698 }
0x20d0   :  { %8136 = vrcp.f32 %v5518_v9  ;;  %v5721_v32 = vsel %vm456_vm1, %v5699_v36, 0 }
0x20d3   :  { %v5558_v33 = vpop.permute.xlu0 %5557 }
0x20d4   :  { %7480 = vmatprep.subr.bf16.mxu0 %v5558_v33 }
0x20d5   :  { %7481 = vmatpush3.bf16.msra.mxu0 %v5558_v33 }
0x20d6   :  { %7626 = vmatprep.subr.msk.bf16.mxu0 %vm456_vm1, %v5701_v42 }
0x20d9   :  { %v8131_v8 = vpop.eup %8130 }
0x20da   :  { %v8133_v62 = vpop.eup %8132  ;;  %v5548_v4 = vmul.f32 %v8131_v8, %v8119_v5 }
0x20db   :  { %v8135_v63 = vpop.eup %8134  ;;  %v5545_v54 = vmul.f32 %v8133_v62, %v10476_v25 }
0x20dc   :  { %v5547_v50 = vmul.f32 %v8135_v63, %v10472_v48 }
0x20dd   :  { %v8137_v2 = vpop.eup %8136 }
0x20de   :  { %v5546_v57 = vmul.f32 %v8137_v2, %v8121_v18  ;;  %v5554_v35 = vpack.c.bf16 %v5548_v4, %v5547_v50 }
0x20e0   :  { %v5553_v7 = vpack.c.bf16 %v5546_v57, %v5545_v54 }
0x20e2   :  { %7482 = vmatprep.mubr.msk.bf16.mxu0 %vm546_vm2, %v5553_v7 }
0x20e3   :  { %7483 = vmatmul.mubr.msk.bf16.vlgmr.msra.gmra.mxu0 %vm546_vm2, %v5554_v35 }
0x20e4   :  { %7491 = vmatpush3.bf16.xpose.msra.mxu0 %v5724_v26 }
0x20e5   :  { %7627 = vmatprep.subr.msk.bf16.mxu0 %vm456_vm1, %v5699_v36 }
0x20ec   :  { %7493 = vmatpush3.bf16.xpose.msra.mxu0 %v5721_v32 }
0x2100   :  { %v5527_v5 = vpop.xlane.xlu1 %5526 }
0x2104   :  { %v5533_v25 = vpop.xlane.xlu0 %5532  ;;  %v5536_v18 = vpop.xlane.xlu1 %5535 }
0x2105   :  { %8138 = vrcp.f32 %v5533_v25 }
0x2106   :  { %8140 = vrcp.f32 %v5536_v18 }
0x2107   :  { %8142 = vrcp.f32 %v5527_v5 }
0x2108   :  { %v5530_v48 = vpop.xlane.xlu0 %5529  ;;  %v5695_v33 = vpop.permute.xlu1 %5694 }
0x2109   :  { %8144 = vrcp.f32 %v5530_v48  ;;  %v5715_v63 = vsel %vm456_vm1, %v5695_v33, 0 }
0x210c   :  { %v5697_v61 = vpop.permute.xlu0 %5696  ;;  %v5689_v36 = vpop.permute.xlu1 %5688 }
0x210d   :  { %v5718_v9 = vsel %vm456_vm1, %v5697_v61, 0  ;;  %7628 = vmatprep.subr.msk.bf16.mxu0 %vm456_vm1, %v5697_v61 }
0x210e   :  { %7495 = vmatpush3.bf16.xpose.msra.mxu0 %v5718_v9 }
0x210f   :  { %7629 = vmatprep.subr.msk.bf16.mxu0 %vm456_vm1, %v5695_v33 }
0x2110   :  { %v5687_v26 = vpop.permute.xlu0 %5686 }
0x2112   :  { %v8139_v42 = vpop.eup %8138 }
0x2113   :  { %v8141_v8 = vpop.eup %8140  ;;  %v5551_v4 = vmul.f32 %v8139_v42, %v10490_v12  ;;  %v5693_v12 = vpop.permute.xlu1 %5692 }
0x2114   :  { %v8143_v62 = vpop.eup %8142  ;;  %v5552_v54 = vmul.f32 %v8141_v8, %v10494_v28  ;;  %v5691_v32 = vpop.permute.xlu0 %5690 }
0x2115   :  { %v5549_v57 = vmul.f32 %v8143_v62, %v10488_v3 }
0x2116   :  { %v8145_v2 = vpop.eup %8144  ;;  %7497 = vmatpush3.bf16.xpose.msra.mxu0 %v5715_v63  ;;  %v5556_v35 = vpack.c.bf16 %v5552_v54, %v5551_v4 }
0x2117   :  { %v5550_v50 = vmul.f32 %v8145_v2, %v10500_v58 }
0x2119   :  { %v5555_v7 = vpack.c.bf16 %v5550_v50, %v5549_v57 }
0x211b   :  { %7486 = vmatprep.mubr.msk.bf16.mxu0 %vm546_vm2, %v5555_v7 }
0x211c   :  { %7487 = vmatmul.mubr.msk.bf16.gmra.mxu0 %vm546_vm2, %v5556_v35 }
0x211d   :  { %7498 = vmatprep.mubr.msk.bf16.mxu0 %vm456_vm1, %v5687_v26 }
0x2124   :  { %7499 = vmatmul.mubr.msk.bf16.vlgmr.msra.gmra.mxu0 %vm456_vm1, %v5689_v36 }
0x2125   :  { %7502 = vmatprep.mubr.msk.bf16.mxu0 %vm456_vm1, %v5691_v32 }
0x212c   :  { %7503 = vmatmul.mubr.msk.bf16.gmra.mxu0 %vm456_vm1, %v5693_v12 }
0x21a3   :  { %v10538_v3 = vpop.f32.mrf.mxu0 }
0x21a5   :  { %v10540_v28 = vpop.f32.mrf.mxu0 }
0x21a7   :  { %v10542_v58 = vpop.f32.mrf.mxu0 }
0x21a9   :  { %v10544_v5 = vpop.f32.mrf.mxu0 }
0x21dc   :  { %v10546_v25 = vpop.f32.mrf.mxu0 }
0x21dd   :  { %10926 = vst [vmem:[#allocation34_spill] sm:$0xff] %v10546_v25 }
0x21de   :  { %v10548_v18 = vpop.f32.mrf.mxu0 }
0x21df   :  { %10927 = vst [vmem:[#allocation35_spill] sm:$0xff] %v10548_v18 }
0x21e0   :  { %v10550_v48 = vpop.f32.mrf.mxu0 }
0x21e1   :  { %10928 = vst [vmem:[#allocation36_spill] sm:$0xff] %v10550_v48 }
0x21e2   :  { %v10552_v61 = vpop.f32.mrf.mxu0 }
0x21e3   :  { %10929 = vst [vmem:[#allocation37_spill] sm:$0xff] %v10552_v61 }
0x21e4   :  { %v7500_v9 = vpop.f32.mrf.mxu0 }
0x21e5   :  { %v5797_v63 = vsel %vm546_vm2, %v7500_v9, -inf }
0x21e6   :  { %v5760_v33 = vpop.f32.mrf.mxu0 }
0x21e7   :  { %v5791_v42 = vsel %vm546_vm2, %v5760_v33, -inf }
0x21e8   :  { %5792 = vmax.xlane.f32.xlu0 %v5791_v42  ;;  %v7501_v8 = vpop.f32.mrf.mxu0 }
0x21e9   :  { %v5800_v57 = vsel %vm546_vm2, %v7501_v8, -inf }
0x21ea   :  { %v5763_v62 = vpop.f32.mrf.mxu0 }
0x21eb   :  { %v5794_v2 = vsel %vm546_vm2, %v5763_v62, -inf }
0x21ec   :  { %5798 = vmax.xlane.f32.xlu0 %v5797_v63  ;;  %5795 = vmax.xlane.f32.xlu1 %v5794_v2  ;;  %v7504_v4 = vpop.f32.mrf.mxu0 }
0x21ed   :  { %v5809_v26 = vsel %vm546_vm2, %v7504_v4, -inf }
0x21ee   :  { %v5776_v54 = vpop.f32.mrf.mxu0 }
0x21ef   :  { %v5803_v50 = vsel %vm546_vm2, %v5776_v54, -inf }
0x21f0   :  { %5801 = vmax.xlane.f32.xlu0 %v5800_v57  ;;  %5804 = vmax.xlane.f32.xlu1 %v5803_v50  ;;  %v7505_v7 = vpop.f32.mrf.mxu0 }
0x21f1   :  { %v5812_v32 = vsel %vm546_vm2, %v7505_v7, -inf }
0x21f2   :  { %v5779_v35 = vpop.f32.mrf.mxu0 }
0x21f3   :  { %v5806_v36 = vsel %vm546_vm2, %v5779_v35, -inf }
0x21f4   :  { %5810 = vmax.xlane.f32.xlu1 %v5809_v26  ;;  %5807 = vmax.xlane.f32.xlu0 %v5806_v36 }
0x21f8   :  { %5813 = vmax.xlane.f32.xlu0 %v5812_v32 }
0x2205   :  { %5889 = vrot.lane.b32.xlu1 %v9831_v15, %s8325_s21 }
0x2271   :  { %v5793_v12 = vpop.xlane.xlu0 %5792 }
0x2272   :  { %v5815_v42 = vsub.f32 %v5760_v33, %v5793_v12 }
0x2274   :  { %v5823_v50 = vmul.f32 1.442695, %v5815_v42 }
0x2275   :  { %v5799_v63 = vpop.xlane.xlu0 %5798  ;;  %v5796_v2 = vpop.xlane.xlu1 %5795 }
0x2276   :  { %v5817_v57 = vsub.f32 %v7500_v9, %v5799_v63  ;;  %v5816_v43 = vsub.f32 %v5763_v62, %v5796_v2 }
0x2278   :  { %v5827_v34 = vmul.f32 1.442695, %v5817_v57  ;;  %v5825_v26 = vmul.f32 1.442695, %v5816_v43 }
0x2279   :  { %v5802_v46 = vpop.xlane.xlu0 %5801  ;;  %v5805_v48 = vpop.xlane.xlu1 %5804 }
0x227a   :  { %8146 = vpow2.f32 %v5827_v34  ;;  %v5818_v25 = vsub.f32 %v7501_v8, %v5802_v46  ;;  %v5819_v18 = vsub.f32 %v5776_v54, %v5805_v48 }
0x227b   :  { %8148 = vpow2.f32 %v5823_v50 }
0x227c   :  { %v5829_v36 = vmul.f32 1.442695, %v5818_v25  ;;  %v5831_v61 = vmul.f32 1.442695, %v5819_v18 }
0x227d   :  { %v5808_v32 = vpop.xlane.xlu0 %5807  ;;  %v5811_v23 = vpop.xlane.xlu1 %5810 }
0x227e   :  { %8150 = vpow2.f32 %v5829_v36  ;;  %v5821_v15 = vsub.f32 %v7504_v4, %v5811_v23  ;;  %v5820_v33 = vsub.f32 %v5779_v35, %v5808_v32 }
0x227f   :  { %8152 = vpow2.f32 %v5825_v26 }
0x2280   :  { %v5835_v12 = vmul.f32 1.442695, %v5821_v15  ;;  %v5833_v34 = vmul.f32 1.442695, %v5820_v33 }
0x2281   :  { %v5814_v9 = vpop.xlane.xlu0 %5813  ;;  %v5890_v42 = vpop.permute.xlu1 %5889 }
0x2282   :  { %v5822_v63 = vsub.f32 %v7505_v7, %v5814_v9  ;;  %7506 = vmatprep.subr.bf16.mxu1 %v5890_v42  ;;  %8154 = vpow2.f32 %v5835_v12 }
0x2283   :  { %7507 = vmatpush3.bf16.msra.mxu1 %v5890_v42  ;;  %8156 = vpow2.f32 %v5831_v61 }
0x2284   :  { %v5837_v46 = vmul.f32 1.442695, %v5822_v63 }
0x2286   :  { %8158 = vpow2.f32 %v5837_v46 }
0x2287   :  { %v10564_v43 = vpop.eup %8146  ;;  %8160 = vpow2.f32 %v5833_v34 }
0x2288   :  { %v5845_v23 = vsel %vm546_vm2, %v10564_v43, 0.0  ;;  %v10568_v25 = vpop.eup %8148 }
0x2289   :  { %5846 = vadd.xlane.f32.xlu1 %v5845_v23  ;;  %v5839_v48 = vsel %vm546_vm2, %v10568_v25, 0.0 }
0x228b   :  { %v10570_v18 = vpop.eup %8150 }
0x228c   :  { %v5848_v8 = vsel %vm546_vm2, %v10570_v18, 0.0  ;;  %v10576_v62 = vpop.eup %8152 }
0x228d   :  { %5840 = vadd.xlane.f32.xlu1 %v5839_v48  ;;  %5849 = vadd.xlane.f32.xlu0 %v5848_v8  ;;  %v5842_v4 = vsel %vm546_vm2, %v10576_v62, 0.0 }
0x228f   :  { %v10578_v61 = vpop.eup %8154 }
0x2290   :  { %v5857_v54 = vsel %vm546_vm2, %v10578_v61, 0.0  ;;  %v10584_v7 = vpop.eup %8156 }
0x2291   :  { %5843 = vadd.xlane.f32.xlu0 %v5842_v4  ;;  %5858 = vadd.xlane.f32.xlu1 %v5857_v54  ;;  %v5851_v50 = vsel %vm546_vm2, %v10584_v7, 0.0 }
0x2293   :  { %v10586_v35 = vpop.eup %8158 }
0x2294   :  { %v5860_v2 = vsel %vm546_vm2, %v10586_v35, 0.0  ;;  %v10590_v57 = vpop.eup %8160 }
0x2295   :  { %5861 = vadd.xlane.f32.xlu0 %v5860_v2  ;;  %5852 = vadd.xlane.f32.xlu1 %v5851_v50  ;;  %v5854_v26 = vsel %vm546_vm2, %v10590_v57, 0.0 }
0x2299   :  { %5855 = vadd.xlane.f32.xlu0 %v5854_v26 }
0x22a6   :  { %5885 = vrot.lane.b32.xlu1 %v9823_v51, %s8325_s21  ;;  %v10930_v51 = vld [vmem:[#allocation37_spill] sm:$0xff] }
0x22aa   :  { %5883 = vrot.lane.b32.xlu1 %v9826_v0, %s8325_s21  ;;  %v10931_v0 = vld [vmem:[#allocation33_spill] sm:$0xff] }
0x22ae   :  { %4062 = vrot.lane.b32.xlu1 %v10162_v55, %s8313_s20 }
0x22af   :  { %5887 = vrot.lane.b32.xlu0 %v9834_v45, %s8325_s21  ;;  %v10932_v45 = vld [vmem:[#allocation35_spill] sm:$0xff] }
0x22b2   :  { %4066 = vrot.lane.b32.xlu1 %v10160_v39, %s8313_s20 }
0x22b3   :  { %4060 = vrot.lane.b32.xlu0 %v10158_v13, %s8313_s20 }
0x22b6   :  { %4388 = vrot.lane.b32.xlu1 %v10178_v17, %s8326_s24 }
0x22b7   :  { %4064 = vrot.lane.b32.xlu0 %v10156_v21, %s8313_s20 }
0x22ba   :  { %4392 = vrot.lane.b32.xlu1 %v10176_v44, %s8326_s24 }
0x22bb   :  { %4386 = vrot.lane.b32.xlu0 %v10174_v24, %s8326_s24 }
0x22be   :  { %4714 = vrot.lane.b32.xlu1 %v10266_v41, %s8327_s5 }
0x22bf   :  { %4390 = vrot.lane.b32.xlu0 %v10172_v10, %s8326_s24 }
0x22c2   :  { %4718 = vrot.lane.b32.xlu1 %v10264_v1, %s8327_s5 }
0x22c3   :  { %4712 = vrot.lane.b32.xlu0 %v10262_v14, %s8327_s5 }
0x22c6   :  { %4070 = vrot.lane.b32.xlu1 %v10170_v47, %s8313_s20 }
0x22c7   :  { %4716 = vrot.lane.b32.xlu0 %v10260_v30, %s8327_s5 }
0x22ca   :  { %4074 = vrot.lane.b32.xlu1 %v10168_v38, %s8313_s20 }
0x22cb   :  { %4068 = vrot.lane.b32.xlu0 %v10166_v49, %s8313_s20 }
0x22ce   :  { %4396 = vrot.lane.b32.xlu1 %v10186_v19, %s8326_s24 }
0x22cf   :  { %4072 = vrot.lane.b32.xlu0 %v10164_v11, %s8313_s20 }
0x22d2   :  { %4400 = vrot.lane.b32.xlu1 %v10184_v52, %s8326_s24 }
0x22d3   :  { %4394 = vrot.lane.b32.xlu0 %v10182_v37, %s8326_s24 }
0x22d6   :  { %4722 = vrot.lane.b32.xlu1 %v10274_v29, %s8327_s5 }
0x22d7   :  { %4398 = vrot.lane.b32.xlu0 %v10180_v56, %s8326_s24 }
0x22da   :  { %4726 = vrot.lane.b32.xlu1 %v10272_v6, %s8327_s5 }
0x22db   :  { %4720 = vrot.lane.b32.xlu0 %v10270_v59, %s8327_s5  ;;  %v7662_v59 = vld [vmem:[#allocation9 + $0x18] sm:$0xff]  }
0x22de   :  { %5330 = vrot.lane.b32.xlu1 %v10450_v60, %s8313_s20 }
0x22df   :  { %4724 = vrot.lane.b32.xlu0 %v10268_v31, %s8327_s5 }
0x22e2   :  { %5334 = vrot.lane.b32.xlu1 %v10448_v22, %s8313_s20 }
0x22e3   :  { %5328 = vrot.lane.b32.xlu0 %v10446_v16, %s8313_s20 }
0x22e6   :  { %5656 = vrot.lane.b32.xlu1 %v10544_v5, %s8326_s24 }
0x22e7   :  { %5332 = vrot.lane.b32.xlu0 %v10444_v20, %s8313_s20 }
0x22ea   :  { %5660 = vrot.lane.b32.xlu1 %v10542_v58, %s8326_s24 }
0x22eb   :  { %5654 = vrot.lane.b32.xlu0 %v10540_v28, %s8326_s24 }
0x22ee   :  { %5338 = vrot.lane.b32.xlu1 %v10458_v53, %s8313_s20  ;;  %v7663_v53 = vld [vmem:[#allocation9 + $0x10] sm:$0xff]  }
0x22ef   :  { %5658 = vrot.lane.b32.xlu0 %v10538_v3, %s8326_s24 }
0x22f2   :  { %5342 = vrot.lane.b32.xlu1 %v10456_v40, %s8313_s20 }
0x22f3   :  { %5336 = vrot.lane.b32.xlu0 %v10454_v27, %s8313_s20 }
0x22f6   :  { %5664 = vrot.lane.b32.xlu1 %v10930_v51, %s8326_s24 }
0x22f7   :  { %5340 = vrot.lane.b32.xlu0 %v10931_v0, %s8313_s20 }
0x22fb   :  { %5662 = vrot.lane.b32.xlu0 %v10932_v45, %s8326_s24 }
0x2312   :  { %v5847_v21 = vpop.xlane.xlu1 %5846 }
0x2316   :  { %v5850_v13 = vpop.xlane.xlu0 %5849  ;;  %v5841_v39 = vpop.xlane.xlu1 %5840 }
0x2317   :  { %8162 = vrcp.f32 %v5841_v39 }
0x231a   :  { %v5844_v55 = vpop.xlane.xlu0 %5843  ;;  %v5859_v11 = vpop.xlane.xlu1 %5858 }
0x231b   :  { %8164 = vrcp.f32 %v5844_v55 }
0x231c   :  { %8166 = vrcp.f32 %v5850_v13 }
0x231d   :  { %8168 = vrcp.f32 %v5847_v21 }
0x231e   :  { %v5862_v49 = vpop.xlane.xlu0 %5861  ;;  %v5853_v38 = vpop.xlane.xlu1 %5852 }
0x231f   :  { %8170 = vrcp.f32 %v5853_v38 }
0x2322   :  { %v5856_v47 = vpop.xlane.xlu0 %5855  ;;  %v5886_v10 = vpop.permute.xlu1 %5885 }
0x2323   :  { %8172 = vrcp.f32 %v5856_v47 }
0x2324   :  { %8174 = vrcp.f32 %v5862_v49  ;;  %v8163_v24 = vpop.eup %8162 }
0x2325   :  { %8176 = vrcp.f32 %v5859_v11  ;;  %v5871_v37 = vmul.f32 %v8163_v24, %v10568_v25 }
0x2326   :  { %v5888_v44 = vpop.permute.xlu0 %5887  ;;  %v5884_v17 = vpop.permute.xlu1 %5883 }
0x2327   :  { %7508 = vmatprep.subr.bf16.mxu1 %v5888_v44 }
0x2328   :  { %v8165_v56 = vpop.eup %8164  ;;  %7509 = vmatpush3.bf16.msra.mxu1 %v5888_v44 }
0x2329   :  { %7510 = vmatprep.subr.bf16.mxu1 %v5886_v10  ;;  %v5872_v52 = vmul.f32 %v8165_v56, %v10576_v62  ;;  %v8167_v19 = vpop.eup %8166 }
0x232a   :  { %v4061_v30 = vpop.permute.xlu0 %4060  ;;  %v4063_v14 = vpop.permute.xlu1 %4062  ;;  %v5874_v31 = vmul.f32 %v8167_v19, %v10570_v18 }
0x232b   :  { %4084 = vst.msk [vmem:[#allocation2] sm:$0xff] %vm1054_vm3, %v4061_v30  ;;  %v5879_v1 = vpack.c.bf16 %v5872_v52, %v5871_v37  ;;  %v8169_v41 = vpop.eup %8168  ;;  %4085 = vst.msk [vmem:[#allocation2 + $0x8] sm:$0xff] %vm1054_vm3, %v4063_v14 }
0x232c   :  { %7511 = vmatpush3.bf16.msra.mxu1 %v5886_v10  ;;  %v8171_v6 = vpop.eup %8170  ;;  %v5873_v20 = vmul.f32 %v8169_v41, %v10564_v43  ;;  %v7664_v41 = vld [vmem:[#allocation11 + $0x18] sm:$0xff]  }
0x232d   :  { %7512 = vmatprep.subr.bf16.mxu1 %v5884_v17  ;;  %7514 = vmatprep.mubr.msk.bf16.mxu1 %vm546_vm2, %v5879_v1  ;;  %v5875_v27 = vmul.f32 %v8171_v6, %v10584_v7 }
0x232e   :  { %v4065_v29 = vpop.permute.xlu0 %4064  ;;  %v4067_v16 = vpop.permute.xlu1 %4066  ;;  %v5880_v60 = vpack.c.bf16 %v5874_v31, %v5873_v20  ;;  %7542 = vmatprep.subr.bf16.mxu0 %v7664_v41  ;;  %v7665_v31 = vld [vmem:[#allocation11 + $0x10] sm:$0xff]  }
0x232f   :  { %4086 = vst.msk [vmem:[#allocation2 + $0x10] sm:$0xff] %vm1054_vm3, %v4065_v29  ;;  %4087 = vst.msk [vmem:[#allocation2 + $0x18] sm:$0xff] %vm1054_vm3, %v4067_v16  ;;  %7543 = vmatpush3.bf16.msra.mxu0 %v7664_v41 }
0x2330   :  { %v8173_v22 = vpop.eup %8172  ;;  %7513 = vmatpush3.bf16.msra.mxu1 %v5884_v17  ;;  %7544 = vmatprep.subr.bf16.mxu0 %v7665_v31 }
0x2331   :  { %v5876_v40 = vmul.f32 %v8173_v22, %v10590_v57  ;;  %7522 = vmatprep.subr.bf16.mxu1 %v7662_v59  ;;  %v8175_v3 = vpop.eup %8174  ;;  %v10933_v22 = vld [vmem:[#allocation34_spill] sm:$0xff] }
0x2332   :  { %v4387_v28 = vpop.permute.xlu0 %4386  ;;  %v4389_v58 = vpop.permute.xlu1 %4388  ;;  %v5878_v32 = vmul.f32 %v8175_v3, %v10586_v35 }
0x2333   :  { %4410 = vst.msk [vmem:[#allocation2] sm:$0xff] %vm1381_vm4, %v4387_v28  ;;  %7515 = vmatmul.mubr.msk.bf16.vlgmr.msra.gmra.mxu1 %vm546_vm2, %v5880_v60  ;;  %v5881_v5 = vpack.c.bf16 %v5876_v40, %v5875_v27  ;;  %v8177_v36 = vpop.eup %8176  ;;  %4411 = vst.msk [vmem:[#allocation2 + $0x8] sm:$0xff] %vm1381_vm4, %v4389_v58  ;;  %7545 = vmatpush3.bf16.msra.mxu0 %v7665_v31  ;;  %v10934_v40 = vld [vmem:[#allocation36_spill] sm:$0xff]  ;;  %v10747_v58 = vld [vmem:[%s10851_s6 + $0x1] ss:$0 sm:$0xff]  ;;  %s8328_s6 = smov [#allocation12]  }
0x2334   :  { %7523 = vmatpush3.bf16.msra.mxu1 %v7662_v59  ;;  %v5877_v12 = vmul.f32 %v8177_v36, %v10578_v61  ;;  %s6365_s0 = sshll.u32 %s8328_s6, 4  ;;  %s6366_s0 = int_to_ptr.vmem [resolvable:$true] %s6365_s0 }
0x2335   :  { %7518 = vmatprep.mubr.msk.bf16.mxu1 %vm546_vm2, %v5881_v5  ;;  %7524 = vmatprep.subr.bf16.mxu1 %v7663_v53  ;;  %s8279_s29 = scalar_lea.vmem %s6366_s0, 2048  ;;  %p8284_p12 = scmp.lt.s32.totalorder %s6366_s0, %s6366_s0 }
0x2336   :  { %v4391_v15 = vpop.permute.xlu0 %4390  ;;  %v4393_v33 = vpop.permute.xlu1 %4392  ;;  %v5882_v9 = vpack.c.bf16 %v5878_v32, %v5877_v12  ;;  %p8280_p11 = scmp.ne.s32.totalorder %s6366_s0, %s8279_s29  ;;  %p8285_p13 = scmp.lt.s32.totalorder %s8279_s29, %s8279_s29 }
0x2337   :  { %4412 = vst.msk [vmem:[#allocation2 + $0x10] sm:$0xff] %vm1381_vm4, %v4391_v15  ;;  %4413 = vst.msk [vmem:[#allocation2 + $0x18] sm:$0xff] %vm1381_vm4, %v4393_v33 }
0x2338   :  { %7525 = vmatpush3.bf16.msra.mxu1 %v7663_v53  ;;  %p8286_p0 = por %p8285_p13, %p8284_p12 }
0x2339   :  { %7562 = vmatprep.subr.bf16.mxu1 %v7664_v41 }
0x233a   :  { %v4713_v42 = vpop.permute.xlu0 %4712  ;;  %v4715_v63 = vpop.permute.xlu1 %4714  ;;  %p8287_p1 = pnand %p8286_p0, %p8280_p11 }
0x233b   :  { %4736 = vst.msk [vmem:[#allocation2] sm:$0xff] %vm1708_vm5, %v4713_v42  ;;  %7519 = vmatmul.mubr.msk.bf16.gmra.mxu1 %vm546_vm2, %v5882_v9  ;;  %4737 = vst.msk [vmem:[#allocation2 + $0x8] sm:$0xff] %vm1708_vm5, %v4715_v63  ;;  %v10935_v9 = vld [vmem:[#allocation17_spill] sm:$0xff]  ;;  %v10936_v63 = vld [vmem:[#allocation18_spill] sm:$0xff] }
0x233e   :  { %v4717_v34 = vpop.permute.xlu0 %4716  ;;  %v4719_v46 = vpop.permute.xlu1 %4718 }
0x233f   :  { %4738 = vst.msk [vmem:[#allocation2 + $0x10] sm:$0xff] %vm1708_vm5, %v4717_v34  ;;  %4739 = vst.msk [vmem:[#allocation2 + $0x18] sm:$0xff] %vm1708_vm5, %v4719_v46  ;;  %v10937_v46 = vld [vmem:[#allocation19_spill] sm:$0xff] }
0x2342   :  { %v4069_v43 = vpop.permute.xlu0 %4068  ;;  %v6012_v23 = vld [vmem:[#allocation2] sm:$0xff]  ;;  %v4071_v25 = vpop.permute.xlu1 %4070  ;;  %v6013_v18 = vld [vmem:[#allocation2 + $0x8] sm:$0xff] }
0x2343   :  { %4088 = vst.msk [vmem:[#allocation2 + $0x20] sm:$0xff] %vm1054_vm3, %v4069_v43  ;;  %4089 = vst.msk [vmem:[#allocation2 + $0x28] sm:$0xff] %vm1054_vm3, %v4071_v25  ;;  %v6033_v48 = vpack.c.bf16 %v6013_v18, %v6012_v23  ;;  %v10938_v23 = vld [vmem:[#allocation20_spill] sm:$0xff] }
0x2345   :  { %7526 = vmatprep.mubr.msk.bf16.mxu1 %vm146_vm0, %v6033_v48 }
0x2346   :  { %v4073_v8 = vpop.permute.xlu0 %4072  ;;  %v6014_v62 = vld [vmem:[#allocation2 + $0x10] sm:$0xff]  ;;  %v4075_v61 = vpop.permute.xlu1 %4074  ;;  %v6015_v4 = vld [vmem:[#allocation2 + $0x18] sm:$0xff] }
0x2347   :  { %4090 = vst.msk [vmem:[#allocation2 + $0x30] sm:$0xff] %vm1054_vm3, %v4073_v8  ;;  %4091 = vst.msk [vmem:[#allocation2 + $0x38] sm:$0xff] %vm1054_vm3, %v4075_v61  ;;  %v6034_v54 = vpack.c.bf16 %v6015_v4, %v6014_v62 }
0x2349   :  { %7527 = vmatmul.mubr.msk.bf16.vlgmr.msra.gmra.mxu1 %vm146_vm0, %v6034_v54 }
0x234a   :  { %v4395_v7 = vpop.permute.xlu0 %4394  ;;  %v4397_v35 = vpop.permute.xlu1 %4396  ;;  %7564 = vmatpush3.bf16.msra.mxu1 %v7664_v41 }
0x234b   :  { %4414 = vst.msk [vmem:[#allocation2 + $0x20] sm:$0xff] %vm1381_vm4, %v4395_v7  ;;  %4415 = vst.msk [vmem:[#allocation2 + $0x28] sm:$0xff] %vm1381_vm4, %v4397_v35  ;;  %7563 = vmatprep.subr.bf16.mxu1 %v7665_v31 }
0x234e   :  { %v4399_v2 = vpop.permute.xlu0 %4398  ;;  %v4401_v57 = vpop.permute.xlu1 %4400  ;;  %7565 = vmatpush3.bf16.msra.mxu1 %v7665_v31 }
0x234f   :  { %4416 = vst.msk [vmem:[#allocation2 + $0x30] sm:$0xff] %vm1381_vm4, %v4399_v2  ;;  %4417 = vst.msk [vmem:[#allocation2 + $0x38] sm:$0xff] %vm1381_vm4, %v4401_v57  ;;  %v10939_v57 = vld [vmem:[#allocation21_spill] sm:$0xff] }
0x2352   :  { %v4721_v50 = vpop.permute.xlu0 %4720  ;;  %v4723_v26 = vpop.permute.xlu1 %4722 }
0x2353   :  { %4740 = vst.msk [vmem:[#allocation2 + $0x20] sm:$0xff] %vm1708_vm5, %v4721_v50  ;;  %4741 = vst.msk [vmem:[#allocation2 + $0x28] sm:$0xff] %vm1708_vm5, %v4723_v26  ;;  %v10940_v26 = vld [vmem:[#allocation30_spill] sm:$0xff] }
0x2356   :  { %v4725_v51 = vpop.permute.xlu0 %4724  ;;  %v4727_v0 = vpop.permute.xlu1 %4726 }
0x2357   :  { %4742 = vst.msk [vmem:[#allocation2 + $0x30] sm:$0xff] %vm1708_vm5, %v4725_v51  ;;  %4743 = vst.msk [vmem:[#allocation2 + $0x38] sm:$0xff] %vm1708_vm5, %v4727_v0  ;;  %v10941_v0 = vld [vmem:[#allocation31_spill] sm:$0xff] }
0x235a   :  { %v5329_v45 = vpop.permute.xlu0 %5328  ;;  %v6016_v21 = vld [vmem:[#allocation2 + $0x20] sm:$0xff]  ;;  %v5331_v13 = vpop.permute.xlu1 %5330  ;;  %v6017_v39 = vld [vmem:[#allocation2 + $0x28] sm:$0xff] }
0x235b   :  { %5352 = vst.msk [vmem:[#allocation2 + $0x40] sm:$0xff] %vm1054_vm3, %v5329_v45  ;;  %5353 = vst.msk [vmem:[#allocation2 + $0x48] sm:$0xff] %vm1054_vm3, %v5331_v13  ;;  %v6035_v55 = vpack.c.bf16 %v6017_v39, %v6016_v21  ;;  %v10942_v21 = vld [vmem:[#allocation32_spill] sm:$0xff] }
0x235d   :  { %7530 = vmatprep.mubr.msk.bf16.mxu1 %vm146_vm0, %v6035_v55 }
0x235e   :  { %v5333_v11 = vpop.permute.xlu0 %5332  ;;  %v6018_v49 = vld [vmem:[#allocation2 + $0x30] sm:$0xff]  ;;  %v5335_v38 = vpop.permute.xlu1 %5334  ;;  %v6019_v47 = vld [vmem:[#allocation2 + $0x38] sm:$0xff] }
0x235f   :  { %5354 = vst.msk [vmem:[#allocation2 + $0x50] sm:$0xff] %vm1054_vm3, %v5333_v11  ;;  %5355 = vst.msk [vmem:[#allocation2 + $0x58] sm:$0xff] %vm1054_vm3, %v5335_v38  ;;  %v6036_v10 = vpack.c.bf16 %v6019_v47, %v6018_v49 }
0x2361   :  { %7531 = vmatmul.mubr.msk.bf16.gmra.mxu1 %vm146_vm0, %v6036_v10 }
0x2362   :  { %v5655_v24 = vpop.permute.xlu0 %5654  ;;  %v5657_v44 = vpop.permute.xlu1 %5656 }
0x2363   :  { %5678 = vst.msk [vmem:[#allocation2 + $0x40] sm:$0xff] %vm1381_vm4, %v5655_v24  ;;  %5679 = vst.msk [vmem:[#allocation2 + $0x48] sm:$0xff] %vm1381_vm4, %v5657_v44 }
0x2366   :  { %v5659_v17 = vpop.permute.xlu0 %5658  ;;  %v5661_v56 = vpop.permute.xlu1 %5660 }
0x2367   :  { %5680 = vst.msk [vmem:[#allocation2 + $0x50] sm:$0xff] %vm1381_vm4, %v5659_v17  ;;  %5681 = vst.msk [vmem:[#allocation2 + $0x58] sm:$0xff] %vm1381_vm4, %v5661_v56 }
0x236a   :  { %v5337_v37 = vpop.permute.xlu0 %5336  ;;  %v5339_v52 = vpop.permute.xlu1 %5338 }
0x236b   :  { %5356 = vst.msk [vmem:[#allocation2 + $0x60] sm:$0xff] %vm1054_vm3, %v5337_v37  ;;  %5357 = vst.msk [vmem:[#allocation2 + $0x68] sm:$0xff] %vm1054_vm3, %v5339_v52 }
0x236e   :  { %v5341_v19 = vpop.permute.xlu0 %5340  ;;  %v5343_v30 = vpop.permute.xlu1 %5342 }
0x236f   :  { %5358 = vst.msk [vmem:[#allocation2 + $0x70] sm:$0xff] %vm1054_vm3, %v5341_v19  ;;  %5359 = vst.msk [vmem:[#allocation2 + $0x78] sm:$0xff] %vm1054_vm3, %v5343_v30 }
0x2372   :  { %v5663_v14 = vpop.permute.xlu0 %5662  ;;  %v5665_v1 = vpop.permute.xlu1 %5664 }
0x2373   :  { %5682 = vst.msk [vmem:[#allocation2 + $0x60] sm:$0xff] %vm1381_vm4, %v5663_v14  ;;  %5683 = vst.msk [vmem:[#allocation2 + $0x68] sm:$0xff] %vm1381_vm4, %v5665_v1 }
0x23f3   :  { %v7516_v59 = vpop.f32.mrf.mxu1 }
0x23f4   :  { %5984 = vrot.lane.b32.xlu0 %v7516_v59, %s8327_s5 }
0x23f5   :  { %v5941_v6 = vpop.f32.mrf.mxu1 }
0x23f7   :  { %v7517_v29 = vpop.f32.mrf.mxu1 }
0x23f8   :  { %5980 = vrot.lane.b32.xlu0 %v5941_v6, %s8327_s5  ;;  %5986 = vrot.lane.b32.xlu1 %v7517_v29, %s8327_s5 }
0x23f9   :  { %v5944_v20 = vpop.f32.mrf.mxu1 }
0x23fb   :  { %v7520_v16 = vpop.f32.mrf.mxu1 }
0x23fc   :  { %5666 = vrot.lane.b32.xlu0 %v10933_v22, %s8326_s24  ;;  %5982 = vrot.lane.b32.xlu1 %v5944_v20, %s8327_s5 }
0x23fd   :  { %v5957_v60 = vpop.f32.mrf.mxu1 }
0x23ff   :  { %v7521_v27 = vpop.f32.mrf.mxu1 }
0x2400   :  { %5668 = vrot.lane.b32.xlu1 %v10934_v40, %s8326_s24  ;;  %5988 = vrot.lane.b32.xlu0 %v5957_v60, %s8327_s5 }
0x2401   :  { %v5960_v53 = vpop.f32.mrf.mxu1 }
0x2404   :  { %5992 = vrot.lane.b32.xlu0 %v7520_v16, %s8327_s5  ;;  %5990 = vrot.lane.b32.xlu1 %v5960_v53, %s8327_s5 }
0x2408   :  { %5994 = vrot.lane.b32.xlu1 %v7521_v27, %s8327_s5 }
0x2409   :  { %v7528_v3 = vpop.f32.mrf.mxu1 }
0x240a   :  { %v6128_v15 = vadd.f32 %v7528_v3, %v10747_v58 }
0x240b   :  { %v6119_v28 = vpop.f32.mrf.mxu1 }
0x240c   :  { %v6120_v36 = vadd.f32 %v10747_v58, %v6119_v28  ;;  %v6184_v25 = vadd.f32 %v6128_v15, %v10938_v23 }
0x240d   :  { %v7529_v5 = vpop.f32.mrf.mxu1 }
0x240e   :  { %v6131_v32 = vadd.f32 %v7529_v5, %v10747_v58  ;;  %v10757_v34 = vadd.f32 %v6120_v36, %v10936_v63 }
0x240f   :  { %v6122_v33 = vpop.f32.mrf.mxu1 }
0x2410   :  { %v6123_v12 = vadd.f32 %v10747_v58, %v6122_v33  ;;  %v10754_v42 = vadd.f32 %v6131_v32, %v10935_v9 }
0x2412   :  { %v10760_v43 = vadd.f32 %v6123_v12, %v10937_v46  ;;  %v6204_v48 = vpack.c.bf16 %v10754_v42, %v6184_v25 }
0x2414   :  { %v6203_v18 = vpack.c.bf16 %v10760_v43, %v10757_v34 }
0x2416   :  { %7546 = vmatprep.mubr.msk.bf16.mxu0 %vm146_vm0, %v6203_v18 }
0x2417   :  { %7547 = vmatmul.mubr.msk.bf16.vlgmr.msra.gmra.mxu0 %vm146_vm0, %v6204_v48 }
0x2421   :  { %v7532_v8 = vpop.f32.mrf.mxu1 }
0x2422   :  { %v6144_v7 = vadd.f32 %v7532_v8, %v10747_v58 }
0x2423   :  { %v6135_v62 = vpop.f32.mrf.mxu1 }
0x2424   :  { %v6136_v4 = vadd.f32 %v10747_v58, %v6135_v62  ;;  %v6188_v13 = vadd.f32 %v6144_v7, %v10942_v21  ;;  %v10943_v62 = vld [vmem:[#allocation24_spill] sm:$0xff]  ;;  %v10945_v7 = vld [vmem:[#allocation25_spill] sm:$0xff] }
0x2425   :  { %v7533_v61 = vpop.f32.mrf.mxu1 }
0x2426   :  { %v6147_v54 = vadd.f32 %v7533_v61, %v10747_v58  ;;  %v6186_v51 = vadd.f32 %v6136_v4, %v10940_v26  ;;  %v10944_v4 = vld [vmem:[#allocation23_spill] sm:$0xff] }
0x2427   :  { %v6138_v35 = vpop.f32.mrf.mxu1 }
0x2428   :  { %v6139_v2 = vadd.f32 %v10747_v58, %v6138_v35  ;;  %v10773_v50 = vadd.f32 %v6147_v54, %v10939_v57 }
0x242a   :  { %v10777_v45 = vadd.f32 %v6139_v2, %v10941_v0  ;;  %v6206_v55 = vpack.c.bf16 %v10773_v50, %v6188_v13  ;;  %v10946_v2 = vld [vmem:[#allocation22_spill] sm:$0xff] }
0x242c   :  { %v6205_v39 = vpack.c.bf16 %v10777_v45, %v6186_v51 }
0x242e   :  { %7550 = vmatprep.mubr.msk.bf16.mxu0 %vm146_vm0, %v6205_v39 }
0x242f   :  { %7551 = vmatmul.mubr.msk.bf16.gmra.mxu0 %vm146_vm0, %v6206_v55 }
0x2466   :  { %v5985_v11 = vpop.permute.xlu0 %5984 }
0x2467   :  { %6006 = vst.msk [vmem:[#allocation2 + $0x50] sm:$0xff] %vm1708_vm5, %v5985_v11 }
0x246a   :  { %v5981_v49 = vpop.permute.xlu0 %5980  ;;  %v5987_v38 = vpop.permute.xlu1 %5986 }
0x246b   :  { %6004 = vst.msk [vmem:[#allocation2 + $0x40] sm:$0xff] %vm1708_vm5, %v5981_v49  ;;  %6007 = vst.msk [vmem:[#allocation2 + $0x58] sm:$0xff] %vm1708_vm5, %v5987_v38  ;;  %v10947_v49 = vld [vmem:[#allocation28_spill] sm:$0xff] }
0x246e   :  { %v5667_v47 = vpop.permute.xlu0 %5666  ;;  %v5983_v10 = vpop.permute.xlu1 %5982  ;;  %v6022_v14 = vld [vmem:[#allocation2 + $0x50] sm:$0xff] }
0x246f   :  { %5684 = vst.msk [vmem:[#allocation2 + $0x70] sm:$0xff] %vm1381_vm4, %v5667_v47  ;;  %v10948_v47 = vld [vmem:[#allocation27_spill] sm:$0xff] }
0x2470   :  { %6005 = vst.msk [vmem:[#allocation2 + $0x48] sm:$0xff] %vm1708_vm5, %v5983_v10 }
0x2472   :  { %v5989_v24 = vpop.permute.xlu0 %5988  ;;  %v5669_v44 = vpop.permute.xlu1 %5668  ;;  %v6023_v17 = vld [vmem:[#allocation2 + $0x58] sm:$0xff]  ;;  %v6020_v52 = vld [vmem:[#allocation2 + $0x40] sm:$0xff] }
0x2473   :  { %6008 = vst.msk [vmem:[#allocation2 + $0x60] sm:$0xff] %vm1708_vm5, %v5989_v24  ;;  %v6038_v1 = vpack.c.bf16 %v6023_v17, %v6022_v14  ;;  %v10949_v24 = vld [vmem:[#allocation29_spill] sm:$0xff]  ;;  %v10950_v17 = vld [vmem:[#allocation26_spill] sm:$0xff] }
0x2474   :  { %5685 = vst.msk [vmem:[#allocation2 + $0x78] sm:$0xff] %vm1381_vm4, %v5669_v44 }
0x2476   :  { %v5993_v56 = vpop.permute.xlu0 %5992  ;;  %v5991_v37 = vpop.permute.xlu1 %5990 }
0x2477   :  { %v6021_v19 = vld [vmem:[#allocation2 + $0x48] sm:$0xff]  ;;  %6010 = vst.msk [vmem:[#allocation2 + $0x70] sm:$0xff] %vm1708_vm5, %v5993_v56  ;;  %6009 = vst.msk [vmem:[#allocation2 + $0x68] sm:$0xff] %vm1708_vm5, %v5991_v37 }
0x2478   :  { %v6037_v30 = vpack.c.bf16 %v6021_v19, %v6020_v52 }
0x247a   :  { %7534 = vmatprep.mubr.msk.bf16.mxu1 %vm146_vm0, %v6037_v30  ;;  %v5995_v41 = vpop.permute.xlu1 %5994  ;;  %v6024_v31 = vld [vmem:[#allocation2 + $0x60] sm:$0xff] }
0x247b   :  { %7535 = vmatmul.mubr.msk.bf16.gmra.mxu1 %vm146_vm0, %v6038_v1  ;;  %6011 = vst.msk [vmem:[#allocation2 + $0x78] sm:$0xff] %vm1708_vm5, %v5995_v41 }
0x247e   :  { %v6025_v59 = vld [vmem:[#allocation2 + $0x68] sm:$0xff]  ;;  %v6026_v29 = vld [vmem:[#allocation2 + $0x70] sm:$0xff] }
0x247f   :  { %v6039_v6 = vpack.c.bf16 %v6025_v59, %v6024_v31 }
0x2481   :  { %7538 = vmatprep.mubr.msk.bf16.mxu1 %vm146_vm0, %v6039_v6 }
0x2482   :  { %v6027_v20 = vld [vmem:[#allocation2 + $0x78] sm:$0xff] }
0x2483   :  { %v6040_v16 = vpack.c.bf16 %v6027_v20, %v6026_v29 }
0x2485   :  { %7539 = vmatmul.mubr.msk.bf16.gmra.mxu1 %vm146_vm0, %v6040_v16 }
0x24d7   :  { %v7548_v22 = vpop.f32.mrf.mxu0 }
0x24d8   :  { %v6290_v60 = vadd.f32 %v7548_v22, %v6184_v25 }
0x24d9   :  { %v6281_v27 = vpop.f32.mrf.mxu0 }
0x24da   :  { %6346 = vst.msk [vmem:[#allocation12 + $0x10] sm:$0xff] %vm146_vm0, %v6290_v60  ;;  %v6282_v40 = vadd.f32 %v6281_v27, %v10757_v34 }
0x24db   :  { %v7549_v53 = vpop.f32.mrf.mxu0 }
0x24dc   :  { %6344 = vst.msk [vmem:[#allocation12] sm:$0xff] %vm146_vm0, %v6282_v40  ;;  %v6293_v3 = vadd.f32 %v7549_v53, %v10754_v42 }
0x24dd   :  { %v6284_v28 = vpop.f32.mrf.mxu0 }
0x24de   :  { %6347 = vst.msk [vmem:[#allocation12 + $0x18] sm:$0xff] %vm146_vm0, %v6293_v3  ;;  %v6285_v5 = vadd.f32 %v6284_v28, %v10760_v43 }
0x24e0   :  { %6345 = vst.msk [vmem:[#allocation12 + $0x8] sm:$0xff] %vm146_vm0, %v6285_v5 }
0x24ef   :  { %v7552_v36 = vpop.f32.mrf.mxu0 }
0x24f0   :  { %v6306_v32 = vadd.f32 %v7552_v36, %v6188_v13 }
0x24f1   :  { %v6297_v15 = vpop.f32.mrf.mxu0 }
0x24f2   :  { %6350 = vst.msk [vmem:[#allocation12 + $0x30] sm:$0xff] %vm146_vm0, %v6306_v32  ;;  %v6298_v33 = vadd.f32 %v6297_v15, %v6186_v51 }
0x24f3   :  { %v7553_v12 = vpop.f32.mrf.mxu0 }
0x24f4   :  { %6348 = vst.msk [vmem:[#allocation12 + $0x20] sm:$0xff] %vm146_vm0, %v6298_v33  ;;  %v6309_v9 = vadd.f32 %v7553_v12, %v10773_v50 }
0x24f5   :  { %v6300_v63 = vpop.f32.mrf.mxu0 }
0x24f6   :  { %6351 = vst.msk [vmem:[#allocation12 + $0x38] sm:$0xff] %vm146_vm0, %v6309_v9  ;;  %v6301_v42 = vadd.f32 %v6300_v63, %v10777_v45 }
0x24f8   :  { %6349 = vst.msk [vmem:[#allocation12 + $0x28] sm:$0xff] %vm146_vm0, %v6301_v42 }
0x253b   :  { %v7536_v34 = vpop.f32.mrf.mxu1 }
0x253c   :  { %v6160_v18 = vadd.f32 %v7536_v34, %v10747_v58 }
0x253d   :  { %v6151_v46 = vpop.f32.mrf.mxu1 }
0x253e   :  { %v6152_v23 = vadd.f32 %v10747_v58, %v6151_v46  ;;  %v6192_v57 = vadd.f32 %v6160_v18, %v10946_v2 }
0x253f   :  { %v7537_v43 = vpop.f32.mrf.mxu1 }
0x2540   :  { %v6163_v25 = vadd.f32 %v7537_v43, %v10747_v58  ;;  %v6190_v54 = vadd.f32 %v6152_v23, %v10944_v4 }
0x2541   :  { %v6154_v48 = vpop.f32.mrf.mxu1 }
0x2542   :  { %v6155_v8 = vadd.f32 %v10747_v58, %v6154_v48  ;;  %v6193_v61 = vadd.f32 %v6163_v25, %v10943_v62 }
0x2544   :  { %v6191_v35 = vadd.f32 %v6155_v8, %v10945_v7  ;;  %v6208_v51 = vpack.c.bf16 %v6193_v61, %v6192_v57 }
0x2545   :  { %v7540_v26 = vpop.f32.mrf.mxu1 }
0x2546   :  { %v6207_v50 = vpack.c.bf16 %v6191_v35, %v6190_v54  ;;  %v6176_v39 = vadd.f32 %v7540_v26, %v10747_v58 }
0x2547   :  { %v6167_v0 = vpop.f32.mrf.mxu1 }
0x2548   :  { %7554 = vmatprep.mubr.msk.bf16.mxu0 %vm146_vm0, %v6207_v50  ;;  %v6168_v21 = vadd.f32 %v10747_v58, %v6167_v0  ;;  %v6196_v56 = vadd.f32 %v6176_v39, %v10950_v17 }
0x2549   :  { %7555 = vmatmul.mubr.msk.bf16.gmra.mxu0 %vm146_vm0, %v6208_v51  ;;  %v7541_v45 = vpop.f32.mrf.mxu1 }
0x254a   :  { %v6179_v13 = vadd.f32 %v7541_v45, %v10747_v58  ;;  %v6194_v10 = vadd.f32 %v6168_v21, %v10948_v47 }
0x254b   :  { %v6170_v55 = vpop.f32.mrf.mxu1 }
0x254c   :  { %v6171_v11 = vadd.f32 %v10747_v58, %v6170_v55  ;;  %v6197_v38 = vadd.f32 %v6179_v13, %v10947_v49 }
0x254e   :  { %v6195_v44 = vadd.f32 %v6171_v11, %v10949_v24  ;;  %v6210_v52 = vpack.c.bf16 %v6197_v38, %v6196_v56 }
0x2550   :  { %v6209_v37 = vpack.c.bf16 %v6195_v44, %v6194_v10 }
0x2552   :  { %7558 = vmatprep.mubr.msk.bf16.mxu1 %vm146_vm0, %v6209_v37 }
0x2553   :  { %7559 = vmatmul.mubr.msk.bf16.vlgmr.msra.gmra.mxu1 %vm146_vm0, %v6210_v52 }
0x2609   :  { %v7556_v19 = vpop.f32.mrf.mxu0 }
0x260a   :  { %v6322_v30 = vadd.f32 %v7556_v19, %v6192_v57 }
0x260b   :  { %v6313_v14 = vpop.f32.mrf.mxu0 }
0x260c   :  { %6354 = vst.msk [vmem:[#allocation12 + $0x50] sm:$0xff] %vm146_vm0, %v6322_v30  ;;  %v6314_v58 = vadd.f32 %v6313_v14, %v6190_v54 }
0x260d   :  { %v7557_v1 = vpop.f32.mrf.mxu0 }
0x260e   :  { %6352 = vst.msk [vmem:[#allocation12 + $0x40] sm:$0xff] %vm146_vm0, %v6314_v58  ;;  %v6325_v41 = vadd.f32 %v7557_v1, %v6193_v61 }
0x260f   :  { %v6316_v31 = vpop.f32.mrf.mxu0 }
0x2610   :  { %6355 = vst.msk [vmem:[#allocation12 + $0x58] sm:$0xff] %vm146_vm0, %v6325_v41  ;;  %v6317_v59 = vadd.f32 %v6316_v31, %v6191_v35 }
0x2612   :  { %6353 = vst.msk [vmem:[#allocation12 + $0x48] sm:$0xff] %vm146_vm0, %v6317_v59 }
0x2613   :  { %v7560_v6 = vpop.f32.mrf.mxu1 }
0x2614   :  { %v6338_v29 = vadd.f32 %v7560_v6, %v6196_v56 }
0x2615   :  { %v6329_v20 = vpop.f32.mrf.mxu1 }
0x2616   :  { %6358 = vst.msk [vmem:[#allocation12 + $0x70] sm:$0xff] %vm146_vm0, %v6338_v29  ;;  %v6330_v16 = vadd.f32 %v6329_v20, %v6194_v10 }
0x2617   :  { %v7561_v22 = vpop.f32.mrf.mxu1 }
0x2618   :  { %6356 = vst.msk [vmem:[#allocation12 + $0x60] sm:$0xff] %vm146_vm0, %v6330_v16  ;;  %v6341_v60 = vadd.f32 %v7561_v22, %v6197_v38 }
0x2619   :  { %v6332_v27 = vpop.f32.mrf.mxu1 }
0x261a   :  { %6359 = vst.msk [vmem:[#allocation12 + $0x78] sm:$0xff] %vm146_vm0, %v6341_v60  ;;  %v6333_v40 = vadd.f32 %v6332_v27, %v6195_v44 }
0x261c   :  { %6357 = vst.msk [vmem:[#allocation12 + $0x68] sm:$0xff] %vm146_vm0, %v6333_v40 }
0x261d   :  { %8290 = shalt.err (!%p8287_p1)
}
0x261e   :  { %6371 = dma.vmem_to_hbm [thread:$0]  %s6366_s0, 2048, %s10853_s8, [#allocation5], %s8312_s19, %s8312_s19, %s8313_s20  }
0x261f   :  { %8305 = dma.done.wait [#allocation5], 2048  }
0x2620   :  { %8306 = vsyncadd [#allocation5], 4294965248 }
0x2621   :  { %6375 = vsyncpa [#allocation4], 1 }
0x2622   :  { %6376 = vsyncpa [#allocation7], 1 }
0x2623   :  { %6377 = vsyncpa [#allocation10], 1 }
0x2624   :  { %6378 = vsyncpa [#allocation5], 1 }

</bundles_post_ra>
